<compile_context>
chip_gen: v7x
topology: tpu7x:2x2x1
jax: 0.10.0
libtpu: 0.0.40
codegen_flags: <defaults>
</compile_context>

<pallas_src>
import jax
import jax.numpy as jnp
from jax.experimental import pallas as pl
from jax.experimental.pallas import tpu as pltpu

BN_EPS = 1e-5
VMEM_LIMIT = 32 * 1024 * 1024


# ----------------------- fc1 + BatchNorm1 + ReLU (fused) ----------------------

def _fc_bn_relu_kernel(x_ref, w_ref, b_ref, g_ref, bb_ref, o_ref):
    # h columns are (pixel-major, channel-minor): col = pix*C + c
    h = (jnp.dot(x_ref[...], w_ref[...], preferred_element_type=jnp.float32)
         + b_ref[...])
    C = g_ref.shape[-1]
    P = h.shape[-1] // C                      # number of spatial pixels (16)
    n = h.shape[0] * P                        # BN sample count per channel

    s = jnp.zeros((1, C), jnp.float32)
    ss = jnp.zeros((1, C), jnp.float32)
    for p in range(P):                        # static lane slices (offsets % 128 == 0)
        hp = h[:, p * C:(p + 1) * C]
        s = s + jnp.sum(hp, axis=0, keepdims=True)
        ss = ss + jnp.sum(hp * hp, axis=0, keepdims=True)

    mean = s * (1.0 / n)
    var = ss * (1.0 / n) - mean * mean        # biased (training-mode) variance
    scale = jax.lax.rsqrt(var + BN_EPS) * g_ref[...]
    shift = bb_ref[...] - mean * scale
    for p in range(P):
        hp = h[:, p * C:(p + 1) * C]
        o_ref[:, p * C:(p + 1) * C] = jnp.maximum(hp * scale + shift,
                                                  0.0).astype(o_ref.dtype)


def fc_bn_relu(x, w, b, gamma, beta):
    """x:(B,Kp) bf16, w:(Kp,N) bf16 column-permuted, b:(1,N) f32 -> (B,N) bf16."""
    M, K = x.shape
    N = w.shape[1]
    C = gamma.shape[0]
    return pl.pallas_call(
        _fc_bn_relu_kernel,
        out_shape=jax.ShapeDtypeStruct((M, N), jnp.bfloat16),
        grid=(1,),
        in_specs=[
            pl.BlockSpec((M, K), lambda i: (0, 0)),
            pl.BlockSpec((K, N), lambda i: (0, 0)),
            pl.BlockSpec((1, N), lambda i: (0, 0)),
            pl.BlockSpec((1, C), lambda i: (0, 0)),
            pl.BlockSpec((1, C), lambda i: (0, 0)),
        ],
        out_specs=pl.BlockSpec((M, N), lambda i: (0, 0)),
        compiler_params=pltpu.CompilerParams(
            dimension_semantics=("arbitrary",), vmem_limit_bytes=VMEM_LIMIT),
    )(x, w, b, gamma.reshape(1, C), beta.reshape(1, C))


# ------------- sub-pixel ConvTranspose2d(k=4, s=2, p=1) kernels --------------
# For output parity (ph, pw) in {0,1}^2 the transposed conv is a dense 2x2 conv
# over the 1-padded input xp:
#   out[n, 2i+ph, 2j+pw, :] =
#     sum_{dr,dc} xp[n, i+ph+dr, j+pw+dc, :] @ W[:, :, 3-ph-2dr, 3-pw-2dc]
# i.e. one (B*H*W, 4*Cin) @ (4*Cin, Cout) matmul per parity on the MXU.

def _deconv_bn_relu_kernel(p_ref, w_ref, g_ref, b_ref, o_ref, s_ref, ss_ref):
    p = pl.program_id(0)
    # Raw sub-pixel conv output for this parity (f32 accumulation).  The
    # ConvTranspose2d bias (per-channel constant) is exactly cancelled by the
    # training-mode BN mean subtraction below, so it is omitted.
    y = jnp.dot(p_ref[0], w_ref[0], preferred_element_type=jnp.float32)

    @pl.when(p == 0)
    def _():
        s_ref[...] = jnp.zeros_like(s_ref)
        ss_ref[...] = jnp.zeros_like(ss_ref)

    s_ref[...] += jnp.sum(y, axis=0, keepdims=True)
    ss_ref[...] += jnp.sum(y * y, axis=0, keepdims=True)
    o_ref[p] = y.astype(o_ref.dtype)          # resident output block, no extra scratch

    @pl.when(p == pl.num_programs(0) - 1)
    def _():
        n_pix = o_ref.shape[0] * o_ref.shape[1]   # all N*OH*OW output pixels
        mean = s_ref[...] * (1.0 / n_pix)
        var = ss_ref[...] * (1.0 / n_pix) - mean * mean   # biased variance
        scale = jax.lax.rsqrt(var + BN_EPS) * g_ref[...]
        shift = b_ref[...] - mean * scale
        for k in range(o_ref.shape[0]):
            yk = o_ref[k].astype(jnp.float32)
            o_ref[k] = jnp.maximum(yk * scale + shift, 0.0).astype(o_ref.dtype)


def deconv_bn_relu(patches, wmats, gamma, beta):
    P, M, K4 = patches.shape
    C = wmats.shape[-1]
    return pl.pallas_call(
        _deconv_bn_relu_kernel,
        out_shape=jax.ShapeDtypeStruct((P, M, C), jnp.bfloat16),
        grid=(P,),
        in_specs=[
            pl.BlockSpec((1, M, K4), lambda p: (p, 0, 0)),
            pl.BlockSpec((1, K4, C), lambda p: (p, 0, 0)),
            pl.BlockSpec((1, C), lambda p: (0, 0)),
            pl.BlockSpec((1, C), lambda p: (0, 0)),
        ],
        # Whole (P, M, C) output block stays resident until the last step.
        out_specs=pl.BlockSpec((P, M, C), lambda p: (0, 0, 0)),
        scratch_shapes=[pltpu.VMEM((1, C), jnp.float32),   # per-channel sum
                        pltpu.VMEM((1, C), jnp.float32)],  # per-channel sum of squares
        compiler_params=pltpu.CompilerParams(
            dimension_semantics=("arbitrary",), vmem_limit_bytes=VMEM_LIMIT),
    )(patches, wmats, gamma.reshape(1, C), beta.reshape(1, C))


def _deconv_tanh_kernel(p_ref, w_ref, b_ref, o_ref):
    y = (jnp.dot(p_ref[0], w_ref[0], preferred_element_type=jnp.float32)
         + b_ref[...])
    o_ref[0] = jnp.tanh(y)


def deconv_tanh(patches, wmats, bias):
    P, M, K4 = patches.shape
    C = wmats.shape[-1]
    return pl.pallas_call(
        _deconv_tanh_kernel,
        out_shape=jax.ShapeDtypeStruct((P, M, C), jnp.float32),
        grid=(P,),
        in_specs=[
            pl.BlockSpec((1, M, K4), lambda p: (p, 0, 0)),
            pl.BlockSpec((1, K4, C), lambda p: (p, 0, 0)),
            pl.BlockSpec((1, C), lambda p: (0, 0)),
        ],
        out_specs=pl.BlockSpec((1, M, C), lambda p: (p, 0, 0)),
        compiler_params=pltpu.CompilerParams(
            dimension_semantics=("parallel",), vmem_limit_bytes=VMEM_LIMIT),
    )(patches, wmats, bias.reshape(1, C))


# ------------------------------ XLA-side glue --------------------------------
# TODO(synk): patch extraction / parity interleave could move inside the deconv
# kernels (index_map off the parity-stacked layout) to cut the remaining glue.

def _subpixel_patches(x_nhwc):
    """im2col for the 4 sub-pixel 2x2 convolutions: (4, B*H*W, 4*Cin) (bf16)."""
    B, H, W, Cin = x_nhwc.shape
    xp = jnp.pad(x_nhwc, ((0, 0), (1, 1), (1, 1), (0, 0)))
    pats = []
    for ph in range(2):
        for pw in range(2):
            cols = [xp[:, ph + dr:ph + dr + H, pw + dc:pw + dc + W, :]
                    for dr in range(2) for dc in range(2)]
            pats.append(jnp.stack(cols, axis=3).reshape(B * H * W, 4 * Cin))
    return jnp.stack(pats, axis=0).astype(jnp.bfloat16)


def _subpixel_weights(w_deconv, cout_pad=None):
    """Per-parity (4*Cin, Cout[_pad]) bf16 weight matrices: (4, 4*Cin, Cout[_pad])."""
    Cin, Cout, _, _ = w_deconv.shape            # PyTorch layout (Cin, Cout, 4, 4)
    mats = []
    for ph in range(2):
        for pw in range(2):
            rows = [w_deconv[:, :, 3 - ph - 2 * dr, 3 - pw - 2 * dc]
                    for dr in range(2) for dc in range(2)]
            m = jnp.concatenate(rows, axis=0)   # (4*Cin, Cout)
            if cout_pad is not None and cout_pad != Cout:
                m = jnp.pad(m, ((0, 0), (0, cout_pad - Cout)))
            mats.append(m)
    return jnp.stack(mats, axis=0).astype(jnp.bfloat16)


def _interleave_parities(y, B, H, W):
    """(4, B*H*W, C) parity-stacked -> (B, 2H, 2W, C) NHWC."""
    C = y.shape[-1]
    y = y.reshape(2, 2, B, H, W, C)             # (ph, pw, b, i, j, c)
    y = y.transpose(2, 3, 0, 4, 1, 5)           # (b, i, ph, j, pw, c)
    return y.reshape(B, 2 * H, 2 * W, C)


# ------------------------------- Generator -----------------------------------

def init_params(key):
    ks = jax.random.split(key, 14)
    f32 = jnp.float32

    def nrm(k, shape, s=0.02):
        return s * jax.random.normal(k, shape, f32)

    return {
        "fc1_w": nrm(ks[0], (100, 8192)),
        "fc1_b": nrm(ks[1], (8192,), 0.1),
        "bn1_g": 1.0 + nrm(ks[2], (512,), 0.1), "bn1_b": nrm(ks[3], (512,), 0.1),
        "dc1_w": nrm(ks[4], (512, 256, 4, 4)),
        "dc1_b": nrm(ks[5], (256,), 0.1),
        "bn2_g": 1.0 + nrm(ks[6], (256,), 0.1), "bn2_b": nrm(ks[7], (256,), 0.1),
        "dc2_w": nrm(ks[8], (256, 128, 4, 4)),
        "dc2_b": nrm(ks[9], (128,), 0.1),
        "bn3_g": 1.0 + nrm(ks[10], (128,), 0.1), "bn3_b": nrm(ks[11], (128,), 0.1),
        "dc3_w": nrm(ks[12], (128, 3, 4, 4)),
        "dc3_b": nrm(ks[13], (3,), 0.1),
    }


@jax.jit
def generator_forward(params, x):
    B = x.shape[0]
    K = params["fc1_w"].shape[0]                 # 100
    N = params["fc1_w"].shape[1]                 # 8192
    C1 = params["bn1_g"].shape[0]                # 512
    P1 = N // C1                                 # 16 (= 4x4 pixels)
    Kp = 128                                     # padded contraction dim

    # --- fc1 + BN1 + ReLU (fused, no post-fc transpose) ---
    # Permute fc1 columns so output col = pix*C1 + c (== original col c*P1 + pix):
    # then (B, 8192) bf16 reshapes directly to NHWC (B, 4, 4, 512).
    w1 = params["fc1_w"].reshape(K, C1, P1).transpose(0, 2, 1).reshape(K, N)
    w1 = jnp.pad(w1, ((0, Kp - K), (0, 0))).astype(jnp.bfloat16)
    b1 = params["fc1_b"].reshape(C1, P1).transpose(1, 0).reshape(1, N)   # stays f32
    xp = jnp.pad(x, ((0, 0), (0, Kp - K))).astype(jnp.bfloat16)

    h = fc_bn_relu(xp, w1, b1, params["bn1_g"], params["bn1_b"])
    h = h.reshape(B, 4, 4, C1)                                   # NHWC bf16

    # deconv1 (512 -> 256, 4x4 -> 8x8) with fused BN2 + ReLU
    y = deconv_bn_relu(_subpixel_patches(h), _subpixel_weights(params["dc1_w"]),
                       params["bn2_g"], params["bn2_b"])
    h = _interleave_parities(y, B, 4, 4)                         # (B, 8, 8, 256) bf16

    # deconv2 (256 -> 128, 8x8 -> 16x16) with fused BN3 + ReLU
    y = deconv_bn_relu(_subpixel_patches(h), _subpixel_weights(params["dc2_w"]),
                       params["bn3_g"], params["bn3_b"])
    h = _interleave_parities(y, B, 8, 8)                         # (B, 16, 16, 128) bf16

    # deconv3 (128 -> 3, 16x16 -> 32x32) with fused tanh; Cout padded 3 -> 128 so
    # output stores are lane-dense; real channels sliced back afterwards.
    b3 = jnp.pad(params["dc3_b"], (0, 125))
    y = deconv_tanh(_subpixel_patches(h),
                    _subpixel_weights(params["dc3_w"], cout_pad=128), b3)
    h = _interleave_parities(y[..., :3], B, 16, 16)              # (B, 32, 32, 3) f32

    return h.transpose(0, 3, 1, 2).astype(jnp.float32)           # NCHW (B, 3, 32, 32)


# --------------------- pure-JAX reference (PyTorch semantics) -----------------

def _ref_conv_transpose(x_nchw, w, b, stride=2, padding=1):
    kh = w.shape[2]
    w_flip = jnp.transpose(w, (1, 0, 2, 3))[:, :, ::-1, ::-1]    # (Cout, Cin, kH, kW)
    pad = kh - 1 - padding
    y = jax.lax.conv_general_dilated(
        x_nchw, w_flip, window_strides=(1, 1),
        padding=[(pad, pad), (pad, pad)], lhs_dilation=(stride, stride),
        dimension_numbers=("NCHW", "OIHW", "NCHW"),
        precision=jax.lax.Precision.HIGHEST)
    return y + b.reshape(1, -1, 1, 1)


def _ref_bn_relu(x_nchw, g, b, relu=True):
    mean = jnp.mean(x_nchw, axis=(0, 2, 3), keepdims=True)
    var = jnp.mean(jnp.square(x_nchw - mean), axis=(0, 2, 3), keepdims=True)
    y = ((x_nchw - mean) * jax.lax.rsqrt(var + BN_EPS) * g.reshape(1, -1, 1, 1)
         + b.reshape(1, -1, 1, 1))
    return jnp.maximum(y, 0.0) if relu else y


@jax.jit
def reference_forward(params, x):
    B = x.shape[0]
    h = x @ params["fc1_w"] + params["fc1_b"]
    h = h.reshape(B, 512, 4, 4)
    h = _ref_bn_relu(h, params["bn1_g"], params["bn1_b"])
    h = _ref_conv_transpose(h, params["dc1_w"], params["dc1_b"])
    h = _ref_bn_relu(h, params["bn2_g"], params["bn2_b"])
    h = _ref_conv_transpose(h, params["dc2_w"], params["dc2_b"])
    h = _ref_bn_relu(h, params["bn3_g"], params["bn3_b"])
    h = _ref_conv_transpose(h, params["dc3_w"], params["dc3_b"])
    return jnp.tanh(h)


if __name__ == "__main__":
    key = jax.random.PRNGKey(0)
    pkey, xkey = jax.random.split(key)
    params = init_params(pkey)
    x = jax.random.normal(xkey, (2, 100), jnp.float32)   # latent vectors

    out = jax.block_until_ready(generator_forward(params, x))

    assert out.shape == (2, 3, 32, 32), out.shape
    assert out.dtype == jnp.float32
    assert bool(jnp.all(jnp.isfinite(out)))
    assert bool(jnp.all(jnp.abs(out) <= 1.0))            # tanh range

    ref = jax.block_until_ready(reference_forward(params, x))
    err = float(jnp.max(jnp.abs(out - ref)))
    assert err < 6e-2, f"max abs err vs PyTorch-semantics reference: {err}"
    print("KERNEL_OK")
</pallas_src>

<mosaic_0001>
module attributes {stable_mosaic.version = 11 : i64} {
  func.func @_fc_bn_relu_kernel(%arg0: i32, %arg1: memref<2x128xbf16, #tpu.memory_space<vmem>>, %arg2: memref<128x8192xbf16, #tpu.memory_space<vmem>>, %arg3: memref<1x8192xf32, #tpu.memory_space<vmem>>, %arg4: memref<1x512xf32, #tpu.memory_space<vmem>>, %arg5: memref<1x512xf32, #tpu.memory_space<vmem>>, %arg6: memref<2x8192xbf16, #tpu.memory_space<vmem>>) attributes {dimension_semantics = [#tpu.dimension_semantics<arbitrary>], iteration_bounds = array<i64: 1>, scalar_prefetch = 0 : i64, scratch_operands = 0 : i64, tpu.core_type = #tpu.core_type<tc>, window_params = [{pipeline_mode = #tpu.pipeline_mode<synchronous>, transform_indices = @transform_0, window_bounds = array<i64: 2, 128>}, {pipeline_mode = #tpu.pipeline_mode<synchronous>, transform_indices = @transform_1, window_bounds = array<i64: 128, 8192>}, {pipeline_mode = #tpu.pipeline_mode<synchronous>, transform_indices = @transform_2, window_bounds = array<i64: 1, 8192>}, {pipeline_mode = #tpu.pipeline_mode<synchronous>, transform_indices = @transform_3, window_bounds = array<i64: 1, 512>}, {pipeline_mode = #tpu.pipeline_mode<synchronous>, transform_indices = @transform_4, window_bounds = array<i64: 1, 512>}, {pipeline_mode = #tpu.pipeline_mode<synchronous>, transform_indices = @transform_5, window_bounds = array<i64: 2, 8192>}]} {
    %c0 = arith.constant 0 : index
    %c0_0 = arith.constant 0 : index
    %0 = vector.load %arg1[%c0, %c0_0] : memref<2x128xbf16, #tpu.memory_space<vmem>>, vector<2x128xbf16>
    %c0_1 = arith.constant 0 : index
    %c0_2 = arith.constant 0 : index
    %1 = vector.load %arg2[%c0_1, %c0_2] : memref<128x8192xbf16, #tpu.memory_space<vmem>>, vector<128x8192xbf16>
    %cst = arith.constant dense<0.000000e+00> : vector<2x8192xf32>
    %2 = tpu.matmul %0, %1, %cst {dimension_numbers = #tpu.dot_dimension_numbers<[1], [0], [0], [1], [0, 0, 1, 1], [], []>} : vector<2x128xbf16>, vector<128x8192xbf16>, vector<2x8192xf32> -> vector<2x8192xf32>
    %c0_3 = arith.constant 0 : index
    %c0_4 = arith.constant 0 : index
    %3 = vector.load %arg3[%c0_3, %c0_4] : memref<1x8192xf32, #tpu.memory_space<vmem>>, vector<1x8192xf32>
    %4 = vector.broadcast %3 : vector<1x8192xf32> to vector<2x8192xf32>
    %5 = arith.addf %2, %4 : vector<2x8192xf32>
    %cst_5 = arith.constant 0.000000e+00 : f32
    %6 = vector.broadcast %cst_5 : f32 to vector<1x512xf32>
    %cst_6 = arith.constant 0.000000e+00 : f32
    %7 = vector.broadcast %cst_6 : f32 to vector<1x512xf32>
    %8 = vector.extract_strided_slice %5 {offsets = [0, 0], sizes = [2, 512], strides = [1, 1]} : vector<2x8192xf32> to vector<2x512xf32>
    %cst_7 = arith.constant dense<0.000000e+00> : vector<512xf32>
    %9 = vector.multi_reduction <add>, %8, %cst_7 [0] : vector<2x512xf32> to vector<512xf32>
    %10 = vector.shape_cast %9 : vector<512xf32> to vector<1x512xf32>
    %11 = arith.addf %6, %10 : vector<1x512xf32>
    %12 = arith.mulf %8, %8 : vector<2x512xf32>
    %cst_8 = arith.constant dense<0.000000e+00> : vector<512xf32>
    %13 = vector.multi_reduction <add>, %12, %cst_8 [0] : vector<2x512xf32> to vector<512xf32>
    %14 = vector.shape_cast %13 : vector<512xf32> to vector<1x512xf32>
    %15 = arith.addf %7, %14 : vector<1x512xf32>
    %16 = vector.extract_strided_slice %5 {offsets = [0, 512], sizes = [2, 512], strides = [1, 1]} : vector<2x8192xf32> to vector<2x512xf32>
    %cst_9 = arith.constant dense<0.000000e+00> : vector<512xf32>
    %17 = vector.multi_reduction <add>, %16, %cst_9 [0] : vector<2x512xf32> to vector<512xf32>
    %18 = vector.shape_cast %17 : vector<512xf32> to vector<1x512xf32>
    %19 = arith.addf %11, %18 : vector<1x512xf32>
    %20 = arith.mulf %16, %16 : vector<2x512xf32>
    %cst_10 = arith.constant dense<0.000000e+00> : vector<512xf32>
    %21 = vector.multi_reduction <add>, %20, %cst_10 [0] : vector<2x512xf32> to vector<512xf32>
    %22 = vector.shape_cast %21 : vector<512xf32> to vector<1x512xf32>
    %23 = arith.addf %15, %22 : vector<1x512xf32>
    %24 = vector.extract_strided_slice %5 {offsets = [0, 1024], sizes = [2, 512], strides = [1, 1]} : vector<2x8192xf32> to vector<2x512xf32>
    %cst_11 = arith.constant dense<0.000000e+00> : vector<512xf32>
    %25 = vector.multi_reduction <add>, %24, %cst_11 [0] : vector<2x512xf32> to vector<512xf32>
    %26 = vector.shape_cast %25 : vector<512xf32> to vector<1x512xf32>
    %27 = arith.addf %19, %26 : vector<1x512xf32>
    %28 = arith.mulf %24, %24 : vector<2x512xf32>
    %cst_12 = arith.constant dense<0.000000e+00> : vector<512xf32>
    %29 = vector.multi_reduction <add>, %28, %cst_12 [0] : vector<2x512xf32> to vector<512xf32>
    %30 = vector.shape_cast %29 : vector<512xf32> to vector<1x512xf32>
    %31 = arith.addf %23, %30 : vector<1x512xf32>
    %32 = vector.extract_strided_slice %5 {offsets = [0, 1536], sizes = [2, 512], strides = [1, 1]} : vector<2x8192xf32> to vector<2x512xf32>
    %cst_13 = arith.constant dense<0.000000e+00> : vector<512xf32>
    %33 = vector.multi_reduction <add>, %32, %cst_13 [0] : vector<2x512xf32> to vector<512xf32>
    %34 = vector.shape_cast %33 : vector<512xf32> to vector<1x512xf32>
    %35 = arith.addf %27, %34 : vector<1x512xf32>
    %36 = arith.mulf %32, %32 : vector<2x512xf32>
    %cst_14 = arith.constant dense<0.000000e+00> : vector<512xf32>
    %37 = vector.multi_reduction <add>, %36, %cst_14 [0] : vector<2x512xf32> to vector<512xf32>
    %38 = vector.shape_cast %37 : vector<512xf32> to vector<1x512xf32>
    %39 = arith.addf %31, %38 : vector<1x512xf32>
    %40 = vector.extract_strided_slice %5 {offsets = [0, 2048], sizes = [2, 512], strides = [1, 1]} : vector<2x8192xf32> to vector<2x512xf32>
    %cst_15 = arith.constant dense<0.000000e+00> : vector<512xf32>
    %41 = vector.multi_reduction <add>, %40, %cst_15 [0] : vector<2x512xf32> to vector<512xf32>
    %42 = vector.shape_cast %41 : vector<512xf32> to vector<1x512xf32>
    %43 = arith.addf %35, %42 : vector<1x512xf32>
    %44 = arith.mulf %40, %40 : vector<2x512xf32>
    %cst_16 = arith.constant dense<0.000000e+00> : vector<512xf32>
    %45 = vector.multi_reduction <add>, %44, %cst_16 [0] : vector<2x512xf32> to vector<512xf32>
    %46 = vector.shape_cast %45 : vector<512xf32> to vector<1x512xf32>
    %47 = arith.addf %39, %46 : vector<1x512xf32>
    %48 = vector.extract_strided_slice %5 {offsets = [0, 2560], sizes = [2, 512], strides = [1, 1]} : vector<2x8192xf32> to vector<2x512xf32>
    %cst_17 = arith.constant dense<0.000000e+00> : vector<512xf32>
    %49 = vector.multi_reduction <add>, %48, %cst_17 [0] : vector<2x512xf32> to vector<512xf32>
    %50 = vector.shape_cast %49 : vector<512xf32> to vector<1x512xf32>
    %51 = arith.addf %43, %50 : vector<1x512xf32>
    %52 = arith.mulf %48, %48 : vector<2x512xf32>
    %cst_18 = arith.constant dense<0.000000e+00> : vector<512xf32>
    %53 = vector.multi_reduction <add>, %52, %cst_18 [0] : vector<2x512xf32> to vector<512xf32>
    %54 = vector.shape_cast %53 : vector<512xf32> to vector<1x512xf32>
    %55 = arith.addf %47, %54 : vector<1x512xf32>
    %56 = vector.extract_strided_slice %5 {offsets = [0, 3072], sizes = [2, 512], strides = [1, 1]} : vector<2x8192xf32> to vector<2x512xf32>
    %cst_19 = arith.constant dense<0.000000e+00> : vector<512xf32>
    %57 = vector.multi_reduction <add>, %56, %cst_19 [0] : vector<2x512xf32> to vector<512xf32>
    %58 = vector.shape_cast %57 : vector<512xf32> to vector<1x512xf32>
    %59 = arith.addf %51, %58 : vector<1x512xf32>
    %60 = arith.mulf %56, %56 : vector<2x512xf32>
    %cst_20 = arith.constant dense<0.000000e+00> : vector<512xf32>
    %61 = vector.multi_reduction <add>, %60, %cst_20 [0] : vector<2x512xf32> to vector<512xf32>
    %62 = vector.shape_cast %61 : vector<512xf32> to vector<1x512xf32>
    %63 = arith.addf %55, %62 : vector<1x512xf32>
    %64 = vector.extract_strided_slice %5 {offsets = [0, 3584], sizes = [2, 512], strides = [1, 1]} : vector<2x8192xf32> to vector<2x512xf32>
    %cst_21 = arith.constant dense<0.000000e+00> : vector<512xf32>
    %65 = vector.multi_reduction <add>, %64, %cst_21 [0] : vector<2x512xf32> to vector<512xf32>
    %66 = vector.shape_cast %65 : vector<512xf32> to vector<1x512xf32>
    %67 = arith.addf %59, %66 : vector<1x512xf32>
    %68 = arith.mulf %64, %64 : vector<2x512xf32>
    %cst_22 = arith.constant dense<0.000000e+00> : vector<512xf32>
    %69 = vector.multi_reduction <add>, %68, %cst_22 [0] : vector<2x512xf32> to vector<512xf32>
    %70 = vector.shape_cast %69 : vector<512xf32> to vector<1x512xf32>
    %71 = arith.addf %63, %70 : vector<1x512xf32>
    %72 = vector.extract_strided_slice %5 {offsets = [0, 4096], sizes = [2, 512], strides = [1, 1]} : vector<2x8192xf32> to vector<2x512xf32>
    %cst_23 = arith.constant dense<0.000000e+00> : vector<512xf32>
    %73 = vector.multi_reduction <add>, %72, %cst_23 [0] : vector<2x512xf32> to vector<512xf32>
    %74 = vector.shape_cast %73 : vector<512xf32> to vector<1x512xf32>
    %75 = arith.addf %67, %74 : vector<1x512xf32>
    %76 = arith.mulf %72, %72 : vector<2x512xf32>
    %cst_24 = arith.constant dense<0.000000e+00> : vector<512xf32>
    %77 = vector.multi_reduction <add>, %76, %cst_24 [0] : vector<2x512xf32> to vector<512xf32>
    %78 = vector.shape_cast %77 : vector<512xf32> to vector<1x512xf32>
    %79 = arith.addf %71, %78 : vector<1x512xf32>
    %80 = vector.extract_strided_slice %5 {offsets = [0, 4608], sizes = [2, 512], strides = [1, 1]} : vector<2x8192xf32> to vector<2x512xf32>
    %cst_25 = arith.constant dense<0.000000e+00> : vector<512xf32>
    %81 = vector.multi_reduction <add>, %80, %cst_25 [0] : vector<2x512xf32> to vector<512xf32>
    %82 = vector.shape_cast %81 : vector<512xf32> to vector<1x512xf32>
    %83 = arith.addf %75, %82 : vector<1x512xf32>
    %84 = arith.mulf %80, %80 : vector<2x512xf32>
    %cst_26 = arith.constant dense<0.000000e+00> : vector<512xf32>
    %85 = vector.multi_reduction <add>, %84, %cst_26 [0] : vector<2x512xf32> to vector<512xf32>
    %86 = vector.shape_cast %85 : vector<512xf32> to vector<1x512xf32>
    %87 = arith.addf %79, %86 : vector<1x512xf32>
    %88 = vector.extract_strided_slice %5 {offsets = [0, 5120], sizes = [2, 512], strides = [1, 1]} : vector<2x8192xf32> to vector<2x512xf32>
    %cst_27 = arith.constant dense<0.000000e+00> : vector<512xf32>
    %89 = vector.multi_reduction <add>, %88, %cst_27 [0] : vector<2x512xf32> to vector<512xf32>
    %90 = vector.shape_cast %89 : vector<512xf32> to vector<1x512xf32>
    %91 = arith.addf %83, %90 : vector<1x512xf32>
    %92 = arith.mulf %88, %88 : vector<2x512xf32>
    %cst_28 = arith.constant dense<0.000000e+00> : vector<512xf32>
    %93 = vector.multi_reduction <add>, %92, %cst_28 [0] : vector<2x512xf32> to vector<512xf32>
    %94 = vector.shape_cast %93 : vector<512xf32> to vector<1x512xf32>
    %95 = arith.addf %87, %94 : vector<1x512xf32>
    %96 = vector.extract_strided_slice %5 {offsets = [0, 5632], sizes = [2, 512], strides = [1, 1]} : vector<2x8192xf32> to vector<2x512xf32>
    %cst_29 = arith.constant dense<0.000000e+00> : vector<512xf32>
    %97 = vector.multi_reduction <add>, %96, %cst_29 [0] : vector<2x512xf32> to vector<512xf32>
    %98 = vector.shape_cast %97 : vector<512xf32> to vector<1x512xf32>
    %99 = arith.addf %91, %98 : vector<1x512xf32>
    %100 = arith.mulf %96, %96 : vector<2x512xf32>
    %cst_30 = arith.constant dense<0.000000e+00> : vector<512xf32>
    %101 = vector.multi_reduction <add>, %100, %cst_30 [0] : vector<2x512xf32> to vector<512xf32>
    %102 = vector.shape_cast %101 : vector<512xf32> to vector<1x512xf32>
    %103 = arith.addf %95, %102 : vector<1x512xf32>
    %104 = vector.extract_strided_slice %5 {offsets = [0, 6144], sizes = [2, 512], strides = [1, 1]} : vector<2x8192xf32> to vector<2x512xf32>
    %cst_31 = arith.constant dense<0.000000e+00> : vector<512xf32>
    %105 = vector.multi_reduction <add>, %104, %cst_31 [0] : vector<2x512xf32> to vector<512xf32>
    %106 = vector.shape_cast %105 : vector<512xf32> to vector<1x512xf32>
    %107 = arith.addf %99, %106 : vector<1x512xf32>
    %108 = arith.mulf %104, %104 : vector<2x512xf32>
    %cst_32 = arith.constant dense<0.000000e+00> : vector<512xf32>
    %109 = vector.multi_reduction <add>, %108, %cst_32 [0] : vector<2x512xf32> to vector<512xf32>
    %110 = vector.shape_cast %109 : vector<512xf32> to vector<1x512xf32>
    %111 = arith.addf %103, %110 : vector<1x512xf32>
    %112 = vector.extract_strided_slice %5 {offsets = [0, 6656], sizes = [2, 512], strides = [1, 1]} : vector<2x8192xf32> to vector<2x512xf32>
    %cst_33 = arith.constant dense<0.000000e+00> : vector<512xf32>
    %113 = vector.multi_reduction <add>, %112, %cst_33 [0] : vector<2x512xf32> to vector<512xf32>
    %114 = vector.shape_cast %113 : vector<512xf32> to vector<1x512xf32>
    %115 = arith.addf %107, %114 : vector<1x512xf32>
    %116 = arith.mulf %112, %112 : vector<2x512xf32>
    %cst_34 = arith.constant dense<0.000000e+00> : vector<512xf32>
    %117 = vector.multi_reduction <add>, %116, %cst_34 [0] : vector<2x512xf32> to vector<512xf32>
    %118 = vector.shape_cast %117 : vector<512xf32> to vector<1x512xf32>
    %119 = arith.addf %111, %118 : vector<1x512xf32>
    %120 = vector.extract_strided_slice %5 {offsets = [0, 7168], sizes = [2, 512], strides = [1, 1]} : vector<2x8192xf32> to vector<2x512xf32>
    %cst_35 = arith.constant dense<0.000000e+00> : vector<512xf32>
    %121 = vector.multi_reduction <add>, %120, %cst_35 [0] : vector<2x512xf32> to vector<512xf32>
    %122 = vector.shape_cast %121 : vector<512xf32> to vector<1x512xf32>
    %123 = arith.addf %115, %122 : vector<1x512xf32>
    %124 = arith.mulf %120, %120 : vector<2x512xf32>
    %cst_36 = arith.constant dense<0.000000e+00> : vector<512xf32>
    %125 = vector.multi_reduction <add>, %124, %cst_36 [0] : vector<2x512xf32> to vector<512xf32>
    %126 = vector.shape_cast %125 : vector<512xf32> to vector<1x512xf32>
    %127 = arith.addf %119, %126 : vector<1x512xf32>
    %128 = vector.extract_strided_slice %5 {offsets = [0, 7680], sizes = [2, 512], strides = [1, 1]} : vector<2x8192xf32> to vector<2x512xf32>
    %cst_37 = arith.constant dense<0.000000e+00> : vector<512xf32>
    %129 = vector.multi_reduction <add>, %128, %cst_37 [0] : vector<2x512xf32> to vector<512xf32>
    %130 = vector.shape_cast %129 : vector<512xf32> to vector<1x512xf32>
    %131 = arith.addf %123, %130 : vector<1x512xf32>
    %132 = arith.mulf %128, %128 : vector<2x512xf32>
    %cst_38 = arith.constant dense<0.000000e+00> : vector<512xf32>
    %133 = vector.multi_reduction <add>, %132, %cst_38 [0] : vector<2x512xf32> to vector<512xf32>
    %134 = vector.shape_cast %133 : vector<512xf32> to vector<1x512xf32>
    %135 = arith.addf %127, %134 : vector<1x512xf32>
    %cst_39 = arith.constant 3.125000e-02 : f32
    %136 = vector.broadcast %cst_39 : f32 to vector<1x512xf32>
    %137 = arith.mulf %131, %136 : vector<1x512xf32>
    %cst_40 = arith.constant 3.125000e-02 : f32
    %138 = vector.broadcast %cst_40 : f32 to vector<1x512xf32>
    %139 = arith.mulf %135, %138 : vector<1x512xf32>
    %140 = arith.mulf %137, %137 : vector<1x512xf32>
    %141 = arith.subf %139, %140 : vector<1x512xf32>
    %cst_41 = arith.constant 9.99999974E-6 : f32
    %142 = vector.broadcast %cst_41 : f32 to vector<1x512xf32>
    %143 = arith.addf %141, %142 : vector<1x512xf32>
    %144 = math.rsqrt %143 : vector<1x512xf32>
    %c0_42 = arith.constant 0 : index
    %c0_43 = arith.constant 0 : index
    %145 = vector.load %arg4[%c0_42, %c0_43] : memref<1x512xf32, #tpu.memory_space<vmem>>, vector<1x512xf32>
    %146 = arith.mulf %144, %145 : vector<1x512xf32>
    %c0_44 = arith.constant 0 : index
    %c0_45 = arith.constant 0 : index
    %147 = vector.load %arg5[%c0_44, %c0_45] : memref<1x512xf32, #tpu.memory_space<vmem>>, vector<1x512xf32>
    %148 = arith.mulf %137, %146 : vector<1x512xf32>
    %149 = arith.subf %147, %148 : vector<1x512xf32>
    %150 = vector.extract_strided_slice %5 {offsets = [0, 0], sizes = [2, 512], strides = [1, 1]} : vector<2x8192xf32> to vector<2x512xf32>
    %151 = vector.broadcast %146 : vector<1x512xf32> to vector<2x512xf32>
    %152 = arith.mulf %150, %151 : vector<2x512xf32>
    %153 = vector.broadcast %149 : vector<1x512xf32> to vector<2x512xf32>
    %154 = arith.addf %152, %153 : vector<2x512xf32>
    %cst_46 = arith.constant 0.000000e+00 : f32
    %155 = vector.broadcast %cst_46 : f32 to vector<2x512xf32>
    %156 = arith.maximumf %154, %155 : vector<2x512xf32>
    %157 = arith.truncf %156 : vector<2x512xf32> to vector<2x512xbf16>
    %c0_47 = arith.constant 0 : index
    %c0_48 = arith.constant 0 : index
    %158 = vector.load %arg6[%c0_47, %c0_48] : memref<2x8192xbf16, #tpu.memory_space<vmem>>, vector<2x512xbf16>
    tpu.vector_store %arg6[%c0_47, %c0_48], %157 {strides = array<i32>} : memref<2x8192xbf16, #tpu.memory_space<vmem>>, vector<2x512xbf16>,
    %159 = vector.extract_strided_slice %5 {offsets = [0, 512], sizes = [2, 512], strides = [1, 1]} : vector<2x8192xf32> to vector<2x512xf32>
    %160 = vector.broadcast %146 : vector<1x512xf32> to vector<2x512xf32>
    %161 = arith.mulf %159, %160 : vector<2x512xf32>
    %162 = vector.broadcast %149 : vector<1x512xf32> to vector<2x512xf32>
    %163 = arith.addf %161, %162 : vector<2x512xf32>
    %cst_49 = arith.constant 0.000000e+00 : f32
    %164 = vector.broadcast %cst_49 : f32 to vector<2x512xf32>
    %165 = arith.maximumf %163, %164 : vector<2x512xf32>
    %166 = arith.truncf %165 : vector<2x512xf32> to vector<2x512xbf16>
    %c0_50 = arith.constant 0 : index
    %c512 = arith.constant 512 : index
    %167 = vector.load %arg6[%c0_50, %c512] : memref<2x8192xbf16, #tpu.memory_space<vmem>>, vector<2x512xbf16>
    tpu.vector_store %arg6[%c0_50, %c512], %166 {strides = array<i32>} : memref<2x8192xbf16, #tpu.memory_space<vmem>>, vector<2x512xbf16>,
    %168 = vector.extract_strided_slice %5 {offsets = [0, 1024], sizes = [2, 512], strides = [1, 1]} : vector<2x8192xf32> to vector<2x512xf32>
    %169 = vector.broadcast %146 : vector<1x512xf32> to vector<2x512xf32>
    %170 = arith.mulf %168, %169 : vector<2x512xf32>
    %171 = vector.broadcast %149 : vector<1x512xf32> to vector<2x512xf32>
    %172 = arith.addf %170, %171 : vector<2x512xf32>
    %cst_51 = arith.constant 0.000000e+00 : f32
    %173 = vector.broadcast %cst_51 : f32 to vector<2x512xf32>
    %174 = arith.maximumf %172, %173 : vector<2x512xf32>
    %175 = arith.truncf %174 : vector<2x512xf32> to vector<2x512xbf16>
    %c0_52 = arith.constant 0 : index
    %c1024 = arith.constant 1024 : index
    %176 = vector.load %arg6[%c0_52, %c1024] : memref<2x8192xbf16, #tpu.memory_space<vmem>>, vector<2x512xbf16>
    tpu.vector_store %arg6[%c0_52, %c1024], %175 {strides = array<i32>} : memref<2x8192xbf16, #tpu.memory_space<vmem>>, vector<2x512xbf16>,
    %177 = vector.extract_strided_slice %5 {offsets = [0, 1536], sizes = [2, 512], strides = [1, 1]} : vector<2x8192xf32> to vector<2x512xf32>
    %178 = vector.broadcast %146 : vector<1x512xf32> to vector<2x512xf32>
    %179 = arith.mulf %177, %178 : vector<2x512xf32>
    %180 = vector.broadcast %149 : vector<1x512xf32> to vector<2x512xf32>
    %181 = arith.addf %179, %180 : vector<2x512xf32>
    %cst_53 = arith.constant 0.000000e+00 : f32
    %182 = vector.broadcast %cst_53 : f32 to vector<2x512xf32>
    %183 = arith.maximumf %181, %182 : vector<2x512xf32>
    %184 = arith.truncf %183 : vector<2x512xf32> to vector<2x512xbf16>
    %c0_54 = arith.constant 0 : index
    %c1536 = arith.constant 1536 : index
    %185 = vector.load %arg6[%c0_54, %c1536] : memref<2x8192xbf16, #tpu.memory_space<vmem>>, vector<2x512xbf16>
    tpu.vector_store %arg6[%c0_54, %c1536], %184 {strides = array<i32>} : memref<2x8192xbf16, #tpu.memory_space<vmem>>, vector<2x512xbf16>,
    %186 = vector.extract_strided_slice %5 {offsets = [0, 2048], sizes = [2, 512], strides = [1, 1]} : vector<2x8192xf32> to vector<2x512xf32>
    %187 = vector.broadcast %146 : vector<1x512xf32> to vector<2x512xf32>
    %188 = arith.mulf %186, %187 : vector<2x512xf32>
    %189 = vector.broadcast %149 : vector<1x512xf32> to vector<2x512xf32>
    %190 = arith.addf %188, %189 : vector<2x512xf32>
    %cst_55 = arith.constant 0.000000e+00 : f32
    %191 = vector.broadcast %cst_55 : f32 to vector<2x512xf32>
    %192 = arith.maximumf %190, %191 : vector<2x512xf32>
    %193 = arith.truncf %192 : vector<2x512xf32> to vector<2x512xbf16>
    %c0_56 = arith.constant 0 : index
    %c2048 = arith.constant 2048 : index
    %194 = vector.load %arg6[%c0_56, %c2048] : memref<2x8192xbf16, #tpu.memory_space<vmem>>, vector<2x512xbf16>
    tpu.vector_store %arg6[%c0_56, %c2048], %193 {strides = array<i32>} : memref<2x8192xbf16, #tpu.memory_space<vmem>>, vector<2x512xbf16>,
    %195 = vector.extract_strided_slice %5 {offsets = [0, 2560], sizes = [2, 512], strides = [1, 1]} : vector<2x8192xf32> to vector<2x512xf32>
    %196 = vector.broadcast %146 : vector<1x512xf32> to vector<2x512xf32>
    %197 = arith.mulf %195, %196 : vector<2x512xf32>
    %198 = vector.broadcast %149 : vector<1x512xf32> to vector<2x512xf32>
    %199 = arith.addf %197, %198 : vector<2x512xf32>
    %cst_57 = arith.constant 0.000000e+00 : f32
    %200 = vector.broadcast %cst_57 : f32 to vector<2x512xf32>
    %201 = arith.maximumf %199, %200 : vector<2x512xf32>
    %202 = arith.truncf %201 : vector<2x512xf32> to vector<2x512xbf16>
    %c0_58 = arith.constant 0 : index
    %c2560 = arith.constant 2560 : index
    %203 = vector.load %arg6[%c0_58, %c2560] : memref<2x8192xbf16, #tpu.memory_space<vmem>>, vector<2x512xbf16>
    tpu.vector_store %arg6[%c0_58, %c2560], %202 {strides = array<i32>} : memref<2x8192xbf16, #tpu.memory_space<vmem>>, vector<2x512xbf16>,
    %204 = vector.extract_strided_slice %5 {offsets = [0, 3072], sizes = [2, 512], strides = [1, 1]} : vector<2x8192xf32> to vector<2x512xf32>
    %205 = vector.broadcast %146 : vector<1x512xf32> to vector<2x512xf32>
    %206 = arith.mulf %204, %205 : vector<2x512xf32>
    %207 = vector.broadcast %149 : vector<1x512xf32> to vector<2x512xf32>
    %208 = arith.addf %206, %207 : vector<2x512xf32>
    %cst_59 = arith.constant 0.000000e+00 : f32
    %209 = vector.broadcast %cst_59 : f32 to vector<2x512xf32>
    %210 = arith.maximumf %208, %209 : vector<2x512xf32>
    %211 = arith.truncf %210 : vector<2x512xf32> to vector<2x512xbf16>
    %c0_60 = arith.constant 0 : index
    %c3072 = arith.constant 3072 : index
    %212 = vector.load %arg6[%c0_60, %c3072] : memref<2x8192xbf16, #tpu.memory_space<vmem>>, vector<2x512xbf16>
    tpu.vector_store %arg6[%c0_60, %c3072], %211 {strides = array<i32>} : memref<2x8192xbf16, #tpu.memory_space<vmem>>, vector<2x512xbf16>,
    %213 = vector.extract_strided_slice %5 {offsets = [0, 3584], sizes = [2, 512], strides = [1, 1]} : vector<2x8192xf32> to vector<2x512xf32>
    %214 = vector.broadcast %146 : vector<1x512xf32> to vector<2x512xf32>
    %215 = arith.mulf %213, %214 : vector<2x512xf32>
    %216 = vector.broadcast %149 : vector<1x512xf32> to vector<2x512xf32>
    %217 = arith.addf %215, %216 : vector<2x512xf32>
    %cst_61 = arith.constant 0.000000e+00 : f32
    %218 = vector.broadcast %cst_61 : f32 to vector<2x512xf32>
    %219 = arith.maximumf %217, %218 : vector<2x512xf32>
    %220 = arith.truncf %219 : vector<2x512xf32> to vector<2x512xbf16>
    %c0_62 = arith.constant 0 : index
    %c3584 = arith.constant 3584 : index
    %221 = vector.load %arg6[%c0_62, %c3584] : memref<2x8192xbf16, #tpu.memory_space<vmem>>, vector<2x512xbf16>
    tpu.vector_store %arg6[%c0_62, %c3584], %220 {strides = array<i32>} : memref<2x8192xbf16, #tpu.memory_space<vmem>>, vector<2x512xbf16>,
    %222 = vector.extract_strided_slice %5 {offsets = [0, 4096], sizes = [2, 512], strides = [1, 1]} : vector<2x8192xf32> to vector<2x512xf32>
    %223 = vector.broadcast %146 : vector<1x512xf32> to vector<2x512xf32>
    %224 = arith.mulf %222, %223 : vector<2x512xf32>
    %225 = vector.broadcast %149 : vector<1x512xf32> to vector<2x512xf32>
    %226 = arith.addf %224, %225 : vector<2x512xf32>
    %cst_63 = arith.constant 0.000000e+00 : f32
    %227 = vector.broadcast %cst_63 : f32 to vector<2x512xf32>
    %228 = arith.maximumf %226, %227 : vector<2x512xf32>
    %229 = arith.truncf %228 : vector<2x512xf32> to vector<2x512xbf16>
    %c0_64 = arith.constant 0 : index
    %c4096 = arith.constant 4096 : index
    %230 = vector.load %arg6[%c0_64, %c4096] : memref<2x8192xbf16, #tpu.memory_space<vmem>>, vector<2x512xbf16>
    tpu.vector_store %arg6[%c0_64, %c4096], %229 {strides = array<i32>} : memref<2x8192xbf16, #tpu.memory_space<vmem>>, vector<2x512xbf16>,
    %231 = vector.extract_strided_slice %5 {offsets = [0, 4608], sizes = [2, 512], strides = [1, 1]} : vector<2x8192xf32> to vector<2x512xf32>
    %232 = vector.broadcast %146 : vector<1x512xf32> to vector<2x512xf32>
    %233 = arith.mulf %231, %232 : vector<2x512xf32>
    %234 = vector.broadcast %149 : vector<1x512xf32> to vector<2x512xf32>
    %235 = arith.addf %233, %234 : vector<2x512xf32>
    %cst_65 = arith.constant 0.000000e+00 : f32
    %236 = vector.broadcast %cst_65 : f32 to vector<2x512xf32>
    %237 = arith.maximumf %235, %236 : vector<2x512xf32>
    %238 = arith.truncf %237 : vector<2x512xf32> to vector<2x512xbf16>
    %c0_66 = arith.constant 0 : index
    %c4608 = arith.constant 4608 : index
    %239 = vector.load %arg6[%c0_66, %c4608] : memref<2x8192xbf16, #tpu.memory_space<vmem>>, vector<2x512xbf16>
    tpu.vector_store %arg6[%c0_66, %c4608], %238 {strides = array<i32>} : memref<2x8192xbf16, #tpu.memory_space<vmem>>, vector<2x512xbf16>,
    %240 = vector.extract_strided_slice %5 {offsets = [0, 5120], sizes = [2, 512], strides = [1, 1]} : vector<2x8192xf32> to vector<2x512xf32>
    %241 = vector.broadcast %146 : vector<1x512xf32> to vector<2x512xf32>
    %242 = arith.mulf %240, %241 : vector<2x512xf32>
    %243 = vector.broadcast %149 : vector<1x512xf32> to vector<2x512xf32>
    %244 = arith.addf %242, %243 : vector<2x512xf32>
    %cst_67 = arith.constant 0.000000e+00 : f32
    %245 = vector.broadcast %cst_67 : f32 to vector<2x512xf32>
    %246 = arith.maximumf %244, %245 : vector<2x512xf32>
    %247 = arith.truncf %246 : vector<2x512xf32> to vector<2x512xbf16>
    %c0_68 = arith.constant 0 : index
    %c5120 = arith.constant 5120 : index
    %248 = vector.load %arg6[%c0_68, %c5120] : memref<2x8192xbf16, #tpu.memory_space<vmem>>, vector<2x512xbf16>
    tpu.vector_store %arg6[%c0_68, %c5120], %247 {strides = array<i32>} : memref<2x8192xbf16, #tpu.memory_space<vmem>>, vector<2x512xbf16>,
    %249 = vector.extract_strided_slice %5 {offsets = [0, 5632], sizes = [2, 512], strides = [1, 1]} : vector<2x8192xf32> to vector<2x512xf32>
    %250 = vector.broadcast %146 : vector<1x512xf32> to vector<2x512xf32>
    %251 = arith.mulf %249, %250 : vector<2x512xf32>
    %252 = vector.broadcast %149 : vector<1x512xf32> to vector<2x512xf32>
    %253 = arith.addf %251, %252 : vector<2x512xf32>
    %cst_69 = arith.constant 0.000000e+00 : f32
    %254 = vector.broadcast %cst_69 : f32 to vector<2x512xf32>
    %255 = arith.maximumf %253, %254 : vector<2x512xf32>
    %256 = arith.truncf %255 : vector<2x512xf32> to vector<2x512xbf16>
    %c0_70 = arith.constant 0 : index
    %c5632 = arith.constant 5632 : index
    %257 = vector.load %arg6[%c0_70, %c5632] : memref<2x8192xbf16, #tpu.memory_space<vmem>>, vector<2x512xbf16>
    tpu.vector_store %arg6[%c0_70, %c5632], %256 {strides = array<i32>} : memref<2x8192xbf16, #tpu.memory_space<vmem>>, vector<2x512xbf16>,
    %258 = vector.extract_strided_slice %5 {offsets = [0, 6144], sizes = [2, 512], strides = [1, 1]} : vector<2x8192xf32> to vector<2x512xf32>
    %259 = vector.broadcast %146 : vector<1x512xf32> to vector<2x512xf32>
    %260 = arith.mulf %258, %259 : vector<2x512xf32>
    %261 = vector.broadcast %149 : vector<1x512xf32> to vector<2x512xf32>
    %262 = arith.addf %260, %261 : vector<2x512xf32>
    %cst_71 = arith.constant 0.000000e+00 : f32
    %263 = vector.broadcast %cst_71 : f32 to vector<2x512xf32>
    %264 = arith.maximumf %262, %263 : vector<2x512xf32>
    %265 = arith.truncf %264 : vector<2x512xf32> to vector<2x512xbf16>
    %c0_72 = arith.constant 0 : index
    %c6144 = arith.constant 6144 : index
    %266 = vector.load %arg6[%c0_72, %c6144] : memref<2x8192xbf16, #tpu.memory_space<vmem>>, vector<2x512xbf16>
    tpu.vector_store %arg6[%c0_72, %c6144], %265 {strides = array<i32>} : memref<2x8192xbf16, #tpu.memory_space<vmem>>, vector<2x512xbf16>,
    %267 = vector.extract_strided_slice %5 {offsets = [0, 6656], sizes = [2, 512], strides = [1, 1]} : vector<2x8192xf32> to vector<2x512xf32>
    %268 = vector.broadcast %146 : vector<1x512xf32> to vector<2x512xf32>
    %269 = arith.mulf %267, %268 : vector<2x512xf32>
    %270 = vector.broadcast %149 : vector<1x512xf32> to vector<2x512xf32>
    %271 = arith.addf %269, %270 : vector<2x512xf32>
    %cst_73 = arith.constant 0.000000e+00 : f32
    %272 = vector.broadcast %cst_73 : f32 to vector<2x512xf32>
    %273 = arith.maximumf %271, %272 : vector<2x512xf32>
    %274 = arith.truncf %273 : vector<2x512xf32> to vector<2x512xbf16>
    %c0_74 = arith.constant 0 : index
    %c6656 = arith.constant 6656 : index
    %275 = vector.load %arg6[%c0_74, %c6656] : memref<2x8192xbf16, #tpu.memory_space<vmem>>, vector<2x512xbf16>
    tpu.vector_store %arg6[%c0_74, %c6656], %274 {strides = array<i32>} : memref<2x8192xbf16, #tpu.memory_space<vmem>>, vector<2x512xbf16>,
    %276 = vector.extract_strided_slice %5 {offsets = [0, 7168], sizes = [2, 512], strides = [1, 1]} : vector<2x8192xf32> to vector<2x512xf32>
    %277 = vector.broadcast %146 : vector<1x512xf32> to vector<2x512xf32>
    %278 = arith.mulf %276, %277 : vector<2x512xf32>
    %279 = vector.broadcast %149 : vector<1x512xf32> to vector<2x512xf32>
    %280 = arith.addf %278, %279 : vector<2x512xf32>
    %cst_75 = arith.constant 0.000000e+00 : f32
    %281 = vector.broadcast %cst_75 : f32 to vector<2x512xf32>
    %282 = arith.maximumf %280, %281 : vector<2x512xf32>
    %283 = arith.truncf %282 : vector<2x512xf32> to vector<2x512xbf16>
    %c0_76 = arith.constant 0 : index
    %c7168 = arith.constant 7168 : index
    %284 = vector.load %arg6[%c0_76, %c7168] : memref<2x8192xbf16, #tpu.memory_space<vmem>>, vector<2x512xbf16>
    tpu.vector_store %arg6[%c0_76, %c7168], %283 {strides = array<i32>} : memref<2x8192xbf16, #tpu.memory_space<vmem>>, vector<2x512xbf16>,
    %285 = vector.extract_strided_slice %5 {offsets = [0, 7680], sizes = [2, 512], strides = [1, 1]} : vector<2x8192xf32> to vector<2x512xf32>
    %286 = vector.broadcast %146 : vector<1x512xf32> to vector<2x512xf32>
    %287 = arith.mulf %285, %286 : vector<2x512xf32>
    %288 = vector.broadcast %149 : vector<1x512xf32> to vector<2x512xf32>
    %289 = arith.addf %287, %288 : vector<2x512xf32>
    %cst_77 = arith.constant 0.000000e+00 : f32
    %290 = vector.broadcast %cst_77 : f32 to vector<2x512xf32>
    %291 = arith.maximumf %289, %290 : vector<2x512xf32>
    %292 = arith.truncf %291 : vector<2x512xf32> to vector<2x512xbf16>
    %c0_78 = arith.constant 0 : index
    %c7680 = arith.constant 7680 : index
    %293 = vector.load %arg6[%c0_78, %c7680] : memref<2x8192xbf16, #tpu.memory_space<vmem>>, vector<2x512xbf16>
    tpu.vector_store %arg6[%c0_78, %c7680], %292 {strides = array<i32>} : memref<2x8192xbf16, #tpu.memory_space<vmem>>, vector<2x512xbf16>,
    return
  }
  func.func @transform_0(%arg0: i32) -> (i32, i32) {
    %c0_i32 = arith.constant 0 : i32
    %c0_i32_0 = arith.constant 0 : i32
    %c0_i32_1 = arith.constant 0 : i32
    return %c0_i32, %c0_i32_0 : i32, i32
  }
  func.func @transform_1(%arg0: i32) -> (i32, i32) {
    %c0_i32 = arith.constant 0 : i32
    %c0_i32_0 = arith.constant 0 : i32
    %c0_i32_1 = arith.constant 0 : i32
    return %c0_i32, %c0_i32_0 : i32, i32
  }
  func.func @transform_2(%arg0: i32) -> (i32, i32) {
    %c0_i32 = arith.constant 0 : i32
    %c0_i32_0 = arith.constant 0 : i32
    %c0_i32_1 = arith.constant 0 : i32
    return %c0_i32, %c0_i32_0 : i32, i32
  }
  func.func @transform_3(%arg0: i32) -> (i32, i32) {
    %c0_i32 = arith.constant 0 : i32
    %c0_i32_0 = arith.constant 0 : i32
    %c0_i32_1 = arith.constant 0 : i32
    return %c0_i32, %c0_i32_0 : i32, i32
  }
  func.func @transform_4(%arg0: i32) -> (i32, i32) {
    %c0_i32 = arith.constant 0 : i32
    %c0_i32_0 = arith.constant 0 : i32
    %c0_i32_1 = arith.constant 0 : i32
    return %c0_i32, %c0_i32_0 : i32, i32
  }
  func.func @transform_5(%arg0: i32) -> (i32, i32) {
    %c0_i32 = arith.constant 0 : i32
    %c0_i32_0 = arith.constant 0 : i32
    %c0_i32_1 = arith.constant 0 : i32
    return %c0_i32, %c0_i32_0 : i32, i32
  }
}

module attributes {stable_mosaic.version = 11 : i64} {
  func.func @_deconv_bn_relu_kernel(%arg0: i32, %arg1: memref<1x32x2048xbf16, #tpu.memory_space<vmem>>, %arg2: memref<1x2048x256xbf16, #tpu.memory_space<vmem>>, %arg3: memref<1x256xf32, #tpu.memory_space<vmem>>, %arg4: memref<1x256xf32, #tpu.memory_space<vmem>>, %arg5: memref<4x32x256xbf16, #tpu.memory_space<vmem>>, %arg6: memref<1x256xf32, #tpu.memory_space<vmem>>, %arg7: memref<1x256xf32, #tpu.memory_space<vmem>>) attributes {dimension_semantics = [#tpu.dimension_semantics<arbitrary>], iteration_bounds = array<i64: 4>, scalar_prefetch = 0 : i64, scratch_operands = 2 : i64, tpu.core_type = #tpu.core_type<tc>, window_params = [{transform_indices = @transform_0, window_bounds = array<i64: 1, 32, 2048>}, {transform_indices = @transform_1, window_bounds = array<i64: 1, 2048, 256>}, {pipeline_mode = #tpu.pipeline_mode<synchronous>, transform_indices = @transform_2, window_bounds = array<i64: 1, 256>}, {pipeline_mode = #tpu.pipeline_mode<synchronous>, transform_indices = @transform_3, window_bounds = array<i64: 1, 256>}, {pipeline_mode = #tpu.pipeline_mode<synchronous>, transform_indices = @transform_4, window_bounds = array<i64: 4, 32, 256>}]} {
    %c0 = arith.constant 0 : index
    %c0_0 = arith.constant 0 : index
    %c0_1 = arith.constant 0 : index
    %0 = vector.load %arg1[%c0, %c0_0, %c0_1] : memref<1x32x2048xbf16, #tpu.memory_space<vmem>>, vector<1x32x2048xbf16>
    %1 = vector.shape_cast %0 : vector<1x32x2048xbf16> to vector<32x2048xbf16>
    %c0_2 = arith.constant 0 : index
    %c0_3 = arith.constant 0 : index
    %c0_4 = arith.constant 0 : index
    %2 = vector.load %arg2[%c0_2, %c0_3, %c0_4] : memref<1x2048x256xbf16, #tpu.memory_space<vmem>>, vector<1x2048x256xbf16>
    %3 = vector.shape_cast %2 : vector<1x2048x256xbf16> to vector<2048x256xbf16>
    %cst = arith.constant dense<0.000000e+00> : vector<32x256xf32>
    %4 = tpu.matmul %1, %3, %cst {dimension_numbers = #tpu.dot_dimension_numbers<[1], [0], [0], [1], [0, 0, 1, 1], [], []>} : vector<32x2048xbf16>, vector<2048x256xbf16>, vector<32x256xf32> -> vector<32x256xf32>
    %c0_i32 = arith.constant 0 : i32
    %5 = arith.cmpi eq, %arg0, %c0_i32 : i32
    %6 = arith.extui %5 : i1 to i32
    %c0_i32_5 = arith.constant 0 : i32
    %7 = arith.cmpi ne, %6, %c0_i32_5 : i32
    scf.if %7 {
      %cst_19 = arith.constant 0.000000e+00 : f32
      %27 = vector.broadcast %cst_19 : f32 to vector<1x256xf32>
      %c0_20 = arith.constant 0 : index
      %c0_21 = arith.constant 0 : index
      %28 = vector.load %arg6[%c0_20, %c0_21] : memref<1x256xf32, #tpu.memory_space<vmem>>, vector<1x256xf32>
      tpu.vector_store %arg6[%c0_20, %c0_21], %27 {strides = array<i32>} : memref<1x256xf32, #tpu.memory_space<vmem>>, vector<1x256xf32>,
      %cst_22 = arith.constant 0.000000e+00 : f32
      %29 = vector.broadcast %cst_22 : f32 to vector<1x256xf32>
      %c0_23 = arith.constant 0 : index
      %c0_24 = arith.constant 0 : index
      %30 = vector.load %arg7[%c0_23, %c0_24] : memref<1x256xf32, #tpu.memory_space<vmem>>, vector<1x256xf32>
      tpu.vector_store %arg7[%c0_23, %c0_24], %29 {strides = array<i32>} : memref<1x256xf32, #tpu.memory_space<vmem>>, vector<1x256xf32>,
    } else {
    }
    %c0_6 = arith.constant 0 : index
    %c0_7 = arith.constant 0 : index
    %8 = vector.load %arg6[%c0_6, %c0_7] : memref<1x256xf32, #tpu.memory_space<vmem>>, vector<1x256xf32>
    %cst_8 = arith.constant dense<0.000000e+00> : vector<256xf32>
    %9 = vector.multi_reduction <add>, %4, %cst_8 [0] : vector<32x256xf32> to vector<256xf32>
    %10 = vector.shape_cast %9 : vector<256xf32> to vector<1x256xf32>
    %11 = arith.addf %8, %10 : vector<1x256xf32>
    %c0_9 = arith.constant 0 : index
    %c0_10 = arith.constant 0 : index
    %12 = vector.load %arg6[%c0_9, %c0_10] : memref<1x256xf32, #tpu.memory_space<vmem>>, vector<1x256xf32>
    tpu.vector_store %arg6[%c0_9, %c0_10], %11 {strides = array<i32>} : memref<1x256xf32, #tpu.memory_space<vmem>>, vector<1x256xf32>,
    %c0_11 = arith.constant 0 : index
    %c0_12 = arith.constant 0 : index
    %13 = vector.load %arg7[%c0_11, %c0_12] : memref<1x256xf32, #tpu.memory_space<vmem>>, vector<1x256xf32>
    %14 = arith.mulf %4, %4 : vector<32x256xf32>
    %cst_13 = arith.constant dense<0.000000e+00> : vector<256xf32>
    %15 = vector.multi_reduction <add>, %14, %cst_13 [0] : vector<32x256xf32> to vector<256xf32>
    %16 = vector.shape_cast %15 : vector<256xf32> to vector<1x256xf32>
    %17 = arith.addf %13, %16 : vector<1x256xf32>
    %c0_14 = arith.constant 0 : index
    %c0_15 = arith.constant 0 : index
    %18 = vector.load %arg7[%c0_14, %c0_15] : memref<1x256xf32, #tpu.memory_space<vmem>>, vector<1x256xf32>
    tpu.vector_store %arg7[%c0_14, %c0_15], %17 {strides = array<i32>} : memref<1x256xf32, #tpu.memory_space<vmem>>, vector<1x256xf32>,
    %19 = arith.truncf %4 : vector<32x256xf32> to vector<32x256xbf16>
    %20 = arith.index_cast %arg0 : i32 to index
    %c0_16 = arith.constant 0 : index
    %c0_17 = arith.constant 0 : index
    %21 = vector.load %arg5[%20, %c0_16, %c0_17] : memref<4x32x256xbf16, #tpu.memory_space<vmem>>, vector<1x32x256xbf16>
    %22 = vector.shape_cast %21 : vector<1x32x256xbf16> to vector<32x256xbf16>
    %23 = vector.shape_cast %19 : vector<32x256xbf16> to vector<1x32x256xbf16>
    tpu.vector_store %arg5[%20, %c0_16, %c0_17], %23 {strides = array<i32>} : memref<4x32x256xbf16, #tpu.memory_space<vmem>>, vector<1x32x256xbf16>,
    %c3_i32 = arith.constant 3 : i32
    %24 = arith.cmpi eq, %arg0, %c3_i32 : i32
    %25 = arith.extui %24 : i1 to i32
    %c0_i32_18 = arith.constant 0 : i32
    %26 = arith.cmpi ne, %25, %c0_i32_18 : i32
    scf.if %26 {
      %c0_19 = arith.constant 0 : index
      %c0_20 = arith.constant 0 : index
      %27 = vector.load %arg6[%c0_19, %c0_20] : memref<1x256xf32, #tpu.memory_space<vmem>>, vector<1x256xf32>
      %cst_21 = arith.constant 7.812500e-03 : f32
      %28 = vector.broadcast %cst_21 : f32 to vector<1x256xf32>
      %29 = arith.mulf %27, %28 : vector<1x256xf32>
      %c0_22 = arith.constant 0 : index
      %c0_23 = arith.constant 0 : index
      %30 = vector.load %arg7[%c0_22, %c0_23] : memref<1x256xf32, #tpu.memory_space<vmem>>, vector<1x256xf32>
      %cst_24 = arith.constant 7.812500e-03 : f32
      %31 = vector.broadcast %cst_24 : f32 to vector<1x256xf32>
      %32 = arith.mulf %30, %31 : vector<1x256xf32>
      %33 = arith.mulf %29, %29 : vector<1x256xf32>
      %34 = arith.subf %32, %33 : vector<1x256xf32>
      %cst_25 = arith.constant 9.99999974E-6 : f32
      %35 = vector.broadcast %cst_25 : f32 to vector<1x256xf32>
      %36 = arith.addf %34, %35 : vector<1x256xf32>
      %37 = math.rsqrt %36 : vector<1x256xf32>
      %c0_26 = arith.constant 0 : index
      %c0_27 = arith.constant 0 : index
      %38 = vector.load %arg3[%c0_26, %c0_27] : memref<1x256xf32, #tpu.memory_space<vmem>>, vector<1x256xf32>
      %39 = arith.mulf %37, %38 : vector<1x256xf32>
      %c0_28 = arith.constant 0 : index
      %c0_29 = arith.constant 0 : index
      %40 = vector.load %arg4[%c0_28, %c0_29] : memref<1x256xf32, #tpu.memory_space<vmem>>, vector<1x256xf32>
      %41 = arith.mulf %29, %39 : vector<1x256xf32>
      %42 = arith.subf %40, %41 : vector<1x256xf32>
      %c0_30 = arith.constant 0 : index
      %c0_31 = arith.constant 0 : index
      %c0_32 = arith.constant 0 : index
      %43 = vector.load %arg5[%c0_30, %c0_31, %c0_32] : memref<4x32x256xbf16, #tpu.memory_space<vmem>>, vector<1x32x256xbf16>
      %44 = vector.shape_cast %43 : vector<1x32x256xbf16> to vector<32x256xbf16>
      %45 = arith.extf %44 : vector<32x256xbf16> to vector<32x256xf32>
      %46 = vector.broadcast %39 : vector<1x256xf32> to vector<32x256xf32>
      %47 = arith.mulf %45, %46 : vector<32x256xf32>
      %48 = vector.broadcast %42 : vector<1x256xf32> to vector<32x256xf32>
      %49 = arith.addf %47, %48 : vector<32x256xf32>
      %cst_33 = arith.constant 0.000000e+00 : f32
      %50 = vector.broadcast %cst_33 : f32 to vector<32x256xf32>
      %51 = arith.maximumf %49, %50 : vector<32x256xf32>
      %52 = arith.truncf %51 : vector<32x256xf32> to vector<32x256xbf16>
      %c0_34 = arith.constant 0 : index
      %c0_35 = arith.constant 0 : index
      %c0_36 = arith.constant 0 : index
      %53 = vector.load %arg5[%c0_34, %c0_35, %c0_36] : memref<4x32x256xbf16, #tpu.memory_space<vmem>>, vector<1x32x256xbf16>
      %54 = vector.shape_cast %53 : vector<1x32x256xbf16> to vector<32x256xbf16>
      %55 = vector.shape_cast %52 : vector<32x256xbf16> to vector<1x32x256xbf16>
      tpu.vector_store %arg5[%c0_34, %c0_35, %c0_36], %55 {strides = array<i32>} : memref<4x32x256xbf16, #tpu.memory_space<vmem>>, vector<1x32x256xbf16>,
      %c1 = arith.constant 1 : index
      %c0_37 = arith.constant 0 : index
      %c0_38 = arith.constant 0 : index
      %56 = vector.load %arg5[%c1, %c0_37, %c0_38] : memref<4x32x256xbf16, #tpu.memory_space<vmem>>, vector<1x32x256xbf16>
      %57 = vector.shape_cast %56 : vector<1x32x256xbf16> to vector<32x256xbf16>
      %58 = arith.extf %57 : vector<32x256xbf16> to vector<32x256xf32>
      %59 = vector.broadcast %39 : vector<1x256xf32> to vector<32x256xf32>
      %60 = arith.mulf %58, %59 : vector<32x256xf32>
      %61 = vector.broadcast %42 : vector<1x256xf32> to vector<32x256xf32>
      %62 = arith.addf %60, %61 : vector<32x256xf32>
      %cst_39 = arith.constant 0.000000e+00 : f32
      %63 = vector.broadcast %cst_39 : f32 to vector<32x256xf32>
      %64 = arith.maximumf %62, %63 : vector<32x256xf32>
      %65 = arith.truncf %64 : vector<32x256xf32> to vector<32x256xbf16>
      %c1_40 = arith.constant 1 : index
      %c0_41 = arith.constant 0 : index
      %c0_42 = arith.constant 0 : index
      %66 = vector.load %arg5[%c1_40, %c0_41, %c0_42] : memref<4x32x256xbf16, #tpu.memory_space<vmem>>, vector<1x32x256xbf16>
      %67 = vector.shape_cast %66 : vector<1x32x256xbf16> to vector<32x256xbf16>
      %68 = vector.shape_cast %65 : vector<32x256xbf16> to vector<1x32x256xbf16>
      tpu.vector_store %arg5[%c1_40, %c0_41, %c0_42], %68 {strides = array<i32>} : memref<4x32x256xbf16, #tpu.memory_space<vmem>>, vector<1x32x256xbf16>,
      %c2 = arith.constant 2 : index
      %c0_43 = arith.constant 0 : index
      %c0_44 = arith.constant 0 : index
      %69 = vector.load %arg5[%c2, %c0_43, %c0_44] : memref<4x32x256xbf16, #tpu.memory_space<vmem>>, vector<1x32x256xbf16>
      %70 = vector.shape_cast %69 : vector<1x32x256xbf16> to vector<32x256xbf16>
      %71 = arith.extf %70 : vector<32x256xbf16> to vector<32x256xf32>
      %72 = vector.broadcast %39 : vector<1x256xf32> to vector<32x256xf32>
      %73 = arith.mulf %71, %72 : vector<32x256xf32>
      %74 = vector.broadcast %42 : vector<1x256xf32> to vector<32x256xf32>
      %75 = arith.addf %73, %74 : vector<32x256xf32>
      %cst_45 = arith.constant 0.000000e+00 : f32
      %76 = vector.broadcast %cst_45 : f32 to vector<32x256xf32>
      %77 = arith.maximumf %75, %76 : vector<32x256xf32>
      %78 = arith.truncf %77 : vector<32x256xf32> to vector<32x256xbf16>
      %c2_46 = arith.constant 2 : index
      %c0_47 = arith.constant 0 : index
      %c0_48 = arith.constant 0 : index
      %79 = vector.load %arg5[%c2_46, %c0_47, %c0_48] : memref<4x32x256xbf16, #tpu.memory_space<vmem>>, vector<1x32x256xbf16>
      %80 = vector.shape_cast %79 : vector<1x32x256xbf16> to vector<32x256xbf16>
      %81 = vector.shape_cast %78 : vector<32x256xbf16> to vector<1x32x256xbf16>
      tpu.vector_store %arg5[%c2_46, %c0_47, %c0_48], %81 {strides = array<i32>} : memref<4x32x256xbf16, #tpu.memory_space<vmem>>, vector<1x32x256xbf16>,
      %c3 = arith.constant 3 : index
      %c0_49 = arith.constant 0 : index
      %c0_50 = arith.constant 0 : index
      %82 = vector.load %arg5[%c3, %c0_49, %c0_50] : memref<4x32x256xbf16, #tpu.memory_space<vmem>>, vector<1x32x256xbf16>
      %83 = vector.shape_cast %82 : vector<1x32x256xbf16> to vector<32x256xbf16>
      %84 = arith.extf %83 : vector<32x256xbf16> to vector<32x256xf32>
      %85 = vector.broadcast %39 : vector<1x256xf32> to vector<32x256xf32>
      %86 = arith.mulf %84, %85 : vector<32x256xf32>
      %87 = vector.broadcast %42 : vector<1x256xf32> to vector<32x256xf32>
      %88 = arith.addf %86, %87 : vector<32x256xf32>
      %cst_51 = arith.constant 0.000000e+00 : f32
      %89 = vector.broadcast %cst_51 : f32 to vector<32x256xf32>
      %90 = arith.maximumf %88, %89 : vector<32x256xf32>
      %91 = arith.truncf %90 : vector<32x256xf32> to vector<32x256xbf16>
      %c3_52 = arith.constant 3 : index
      %c0_53 = arith.constant 0 : index
      %c0_54 = arith.constant 0 : index
      %92 = vector.load %arg5[%c3_52, %c0_53, %c0_54] : memref<4x32x256xbf16, #tpu.memory_space<vmem>>, vector<1x32x256xbf16>
      %93 = vector.shape_cast %92 : vector<1x32x256xbf16> to vector<32x256xbf16>
      %94 = vector.shape_cast %91 : vector<32x256xbf16> to vector<1x32x256xbf16>
      tpu.vector_store %arg5[%c3_52, %c0_53, %c0_54], %94 {strides = array<i32>} : memref<4x32x256xbf16, #tpu.memory_space<vmem>>, vector<1x32x256xbf16>,
    } else {
    }
    return
  }
  func.func @transform_0(%arg0: i32) -> (i32, i32, i32) {
    %c0_i32 = arith.constant 0 : i32
    %c0_i32_0 = arith.constant 0 : i32
    %c0_i32_1 = arith.constant 0 : i32
    return %arg0, %c0_i32, %c0_i32_0 : i32, i32, i32
  }
  func.func @transform_1(%arg0: i32) -> (i32, i32, i32) {
    %c0_i32 = arith.constant 0 : i32
    %c0_i32_0 = arith.constant 0 : i32
    %c0_i32_1 = arith.constant 0 : i32
    return %arg0, %c0_i32, %c0_i32_0 : i32, i32, i32
  }
  func.func @transform_2(%arg0: i32) -> (i32, i32) {
    %c0_i32 = arith.constant 0 : i32
    %c0_i32_0 = arith.constant 0 : i32
    %c0_i32_1 = arith.constant 0 : i32
    return %c0_i32, %c0_i32_0 : i32, i32
  }
  func.func @transform_3(%arg0: i32) -> (i32, i32) {
    %c0_i32 = arith.constant 0 : i32
    %c0_i32_0 = arith.constant 0 : i32
    %c0_i32_1 = arith.constant 0 : i32
    return %c0_i32, %c0_i32_0 : i32, i32
  }
  func.func @transform_4(%arg0: i32) -> (i32, i32, i32) {
    %c0_i32 = arith.constant 0 : i32
    %c0_i32_0 = arith.constant 0 : i32
    %c0_i32_1 = arith.constant 0 : i32
    %c0_i32_2 = arith.constant 0 : i32
    return %c0_i32, %c0_i32_0, %c0_i32_1 : i32, i32, i32
  }
}

module attributes {stable_mosaic.version = 11 : i64} {
  func.func @_deconv_bn_relu_kernel(%arg0: i32, %arg1: memref<1x128x1024xbf16, #tpu.memory_space<vmem>>, %arg2: memref<1x1024x128xbf16, #tpu.memory_space<vmem>>, %arg3: memref<1x128xf32, #tpu.memory_space<vmem>>, %arg4: memref<1x128xf32, #tpu.memory_space<vmem>>, %arg5: memref<4x128x128xbf16, #tpu.memory_space<vmem>>, %arg6: memref<1x128xf32, #tpu.memory_space<vmem>>, %arg7: memref<1x128xf32, #tpu.memory_space<vmem>>) attributes {dimension_semantics = [#tpu.dimension_semantics<arbitrary>], iteration_bounds = array<i64: 4>, scalar_prefetch = 0 : i64, scratch_operands = 2 : i64, tpu.core_type = #tpu.core_type<tc>, window_params = [{transform_indices = @transform_0, window_bounds = array<i64: 1, 128, 1024>}, {transform_indices = @transform_1, window_bounds = array<i64: 1, 1024, 128>}, {pipeline_mode = #tpu.pipeline_mode<synchronous>, transform_indices = @transform_2, window_bounds = array<i64: 1, 128>}, {pipeline_mode = #tpu.pipeline_mode<synchronous>, transform_indices = @transform_3, window_bounds = array<i64: 1, 128>}, {pipeline_mode = #tpu.pipeline_mode<synchronous>, transform_indices = @transform_4, window_bounds = array<i64: 4, 128, 128>}]} {
    %c0 = arith.constant 0 : index
    %c0_0 = arith.constant 0 : index
    %c0_1 = arith.constant 0 : index
    %0 = vector.load %arg1[%c0, %c0_0, %c0_1] : memref<1x128x1024xbf16, #tpu.memory_space<vmem>>, vector<1x128x1024xbf16>
    %1 = vector.shape_cast %0 : vector<1x128x1024xbf16> to vector<128x1024xbf16>
    %c0_2 = arith.constant 0 : index
    %c0_3 = arith.constant 0 : index
    %c0_4 = arith.constant 0 : index
    %2 = vector.load %arg2[%c0_2, %c0_3, %c0_4] : memref<1x1024x128xbf16, #tpu.memory_space<vmem>>, vector<1x1024x128xbf16>
    %3 = vector.shape_cast %2 : vector<1x1024x128xbf16> to vector<1024x128xbf16>
    %cst = arith.constant dense<0.000000e+00> : vector<128x128xf32>
    %4 = tpu.matmul %1, %3, %cst {dimension_numbers = #tpu.dot_dimension_numbers<[1], [0], [0], [1], [0, 0, 1, 1], [], []>} : vector<128x1024xbf16>, vector<1024x128xbf16>, vector<128x128xf32> -> vector<128x128xf32>
    %c0_i32 = arith.constant 0 : i32
    %5 = arith.cmpi eq, %arg0, %c0_i32 : i32
    %6 = arith.extui %5 : i1 to i32
    %c0_i32_5 = arith.constant 0 : i32
    %7 = arith.cmpi ne, %6, %c0_i32_5 : i32
    scf.if %7 {
      %cst_19 = arith.constant 0.000000e+00 : f32
      %27 = vector.broadcast %cst_19 : f32 to vector<1x128xf32>
      %c0_20 = arith.constant 0 : index
      %c0_21 = arith.constant 0 : index
      %28 = vector.load %arg6[%c0_20, %c0_21] : memref<1x128xf32, #tpu.memory_space<vmem>>, vector<1x128xf32>
      tpu.vector_store %arg6[%c0_20, %c0_21], %27 {strides = array<i32>} : memref<1x128xf32, #tpu.memory_space<vmem>>, vector<1x128xf32>,
      %cst_22 = arith.constant 0.000000e+00 : f32
      %29 = vector.broadcast %cst_22 : f32 to vector<1x128xf32>
      %c0_23 = arith.constant 0 : index
      %c0_24 = arith.constant 0 : index
      %30 = vector.load %arg7[%c0_23, %c0_24] : memref<1x128xf32, #tpu.memory_space<vmem>>, vector<1x128xf32>
      tpu.vector_store %arg7[%c0_23, %c0_24], %29 {strides = array<i32>} : memref<1x128xf32, #tpu.memory_space<vmem>>, vector<1x128xf32>,
    } else {
    }
    %c0_6 = arith.constant 0 : index
    %c0_7 = arith.constant 0 : index
    %8 = vector.load %arg6[%c0_6, %c0_7] : memref<1x128xf32, #tpu.memory_space<vmem>>, vector<1x128xf32>
    %cst_8 = arith.constant dense<0.000000e+00> : vector<128xf32>
    %9 = vector.multi_reduction <add>, %4, %cst_8 [0] : vector<128x128xf32> to vector<128xf32>
    %10 = vector.shape_cast %9 : vector<128xf32> to vector<1x128xf32>
    %11 = arith.addf %8, %10 : vector<1x128xf32>
    %c0_9 = arith.constant 0 : index
    %c0_10 = arith.constant 0 : index
    %12 = vector.load %arg6[%c0_9, %c0_10] : memref<1x128xf32, #tpu.memory_space<vmem>>, vector<1x128xf32>
    tpu.vector_store %arg6[%c0_9, %c0_10], %11 {strides = array<i32>} : memref<1x128xf32, #tpu.memory_space<vmem>>, vector<1x128xf32>,
    %c0_11 = arith.constant 0 : index
    %c0_12 = arith.constant 0 : index
    %13 = vector.load %arg7[%c0_11, %c0_12] : memref<1x128xf32, #tpu.memory_space<vmem>>, vector<1x128xf32>
    %14 = arith.mulf %4, %4 : vector<128x128xf32>
    %cst_13 = arith.constant dense<0.000000e+00> : vector<128xf32>
    %15 = vector.multi_reduction <add>, %14, %cst_13 [0] : vector<128x128xf32> to vector<128xf32>
    %16 = vector.shape_cast %15 : vector<128xf32> to vector<1x128xf32>
    %17 = arith.addf %13, %16 : vector<1x128xf32>
    %c0_14 = arith.constant 0 : index
    %c0_15 = arith.constant 0 : index
    %18 = vector.load %arg7[%c0_14, %c0_15] : memref<1x128xf32, #tpu.memory_space<vmem>>, vector<1x128xf32>
    tpu.vector_store %arg7[%c0_14, %c0_15], %17 {strides = array<i32>} : memref<1x128xf32, #tpu.memory_space<vmem>>, vector<1x128xf32>,
    %19 = arith.truncf %4 : vector<128x128xf32> to vector<128x128xbf16>
    %20 = arith.index_cast %arg0 : i32 to index
    %c0_16 = arith.constant 0 : index
    %c0_17 = arith.constant 0 : index
    %21 = vector.load %arg5[%20, %c0_16, %c0_17] : memref<4x128x128xbf16, #tpu.memory_space<vmem>>, vector<1x128x128xbf16>
    %22 = vector.shape_cast %21 : vector<1x128x128xbf16> to vector<128x128xbf16>
    %23 = vector.shape_cast %19 : vector<128x128xbf16> to vector<1x128x128xbf16>
    tpu.vector_store %arg5[%20, %c0_16, %c0_17], %23 {strides = array<i32>} : memref<4x128x128xbf16, #tpu.memory_space<vmem>>, vector<1x128x128xbf16>,
    %c3_i32 = arith.constant 3 : i32
    %24 = arith.cmpi eq, %arg0, %c3_i32 : i32
    %25 = arith.extui %24 : i1 to i32
    %c0_i32_18 = arith.constant 0 : i32
    %26 = arith.cmpi ne, %25, %c0_i32_18 : i32
    scf.if %26 {
      %c0_19 = arith.constant 0 : index
      %c0_20 = arith.constant 0 : index
      %27 = vector.load %arg6[%c0_19, %c0_20] : memref<1x128xf32, #tpu.memory_space<vmem>>, vector<1x128xf32>
      %cst_21 = arith.constant 0.001953125 : f32
      %28 = vector.broadcast %cst_21 : f32 to vector<1x128xf32>
      %29 = arith.mulf %27, %28 : vector<1x128xf32>
      %c0_22 = arith.constant 0 : index
      %c0_23 = arith.constant 0 : index
      %30 = vector.load %arg7[%c0_22, %c0_23] : memref<1x128xf32, #tpu.memory_space<vmem>>, vector<1x128xf32>
      %cst_24 = arith.constant 0.001953125 : f32
      %31 = vector.broadcast %cst_24 : f32 to vector<1x128xf32>
      %32 = arith.mulf %30, %31 : vector<1x128xf32>
      %33 = arith.mulf %29, %29 : vector<1x128xf32>
      %34 = arith.subf %32, %33 : vector<1x128xf32>
      %cst_25 = arith.constant 9.99999974E-6 : f32
      %35 = vector.broadcast %cst_25 : f32 to vector<1x128xf32>
      %36 = arith.addf %34, %35 : vector<1x128xf32>
      %37 = math.rsqrt %36 : vector<1x128xf32>
      %c0_26 = arith.constant 0 : index
      %c0_27 = arith.constant 0 : index
      %38 = vector.load %arg3[%c0_26, %c0_27] : memref<1x128xf32, #tpu.memory_space<vmem>>, vector<1x128xf32>
      %39 = arith.mulf %37, %38 : vector<1x128xf32>
      %c0_28 = arith.constant 0 : index
      %c0_29 = arith.constant 0 : index
      %40 = vector.load %arg4[%c0_28, %c0_29] : memref<1x128xf32, #tpu.memory_space<vmem>>, vector<1x128xf32>
      %41 = arith.mulf %29, %39 : vector<1x128xf32>
      %42 = arith.subf %40, %41 : vector<1x128xf32>
      %c0_30 = arith.constant 0 : index
      %c0_31 = arith.constant 0 : index
      %c0_32 = arith.constant 0 : index
      %43 = vector.load %arg5[%c0_30, %c0_31, %c0_32] : memref<4x128x128xbf16, #tpu.memory_space<vmem>>, vector<1x128x128xbf16>
      %44 = vector.shape_cast %43 : vector<1x128x128xbf16> to vector<128x128xbf16>
      %45 = arith.extf %44 : vector<128x128xbf16> to vector<128x128xf32>
      %46 = vector.broadcast %39 : vector<1x128xf32> to vector<128x128xf32>
      %47 = arith.mulf %45, %46 : vector<128x128xf32>
      %48 = vector.broadcast %42 : vector<1x128xf32> to vector<128x128xf32>
      %49 = arith.addf %47, %48 : vector<128x128xf32>
      %cst_33 = arith.constant 0.000000e+00 : f32
      %50 = vector.broadcast %cst_33 : f32 to vector<128x128xf32>
      %51 = arith.maximumf %49, %50 : vector<128x128xf32>
      %52 = arith.truncf %51 : vector<128x128xf32> to vector<128x128xbf16>
      %c0_34 = arith.constant 0 : index
      %c0_35 = arith.constant 0 : index
      %c0_36 = arith.constant 0 : index
      %53 = vector.load %arg5[%c0_34, %c0_35, %c0_36] : memref<4x128x128xbf16, #tpu.memory_space<vmem>>, vector<1x128x128xbf16>
      %54 = vector.shape_cast %53 : vector<1x128x128xbf16> to vector<128x128xbf16>
      %55 = vector.shape_cast %52 : vector<128x128xbf16> to vector<1x128x128xbf16>
      tpu.vector_store %arg5[%c0_34, %c0_35, %c0_36], %55 {strides = array<i32>} : memref<4x128x128xbf16, #tpu.memory_space<vmem>>, vector<1x128x128xbf16>,
      %c1 = arith.constant 1 : index
      %c0_37 = arith.constant 0 : index
      %c0_38 = arith.constant 0 : index
      %56 = vector.load %arg5[%c1, %c0_37, %c0_38] : memref<4x128x128xbf16, #tpu.memory_space<vmem>>, vector<1x128x128xbf16>
      %57 = vector.shape_cast %56 : vector<1x128x128xbf16> to vector<128x128xbf16>
      %58 = arith.extf %57 : vector<128x128xbf16> to vector<128x128xf32>
      %59 = vector.broadcast %39 : vector<1x128xf32> to vector<128x128xf32>
      %60 = arith.mulf %58, %59 : vector<128x128xf32>
      %61 = vector.broadcast %42 : vector<1x128xf32> to vector<128x128xf32>
      %62 = arith.addf %60, %61 : vector<128x128xf32>
      %cst_39 = arith.constant 0.000000e+00 : f32
      %63 = vector.broadcast %cst_39 : f32 to vector<128x128xf32>
      %64 = arith.maximumf %62, %63 : vector<128x128xf32>
      %65 = arith.truncf %64 : vector<128x128xf32> to vector<128x128xbf16>
      %c1_40 = arith.constant 1 : index
      %c0_41 = arith.constant 0 : index
      %c0_42 = arith.constant 0 : index
      %66 = vector.load %arg5[%c1_40, %c0_41, %c0_42] : memref<4x128x128xbf16, #tpu.memory_space<vmem>>, vector<1x128x128xbf16>
      %67 = vector.shape_cast %66 : vector<1x128x128xbf16> to vector<128x128xbf16>
      %68 = vector.shape_cast %65 : vector<128x128xbf16> to vector<1x128x128xbf16>
      tpu.vector_store %arg5[%c1_40, %c0_41, %c0_42], %68 {strides = array<i32>} : memref<4x128x128xbf16, #tpu.memory_space<vmem>>, vector<1x128x128xbf16>,
      %c2 = arith.constant 2 : index
      %c0_43 = arith.constant 0 : index
      %c0_44 = arith.constant 0 : index
      %69 = vector.load %arg5[%c2, %c0_43, %c0_44] : memref<4x128x128xbf16, #tpu.memory_space<vmem>>, vector<1x128x128xbf16>
      %70 = vector.shape_cast %69 : vector<1x128x128xbf16> to vector<128x128xbf16>
      %71 = arith.extf %70 : vector<128x128xbf16> to vector<128x128xf32>
      %72 = vector.broadcast %39 : vector<1x128xf32> to vector<128x128xf32>
      %73 = arith.mulf %71, %72 : vector<128x128xf32>
      %74 = vector.broadcast %42 : vector<1x128xf32> to vector<128x128xf32>
      %75 = arith.addf %73, %74 : vector<128x128xf32>
      %cst_45 = arith.constant 0.000000e+00 : f32
      %76 = vector.broadcast %cst_45 : f32 to vector<128x128xf32>
      %77 = arith.maximumf %75, %76 : vector<128x128xf32>
      %78 = arith.truncf %77 : vector<128x128xf32> to vector<128x128xbf16>
      %c2_46 = arith.constant 2 : index
      %c0_47 = arith.constant 0 : index
      %c0_48 = arith.constant 0 : index
      %79 = vector.load %arg5[%c2_46, %c0_47, %c0_48] : memref<4x128x128xbf16, #tpu.memory_space<vmem>>, vector<1x128x128xbf16>
      %80 = vector.shape_cast %79 : vector<1x128x128xbf16> to vector<128x128xbf16>
      %81 = vector.shape_cast %78 : vector<128x128xbf16> to vector<1x128x128xbf16>
      tpu.vector_store %arg5[%c2_46, %c0_47, %c0_48], %81 {strides = array<i32>} : memref<4x128x128xbf16, #tpu.memory_space<vmem>>, vector<1x128x128xbf16>,
      %c3 = arith.constant 3 : index
      %c0_49 = arith.constant 0 : index
      %c0_50 = arith.constant 0 : index
      %82 = vector.load %arg5[%c3, %c0_49, %c0_50] : memref<4x128x128xbf16, #tpu.memory_space<vmem>>, vector<1x128x128xbf16>
      %83 = vector.shape_cast %82 : vector<1x128x128xbf16> to vector<128x128xbf16>
      %84 = arith.extf %83 : vector<128x128xbf16> to vector<128x128xf32>
      %85 = vector.broadcast %39 : vector<1x128xf32> to vector<128x128xf32>
      %86 = arith.mulf %84, %85 : vector<128x128xf32>
      %87 = vector.broadcast %42 : vector<1x128xf32> to vector<128x128xf32>
      %88 = arith.addf %86, %87 : vector<128x128xf32>
      %cst_51 = arith.constant 0.000000e+00 : f32
      %89 = vector.broadcast %cst_51 : f32 to vector<128x128xf32>
      %90 = arith.maximumf %88, %89 : vector<128x128xf32>
      %91 = arith.truncf %90 : vector<128x128xf32> to vector<128x128xbf16>
      %c3_52 = arith.constant 3 : index
      %c0_53 = arith.constant 0 : index
      %c0_54 = arith.constant 0 : index
      %92 = vector.load %arg5[%c3_52, %c0_53, %c0_54] : memref<4x128x128xbf16, #tpu.memory_space<vmem>>, vector<1x128x128xbf16>
      %93 = vector.shape_cast %92 : vector<1x128x128xbf16> to vector<128x128xbf16>
      %94 = vector.shape_cast %91 : vector<128x128xbf16> to vector<1x128x128xbf16>
      tpu.vector_store %arg5[%c3_52, %c0_53, %c0_54], %94 {strides = array<i32>} : memref<4x128x128xbf16, #tpu.memory_space<vmem>>, vector<1x128x128xbf16>,
    } else {
    }
    return
  }
  func.func @transform_0(%arg0: i32) -> (i32, i32, i32) {
    %c0_i32 = arith.constant 0 : i32
    %c0_i32_0 = arith.constant 0 : i32
    %c0_i32_1 = arith.constant 0 : i32
    return %arg0, %c0_i32, %c0_i32_0 : i32, i32, i32
  }
  func.func @transform_1(%arg0: i32) -> (i32, i32, i32) {
    %c0_i32 = arith.constant 0 : i32
    %c0_i32_0 = arith.constant 0 : i32
    %c0_i32_1 = arith.constant 0 : i32
    return %arg0, %c0_i32, %c0_i32_0 : i32, i32, i32
  }
  func.func @transform_2(%arg0: i32) -> (i32, i32) {
    %c0_i32 = arith.constant 0 : i32
    %c0_i32_0 = arith.constant 0 : i32
    %c0_i32_1 = arith.constant 0 : i32
    return %c0_i32, %c0_i32_0 : i32, i32
  }
  func.func @transform_3(%arg0: i32) -> (i32, i32) {
    %c0_i32 = arith.constant 0 : i32
    %c0_i32_0 = arith.constant 0 : i32
    %c0_i32_1 = arith.constant 0 : i32
    return %c0_i32, %c0_i32_0 : i32, i32
  }
  func.func @transform_4(%arg0: i32) -> (i32, i32, i32) {
    %c0_i32 = arith.constant 0 : i32
    %c0_i32_0 = arith.constant 0 : i32
    %c0_i32_1 = arith.constant 0 : i32
    %c0_i32_2 = arith.constant 0 : i32
    return %c0_i32, %c0_i32_0, %c0_i32_1 : i32, i32, i32
  }
}

module attributes {stable_mosaic.version = 11 : i64} {
  func.func @_deconv_tanh_kernel(%arg0: i32, %arg1: memref<1x512x512xbf16, #tpu.memory_space<vmem>>, %arg2: memref<1x512x128xbf16, #tpu.memory_space<vmem>>, %arg3: memref<1x128xf32, #tpu.memory_space<vmem>>, %arg4: memref<1x512x128xf32, #tpu.memory_space<vmem>>) attributes {dimension_semantics = [#tpu.dimension_semantics<parallel>], iteration_bounds = array<i64: 4>, scalar_prefetch = 0 : i64, scratch_operands = 0 : i64, tpu.core_type = #tpu.core_type<tc>, window_params = [{transform_indices = @transform_0, window_bounds = array<i64: 1, 512, 512>}, {transform_indices = @transform_1, window_bounds = array<i64: 1, 512, 128>}, {pipeline_mode = #tpu.pipeline_mode<synchronous>, transform_indices = @transform_2, window_bounds = array<i64: 1, 128>}, {transform_indices = @transform_3, window_bounds = array<i64: 1, 512, 128>}]} {
    %c0 = arith.constant 0 : index
    %c0_0 = arith.constant 0 : index
    %c0_1 = arith.constant 0 : index
    %0 = vector.load %arg1[%c0, %c0_0, %c0_1] : memref<1x512x512xbf16, #tpu.memory_space<vmem>>, vector<1x512x512xbf16>
    %1 = vector.shape_cast %0 : vector<1x512x512xbf16> to vector<512x512xbf16>
    %c0_2 = arith.constant 0 : index
    %c0_3 = arith.constant 0 : index
    %c0_4 = arith.constant 0 : index
    %2 = vector.load %arg2[%c0_2, %c0_3, %c0_4] : memref<1x512x128xbf16, #tpu.memory_space<vmem>>, vector<1x512x128xbf16>
    %3 = vector.shape_cast %2 : vector<1x512x128xbf16> to vector<512x128xbf16>
    %cst = arith.constant dense<0.000000e+00> : vector<512x128xf32>
    %4 = tpu.matmul %1, %3, %cst {dimension_numbers = #tpu.dot_dimension_numbers<[1], [0], [0], [1], [0, 0, 1, 1], [], []>} : vector<512x512xbf16>, vector<512x128xbf16>, vector<512x128xf32> -> vector<512x128xf32>
    %c0_5 = arith.constant 0 : index
    %c0_6 = arith.constant 0 : index
    %5 = vector.load %arg3[%c0_5, %c0_6] : memref<1x128xf32, #tpu.memory_space<vmem>>, vector<1x128xf32>
    %6 = vector.broadcast %5 : vector<1x128xf32> to vector<512x128xf32>
    %7 = arith.addf %4, %6 : vector<512x128xf32>
    %8 = math.tanh %7 : vector<512x128xf32>
    %c0_7 = arith.constant 0 : index
    %c0_8 = arith.constant 0 : index
    %c0_9 = arith.constant 0 : index
    %9 = vector.load %arg4[%c0_7, %c0_8, %c0_9] : memref<1x512x128xf32, #tpu.memory_space<vmem>>, vector<1x512x128xf32>
    %10 = vector.shape_cast %9 : vector<1x512x128xf32> to vector<512x128xf32>
    %11 = vector.shape_cast %8 : vector<512x128xf32> to vector<1x512x128xf32>
    tpu.vector_store %arg4[%c0_7, %c0_8, %c0_9], %11 {strides = array<i32>} : memref<1x512x128xf32, #tpu.memory_space<vmem>>, vector<1x512x128xf32>,
    return
  }
  func.func @transform_0(%arg0: i32) -> (i32, i32, i32) {
    %c0_i32 = arith.constant 0 : i32
    %c0_i32_0 = arith.constant 0 : i32
    %c0_i32_1 = arith.constant 0 : i32
    return %arg0, %c0_i32, %c0_i32_0 : i32, i32, i32
  }
  func.func @transform_1(%arg0: i32) -> (i32, i32, i32) {
    %c0_i32 = arith.constant 0 : i32
    %c0_i32_0 = arith.constant 0 : i32
    %c0_i32_1 = arith.constant 0 : i32
    return %arg0, %c0_i32, %c0_i32_0 : i32, i32, i32
  }
  func.func @transform_2(%arg0: i32) -> (i32, i32) {
    %c0_i32 = arith.constant 0 : i32
    %c0_i32_0 = arith.constant 0 : i32
    %c0_i32_1 = arith.constant 0 : i32
    return %c0_i32, %c0_i32_0 : i32, i32
  }
  func.func @transform_3(%arg0: i32) -> (i32, i32, i32) {
    %c0_i32 = arith.constant 0 : i32
    %c0_i32_0 = arith.constant 0 : i32
    %c0_i32_1 = arith.constant 0 : i32
    return %arg0, %c0_i32, %c0_i32_0 : i32, i32, i32
  }
}

</mosaic_0001>

<bundles_post_ra>
// kernel: generator_forward.4
= control target key start
LH: loop header
LB: loop body
LE: loop exit
PB: predicated region body
PF: predicated region fallthrough
CT: control target
= control target key end

     0   :  { %v10691_v3 = vmov 0   ;;  %vm4742_vm0 = vcmask 1041408   ;;  %s10685_s1 = inlined_call_operand.vmem [shape: bf16[128,8192], index: 1, kind: input, shape index: {}]   ;;  %s10686_s0 = inlined_call_operand.vmem [shape: bf16[2,128], index: 0, kind: input, shape index: {}]   ;;  %s10687_s2 = inlined_call_operand.vmem [shape: f32[1,8192], index: 2, kind: input, shape index: {}]   ;;  %s10688_s3 = inlined_call_operand.vmem [shape: f32[1,512], index: 3, kind: input, shape index: {}]   ;;  %s10689_s4 = inlined_call_operand.vmem [shape: f32[1,512], index: 4, kind: input, shape index: {}]   ;;  %s10690_s5 = inlined_call_operand.vmem [shape: bf16[2,8192], index: 5, kind: output, shape index: {}]  }
   0x1   :  { %v22_v0 = vld [vmem:[%s10685_s1] sm:$0xff]  ;;  %v23_v2 = vld [vmem:[%s10685_s1 + $0x8] sm:$0xff]  ;;  %3462 = vmatprep.mubr.bf16.mxu0 %v10691_v3  ;;  %3503 = vmatprep.mubr.bf16.mxu1 %v10691_v3  ;;  %v24_v63 = vld [vmem:[%s10685_s1 + $0x10] sm:$0xff] }
   0x2   :  { %v54_v1 = vld [vmem:[%s10685_s1 + $0x100] sm:$0xff]  ;;  %v55_v5 = vld [vmem:[%s10685_s1 + $0x108] sm:$0xff] }
   0x3   :  { %v6694_v4 = vcombine.high %v22_v0, %v54_v1  ;;  %v6693_v6 = vcombine.low %v22_v0, %v54_v1  ;;  %v86_v7 = vld [vmem:[%s10685_s1 + $0x200] sm:$0xff]  ;;  %v6696_v9 = vcombine.high %v23_v2, %v55_v5  ;;  %v6695_v10 = vcombine.low %v23_v2, %v55_v5  ;;  %v87_v12 = vld [vmem:[%s10685_s1 + $0x208] sm:$0xff]  ;;  %v56_v0 = vld [vmem:[%s10685_s1 + $0x110] sm:$0xff] }
   0x4   :  { %v118_v8 = vld [vmem:[%s10685_s1 + $0x300] sm:$0xff]  ;;  %v119_v13 = vld [vmem:[%s10685_s1 + $0x308] sm:$0xff]  ;;  %v25_v1 = vld [vmem:[%s10685_s1 + $0x18] sm:$0xff] }
   0x5   :  { %v6758_v11 = vcombine.high %v86_v7, %v118_v8  ;;  %v150_v14 = vld [vmem:[%s10685_s1 + $0x400] sm:$0xff]  ;;  %3430 = vmatprep.subr.bf16.mxu0 %v6694_v4  ;;  %v6760_v15 = vcombine.high %v87_v12, %v119_v13  ;;  %v151_v17 = vld [vmem:[%s10685_s1 + $0x408] sm:$0xff]  ;;  %3471 = vmatprep.subr.bf16.mxu1 %v6696_v9  ;;  %v6757_v19 = vcombine.low %v86_v7, %v118_v8  ;;  %v57_v2 = vld [vmem:[%s10685_s1 + $0x118] sm:$0xff] }
   0x6   :  { %v182_v16 = vld [vmem:[%s10685_s1 + $0x500] sm:$0xff]  ;;  %v183_v18 = vld [vmem:[%s10685_s1 + $0x508] sm:$0xff]  ;;  %3431 = vmatpush1.bf16.msra.mxu0 %v6693_v6  ;;  %3472 = vmatpush1.bf16.msra.mxu1 %v6695_v10  ;;  %v6759_v20 = vcombine.low %v87_v12, %v119_v13  ;;  %v6698_v6 = vcombine.high %v24_v63, %v56_v0  ;;  %v6700_v7 = vcombine.high %v25_v1, %v57_v2  ;;  %v88_v8 = vld [vmem:[%s10685_s1 + $0x210] sm:$0xff] }
   0x7   :  { %3432 = vmatprep.subr.bf16.mxu0 %v6758_v11  ;;  %v6822_v21 = vcombine.high %v150_v14, %v182_v16  ;;  %3473 = vmatprep.subr.bf16.mxu1 %v6760_v15  ;;  %v6824_v22 = vcombine.high %v151_v17, %v183_v18  ;;  %v214_v23 = vld [vmem:[%s10685_s1 + $0x600] sm:$0xff]  ;;  %v215_v25 = vld [vmem:[%s10685_s1 + $0x608] sm:$0xff]  ;;  %v6821_v27 = vcombine.low %v150_v14, %v182_v16  ;;  %v120_v9 = vld [vmem:[%s10685_s1 + $0x310] sm:$0xff] }
   0x8   :  { %v246_v24 = vld [vmem:[%s10685_s1 + $0x700] sm:$0xff]  ;;  %v247_v26 = vld [vmem:[%s10685_s1 + $0x708] sm:$0xff]  ;;  %v6823_v28 = vcombine.low %v151_v17, %v183_v18  ;;  %v89_v10 = vld [vmem:[%s10685_s1 + $0x218] sm:$0xff]  ;;  %v6697_v13 = vcombine.low %v24_v63, %v56_v0  ;;  %v6699_v14 = vcombine.low %v25_v1, %v57_v2  ;;  %v6762_v15 = vcombine.high %v88_v8, %v120_v9 }
   0x9   :  { %v6886_v29 = vcombine.high %v214_v23, %v246_v24  ;;  %v6888_v30 = vcombine.high %v215_v25, %v247_v26  ;;  %v278_v31 = vld [vmem:[%s10685_s1 + $0x800] sm:$0xff]  ;;  %v279_v33 = vld [vmem:[%s10685_s1 + $0x808] sm:$0xff]  ;;  %v6885_v35 = vcombine.low %v214_v23, %v246_v24  ;;  %v6887_v36 = vcombine.low %v215_v25, %v247_v26  ;;  %v121_v11 = vld [vmem:[%s10685_s1 + $0x318] sm:$0xff] }
   0xa   :  { %3433 = vmatpush1.bf16.msra.mxu0 %v6757_v19  ;;  %3474 = vmatpush1.bf16.msra.mxu1 %v6759_v20  ;;  %v310_v32 = vld [vmem:[%s10685_s1 + $0x900] sm:$0xff]  ;;  %v311_v34 = vld [vmem:[%s10685_s1 + $0x908] sm:$0xff]  ;;  %v6764_v16 = vcombine.high %v89_v10, %v121_v11  ;;  %v152_v17 = vld [vmem:[%s10685_s1 + $0x410] sm:$0xff] }
   0xb   :  { %3434 = vmatprep.subr.bf16.mxu0 %v6822_v21  ;;  %3475 = vmatprep.subr.bf16.mxu1 %v6824_v22  ;;  %v6950_v37 = vcombine.high %v278_v31, %v310_v32  ;;  %v6952_v38 = vcombine.high %v279_v33, %v311_v34  ;;  %v342_v39 = vld [vmem:[%s10685_s1 + $0xa00] sm:$0xff]  ;;  %v343_v41 = vld [vmem:[%s10685_s1 + $0xa08] sm:$0xff]  ;;  %v6949_v43 = vcombine.low %v278_v31, %v310_v32  ;;  %v184_v18 = vld [vmem:[%s10685_s1 + $0x510] sm:$0xff] }
   0xc   :  { %v374_v40 = vld [vmem:[%s10685_s1 + $0xb00] sm:$0xff]  ;;  %v375_v42 = vld [vmem:[%s10685_s1 + $0xb08] sm:$0xff]  ;;  %v6951_v44 = vcombine.low %v279_v33, %v311_v34  ;;  %v153_v19 = vld [vmem:[%s10685_s1 + $0x418] sm:$0xff]  ;;  %v6761_v21 = vcombine.low %v88_v8, %v120_v9  ;;  %v6763_v22 = vcombine.low %v89_v10, %v121_v11  ;;  %v6826_v23 = vcombine.high %v152_v17, %v184_v18 }
   0xd   :  { %v7014_v45 = vcombine.high %v342_v39, %v374_v40  ;;  %v7016_v46 = vcombine.high %v343_v41, %v375_v42  ;;  %v406_v47 = vld [vmem:[%s10685_s1 + $0xc00] sm:$0xff]  ;;  %v407_v49 = vld [vmem:[%s10685_s1 + $0xc08] sm:$0xff]  ;;  %v7013_v51 = vcombine.low %v342_v39, %v374_v40  ;;  %v7015_v52 = vcombine.low %v343_v41, %v375_v42  ;;  %v185_v20 = vld [vmem:[%s10685_s1 + $0x518] sm:$0xff] }
   0xe   :  { %3435 = vmatpush1.bf16.msra.mxu0 %v6821_v27  ;;  %3476 = vmatpush1.bf16.msra.mxu1 %v6823_v28  ;;  %v438_v48 = vld [vmem:[%s10685_s1 + $0xd00] sm:$0xff]  ;;  %v439_v50 = vld [vmem:[%s10685_s1 + $0xd08] sm:$0xff]  ;;  %v6828_v24 = vcombine.high %v153_v19, %v185_v20  ;;  %v216_v25 = vld [vmem:[%s10685_s1 + $0x610] sm:$0xff] }
   0xf   :  { %3436 = vmatprep.subr.bf16.mxu0 %v6886_v29  ;;  %3477 = vmatprep.subr.bf16.mxu1 %v6888_v30  ;;  %v7078_v53 = vcombine.high %v406_v47, %v438_v48  ;;  %v7080_v54 = vcombine.high %v407_v49, %v439_v50  ;;  %v470_v55 = vld [vmem:[%s10685_s1 + $0xe00] sm:$0xff]  ;;  %v471_v57 = vld [vmem:[%s10685_s1 + $0xe08] sm:$0xff]  ;;  %v7077_v59 = vcombine.low %v406_v47, %v438_v48  ;;  %v248_v26 = vld [vmem:[%s10685_s1 + $0x710] sm:$0xff] }
  0x10   :  { %v502_v56 = vld [vmem:[%s10685_s1 + $0xf00] sm:$0xff]  ;;  %v503_v58 = vld [vmem:[%s10685_s1 + $0xf08] sm:$0xff]  ;;  %v7079_v60 = vcombine.low %v407_v49, %v439_v50  ;;  %v217_v27 = vld [vmem:[%s10685_s1 + $0x618] sm:$0xff]  ;;  %v6825_v29 = vcombine.low %v152_v17, %v184_v18  ;;  %v6827_v30 = vcombine.low %v153_v19, %v185_v20  ;;  %v6890_v31 = vcombine.high %v216_v25, %v248_v26 }
  0x11   :  { %v7142_v61 = vcombine.high %v470_v55, %v502_v56  ;;  %v7144_v62 = vcombine.high %v471_v57, %v503_v58  ;;  %v7141_v4 = vcombine.low %v470_v55, %v502_v56  ;;  %v7143_v5 = vcombine.low %v471_v57, %v503_v58  ;;  %v7423_v12 = vld [vmem:[%s10686_s0] sm:$0x1]  ;;  %v249_v28 = vld [vmem:[%s10685_s1 + $0x718] sm:$0xff]  ;;  %v280_v33 = vld [vmem:[%s10685_s1 + $0x810] sm:$0xff] }
  0x12   :  { %3437 = vmatpush1.bf16.msra.mxu0 %v6885_v35  ;;  %3478 = vmatpush1.bf16.msra.mxu1 %v6887_v36  ;;  %v6892_v32 = vcombine.high %v217_v27, %v249_v28  ;;  %v312_v34 = vld [vmem:[%s10685_s1 + $0x910] sm:$0xff]  ;;  %v281_v35 = vld [vmem:[%s10685_s1 + $0x818] sm:$0xff]  ;;  %v26_v1 = vld [vmem:[%s10685_s1 + $0x20] sm:$0xff] }
  0x13   :  { %3438 = vmatprep.subr.bf16.mxu0 %v6950_v37  ;;  %3479 = vmatprep.subr.bf16.mxu1 %v6952_v38  ;;  %v313_v36 = vld [vmem:[%s10685_s1 + $0x918] sm:$0xff]  ;;  %v6889_v37 = vcombine.low %v216_v25, %v248_v26  ;;  %v6891_v38 = vcombine.low %v217_v27, %v249_v28  ;;  %v6954_v39 = vcombine.high %v280_v33, %v312_v34  ;;  %v344_v41 = vld [vmem:[%s10685_s1 + $0xa10] sm:$0xff]  ;;  %v58_v2 = vld [vmem:[%s10685_s1 + $0x120] sm:$0xff] }
  0x14   :  { %v6956_v40 = vcombine.high %v281_v35, %v313_v36  ;;  %v376_v42 = vld [vmem:[%s10685_s1 + $0xb10] sm:$0xff]  ;;  %v6702_v8 = vcombine.high %v26_v1, %v58_v2  ;;  %v90_v10 = vld [vmem:[%s10685_s1 + $0x220] sm:$0xff] }
  0x15   :  { %v7018_v47 = vcombine.high %v344_v41, %v376_v42  ;;  %v408_v49 = vld [vmem:[%s10685_s1 + $0xc10] sm:$0xff]  ;;  %v122_v11 = vld [vmem:[%s10685_s1 + $0x320] sm:$0xff] }
  0x16   :  { %3439 = vmatpush1.bf16.msra.mxu0 %v6949_v43  ;;  %3480 = vmatpush1.bf16.msra.mxu1 %v6951_v44  ;;  %v345_v43 = vld [vmem:[%s10685_s1 + $0xa18] sm:$0xff]  ;;  %v440_v50 = vld [vmem:[%s10685_s1 + $0xd10] sm:$0xff]  ;;  %v6766_v17 = vcombine.high %v90_v10, %v122_v11  ;;  %v154_v19 = vld [vmem:[%s10685_s1 + $0x420] sm:$0xff] }
  0x17   :  { %3440 = vmatprep.subr.bf16.mxu0 %v7014_v45  ;;  %3481 = vmatprep.subr.bf16.mxu1 %v7016_v46  ;;  %v377_v44 = vld [vmem:[%s10685_s1 + $0xb18] sm:$0xff]  ;;  %v6953_v45 = vcombine.low %v280_v33, %v312_v34  ;;  %v6955_v46 = vcombine.low %v281_v35, %v313_v36  ;;  %v7082_v55 = vcombine.high %v408_v49, %v440_v50  ;;  %v472_v57 = vld [vmem:[%s10685_s1 + $0xe10] sm:$0xff]  ;;  %v186_v20 = vld [vmem:[%s10685_s1 + $0x520] sm:$0xff] }
  0x18   :  { %v7020_v48 = vcombine.high %v345_v43, %v377_v44  ;;  %v504_v58 = vld [vmem:[%s10685_s1 + $0xf10] sm:$0xff]  ;;  %v6830_v25 = vcombine.high %v154_v19, %v186_v20  ;;  %v218_v27 = vld [vmem:[%s10685_s1 + $0x620] sm:$0xff] }
  0x19   :  { %v7146_v63 = vcombine.high %v472_v57, %v504_v58  ;;  %v250_v28 = vld [vmem:[%s10685_s1 + $0x720] sm:$0xff] }
  0x1a   :  { %3441 = vmatpush1.bf16.msra.mxu0 %v7013_v51  ;;  %3482 = vmatpush1.bf16.msra.mxu1 %v7015_v52  ;;  %v409_v51 = vld [vmem:[%s10685_s1 + $0xc18] sm:$0xff]  ;;  %v6894_v33 = vcombine.high %v218_v27, %v250_v28  ;;  %v282_v35 = vld [vmem:[%s10685_s1 + $0x820] sm:$0xff] }
  0x1b   :  { %3442 = vmatprep.subr.bf16.mxu0 %v7078_v53  ;;  %3483 = vmatprep.subr.bf16.mxu1 %v7080_v54  ;;  %v441_v52 = vld [vmem:[%s10685_s1 + $0xd18] sm:$0xff]  ;;  %v7017_v53 = vcombine.low %v344_v41, %v376_v42  ;;  %v7019_v54 = vcombine.low %v345_v43, %v377_v44  ;;  %v314_v36 = vld [vmem:[%s10685_s1 + $0x920] sm:$0xff] }
  0x1c   :  { %v7084_v56 = vcombine.high %v409_v51, %v441_v52  ;;  %v6958_v41 = vcombine.high %v282_v35, %v314_v36  ;;  %v346_v43 = vld [vmem:[%s10685_s1 + $0xa20] sm:$0xff] }
  0x1d   :  { %v378_v44 = vld [vmem:[%s10685_s1 + $0xb20] sm:$0xff] }
  0x1e   :  { %3443 = vmatpush1.bf16.msra.mxu0 %v7077_v59  ;;  %3484 = vmatpush1.bf16.msra.mxu1 %v7079_v60  ;;  %v473_v59 = vld [vmem:[%s10685_s1 + $0xe18] sm:$0xff] }
  0x1f   :  { %3444 = vmatprep.subr.bf16.mxu0 %v7142_v61  ;;  %3485 = vmatprep.subr.bf16.mxu1 %v7144_v62  ;;  %v505_v60 = vld [vmem:[%s10685_s1 + $0xf18] sm:$0xff]  ;;  %v7081_v61 = vcombine.low %v408_v49, %v440_v50  ;;  %v7083_v62 = vcombine.low %v409_v51, %v441_v52  ;;  %v7022_v49 = vcombine.high %v346_v43, %v378_v44  ;;  %v410_v51 = vld [vmem:[%s10685_s1 + $0xc20] sm:$0xff] }
  0x20   :  { %v7148_v0 = vcombine.high %v473_v59, %v505_v60  ;;  %v442_v52 = vld [vmem:[%s10685_s1 + $0xd20] sm:$0xff] }
  0x22   :  { %3445 = vmatpush1.bf16.msra.mxu0 %v7141_v4  ;;  %3486 = vmatpush1.bf16.msra.mxu1 %v7143_v5  ;;  %v27_v4 = vld [vmem:[%s10685_s1 + $0x28] sm:$0xff] }
  0x23   :  { %3512 = vmatprep.subr.bf16.mxu0 %v6698_v6  ;;  %3553 = vmatprep.subr.bf16.mxu1 %v6700_v7  ;;  %v59_v5 = vld [vmem:[%s10685_s1 + $0x128] sm:$0xff]  ;;  %v7145_v6 = vcombine.low %v472_v57, %v504_v58  ;;  %v7147_v7 = vcombine.low %v473_v59, %v505_v60  ;;  %v7086_v57 = vcombine.high %v410_v51, %v442_v52  ;;  %v474_v59 = vld [vmem:[%s10685_s1 + $0xe20] sm:$0xff] }
  0x24   :  { %v6704_v9 = vcombine.high %v27_v4, %v59_v5  ;;  %v506_v60 = vld [vmem:[%s10685_s1 + $0xf20] sm:$0xff] }
  0x25   :  { %3463 = vmatmul.mubr.bf16.vlgmr.msra.gmra.mrb[0].mxu0 %v7423_v12  ;;  %3504 = vmatmul.mubr.bf16.vlgmr.msra.gmra.mrb[0].mxu1 %v7423_v12 }
  0x26   :  { %3513 = vmatpush1.bf16.msra.mxu0 %v6697_v13  ;;  %3554 = vmatpush1.bf16.msra.mxu1 %v6699_v14  ;;  %v91_v13 = vld [vmem:[%s10685_s1 + $0x228] sm:$0xff] }
  0x27   :  { %3514 = vmatprep.subr.bf16.mxu0 %v6762_v15  ;;  %3555 = vmatprep.subr.bf16.mxu1 %v6764_v16  ;;  %v123_v14 = vld [vmem:[%s10685_s1 + $0x328] sm:$0xff]  ;;  %v6701_v15 = vcombine.low %v26_v1, %v58_v2  ;;  %v6703_v16 = vcombine.low %v27_v4, %v59_v5  ;;  %v7150_v1 = vcombine.high %v474_v59, %v506_v60  ;;  %v28_v4 = vld [vmem:[%s10685_s1 + $0x30] sm:$0xff] }
  0x28   :  { %3544 = vmatprep.mubr.bf16.mxu0 %v10691_v3  ;;  %3585 = vmatprep.mubr.bf16.mxu1 %v10691_v3  ;;  %v6768_v18 = vcombine.high %v91_v13, %v123_v14  ;;  %v60_v5 = vld [vmem:[%s10685_s1 + $0x130] sm:$0xff] }
  0x2a   :  { %3515 = vmatpush1.bf16.msra.mxu0 %v6761_v21  ;;  %3556 = vmatpush1.bf16.msra.mxu1 %v6763_v22  ;;  %v155_v21 = vld [vmem:[%s10685_s1 + $0x428] sm:$0xff] }
  0x2b   :  { %3516 = vmatprep.subr.bf16.mxu0 %v6826_v23  ;;  %3557 = vmatprep.subr.bf16.mxu1 %v6828_v24  ;;  %v187_v22 = vld [vmem:[%s10685_s1 + $0x528] sm:$0xff]  ;;  %v6765_v23 = vcombine.low %v90_v10, %v122_v11  ;;  %v6767_v24 = vcombine.low %v91_v13, %v123_v14  ;;  %v6706_v10 = vcombine.high %v28_v4, %v60_v5  ;;  %v92_v13 = vld [vmem:[%s10685_s1 + $0x230] sm:$0xff] }
  0x2c   :  { %v6832_v26 = vcombine.high %v155_v21, %v187_v22  ;;  %v124_v14 = vld [vmem:[%s10685_s1 + $0x330] sm:$0xff] }
  0x2e   :  { %3517 = vmatpush1.bf16.msra.mxu0 %v6825_v29  ;;  %3558 = vmatpush1.bf16.msra.mxu1 %v6827_v30  ;;  %v219_v29 = vld [vmem:[%s10685_s1 + $0x628] sm:$0xff] }
  0x2f   :  { %3518 = vmatprep.subr.bf16.mxu0 %v6890_v31  ;;  %3559 = vmatprep.subr.bf16.mxu1 %v6892_v32  ;;  %v251_v30 = vld [vmem:[%s10685_s1 + $0x728] sm:$0xff]  ;;  %v6829_v31 = vcombine.low %v154_v19, %v186_v20  ;;  %v6831_v32 = vcombine.low %v155_v21, %v187_v22  ;;  %v6770_v19 = vcombine.high %v92_v13, %v124_v14  ;;  %v156_v21 = vld [vmem:[%s10685_s1 + $0x430] sm:$0xff] }
  0x30   :  { %v6896_v34 = vcombine.high %v219_v29, %v251_v30  ;;  %v188_v22 = vld [vmem:[%s10685_s1 + $0x530] sm:$0xff] }
  0x32   :  { %3519 = vmatpush1.bf16.msra.mxu0 %v6889_v37  ;;  %3560 = vmatpush1.bf16.msra.mxu1 %v6891_v38  ;;  %v283_v37 = vld [vmem:[%s10685_s1 + $0x828] sm:$0xff] }
  0x33   :  { %3520 = vmatprep.subr.bf16.mxu0 %v6954_v39  ;;  %3561 = vmatprep.subr.bf16.mxu1 %v6956_v40  ;;  %v315_v38 = vld [vmem:[%s10685_s1 + $0x928] sm:$0xff]  ;;  %v6893_v39 = vcombine.low %v218_v27, %v250_v28  ;;  %v6895_v40 = vcombine.low %v219_v29, %v251_v30  ;;  %v6834_v27 = vcombine.high %v156_v21, %v188_v22  ;;  %v220_v29 = vld [vmem:[%s10685_s1 + $0x630] sm:$0xff] }
  0x34   :  { %v6960_v42 = vcombine.high %v283_v37, %v315_v38  ;;  %v252_v30 = vld [vmem:[%s10685_s1 + $0x730] sm:$0xff] }
  0x36   :  { %3521 = vmatpush1.bf16.msra.mxu0 %v6953_v45  ;;  %3562 = vmatpush1.bf16.msra.mxu1 %v6955_v46  ;;  %v347_v45 = vld [vmem:[%s10685_s1 + $0xa28] sm:$0xff] }
  0x37   :  { %3522 = vmatprep.subr.bf16.mxu0 %v7018_v47  ;;  %3563 = vmatprep.subr.bf16.mxu1 %v7020_v48  ;;  %v379_v46 = vld [vmem:[%s10685_s1 + $0xb28] sm:$0xff]  ;;  %v6957_v47 = vcombine.low %v282_v35, %v314_v36  ;;  %v6959_v48 = vcombine.low %v283_v37, %v315_v38  ;;  %v6898_v35 = vcombine.high %v220_v29, %v252_v30  ;;  %v284_v37 = vld [vmem:[%s10685_s1 + $0x830] sm:$0xff] }
  0x38   :  { %v7024_v50 = vcombine.high %v347_v45, %v379_v46  ;;  %v316_v38 = vld [vmem:[%s10685_s1 + $0x930] sm:$0xff] }
  0x3a   :  { %3523 = vmatpush1.bf16.msra.mxu0 %v7017_v53  ;;  %3564 = vmatpush1.bf16.msra.mxu1 %v7019_v54  ;;  %v411_v53 = vld [vmem:[%s10685_s1 + $0xc28] sm:$0xff] }
  0x3b   :  { %3524 = vmatprep.subr.bf16.mxu0 %v7082_v55  ;;  %3565 = vmatprep.subr.bf16.mxu1 %v7084_v56  ;;  %v443_v54 = vld [vmem:[%s10685_s1 + $0xd28] sm:$0xff]  ;;  %v7021_v55 = vcombine.low %v346_v43, %v378_v44  ;;  %v7023_v56 = vcombine.low %v347_v45, %v379_v46  ;;  %v6962_v43 = vcombine.high %v284_v37, %v316_v38  ;;  %v348_v45 = vld [vmem:[%s10685_s1 + $0xa30] sm:$0xff] }
  0x3c   :  { %v7088_v58 = vcombine.high %v411_v53, %v443_v54  ;;  %v380_v46 = vld [vmem:[%s10685_s1 + $0xb30] sm:$0xff] }
  0x3e   :  { %3525 = vmatpush1.bf16.msra.mxu0 %v7081_v61  ;;  %3566 = vmatpush1.bf16.msra.mxu1 %v7083_v62  ;;  %v475_v61 = vld [vmem:[%s10685_s1 + $0xe28] sm:$0xff] }
  0x3f   :  { %3526 = vmatprep.subr.bf16.mxu0 %v7146_v63  ;;  %3567 = vmatprep.subr.bf16.mxu1 %v7148_v0  ;;  %v507_v62 = vld [vmem:[%s10685_s1 + $0xf28] sm:$0xff]  ;;  %v7085_v63 = vcombine.low %v410_v51, %v442_v52  ;;  %v7087_v0 = vcombine.low %v411_v53, %v443_v54  ;;  %v7026_v51 = vcombine.high %v348_v45, %v380_v46  ;;  %v412_v53 = vld [vmem:[%s10685_s1 + $0xc30] sm:$0xff] }
  0x40   :  { %v7152_v2 = vcombine.high %v475_v61, %v507_v62  ;;  %v444_v54 = vld [vmem:[%s10685_s1 + $0xd30] sm:$0xff] }
  0x42   :  { %3527 = vmatpush1.bf16.msra.mxu0 %v7145_v6  ;;  %3568 = vmatpush1.bf16.msra.mxu1 %v7147_v7  ;;  %v29_v6 = vld [vmem:[%s10685_s1 + $0x38] sm:$0xff] }
  0x43   :  { %3594 = vmatprep.subr.bf16.mxu0 %v6702_v8  ;;  %3635 = vmatprep.subr.bf16.mxu1 %v6704_v9  ;;  %v61_v7 = vld [vmem:[%s10685_s1 + $0x138] sm:$0xff]  ;;  %v7149_v8 = vcombine.low %v474_v59, %v506_v60  ;;  %v7151_v9 = vcombine.low %v475_v61, %v507_v62  ;;  %v7090_v59 = vcombine.high %v412_v53, %v444_v54  ;;  %v476_v61 = vld [vmem:[%s10685_s1 + $0xe30] sm:$0xff] }
  0x44   :  { %v6708_v11 = vcombine.high %v29_v6, %v61_v7  ;;  %v508_v62 = vld [vmem:[%s10685_s1 + $0xf30] sm:$0xff] }
  0x45   :  { %3545 = vmatmul.mubr.bf16.vlgmr.msra.gmra.mrb[4].mxu0 %v7423_v12  ;;  %3586 = vmatmul.mubr.bf16.vlgmr.msra.gmra.mrb[4].mxu1 %v7423_v12 }
  0x46   :  { %3595 = vmatpush1.bf16.msra.mxu0 %v6701_v15  ;;  %3636 = vmatpush1.bf16.msra.mxu1 %v6703_v16  ;;  %v93_v15 = vld [vmem:[%s10685_s1 + $0x238] sm:$0xff] }
  0x47   :  { %3596 = vmatprep.subr.bf16.mxu0 %v6766_v17  ;;  %3637 = vmatprep.subr.bf16.mxu1 %v6768_v18  ;;  %v125_v16 = vld [vmem:[%s10685_s1 + $0x338] sm:$0xff]  ;;  %v6705_v17 = vcombine.low %v28_v4, %v60_v5  ;;  %v6707_v18 = vcombine.low %v29_v6, %v61_v7  ;;  %v7154_v4 = vcombine.high %v476_v61, %v508_v62  ;;  %v30_v6 = vld [vmem:[%s10685_s1 + $0x40] sm:$0xff] }
  0x48   :  { %3626 = vmatprep.mubr.bf16.mxu0 %v10691_v3  ;;  %3667 = vmatprep.mubr.bf16.mxu1 %v10691_v3  ;;  %v6772_v20 = vcombine.high %v93_v15, %v125_v16  ;;  %v62_v7 = vld [vmem:[%s10685_s1 + $0x140] sm:$0xff] }
  0x4a   :  { %3597 = vmatpush1.bf16.msra.mxu0 %v6765_v23  ;;  %3638 = vmatpush1.bf16.msra.mxu1 %v6767_v24  ;;  %v157_v23 = vld [vmem:[%s10685_s1 + $0x438] sm:$0xff] }
  0x4b   :  { %3598 = vmatprep.subr.bf16.mxu0 %v6830_v25  ;;  %3639 = vmatprep.subr.bf16.mxu1 %v6832_v26  ;;  %v189_v24 = vld [vmem:[%s10685_s1 + $0x538] sm:$0xff]  ;;  %v6769_v25 = vcombine.low %v92_v13, %v124_v14  ;;  %v6771_v26 = vcombine.low %v93_v15, %v125_v16  ;;  %v6710_v13 = vcombine.high %v30_v6, %v62_v7  ;;  %v94_v15 = vld [vmem:[%s10685_s1 + $0x240] sm:$0xff] }
  0x4c   :  { %v6836_v28 = vcombine.high %v157_v23, %v189_v24  ;;  %v126_v16 = vld [vmem:[%s10685_s1 + $0x340] sm:$0xff] }
  0x4e   :  { %3599 = vmatpush1.bf16.msra.mxu0 %v6829_v31  ;;  %3640 = vmatpush1.bf16.msra.mxu1 %v6831_v32  ;;  %v221_v31 = vld [vmem:[%s10685_s1 + $0x638] sm:$0xff] }
  0x4f   :  { %3600 = vmatprep.subr.bf16.mxu0 %v6894_v33  ;;  %3641 = vmatprep.subr.bf16.mxu1 %v6896_v34  ;;  %v253_v32 = vld [vmem:[%s10685_s1 + $0x738] sm:$0xff]  ;;  %v6833_v33 = vcombine.low %v156_v21, %v188_v22  ;;  %v6835_v34 = vcombine.low %v157_v23, %v189_v24  ;;  %v6774_v21 = vcombine.high %v94_v15, %v126_v16  ;;  %v158_v23 = vld [vmem:[%s10685_s1 + $0x440] sm:$0xff] }
  0x50   :  { %v6900_v36 = vcombine.high %v221_v31, %v253_v32  ;;  %v190_v24 = vld [vmem:[%s10685_s1 + $0x540] sm:$0xff] }
  0x52   :  { %3601 = vmatpush1.bf16.msra.mxu0 %v6893_v39  ;;  %3642 = vmatpush1.bf16.msra.mxu1 %v6895_v40  ;;  %v285_v39 = vld [vmem:[%s10685_s1 + $0x838] sm:$0xff] }
  0x53   :  { %3602 = vmatprep.subr.bf16.mxu0 %v6958_v41  ;;  %3643 = vmatprep.subr.bf16.mxu1 %v6960_v42  ;;  %v317_v40 = vld [vmem:[%s10685_s1 + $0x938] sm:$0xff]  ;;  %v6897_v41 = vcombine.low %v220_v29, %v252_v30  ;;  %v6899_v42 = vcombine.low %v221_v31, %v253_v32  ;;  %v6838_v29 = vcombine.high %v158_v23, %v190_v24  ;;  %v222_v31 = vld [vmem:[%s10685_s1 + $0x640] sm:$0xff] }
  0x54   :  { %v6964_v44 = vcombine.high %v285_v39, %v317_v40  ;;  %v254_v32 = vld [vmem:[%s10685_s1 + $0x740] sm:$0xff] }
  0x56   :  { %3603 = vmatpush1.bf16.msra.mxu0 %v6957_v47  ;;  %3644 = vmatpush1.bf16.msra.mxu1 %v6959_v48  ;;  %v349_v47 = vld [vmem:[%s10685_s1 + $0xa38] sm:$0xff] }
  0x57   :  { %3604 = vmatprep.subr.bf16.mxu0 %v7022_v49  ;;  %3645 = vmatprep.subr.bf16.mxu1 %v7024_v50  ;;  %v381_v48 = vld [vmem:[%s10685_s1 + $0xb38] sm:$0xff]  ;;  %v6961_v49 = vcombine.low %v284_v37, %v316_v38  ;;  %v6963_v50 = vcombine.low %v285_v39, %v317_v40  ;;  %v6902_v37 = vcombine.high %v222_v31, %v254_v32  ;;  %v286_v39 = vld [vmem:[%s10685_s1 + $0x840] sm:$0xff] }
  0x58   :  { %v7028_v52 = vcombine.high %v349_v47, %v381_v48  ;;  %v318_v40 = vld [vmem:[%s10685_s1 + $0x940] sm:$0xff] }
  0x5a   :  { %3605 = vmatpush1.bf16.msra.mxu0 %v7021_v55  ;;  %3646 = vmatpush1.bf16.msra.mxu1 %v7023_v56  ;;  %v413_v55 = vld [vmem:[%s10685_s1 + $0xc38] sm:$0xff] }
  0x5b   :  { %3606 = vmatprep.subr.bf16.mxu0 %v7086_v57  ;;  %3647 = vmatprep.subr.bf16.mxu1 %v7088_v58  ;;  %v445_v56 = vld [vmem:[%s10685_s1 + $0xd38] sm:$0xff]  ;;  %v7025_v57 = vcombine.low %v348_v45, %v380_v46  ;;  %v7027_v58 = vcombine.low %v349_v47, %v381_v48  ;;  %v6966_v45 = vcombine.high %v286_v39, %v318_v40  ;;  %v350_v47 = vld [vmem:[%s10685_s1 + $0xa40] sm:$0xff] }
  0x5c   :  { %v7092_v60 = vcombine.high %v413_v55, %v445_v56  ;;  %v382_v48 = vld [vmem:[%s10685_s1 + $0xb40] sm:$0xff] }
  0x5e   :  { %3607 = vmatpush1.bf16.msra.mxu0 %v7085_v63  ;;  %3648 = vmatpush1.bf16.msra.mxu1 %v7087_v0  ;;  %v477_v63 = vld [vmem:[%s10685_s1 + $0xe38] sm:$0xff] }
  0x5f   :  { %3608 = vmatprep.subr.bf16.mxu0 %v7150_v1  ;;  %3649 = vmatprep.subr.bf16.mxu1 %v7152_v2  ;;  %v509_v0 = vld [vmem:[%s10685_s1 + $0xf38] sm:$0xff]  ;;  %v7089_v1 = vcombine.low %v412_v53, %v444_v54  ;;  %v7091_v2 = vcombine.low %v413_v55, %v445_v56  ;;  %v7030_v53 = vcombine.high %v350_v47, %v382_v48  ;;  %v414_v55 = vld [vmem:[%s10685_s1 + $0xc40] sm:$0xff] }
  0x60   :  { %v7156_v5 = vcombine.high %v477_v63, %v509_v0  ;;  %v446_v56 = vld [vmem:[%s10685_s1 + $0xd40] sm:$0xff] }
  0x62   :  { %3609 = vmatpush1.bf16.msra.mxu0 %v7149_v8  ;;  %3650 = vmatpush1.bf16.msra.mxu1 %v7151_v9  ;;  %v31_v8 = vld [vmem:[%s10685_s1 + $0x48] sm:$0xff] }
  0x63   :  { %3676 = vmatprep.subr.bf16.mxu0 %v6706_v10  ;;  %3717 = vmatprep.subr.bf16.mxu1 %v6708_v11  ;;  %v63_v9 = vld [vmem:[%s10685_s1 + $0x148] sm:$0xff]  ;;  %v7153_v10 = vcombine.low %v476_v61, %v508_v62  ;;  %v7155_v11 = vcombine.low %v477_v63, %v509_v0  ;;  %v7094_v61 = vcombine.high %v414_v55, %v446_v56  ;;  %v478_v63 = vld [vmem:[%s10685_s1 + $0xe40] sm:$0xff] }
  0x64   :  { %v6712_v14 = vcombine.high %v31_v8, %v63_v9  ;;  %v510_v0 = vld [vmem:[%s10685_s1 + $0xf40] sm:$0xff] }
  0x65   :  { %3627 = vmatmul.mubr.bf16.vlgmr.msra.gmra.mrb[8].mxu0 %v7423_v12  ;;  %3668 = vmatmul.mubr.bf16.vlgmr.msra.gmra.mrb[8].mxu1 %v7423_v12 }
  0x66   :  { %3677 = vmatpush1.bf16.msra.mxu0 %v6705_v17  ;;  %3718 = vmatpush1.bf16.msra.mxu1 %v6707_v18  ;;  %v95_v17 = vld [vmem:[%s10685_s1 + $0x248] sm:$0xff] }
  0x67   :  { %3678 = vmatprep.subr.bf16.mxu0 %v6770_v19  ;;  %3719 = vmatprep.subr.bf16.mxu1 %v6772_v20  ;;  %v127_v18 = vld [vmem:[%s10685_s1 + $0x348] sm:$0xff]  ;;  %v6709_v19 = vcombine.low %v30_v6, %v62_v7  ;;  %v6711_v20 = vcombine.low %v31_v8, %v63_v9  ;;  %v7158_v6 = vcombine.high %v478_v63, %v510_v0  ;;  %v32_v8 = vld [vmem:[%s10685_s1 + $0x50] sm:$0xff] }
  0x68   :  { %3708 = vmatprep.mubr.bf16.mxu0 %v10691_v3  ;;  %3749 = vmatprep.mubr.bf16.mxu1 %v10691_v3  ;;  %v6776_v22 = vcombine.high %v95_v17, %v127_v18  ;;  %v64_v9 = vld [vmem:[%s10685_s1 + $0x150] sm:$0xff] }
  0x6a   :  { %3679 = vmatpush1.bf16.msra.mxu0 %v6769_v25  ;;  %3720 = vmatpush1.bf16.msra.mxu1 %v6771_v26  ;;  %v159_v25 = vld [vmem:[%s10685_s1 + $0x448] sm:$0xff] }
  0x6b   :  { %3680 = vmatprep.subr.bf16.mxu0 %v6834_v27  ;;  %3721 = vmatprep.subr.bf16.mxu1 %v6836_v28  ;;  %v191_v26 = vld [vmem:[%s10685_s1 + $0x548] sm:$0xff]  ;;  %v6773_v27 = vcombine.low %v94_v15, %v126_v16  ;;  %v6775_v28 = vcombine.low %v95_v17, %v127_v18  ;;  %v6714_v15 = vcombine.high %v32_v8, %v64_v9  ;;  %v96_v17 = vld [vmem:[%s10685_s1 + $0x250] sm:$0xff] }
  0x6c   :  { %v6840_v30 = vcombine.high %v159_v25, %v191_v26  ;;  %v128_v18 = vld [vmem:[%s10685_s1 + $0x350] sm:$0xff] }
  0x6e   :  { %3681 = vmatpush1.bf16.msra.mxu0 %v6833_v33  ;;  %3722 = vmatpush1.bf16.msra.mxu1 %v6835_v34  ;;  %v223_v33 = vld [vmem:[%s10685_s1 + $0x648] sm:$0xff] }
  0x6f   :  { %3682 = vmatprep.subr.bf16.mxu0 %v6898_v35  ;;  %3723 = vmatprep.subr.bf16.mxu1 %v6900_v36  ;;  %v255_v34 = vld [vmem:[%s10685_s1 + $0x748] sm:$0xff]  ;;  %v6837_v35 = vcombine.low %v158_v23, %v190_v24  ;;  %v6839_v36 = vcombine.low %v159_v25, %v191_v26  ;;  %v6778_v23 = vcombine.high %v96_v17, %v128_v18  ;;  %v160_v25 = vld [vmem:[%s10685_s1 + $0x450] sm:$0xff] }
  0x70   :  { %v6904_v38 = vcombine.high %v223_v33, %v255_v34  ;;  %v192_v26 = vld [vmem:[%s10685_s1 + $0x550] sm:$0xff] }
  0x72   :  { %3683 = vmatpush1.bf16.msra.mxu0 %v6897_v41  ;;  %3724 = vmatpush1.bf16.msra.mxu1 %v6899_v42  ;;  %v287_v41 = vld [vmem:[%s10685_s1 + $0x848] sm:$0xff] }
  0x73   :  { %3684 = vmatprep.subr.bf16.mxu0 %v6962_v43  ;;  %3725 = vmatprep.subr.bf16.mxu1 %v6964_v44  ;;  %v319_v42 = vld [vmem:[%s10685_s1 + $0x948] sm:$0xff]  ;;  %v6901_v43 = vcombine.low %v222_v31, %v254_v32  ;;  %v6903_v44 = vcombine.low %v223_v33, %v255_v34  ;;  %v6842_v31 = vcombine.high %v160_v25, %v192_v26  ;;  %v224_v33 = vld [vmem:[%s10685_s1 + $0x650] sm:$0xff] }
  0x74   :  { %v6968_v46 = vcombine.high %v287_v41, %v319_v42  ;;  %v256_v34 = vld [vmem:[%s10685_s1 + $0x750] sm:$0xff] }
  0x76   :  { %3685 = vmatpush1.bf16.msra.mxu0 %v6961_v49  ;;  %3726 = vmatpush1.bf16.msra.mxu1 %v6963_v50  ;;  %v351_v49 = vld [vmem:[%s10685_s1 + $0xa48] sm:$0xff] }
  0x77   :  { %3686 = vmatprep.subr.bf16.mxu0 %v7026_v51  ;;  %3727 = vmatprep.subr.bf16.mxu1 %v7028_v52  ;;  %v383_v50 = vld [vmem:[%s10685_s1 + $0xb48] sm:$0xff]  ;;  %v6965_v51 = vcombine.low %v286_v39, %v318_v40  ;;  %v6967_v52 = vcombine.low %v287_v41, %v319_v42  ;;  %v6906_v39 = vcombine.high %v224_v33, %v256_v34  ;;  %v288_v41 = vld [vmem:[%s10685_s1 + $0x850] sm:$0xff] }
  0x78   :  { %v7032_v54 = vcombine.high %v351_v49, %v383_v50  ;;  %v320_v42 = vld [vmem:[%s10685_s1 + $0x950] sm:$0xff] }
  0x7a   :  { %3687 = vmatpush1.bf16.msra.mxu0 %v7025_v57  ;;  %3728 = vmatpush1.bf16.msra.mxu1 %v7027_v58  ;;  %v415_v57 = vld [vmem:[%s10685_s1 + $0xc48] sm:$0xff] }
  0x7b   :  { %3688 = vmatprep.subr.bf16.mxu0 %v7090_v59  ;;  %3729 = vmatprep.subr.bf16.mxu1 %v7092_v60  ;;  %v447_v58 = vld [vmem:[%s10685_s1 + $0xd48] sm:$0xff]  ;;  %v7029_v59 = vcombine.low %v350_v47, %v382_v48  ;;  %v7031_v60 = vcombine.low %v351_v49, %v383_v50  ;;  %v6970_v47 = vcombine.high %v288_v41, %v320_v42  ;;  %v352_v49 = vld [vmem:[%s10685_s1 + $0xa50] sm:$0xff] }
  0x7c   :  { %v7096_v62 = vcombine.high %v415_v57, %v447_v58  ;;  %v384_v50 = vld [vmem:[%s10685_s1 + $0xb50] sm:$0xff] }
  0x7e   :  { %3689 = vmatpush1.bf16.msra.mxu0 %v7089_v1  ;;  %3730 = vmatpush1.bf16.msra.mxu1 %v7091_v2  ;;  %v479_v1 = vld [vmem:[%s10685_s1 + $0xe48] sm:$0xff] }
  0x7f   :  { %3690 = vmatprep.subr.bf16.mxu0 %v7154_v4  ;;  %3731 = vmatprep.subr.bf16.mxu1 %v7156_v5  ;;  %v511_v2 = vld [vmem:[%s10685_s1 + $0xf48] sm:$0xff]  ;;  %v7093_v4 = vcombine.low %v414_v55, %v446_v56  ;;  %v7095_v5 = vcombine.low %v415_v57, %v447_v58  ;;  %v7034_v55 = vcombine.high %v352_v49, %v384_v50  ;;  %v416_v57 = vld [vmem:[%s10685_s1 + $0xc50] sm:$0xff] }
  0x80   :  { %v7160_v7 = vcombine.high %v479_v1, %v511_v2  ;;  %v448_v58 = vld [vmem:[%s10685_s1 + $0xd50] sm:$0xff] }
  0x82   :  { %3691 = vmatpush1.bf16.msra.mxu0 %v7153_v10  ;;  %3732 = vmatpush1.bf16.msra.mxu1 %v7155_v11  ;;  %v33_v10 = vld [vmem:[%s10685_s1 + $0x58] sm:$0xff] }
  0x83   :  { %3758 = vmatprep.subr.bf16.mxu0 %v6710_v13  ;;  %3799 = vmatprep.subr.bf16.mxu1 %v6712_v14  ;;  %v65_v11 = vld [vmem:[%s10685_s1 + $0x158] sm:$0xff]  ;;  %v7157_v13 = vcombine.low %v478_v63, %v510_v0  ;;  %v7159_v14 = vcombine.low %v479_v1, %v511_v2  ;;  %v7098_v63 = vcombine.high %v416_v57, %v448_v58  ;;  %v480_v1 = vld [vmem:[%s10685_s1 + $0xe50] sm:$0xff] }
  0x84   :  { %v6716_v16 = vcombine.high %v33_v10, %v65_v11  ;;  %v512_v2 = vld [vmem:[%s10685_s1 + $0xf50] sm:$0xff] }
  0x85   :  { %3709 = vmatmul.mubr.bf16.vlgmr.msra.gmra.mrb[12].mxu0 %v7423_v12  ;;  %3750 = vmatmul.mubr.bf16.vlgmr.msra.gmra.mrb[12].mxu1 %v7423_v12 }
  0x86   :  { %3759 = vmatpush1.bf16.msra.mxu0 %v6709_v19  ;;  %3800 = vmatpush1.bf16.msra.mxu1 %v6711_v20  ;;  %v97_v19 = vld [vmem:[%s10685_s1 + $0x258] sm:$0xff] }
  0x87   :  { %3760 = vmatprep.subr.bf16.mxu0 %v6774_v21  ;;  %3801 = vmatprep.subr.bf16.mxu1 %v6776_v22  ;;  %v129_v20 = vld [vmem:[%s10685_s1 + $0x358] sm:$0xff]  ;;  %v6713_v21 = vcombine.low %v32_v8, %v64_v9  ;;  %v6715_v22 = vcombine.low %v33_v10, %v65_v11  ;;  %v7162_v8 = vcombine.high %v480_v1, %v512_v2  ;;  %v34_v10 = vld [vmem:[%s10685_s1 + $0x60] sm:$0xff] }
  0x88   :  { %3790 = vmatprep.mubr.bf16.mxu0 %v10691_v3  ;;  %3831 = vmatprep.mubr.bf16.mxu1 %v10691_v3  ;;  %v6780_v24 = vcombine.high %v97_v19, %v129_v20  ;;  %v66_v11 = vld [vmem:[%s10685_s1 + $0x160] sm:$0xff] }
  0x8a   :  { %3761 = vmatpush1.bf16.msra.mxu0 %v6773_v27  ;;  %3802 = vmatpush1.bf16.msra.mxu1 %v6775_v28  ;;  %v161_v27 = vld [vmem:[%s10685_s1 + $0x458] sm:$0xff] }
  0x8b   :  { %3762 = vmatprep.subr.bf16.mxu0 %v6838_v29  ;;  %3803 = vmatprep.subr.bf16.mxu1 %v6840_v30  ;;  %v193_v28 = vld [vmem:[%s10685_s1 + $0x558] sm:$0xff]  ;;  %v6777_v29 = vcombine.low %v96_v17, %v128_v18  ;;  %v6779_v30 = vcombine.low %v97_v19, %v129_v20  ;;  %v6718_v17 = vcombine.high %v34_v10, %v66_v11  ;;  %v98_v19 = vld [vmem:[%s10685_s1 + $0x260] sm:$0xff] }
  0x8c   :  { %v6844_v32 = vcombine.high %v161_v27, %v193_v28  ;;  %v130_v20 = vld [vmem:[%s10685_s1 + $0x360] sm:$0xff] }
  0x8e   :  { %3763 = vmatpush1.bf16.msra.mxu0 %v6837_v35  ;;  %3804 = vmatpush1.bf16.msra.mxu1 %v6839_v36  ;;  %v225_v35 = vld [vmem:[%s10685_s1 + $0x658] sm:$0xff] }
  0x8f   :  { %3764 = vmatprep.subr.bf16.mxu0 %v6902_v37  ;;  %3805 = vmatprep.subr.bf16.mxu1 %v6904_v38  ;;  %v257_v36 = vld [vmem:[%s10685_s1 + $0x758] sm:$0xff]  ;;  %v6841_v37 = vcombine.low %v160_v25, %v192_v26  ;;  %v6843_v38 = vcombine.low %v161_v27, %v193_v28  ;;  %v6782_v25 = vcombine.high %v98_v19, %v130_v20  ;;  %v162_v27 = vld [vmem:[%s10685_s1 + $0x460] sm:$0xff] }
  0x90   :  { %v6908_v40 = vcombine.high %v225_v35, %v257_v36  ;;  %v194_v28 = vld [vmem:[%s10685_s1 + $0x560] sm:$0xff] }
  0x92   :  { %3765 = vmatpush1.bf16.msra.mxu0 %v6901_v43  ;;  %3806 = vmatpush1.bf16.msra.mxu1 %v6903_v44  ;;  %v289_v43 = vld [vmem:[%s10685_s1 + $0x858] sm:$0xff] }
  0x93   :  { %3766 = vmatprep.subr.bf16.mxu0 %v6966_v45  ;;  %3807 = vmatprep.subr.bf16.mxu1 %v6968_v46  ;;  %v321_v44 = vld [vmem:[%s10685_s1 + $0x958] sm:$0xff]  ;;  %v6905_v45 = vcombine.low %v224_v33, %v256_v34  ;;  %v6907_v46 = vcombine.low %v225_v35, %v257_v36  ;;  %v6846_v33 = vcombine.high %v162_v27, %v194_v28  ;;  %v226_v35 = vld [vmem:[%s10685_s1 + $0x660] sm:$0xff] }
  0x94   :  { %v6972_v48 = vcombine.high %v289_v43, %v321_v44  ;;  %v258_v36 = vld [vmem:[%s10685_s1 + $0x760] sm:$0xff] }
  0x96   :  { %3767 = vmatpush1.bf16.msra.mxu0 %v6965_v51  ;;  %3808 = vmatpush1.bf16.msra.mxu1 %v6967_v52  ;;  %v353_v51 = vld [vmem:[%s10685_s1 + $0xa58] sm:$0xff] }
  0x97   :  { %3768 = vmatprep.subr.bf16.mxu0 %v7030_v53  ;;  %3809 = vmatprep.subr.bf16.mxu1 %v7032_v54  ;;  %v385_v52 = vld [vmem:[%s10685_s1 + $0xb58] sm:$0xff]  ;;  %v6969_v53 = vcombine.low %v288_v41, %v320_v42  ;;  %v6971_v54 = vcombine.low %v289_v43, %v321_v44  ;;  %v6910_v41 = vcombine.high %v226_v35, %v258_v36  ;;  %v290_v43 = vld [vmem:[%s10685_s1 + $0x860] sm:$0xff] }
  0x98   :  { %v7036_v56 = vcombine.high %v353_v51, %v385_v52  ;;  %v322_v44 = vld [vmem:[%s10685_s1 + $0x960] sm:$0xff] }
  0x9a   :  { %3769 = vmatpush1.bf16.msra.mxu0 %v7029_v59  ;;  %3810 = vmatpush1.bf16.msra.mxu1 %v7031_v60  ;;  %v417_v59 = vld [vmem:[%s10685_s1 + $0xc58] sm:$0xff] }
  0x9b   :  { %3770 = vmatprep.subr.bf16.mxu0 %v7094_v61  ;;  %3811 = vmatprep.subr.bf16.mxu1 %v7096_v62  ;;  %v449_v60 = vld [vmem:[%s10685_s1 + $0xd58] sm:$0xff]  ;;  %v7033_v61 = vcombine.low %v352_v49, %v384_v50  ;;  %v7035_v62 = vcombine.low %v353_v51, %v385_v52  ;;  %v6974_v49 = vcombine.high %v290_v43, %v322_v44  ;;  %v354_v51 = vld [vmem:[%s10685_s1 + $0xa60] sm:$0xff] }
  0x9c   :  { %v7100_v0 = vcombine.high %v417_v59, %v449_v60  ;;  %v386_v52 = vld [vmem:[%s10685_s1 + $0xb60] sm:$0xff] }
  0x9e   :  { %3771 = vmatpush1.bf16.msra.mxu0 %v7093_v4  ;;  %3812 = vmatpush1.bf16.msra.mxu1 %v7095_v5  ;;  %v481_v4 = vld [vmem:[%s10685_s1 + $0xe58] sm:$0xff] }
  0x9f   :  { %3772 = vmatprep.subr.bf16.mxu0 %v7158_v6  ;;  %3813 = vmatprep.subr.bf16.mxu1 %v7160_v7  ;;  %v513_v5 = vld [vmem:[%s10685_s1 + $0xf58] sm:$0xff]  ;;  %v7097_v6 = vcombine.low %v416_v57, %v448_v58  ;;  %v7099_v7 = vcombine.low %v417_v59, %v449_v60  ;;  %v7038_v57 = vcombine.high %v354_v51, %v386_v52  ;;  %v418_v59 = vld [vmem:[%s10685_s1 + $0xc60] sm:$0xff] }
  0xa0   :  { %v7164_v9 = vcombine.high %v481_v4, %v513_v5  ;;  %v450_v60 = vld [vmem:[%s10685_s1 + $0xd60] sm:$0xff] }
  0xa2   :  { %3773 = vmatpush1.bf16.msra.mxu0 %v7157_v13  ;;  %3814 = vmatpush1.bf16.msra.mxu1 %v7159_v14  ;;  %v35_v13 = vld [vmem:[%s10685_s1 + $0x68] sm:$0xff] }
  0xa3   :  { %3840 = vmatprep.subr.bf16.mxu0 %v6714_v15  ;;  %3881 = vmatprep.subr.bf16.mxu1 %v6716_v16  ;;  %v67_v14 = vld [vmem:[%s10685_s1 + $0x168] sm:$0xff]  ;;  %v7161_v15 = vcombine.low %v480_v1, %v512_v2  ;;  %v7163_v16 = vcombine.low %v481_v4, %v513_v5  ;;  %v7102_v1 = vcombine.high %v418_v59, %v450_v60  ;;  %v482_v4 = vld [vmem:[%s10685_s1 + $0xe60] sm:$0xff] }
  0xa4   :  { %v6720_v18 = vcombine.high %v35_v13, %v67_v14  ;;  %v514_v5 = vld [vmem:[%s10685_s1 + $0xf60] sm:$0xff] }
  0xa5   :  { %3791 = vmatmul.mubr.bf16.vlgmr.msra.gmra.mrb[16].mxu0 %v7423_v12  ;;  %3832 = vmatmul.mubr.bf16.vlgmr.msra.gmra.mrb[16].mxu1 %v7423_v12 }
  0xa6   :  { %3841 = vmatpush1.bf16.msra.mxu0 %v6713_v21  ;;  %3882 = vmatpush1.bf16.msra.mxu1 %v6715_v22  ;;  %v99_v21 = vld [vmem:[%s10685_s1 + $0x268] sm:$0xff] }
  0xa7   :  { %3842 = vmatprep.subr.bf16.mxu0 %v6778_v23  ;;  %3883 = vmatprep.subr.bf16.mxu1 %v6780_v24  ;;  %v131_v22 = vld [vmem:[%s10685_s1 + $0x368] sm:$0xff]  ;;  %v6717_v23 = vcombine.low %v34_v10, %v66_v11  ;;  %v6719_v24 = vcombine.low %v35_v13, %v67_v14  ;;  %v7166_v10 = vcombine.high %v482_v4, %v514_v5  ;;  %v36_v13 = vld [vmem:[%s10685_s1 + $0x70] sm:$0xff] }
  0xa8   :  { %3872 = vmatprep.mubr.bf16.mxu0 %v10691_v3  ;;  %3913 = vmatprep.mubr.bf16.mxu1 %v10691_v3  ;;  %v6784_v26 = vcombine.high %v99_v21, %v131_v22  ;;  %v68_v14 = vld [vmem:[%s10685_s1 + $0x170] sm:$0xff] }
  0xaa   :  { %3843 = vmatpush1.bf16.msra.mxu0 %v6777_v29  ;;  %3884 = vmatpush1.bf16.msra.mxu1 %v6779_v30  ;;  %v163_v29 = vld [vmem:[%s10685_s1 + $0x468] sm:$0xff] }
  0xab   :  { %3844 = vmatprep.subr.bf16.mxu0 %v6842_v31  ;;  %3885 = vmatprep.subr.bf16.mxu1 %v6844_v32  ;;  %v195_v30 = vld [vmem:[%s10685_s1 + $0x568] sm:$0xff]  ;;  %v7941_v31 = vld [vmem:[%s10686_s0] sm:$0x1]  ;;  %v6781_v32 = vcombine.low %v98_v19, %v130_v20  ;;  %v6722_v19 = vcombine.high %v36_v13, %v68_v14 }
  0xac   :  { %v6848_v34 = vcombine.high %v163_v29, %v195_v30 }
  0xae   :  { %3845 = vmatpush1.bf16.msra.mxu0 %v6841_v37  ;;  %3886 = vmatpush1.bf16.msra.mxu1 %v6843_v38  ;;  %v227_v37 = vld [vmem:[%s10685_s1 + $0x668] sm:$0xff] }
  0xaf   :  { %3846 = vmatprep.subr.bf16.mxu0 %v6906_v39  ;;  %3887 = vmatprep.subr.bf16.mxu1 %v6908_v40  ;;  %v259_v38 = vld [vmem:[%s10685_s1 + $0x768] sm:$0xff]  ;;  %v6845_v39 = vcombine.low %v162_v27, %v194_v28  ;;  %v6847_v40 = vcombine.low %v163_v29, %v195_v30  ;;  %v164_v29 = vld [vmem:[%s10685_s1 + $0x470] sm:$0xff] }
  0xb0   :  { %v6912_v42 = vcombine.high %v227_v37, %v259_v38  ;;  %v196_v30 = vld [vmem:[%s10685_s1 + $0x570] sm:$0xff] }
  0xb2   :  { %3847 = vmatpush1.bf16.msra.mxu0 %v6905_v45  ;;  %3888 = vmatpush1.bf16.msra.mxu1 %v6907_v46  ;;  %v291_v45 = vld [vmem:[%s10685_s1 + $0x868] sm:$0xff] }
  0xb3   :  { %3848 = vmatprep.subr.bf16.mxu0 %v6970_v47  ;;  %3889 = vmatprep.subr.bf16.mxu1 %v6972_v48  ;;  %v323_v46 = vld [vmem:[%s10685_s1 + $0x968] sm:$0xff]  ;;  %v6909_v47 = vcombine.low %v226_v35, %v258_v36  ;;  %v6911_v48 = vcombine.low %v227_v37, %v259_v38  ;;  %v6850_v35 = vcombine.high %v164_v29, %v196_v30  ;;  %v228_v37 = vld [vmem:[%s10685_s1 + $0x670] sm:$0xff] }
  0xb4   :  { %v6976_v50 = vcombine.high %v291_v45, %v323_v46  ;;  %v260_v38 = vld [vmem:[%s10685_s1 + $0x770] sm:$0xff] }
  0xb6   :  { %3849 = vmatpush1.bf16.msra.mxu0 %v6969_v53  ;;  %3890 = vmatpush1.bf16.msra.mxu1 %v6971_v54  ;;  %v355_v53 = vld [vmem:[%s10685_s1 + $0xa68] sm:$0xff] }
  0xb7   :  { %3850 = vmatprep.subr.bf16.mxu0 %v7034_v55  ;;  %3891 = vmatprep.subr.bf16.mxu1 %v7036_v56  ;;  %v387_v54 = vld [vmem:[%s10685_s1 + $0xb68] sm:$0xff]  ;;  %v6973_v55 = vcombine.low %v290_v43, %v322_v44  ;;  %v6975_v56 = vcombine.low %v291_v45, %v323_v46  ;;  %v6914_v43 = vcombine.high %v228_v37, %v260_v38  ;;  %v292_v45 = vld [vmem:[%s10685_s1 + $0x870] sm:$0xff] }
  0xb8   :  { %v7040_v58 = vcombine.high %v355_v53, %v387_v54  ;;  %v324_v46 = vld [vmem:[%s10685_s1 + $0x970] sm:$0xff] }
  0xba   :  { %3851 = vmatpush1.bf16.msra.mxu0 %v7033_v61  ;;  %3892 = vmatpush1.bf16.msra.mxu1 %v7035_v62  ;;  %v419_v61 = vld [vmem:[%s10685_s1 + $0xc68] sm:$0xff] }
  0xbb   :  { %3852 = vmatprep.subr.bf16.mxu0 %v7098_v63  ;;  %3893 = vmatprep.subr.bf16.mxu1 %v7100_v0  ;;  %v451_v62 = vld [vmem:[%s10685_s1 + $0xd68] sm:$0xff]  ;;  %v7037_v63 = vcombine.low %v354_v51, %v386_v52  ;;  %v7039_v0 = vcombine.low %v355_v53, %v387_v54  ;;  %v6978_v51 = vcombine.high %v292_v45, %v324_v46  ;;  %v356_v53 = vld [vmem:[%s10685_s1 + $0xa70] sm:$0xff] }
  0xbc   :  { %v7104_v2 = vcombine.high %v419_v61, %v451_v62  ;;  %v388_v54 = vld [vmem:[%s10685_s1 + $0xb70] sm:$0xff] }
  0xbe   :  { %3853 = vmatpush1.bf16.msra.mxu0 %v7097_v6  ;;  %3894 = vmatpush1.bf16.msra.mxu1 %v7099_v7  ;;  %v483_v6 = vld [vmem:[%s10685_s1 + $0xe68] sm:$0xff] }
  0xbf   :  { %3854 = vmatprep.subr.bf16.mxu0 %v7162_v8  ;;  %3895 = vmatprep.subr.bf16.mxu1 %v7164_v9  ;;  %v515_v7 = vld [vmem:[%s10685_s1 + $0xf68] sm:$0xff]  ;;  %v7101_v8 = vcombine.low %v418_v59, %v450_v60  ;;  %v7103_v9 = vcombine.low %v419_v61, %v451_v62  ;;  %v7042_v59 = vcombine.high %v356_v53, %v388_v54  ;;  %v420_v61 = vld [vmem:[%s10685_s1 + $0xc70] sm:$0xff] }
  0xc0   :  { %v7168_v11 = vcombine.high %v483_v6, %v515_v7  ;;  %v452_v62 = vld [vmem:[%s10685_s1 + $0xd70] sm:$0xff] }
  0xc2   :  { %3855 = vmatpush1.bf16.msra.mxu0 %v7161_v15  ;;  %3896 = vmatpush1.bf16.msra.mxu1 %v7163_v16  ;;  %v37_v15 = vld [vmem:[%s10685_s1 + $0x78] sm:$0xff] }
  0xc3   :  { %3922 = vmatprep.subr.bf16.mxu0 %v6718_v17  ;;  %3963 = vmatprep.subr.bf16.mxu1 %v6720_v18  ;;  %v69_v16 = vld [vmem:[%s10685_s1 + $0x178] sm:$0xff]  ;;  %v7165_v17 = vcombine.low %v482_v4, %v514_v5  ;;  %v7167_v18 = vcombine.low %v483_v6, %v515_v7  ;;  %v7106_v4 = vcombine.high %v420_v61, %v452_v62  ;;  %v484_v7 = vld [vmem:[%s10685_s1 + $0xe70] sm:$0xff] }
  0xc4   :  { %v6724_v20 = vcombine.high %v37_v15, %v69_v16 }
  0xc5   :  { %3873 = vmatmul.mubr.bf16.vlgmr.msra.gmra.mrb[20].mxu0 %v7423_v12  ;;  %3914 = vmatmul.mubr.bf16.vlgmr.msra.gmra.mrb[20].mxu1 %v7941_v31  ;;  %v6783_v12 = vcombine.low %v99_v21, %v131_v22  ;;  %v100_v21 = vld [vmem:[%s10685_s1 + $0x270] sm:$0xff] }
  0xc6   :  { %3923 = vmatpush1.bf16.msra.mxu0 %v6717_v23  ;;  %3964 = vmatpush1.bf16.msra.mxu1 %v6719_v24  ;;  %v132_v22 = vld [vmem:[%s10685_s1 + $0x370] sm:$0xff]  ;;  %v101_v23 = vld [vmem:[%s10685_s1 + $0x278] sm:$0xff] }
  0xc7   :  { %3924 = vmatprep.subr.bf16.mxu0 %v6782_v25  ;;  %3965 = vmatprep.subr.bf16.mxu1 %v6784_v26  ;;  %v133_v24 = vld [vmem:[%s10685_s1 + $0x378] sm:$0xff]  ;;  %v6721_v25 = vcombine.low %v36_v13, %v68_v14  ;;  %v6723_v26 = vcombine.low %v37_v15, %v69_v16  ;;  %v6786_v27 = vcombine.high %v100_v21, %v132_v22 }
  0xc8   :  { %3954 = vmatprep.mubr.bf16.mxu0 %v10691_v3  ;;  %3995 = vmatprep.mubr.bf16.mxu1 %v10691_v3  ;;  %v6788_v28 = vcombine.high %v101_v23, %v133_v24  ;;  %v517_v13 = vld [vmem:[%s10685_s1 + $0xf78] sm:$0xff]  ;;  %v7105_v16 = vcombine.low %v420_v61, %v452_v62 }
  0xca   :  { %3925 = vmatpush1.bf16.msra.mxu0 %v6781_v32  ;;  %3966 = vmatpush1.bf16.msra.mxu1 %v6783_v12  ;;  %v165_v32 = vld [vmem:[%s10685_s1 + $0x478] sm:$0xff] }
  0xcb   :  { %3926 = vmatprep.subr.bf16.mxu0 %v6846_v33  ;;  %3967 = vmatprep.subr.bf16.mxu1 %v6848_v34  ;;  %v197_v12 = vld [vmem:[%s10685_s1 + $0x578] sm:$0xff]  ;;  %v6785_v33 = vcombine.low %v100_v21, %v132_v22  ;;  %v6787_v34 = vcombine.low %v101_v23, %v133_v24  ;;  %v38_v23 = vld [vmem:[%s10685_s1 + $0x80] sm:$0xff] }
  0xcc   :  { %v6852_v36 = vcombine.high %v165_v32, %v197_v12  ;;  %v70_v24 = vld [vmem:[%s10685_s1 + $0x180] sm:$0xff] }
  0xce   :  { %3927 = vmatpush1.bf16.msra.mxu0 %v6845_v39  ;;  %3968 = vmatpush1.bf16.msra.mxu1 %v6847_v40  ;;  %v229_v39 = vld [vmem:[%s10685_s1 + $0x678] sm:$0xff] }
  0xcf   :  { %3928 = vmatprep.subr.bf16.mxu0 %v6910_v41  ;;  %3969 = vmatprep.subr.bf16.mxu1 %v6912_v42  ;;  %v261_v40 = vld [vmem:[%s10685_s1 + $0x778] sm:$0xff]  ;;  %v6849_v41 = vcombine.low %v164_v29, %v196_v30  ;;  %v6851_v42 = vcombine.low %v165_v32, %v197_v12  ;;  %v6726_v29 = vcombine.high %v38_v23, %v70_v24  ;;  %v102_v32 = vld [vmem:[%s10685_s1 + $0x280] sm:$0xff] }
  0xd0   :  { %v6916_v44 = vcombine.high %v229_v39, %v261_v40  ;;  %v134_v12 = vld [vmem:[%s10685_s1 + $0x380] sm:$0xff] }
  0xd2   :  { %3929 = vmatpush1.bf16.msra.mxu0 %v6909_v47  ;;  %3970 = vmatpush1.bf16.msra.mxu1 %v6911_v48  ;;  %v293_v47 = vld [vmem:[%s10685_s1 + $0x878] sm:$0xff] }
  0xd3   :  { %3930 = vmatprep.subr.bf16.mxu0 %v6974_v49  ;;  %3971 = vmatprep.subr.bf16.mxu1 %v6976_v50  ;;  %v325_v48 = vld [vmem:[%s10685_s1 + $0x978] sm:$0xff]  ;;  %v6913_v49 = vcombine.low %v228_v37, %v260_v38  ;;  %v6915_v50 = vcombine.low %v229_v39, %v261_v40  ;;  %v6790_v37 = vcombine.high %v102_v32, %v134_v12  ;;  %v166_v39 = vld [vmem:[%s10685_s1 + $0x480] sm:$0xff] }
  0xd4   :  { %v6980_v52 = vcombine.high %v293_v47, %v325_v48  ;;  %v198_v40 = vld [vmem:[%s10685_s1 + $0x580] sm:$0xff] }
  0xd6   :  { %3931 = vmatpush1.bf16.msra.mxu0 %v6973_v55  ;;  %3972 = vmatpush1.bf16.msra.mxu1 %v6975_v56  ;;  %v357_v55 = vld [vmem:[%s10685_s1 + $0xa78] sm:$0xff] }
  0xd7   :  { %3932 = vmatprep.subr.bf16.mxu0 %v7038_v57  ;;  %3973 = vmatprep.subr.bf16.mxu1 %v7040_v58  ;;  %v389_v56 = vld [vmem:[%s10685_s1 + $0xb78] sm:$0xff]  ;;  %v6977_v57 = vcombine.low %v292_v45, %v324_v46  ;;  %v6979_v58 = vcombine.low %v293_v47, %v325_v48  ;;  %v6854_v45 = vcombine.high %v166_v39, %v198_v40  ;;  %v230_v47 = vld [vmem:[%s10685_s1 + $0x680] sm:$0xff] }
  0xd8   :  { %v7044_v60 = vcombine.high %v357_v55, %v389_v56  ;;  %v262_v48 = vld [vmem:[%s10685_s1 + $0x780] sm:$0xff] }
  0xda   :  { %3933 = vmatpush1.bf16.msra.mxu0 %v7037_v63  ;;  %3974 = vmatpush1.bf16.msra.mxu1 %v7039_v0  ;;  %v421_v63 = vld [vmem:[%s10685_s1 + $0xc78] sm:$0xff] }
  0xdb   :  { %3934 = vmatprep.subr.bf16.mxu0 %v7102_v1  ;;  %3975 = vmatprep.subr.bf16.mxu1 %v7104_v2  ;;  %v453_v0 = vld [vmem:[%s10685_s1 + $0xd78] sm:$0xff]  ;;  %v7041_v1 = vcombine.low %v356_v53, %v388_v54  ;;  %v7043_v2 = vcombine.low %v357_v55, %v389_v56  ;;  %v6918_v53 = vcombine.high %v230_v47, %v262_v48  ;;  %v294_v55 = vld [vmem:[%s10685_s1 + $0x880] sm:$0xff] }
  0xdc   :  { %v7108_v6 = vcombine.high %v421_v63, %v453_v0  ;;  %v326_v56 = vld [vmem:[%s10685_s1 + $0x980] sm:$0xff] }
  0xdd   :  { %v6982_v61 = vcombine.high %v294_v55, %v326_v56 }
  0xde   :  { %3935 = vmatpush1.bf16.msra.mxu0 %v7101_v8  ;;  %3976 = vmatpush1.bf16.msra.mxu1 %v7103_v9  ;;  %v516_v8 = vld [vmem:[%s10685_s1 + $0xf70] sm:$0xff] }
  0xdf   :  { %3936 = vmatprep.subr.bf16.mxu0 %v7166_v10  ;;  %3977 = vmatprep.subr.bf16.mxu1 %v7168_v11  ;;  %v485_v11 = vld [vmem:[%s10685_s1 + $0xe78] sm:$0xff] }
  0xe0   :  { %v7172_v22 = vcombine.high %v485_v11, %v517_v13 }
  0xe2   :  { %3937 = vmatpush1.bf16.msra.mxu0 %v7165_v17  ;;  %3978 = vmatpush1.bf16.msra.mxu1 %v7167_v18 }
  0xe3   :  { %4004 = vmatprep.subr.bf16.mxu0 %v6722_v19  ;;  %4045 = vmatprep.subr.bf16.mxu1 %v6724_v20  ;;  %v7107_v19 = vcombine.low %v421_v63, %v453_v0  ;;  %v7170_v20 = vcombine.high %v484_v7, %v516_v8  ;;  %v358_v63 = vld [vmem:[%s10685_s1 + $0xa80] sm:$0xff] }
  0xe4   :  { %v390_v0 = vld [vmem:[%s10685_s1 + $0xb80] sm:$0xff] }
  0xe5   :  { %3955 = vmatmul.mubr.bf16.vlgmr.msra.gmra.mrb[24].mxu0 %v7941_v31  ;;  %3996 = vmatmul.mubr.bf16.vlgmr.msra.gmra.mrb[24].mxu1 %v7941_v31 }
  0xe6   :  { %4005 = vmatpush1.bf16.msra.mxu0 %v6721_v25  ;;  %4046 = vmatpush1.bf16.msra.mxu1 %v6723_v26  ;;  %v39_v25 = vld [vmem:[%s10685_s1 + $0x88] sm:$0xff] }
  0xe7   :  { %4006 = vmatprep.subr.bf16.mxu0 %v6786_v27  ;;  %4047 = vmatprep.subr.bf16.mxu1 %v6788_v28  ;;  %v71_v26 = vld [vmem:[%s10685_s1 + $0x188] sm:$0xff]  ;;  %v7169_v27 = vcombine.low %v484_v7, %v516_v8  ;;  %v7171_v28 = vcombine.low %v485_v11, %v517_v13  ;;  %v7046_v7 = vcombine.high %v358_v63, %v390_v0  ;;  %v422_v11 = vld [vmem:[%s10685_s1 + $0xc80] sm:$0xff] }
  0xe8   :  { %4036 = vmatprep.mubr.bf16.mxu0 %v10691_v3  ;;  %4077 = vmatprep.mubr.bf16.mxu1 %v10691_v3  ;;  %v6728_v30 = vcombine.high %v39_v25, %v71_v26  ;;  %v454_v13 = vld [vmem:[%s10685_s1 + $0xd80] sm:$0xff] }
  0xea   :  { %4007 = vmatpush1.bf16.msra.mxu0 %v6785_v33  ;;  %4048 = vmatpush1.bf16.msra.mxu1 %v6787_v34  ;;  %v103_v33 = vld [vmem:[%s10685_s1 + $0x288] sm:$0xff] }
  0xeb   :  { %4008 = vmatprep.subr.bf16.mxu0 %v6850_v35  ;;  %4049 = vmatprep.subr.bf16.mxu1 %v6852_v36  ;;  %v135_v34 = vld [vmem:[%s10685_s1 + $0x388] sm:$0xff]  ;;  %v6725_v35 = vcombine.low %v38_v23, %v70_v24  ;;  %v6727_v36 = vcombine.low %v39_v25, %v71_v26  ;;  %v518_v23 = vld [vmem:[%s10685_s1 + $0xf80] sm:$0xff] }
  0xec   :  { %v6792_v38 = vcombine.high %v103_v33, %v135_v34  ;;  %v487_v26 = vld [vmem:[%s10685_s1 + $0xe88] sm:$0xff] }
  0xee   :  { %4009 = vmatpush1.bf16.msra.mxu0 %v6849_v41  ;;  %4050 = vmatpush1.bf16.msra.mxu1 %v6851_v42  ;;  %v167_v41 = vld [vmem:[%s10685_s1 + $0x488] sm:$0xff] }
  0xef   :  { %4010 = vmatprep.subr.bf16.mxu0 %v6914_v43  ;;  %4051 = vmatprep.subr.bf16.mxu1 %v6916_v44  ;;  %v199_v42 = vld [vmem:[%s10685_s1 + $0x588] sm:$0xff]  ;;  %v6789_v43 = vcombine.low %v102_v32, %v134_v12  ;;  %v6791_v44 = vcombine.low %v103_v33, %v135_v34 }
  0xf0   :  { %v6856_v46 = vcombine.high %v167_v41, %v199_v42 }
  0xf2   :  { %4011 = vmatpush1.bf16.msra.mxu0 %v6913_v49  ;;  %4052 = vmatpush1.bf16.msra.mxu1 %v6915_v50  ;;  %v231_v49 = vld [vmem:[%s10685_s1 + $0x688] sm:$0xff] }
  0xf3   :  { %4012 = vmatprep.subr.bf16.mxu0 %v6978_v51  ;;  %4053 = vmatprep.subr.bf16.mxu1 %v6980_v52  ;;  %v263_v50 = vld [vmem:[%s10685_s1 + $0x788] sm:$0xff]  ;;  %v6853_v51 = vcombine.low %v166_v39, %v198_v40  ;;  %v6855_v52 = vcombine.low %v167_v41, %v199_v42  ;;  %v41_v39 = vld [vmem:[%s10685_s1 + $0x98] sm:$0xff] }
  0xf4   :  { %v6920_v54 = vcombine.high %v231_v49, %v263_v50  ;;  %v73_v40 = vld [vmem:[%s10685_s1 + $0x198] sm:$0xff] }
  0xf6   :  { %4013 = vmatpush1.bf16.msra.mxu0 %v6977_v57  ;;  %4054 = vmatpush1.bf16.msra.mxu1 %v6979_v58  ;;  %v295_v57 = vld [vmem:[%s10685_s1 + $0x888] sm:$0xff] }
  0xf7   :  { %4014 = vmatprep.subr.bf16.mxu0 %v7042_v59  ;;  %4055 = vmatprep.subr.bf16.mxu1 %v7044_v60  ;;  %v327_v58 = vld [vmem:[%s10685_s1 + $0x988] sm:$0xff]  ;;  %v6917_v59 = vcombine.low %v230_v47, %v262_v48  ;;  %v6919_v60 = vcombine.low %v231_v49, %v263_v50  ;;  %v105_v47 = vld [vmem:[%s10685_s1 + $0x298] sm:$0xff]  ;;  %v6731_v50 = vcombine.low %v41_v39, %v73_v40 }
  0xf8   :  { %v8094_v5 = vpop.f32.mrb[0].mxu0  ;;  %v8102_v9 = vpop.f32.mrb[0].mxu1  ;;  %v6984_v62 = vcombine.high %v295_v57, %v327_v58  ;;  %v137_v48 = vld [vmem:[%s10685_s1 + $0x398] sm:$0xff] }
  0xf9   :  { %v8104_v10 = vpop.f32.mrb[1].mxu0  ;;  %v8112_v14 = vpop.f32.mrb[1].mxu1 }
  0xfa   :  { %v3468_v15 = vpop.f32.mrb[2].mxu0  ;;  %4015 = vmatpush1.bf16.msra.mxu0 %v7041_v1  ;;  %v3509_v17 = vpop.f32.mrb[2].mxu1  ;;  %4056 = vmatpush1.bf16.msra.mxu1 %v7043_v2  ;;  %v359_v1 = vld [vmem:[%s10685_s1 + $0xa88] sm:$0xff] }
  0xfb   :  { %v3469_v18 = vpop.f32.mrb[3].mxu0  ;;  %4016 = vmatprep.subr.bf16.mxu0 %v7106_v4  ;;  %v3510_v21 = vpop.f32.mrb[3].mxu1  ;;  %4057 = vmatprep.subr.bf16.mxu1 %v7108_v6  ;;  %v391_v2 = vld [vmem:[%s10685_s1 + $0xb88] sm:$0xff]  ;;  %v6981_v4 = vcombine.low %v294_v55, %v326_v56  ;;  %v6983_v6 = vcombine.low %v295_v57, %v327_v58  ;;  %v7045_v17 = vcombine.low %v358_v63, %v390_v0  ;;  %v169_v55 = vld [vmem:[%s10685_s1 + $0x498] sm:$0xff] }
  0xfc   :  { %v7048_v8 = vcombine.high %v359_v1, %v391_v2  ;;  %v423_v15 = vld [vmem:[%s10685_s1 + $0xc88] sm:$0xff]  ;;  %v7047_v18 = vcombine.low %v359_v1, %v391_v2  ;;  %v201_v56 = vld [vmem:[%s10685_s1 + $0x598] sm:$0xff]  ;;  %v6795_v58 = vcombine.low %v105_v47, %v137_v48 }
  0xfd   :  { %v233_v63 = vld [vmem:[%s10685_s1 + $0x698] sm:$0xff]  ;;  %v6859_v2 = vcombine.low %v169_v55, %v201_v56 }
  0xfe   :  { %4017 = vmatpush1.bf16.msra.mxu0 %v7105_v16  ;;  %4058 = vmatpush1.bf16.msra.mxu1 %v7107_v19  ;;  %v455_v16 = vld [vmem:[%s10685_s1 + $0xd88] sm:$0xff]  ;;  %v7110_v19 = vcombine.high %v422_v11, %v454_v13  ;;  %v265_v0 = vld [vmem:[%s10685_s1 + $0x798] sm:$0xff] }
  0xff   :  { %4018 = vmatprep.subr.bf16.mxu0 %v7170_v20  ;;  %4059 = vmatprep.subr.bf16.mxu1 %v7172_v22  ;;  %v7112_v21 = vcombine.high %v423_v15, %v455_v16  ;;  %v486_v22 = vld [vmem:[%s10685_s1 + $0xe80] sm:$0xff]  ;;  %v7111_v33 = vcombine.low %v423_v15, %v455_v16  ;;  %v6923_v16 = vcombine.low %v233_v63, %v265_v0 }
 0x100   :  { %v7174_v34 = vcombine.high %v486_v22, %v518_v23  ;;  %v7173_v41 = vcombine.low %v486_v22, %v518_v23  ;;  %v361_v22 = vld [vmem:[%s10685_s1 + $0xa98] sm:$0xff] }
 0x101   :  { %v393_v23 = vld [vmem:[%s10685_s1 + $0xb98] sm:$0xff] }
 0x102   :  { %4019 = vmatpush1.bf16.msra.mxu0 %v7169_v27  ;;  %4060 = vmatpush1.bf16.msra.mxu1 %v7171_v28  ;;  %v519_v27 = vld [vmem:[%s10685_s1 + $0xf88] sm:$0xff] }
 0x103   :  { %4086 = vmatprep.subr.bf16.mxu0 %v6726_v29  ;;  %4127 = vmatprep.subr.bf16.mxu1 %v6728_v30  ;;  %v7109_v30 = vcombine.low %v422_v11, %v454_v13  ;;  %v7175_v42 = vcombine.low %v487_v26, %v519_v27  ;;  %v297_v11 = vld [vmem:[%s10685_s1 + $0x898] sm:$0xff] }
 0x104   :  { %v329_v13 = vld [vmem:[%s10685_s1 + $0x998] sm:$0xff] }
 0x105   :  { %4037 = vmatmul.mubr.bf16.vlgmr.msra.gmra.mrb[28].mxu0 %v7941_v31  ;;  %4078 = vmatmul.mubr.bf16.vlgmr.msra.gmra.mrb[28].mxu1 %v7941_v31 }
 0x106   :  { %4087 = vmatpush1.bf16.msra.mxu0 %v6725_v35  ;;  %4128 = vmatpush1.bf16.msra.mxu1 %v6727_v36  ;;  %v7176_v36 = vcombine.high %v487_v26, %v519_v27  ;;  %v6987_v27 = vcombine.low %v297_v11, %v329_v13 }
 0x107   :  { %4088 = vmatprep.subr.bf16.mxu0 %v6790_v37  ;;  %4129 = vmatprep.subr.bf16.mxu1 %v6792_v38  ;;  %v40_v37 = vld [vmem:[%s10685_s1 + $0x90] sm:$0xff] }
 0x108   :  { %4118 = vmatprep.mubr.bf16.mxu0 %v10691_v3  ;;  %4159 = vmatprep.mubr.bf16.mxu1 %v10691_v3  ;;  %v72_v38 = vld [vmem:[%s10685_s1 + $0x190] sm:$0xff] }
 0x109   :  { %v6729_v49 = vcombine.low %v40_v37, %v72_v38 }
 0x10a   :  { %4089 = vmatpush1.bf16.msra.mxu0 %v6789_v43  ;;  %4130 = vmatpush1.bf16.msra.mxu1 %v6791_v44  ;;  %v6730_v43 = vcombine.high %v40_v37, %v72_v38  ;;  %v6732_v44 = vcombine.high %v41_v39, %v73_v40  ;;  %v488_v40 = vld [vmem:[%s10685_s1 + $0xe90] sm:$0xff] }
 0x10b   :  { %4090 = vmatprep.subr.bf16.mxu0 %v6854_v45  ;;  %4131 = vmatprep.subr.bf16.mxu1 %v6856_v46  ;;  %v104_v45 = vld [vmem:[%s10685_s1 + $0x290] sm:$0xff] }
 0x10c   :  { %v136_v46 = vld [vmem:[%s10685_s1 + $0x390] sm:$0xff] }
 0x10d   :  { %v6793_v57 = vcombine.low %v104_v45, %v136_v46 }
 0x10e   :  { %4091 = vmatpush1.bf16.msra.mxu0 %v6853_v51  ;;  %4132 = vmatpush1.bf16.msra.mxu1 %v6855_v52  ;;  %v6794_v51 = vcombine.high %v104_v45, %v136_v46  ;;  %v6796_v52 = vcombine.high %v105_v47, %v137_v48  ;;  %v521_v45 = vld [vmem:[%s10685_s1 + $0xf98] sm:$0xff] }
 0x10f   :  { %4092 = vmatprep.subr.bf16.mxu0 %v6918_v53  ;;  %4133 = vmatprep.subr.bf16.mxu1 %v6920_v54  ;;  %v168_v53 = vld [vmem:[%s10685_s1 + $0x490] sm:$0xff] }
 0x110   :  { %v200_v54 = vld [vmem:[%s10685_s1 + $0x590] sm:$0xff] }
 0x111   :  { %v6857_v1 = vcombine.low %v168_v53, %v200_v54 }
 0x112   :  { %4093 = vmatpush1.bf16.msra.mxu0 %v6917_v59  ;;  %4134 = vmatpush1.bf16.msra.mxu1 %v6919_v60  ;;  %v6858_v59 = vcombine.high %v168_v53, %v200_v54  ;;  %v6860_v60 = vcombine.high %v169_v55, %v201_v56  ;;  %v42_v55 = vld [vmem:[%s10685_s1 + $0xa0] sm:$0xff] }
 0x113   :  { %4094 = vmatprep.subr.bf16.mxu0 %v6982_v61  ;;  %4135 = vmatprep.subr.bf16.mxu1 %v6984_v62  ;;  %v232_v61 = vld [vmem:[%s10685_s1 + $0x690] sm:$0xff]  ;;  %v74_v56 = vld [vmem:[%s10685_s1 + $0x1a0] sm:$0xff] }
 0x114   :  { %v264_v62 = vld [vmem:[%s10685_s1 + $0x790] sm:$0xff] }
 0x115   :  { %v6921_v15 = vcombine.low %v232_v61, %v264_v62 }
 0x116   :  { %4095 = vmatpush1.bf16.msra.mxu0 %v6981_v4  ;;  %4136 = vmatpush1.bf16.msra.mxu1 %v6983_v6  ;;  %v6922_v4 = vcombine.high %v232_v61, %v264_v62  ;;  %v6924_v6 = vcombine.high %v233_v63, %v265_v0  ;;  %v6734_v61 = vcombine.high %v42_v55, %v74_v56  ;;  %v106_v63 = vld [vmem:[%s10685_s1 + $0x2a0] sm:$0xff] }
 0x117   :  { %4096 = vmatprep.subr.bf16.mxu0 %v7046_v7  ;;  %4137 = vmatprep.subr.bf16.mxu1 %v7048_v8  ;;  %v296_v7 = vld [vmem:[%s10685_s1 + $0x890] sm:$0xff]  ;;  %v138_v0 = vld [vmem:[%s10685_s1 + $0x3a0] sm:$0xff] }
 0x118   :  { %v8202_v20 = vpop.f32.mrb[4].mxu0  ;;  %v8210_v24 = vpop.f32.mrb[4].mxu1  ;;  %v328_v8 = vld [vmem:[%s10685_s1 + $0x990] sm:$0xff] }
 0x119   :  { %v8212_v25 = vpop.f32.mrb[5].mxu0  ;;  %v8220_v28 = vpop.f32.mrb[5].mxu1  ;;  %v6985_v26 = vcombine.low %v296_v7, %v328_v8 }
 0x11a   :  { %v3550_v29 = vpop.f32.mrb[6].mxu0  ;;  %4097 = vmatpush1.bf16.msra.mxu0 %v7045_v17  ;;  %v3591_v32 = vpop.f32.mrb[6].mxu1  ;;  %4138 = vmatpush1.bf16.msra.mxu1 %v7047_v18  ;;  %v6986_v17 = vcombine.high %v296_v7, %v328_v8  ;;  %v6988_v18 = vcombine.high %v297_v11, %v329_v13  ;;  %v6798_v7 = vcombine.high %v106_v63, %v138_v0  ;;  %v170_v11 = vld [vmem:[%s10685_s1 + $0x4a0] sm:$0xff] }
 0x11b   :  { %v3551_v12 = vpop.f32.mrb[7].mxu0  ;;  %4098 = vmatprep.subr.bf16.mxu0 %v7110_v19  ;;  %v3592_v35 = vpop.f32.mrb[7].mxu1  ;;  %4139 = vmatprep.subr.bf16.mxu1 %v7112_v21  ;;  %v360_v19 = vld [vmem:[%s10685_s1 + $0xa90] sm:$0xff]  ;;  %v202_v13 = vld [vmem:[%s10685_s1 + $0x5a0] sm:$0xff] }
 0x11c   :  { %v392_v21 = vld [vmem:[%s10685_s1 + $0xb90] sm:$0xff] }
 0x11d   :  { %v7050_v29 = vcombine.high %v360_v19, %v392_v21  ;;  %v424_v32 = vld [vmem:[%s10685_s1 + $0xc90] sm:$0xff]  ;;  %v7049_v35 = vcombine.low %v360_v19, %v392_v21  ;;  %v6862_v19 = vcombine.high %v170_v11, %v202_v13 }
 0x11e   :  { %4099 = vmatpush1.bf16.msra.mxu0 %v7109_v30  ;;  %4140 = vmatpush1.bf16.msra.mxu1 %v7111_v33  ;;  %v7052_v30 = vcombine.high %v361_v22, %v393_v23  ;;  %v456_v12 = vld [vmem:[%s10685_s1 + $0xd90] sm:$0xff]  ;;  %v425_v33 = vld [vmem:[%s10685_s1 + $0xc98] sm:$0xff] }
 0x11f   :  { %4100 = vmatprep.subr.bf16.mxu0 %v7174_v34  ;;  %4141 = vmatprep.subr.bf16.mxu1 %v7176_v36  ;;  %v457_v34 = vld [vmem:[%s10685_s1 + $0xd98] sm:$0xff]  ;;  %v7051_v36 = vcombine.low %v361_v22, %v393_v23  ;;  %v7114_v37 = vcombine.high %v424_v32, %v456_v12  ;;  %v7113_v48 = vcombine.low %v424_v32, %v456_v12  ;;  %v234_v22 = vld [vmem:[%s10685_s1 + $0x6a0] sm:$0xff] }
 0x120   :  { %v7116_v39 = vcombine.high %v425_v33, %v457_v34  ;;  %v266_v23 = vld [vmem:[%s10685_s1 + $0x7a0] sm:$0xff] }
 0x121   :  { %v298_v12 = vld [vmem:[%s10685_s1 + $0x8a0] sm:$0xff] }
 0x122   :  { %4101 = vmatpush1.bf16.msra.mxu0 %v7173_v41  ;;  %4142 = vmatpush1.bf16.msra.mxu1 %v7175_v42  ;;  %v520_v41 = vld [vmem:[%s10685_s1 + $0xf90] sm:$0xff] }
 0x123   :  { %4168 = vmatprep.subr.bf16.mxu0 %v6730_v43  ;;  %4209 = vmatprep.subr.bf16.mxu1 %v6732_v44  ;;  %v489_v44 = vld [vmem:[%s10685_s1 + $0xe98] sm:$0xff] }
 0x124   :  { %v7180_v54 = vcombine.high %v489_v44, %v521_v45 }
 0x125   :  { %4119 = vmatmul.mubr.bf16.vlgmr.msra.gmra.mrb[32].mxu0 %v7941_v31  ;;  %4160 = vmatmul.mubr.bf16.vlgmr.msra.gmra.mrb[32].mxu1 %v7941_v31 }
 0x126   :  { %4169 = vmatpush1.bf16.msra.mxu0 %v6729_v49  ;;  %4210 = vmatpush1.bf16.msra.mxu1 %v6731_v50 }
 0x127   :  { %4170 = vmatprep.subr.bf16.mxu0 %v6794_v51  ;;  %4211 = vmatprep.subr.bf16.mxu1 %v6796_v52  ;;  %v7115_v51 = vcombine.low %v425_v33, %v457_v34  ;;  %v7178_v52 = vcombine.high %v488_v40, %v520_v41  ;;  %v330_v33 = vld [vmem:[%s10685_s1 + $0x9a0] sm:$0xff]  ;;  %v299_v34 = vld [vmem:[%s10685_s1 + $0x8a8] sm:$0xff] }
 0x128   :  { %4200 = vmatprep.mubr.bf16.mxu0 %v10691_v3  ;;  %4241 = vmatprep.mubr.bf16.mxu1 %v10691_v3 }
 0x12a   :  { %4171 = vmatpush1.bf16.msra.mxu0 %v6793_v57  ;;  %4212 = vmatpush1.bf16.msra.mxu1 %v6795_v58  ;;  %v43_v57 = vld [vmem:[%s10685_s1 + $0xa8] sm:$0xff] }
 0x12b   :  { %4172 = vmatprep.subr.bf16.mxu0 %v6858_v59  ;;  %4213 = vmatprep.subr.bf16.mxu1 %v6860_v60  ;;  %v75_v58 = vld [vmem:[%s10685_s1 + $0x1a8] sm:$0xff]  ;;  %v7177_v59 = vcombine.low %v488_v40, %v520_v41  ;;  %v7179_v60 = vcombine.low %v489_v44, %v521_v45  ;;  %v362_v41 = vld [vmem:[%s10685_s1 + $0xaa0] sm:$0xff] }
 0x12c   :  { %v6736_v62 = vcombine.high %v43_v57, %v75_v58  ;;  %v394_v44 = vld [vmem:[%s10685_s1 + $0xba0] sm:$0xff]  ;;  %v363_v45 = vld [vmem:[%s10685_s1 + $0xaa8] sm:$0xff] }
 0x12e   :  { %4173 = vmatpush1.bf16.msra.mxu0 %v6857_v1  ;;  %4214 = vmatpush1.bf16.msra.mxu1 %v6859_v2  ;;  %v107_v1 = vld [vmem:[%s10685_s1 + $0x2a8] sm:$0xff] }
 0x12f   :  { %4174 = vmatprep.subr.bf16.mxu0 %v6922_v4  ;;  %4215 = vmatprep.subr.bf16.mxu1 %v6924_v6  ;;  %v139_v2 = vld [vmem:[%s10685_s1 + $0x3a8] sm:$0xff]  ;;  %v6733_v4 = vcombine.low %v42_v55, %v74_v56  ;;  %v6735_v6 = vcombine.low %v43_v57, %v75_v58  ;;  %v7053_v56 = vcombine.low %v362_v41, %v394_v44 }
 0x130   :  { %v6800_v8 = vcombine.high %v107_v1, %v139_v2  ;;  %v459_v55 = vld [vmem:[%s10685_s1 + $0xda8] sm:$0xff] }
 0x132   :  { %4175 = vmatpush1.bf16.msra.mxu0 %v6921_v15  ;;  %4216 = vmatpush1.bf16.msra.mxu1 %v6923_v16  ;;  %v171_v15 = vld [vmem:[%s10685_s1 + $0x4a8] sm:$0xff] }
 0x133   :  { %4176 = vmatprep.subr.bf16.mxu0 %v6986_v17  ;;  %4217 = vmatprep.subr.bf16.mxu1 %v6988_v18  ;;  %v203_v16 = vld [vmem:[%s10685_s1 + $0x5a8] sm:$0xff]  ;;  %v6797_v17 = vcombine.low %v106_v63, %v138_v0  ;;  %v6799_v18 = vcombine.low %v107_v1, %v139_v2 }
 0x134   :  { %v6864_v21 = vcombine.high %v171_v15, %v203_v16  ;;  %v491_v1 = vld [vmem:[%s10685_s1 + $0xea8] sm:$0xff] }
 0x135   :  { %v523_v2 = vld [vmem:[%s10685_s1 + $0xfa8] sm:$0xff] }
 0x136   :  { %4177 = vmatpush1.bf16.msra.mxu0 %v6985_v26  ;;  %4218 = vmatpush1.bf16.msra.mxu1 %v6987_v27  ;;  %v267_v26 = vld [vmem:[%s10685_s1 + $0x7a8] sm:$0xff]  ;;  %v6861_v27 = vcombine.low %v170_v11, %v202_v13 }
 0x137   :  { %4178 = vmatprep.subr.bf16.mxu0 %v7050_v29  ;;  %4219 = vmatprep.subr.bf16.mxu1 %v7052_v30  ;;  %v6863_v29 = vcombine.low %v171_v15, %v203_v16  ;;  %v6926_v30 = vcombine.high %v234_v22, %v266_v23 }
 0x138   :  { %v8310_v38 = vpop.f32.mrb[8].mxu0  ;;  %v8318_v42 = vpop.f32.mrb[8].mxu1 }
 0x139   :  { %v8320_v43 = vpop.f32.mrb[9].mxu0  ;;  %v8328_v46 = vpop.f32.mrb[9].mxu1 }
 0x13a   :  { %v3632_v47 = vpop.f32.mrb[10].mxu0  ;;  %4179 = vmatpush1.bf16.msra.mxu0 %v7049_v35  ;;  %v3673_v49 = vpop.f32.mrb[10].mxu1  ;;  %4220 = vmatpush1.bf16.msra.mxu1 %v7051_v36  ;;  %v331_v35 = vld [vmem:[%s10685_s1 + $0x9a8] sm:$0xff]  ;;  %v6925_v36 = vcombine.low %v234_v22, %v266_v23  ;;  %v77_v22 = vld [vmem:[%s10685_s1 + $0x1b8] sm:$0xff] }
 0x13b   :  { %v3633_v50 = vpop.f32.mrb[11].mxu0  ;;  %4180 = vmatprep.subr.bf16.mxu0 %v7114_v37  ;;  %v3674_v53 = vpop.f32.mrb[11].mxu1  ;;  %4221 = vmatprep.subr.bf16.mxu1 %v7116_v39  ;;  %v6990_v39 = vcombine.high %v298_v12, %v330_v33  ;;  %v6992_v40 = vcombine.high %v299_v34, %v331_v35  ;;  %v395_v47 = vld [vmem:[%s10685_s1 + $0xba8] sm:$0xff]  ;;  %v6991_v49 = vcombine.low %v299_v34, %v331_v35 }
 0x13c   :  { %v7054_v50 = vcombine.high %v362_v41, %v394_v44  ;;  %v458_v53 = vld [vmem:[%s10685_s1 + $0xda0] sm:$0xff]  ;;  %v7055_v57 = vcombine.low %v363_v45, %v395_v47  ;;  %v173_v41 = vld [vmem:[%s10685_s1 + $0x4b8] sm:$0xff] }
 0x13d   :  { %v205_v44 = vld [vmem:[%s10685_s1 + $0x5b8] sm:$0xff] }
 0x13e   :  { %4181 = vmatpush1.bf16.msra.mxu0 %v7113_v48  ;;  %4222 = vmatpush1.bf16.msra.mxu1 %v7115_v51  ;;  %v6989_v48 = vcombine.low %v298_v12, %v330_v33  ;;  %v7056_v51 = vcombine.high %v363_v45, %v395_v47  ;;  %v141_v12 = vld [vmem:[%s10685_s1 + $0x3b8] sm:$0xff] }
 0x13f   :  { %4182 = vmatprep.subr.bf16.mxu0 %v7178_v52  ;;  %4223 = vmatprep.subr.bf16.mxu1 %v7180_v54  ;;  %v426_v52 = vld [vmem:[%s10685_s1 + $0xca0] sm:$0xff]  ;;  %v427_v54 = vld [vmem:[%s10685_s1 + $0xca8] sm:$0xff] }
 0x140   :  { %v7118_v58 = vcombine.high %v426_v52, %v458_v53  ;;  %v7119_v13 = vcombine.low %v427_v54, %v459_v55 }
 0x142   :  { %4183 = vmatpush1.bf16.msra.mxu0 %v7177_v59  ;;  %4224 = vmatpush1.bf16.msra.mxu1 %v7179_v60  ;;  %v7120_v60 = vcombine.high %v427_v54, %v459_v55  ;;  %v6867_v55 = vcombine.low %v173_v41, %v205_v44 }
 0x143   :  { %4250 = vmatprep.subr.bf16.mxu0 %v6734_v61  ;;  %4291 = vmatprep.subr.bf16.mxu1 %v6736_v62  ;;  %v490_v61 = vld [vmem:[%s10685_s1 + $0xea0] sm:$0xff] }
 0x144   :  { %v522_v62 = vld [vmem:[%s10685_s1 + $0xfa0] sm:$0xff] }
 0x145   :  { %4201 = vmatmul.mubr.bf16.vlgmr.msra.gmra.mrb[36].mxu0 %v7941_v31  ;;  %4242 = vmatmul.mubr.bf16.vlgmr.msra.gmra.mrb[36].mxu1 %v7941_v31  ;;  %v235_v31 = vld [vmem:[%s10685_s1 + $0x6a8] sm:$0xff]  ;;  %v7182_v15 = vcombine.high %v490_v61, %v522_v62  ;;  %v7181_v23 = vcombine.low %v490_v61, %v522_v62  ;;  %v301_v61 = vld [vmem:[%s10685_s1 + $0x8b8] sm:$0xff] }
 0x146   :  { %4251 = vmatpush1.bf16.msra.mxu0 %v6733_v4  ;;  %4292 = vmatpush1.bf16.msra.mxu1 %v6735_v6  ;;  %v6928_v32 = vcombine.high %v235_v31, %v267_v26  ;;  %v6927_v37 = vcombine.low %v235_v31, %v267_v26  ;;  %v7183_v31 = vcombine.low %v491_v1, %v523_v2  ;;  %v333_v62 = vld [vmem:[%s10685_s1 + $0x9b8] sm:$0xff] }
 0x147   :  { %4252 = vmatprep.subr.bf16.mxu0 %v6798_v7  ;;  %4293 = vmatprep.subr.bf16.mxu1 %v6800_v8  ;;  %v7117_v7 = vcombine.low %v426_v52, %v458_v53  ;;  %v237_v52 = vld [vmem:[%s10685_s1 + $0x6b8] sm:$0xff] }
 0x148   :  { %4282 = vmatprep.mubr.bf16.mxu0 %v10691_v3  ;;  %4323 = vmatprep.mubr.bf16.mxu1 %v10691_v3  ;;  %v269_v53 = vld [vmem:[%s10685_s1 + $0x7b8] sm:$0xff] }
 0x14a   :  { %4253 = vmatpush1.bf16.msra.mxu0 %v6797_v17  ;;  %4294 = vmatpush1.bf16.msra.mxu1 %v6799_v18  ;;  %v7184_v17 = vcombine.high %v491_v1, %v523_v2  ;;  %v44_v18 = vld [vmem:[%s10685_s1 + $0xb0] sm:$0xff]  ;;  %v6931_v2 = vcombine.low %v237_v52, %v269_v53 }
 0x14b   :  { %4254 = vmatprep.subr.bf16.mxu0 %v6862_v19  ;;  %4295 = vmatprep.subr.bf16.mxu1 %v6864_v21  ;;  %v76_v19 = vld [vmem:[%s10685_s1 + $0x1b0] sm:$0xff]  ;;  %v45_v21 = vld [vmem:[%s10685_s1 + $0xb8] sm:$0xff] }
 0x14c   :  { %v6738_v26 = vcombine.high %v44_v18, %v76_v19  ;;  %v6737_v33 = vcombine.low %v44_v18, %v76_v19  ;;  %v6739_v34 = vcombine.low %v45_v21, %v77_v22 }
 0x14e   :  { %4255 = vmatpush1.bf16.msra.mxu0 %v6861_v27  ;;  %4296 = vmatpush1.bf16.msra.mxu1 %v6863_v29  ;;  %v6740_v27 = vcombine.high %v45_v21, %v77_v22  ;;  %v108_v29 = vld [vmem:[%s10685_s1 + $0x2b0] sm:$0xff] }
 0x14f   :  { %4256 = vmatprep.subr.bf16.mxu0 %v6926_v30  ;;  %4297 = vmatprep.subr.bf16.mxu1 %v6928_v32  ;;  %v140_v30 = vld [vmem:[%s10685_s1 + $0x3b0] sm:$0xff]  ;;  %v109_v32 = vld [vmem:[%s10685_s1 + $0x2b8] sm:$0xff] }
 0x150   :  { %v6802_v35 = vcombine.high %v108_v29, %v140_v30  ;;  %v6801_v45 = vcombine.low %v108_v29, %v140_v30  ;;  %v6803_v47 = vcombine.low %v109_v32, %v141_v12  ;;  %v428_v21 = vld [vmem:[%s10685_s1 + $0xcb0] sm:$0xff] }
 0x151   :  { %v460_v22 = vld [vmem:[%s10685_s1 + $0xdb0] sm:$0xff] }
 0x152   :  { %4257 = vmatpush1.bf16.msra.mxu0 %v6925_v36  ;;  %4298 = vmatpush1.bf16.msra.mxu1 %v6927_v37  ;;  %v6804_v36 = vcombine.high %v109_v32, %v141_v12  ;;  %v172_v37 = vld [vmem:[%s10685_s1 + $0x4b0] sm:$0xff]  ;;  %v7122_v29 = vcombine.high %v428_v21, %v460_v22 }
 0x153   :  { %4258 = vmatprep.subr.bf16.mxu0 %v6990_v39  ;;  %4299 = vmatprep.subr.bf16.mxu1 %v6992_v40  ;;  %v204_v39 = vld [vmem:[%s10685_s1 + $0x5b0] sm:$0xff]  ;;  %v8471_v40 = vld [vmem:[%s10686_s0] sm:$0x1] }
 0x154   :  { %v6865_v54 = vcombine.low %v172_v37, %v204_v39  ;;  %v492_v12 = vld [vmem:[%s10685_s1 + $0xeb0] sm:$0xff] }
 0x156   :  { %4259 = vmatpush1.bf16.msra.mxu0 %v6989_v48  ;;  %4300 = vmatpush1.bf16.msra.mxu1 %v6991_v49  ;;  %v6866_v48 = vcombine.high %v172_v37, %v204_v39  ;;  %v6868_v49 = vcombine.high %v173_v41, %v205_v44  ;;  %v525_v37 = vld [vmem:[%s10685_s1 + $0xfb8] sm:$0xff]  ;;  %v7121_v44 = vcombine.low %v428_v21, %v460_v22 }
 0x157   :  { %4260 = vmatprep.subr.bf16.mxu0 %v7054_v50  ;;  %4301 = vmatprep.subr.bf16.mxu1 %v7056_v51  ;;  %v236_v50 = vld [vmem:[%s10685_s1 + $0x6b0] sm:$0xff] }
 0x158   :  { %v8418_v59 = vpop.f32.mrb[12].mxu0  ;;  %v8426_v63 = vpop.f32.mrb[12].mxu1  ;;  %v268_v51 = vld [vmem:[%s10685_s1 + $0x7b0] sm:$0xff] }
 0x159   :  { %10767 = vst [vmem:[#allocation2_spill] sm:$0xff] %v8426_v63  ;;  %v8428_v0 = vpop.f32.mrb[13].mxu0  ;;  %v8436_v4 = vpop.f32.mrb[13].mxu1  ;;  %v6929_v1 = vcombine.low %v236_v50, %v268_v51 }
 0x15a   :  { %10768 = vst [vmem:[#allocation3_spill] sm:$0xff] %v8428_v0  ;;  %10769 = vst [vmem:[#allocation4_spill] sm:$0xff] %v8436_v4  ;;  %v3714_v6 = vpop.f32.mrb[14].mxu0  ;;  %4261 = vmatpush1.bf16.msra.mxu0 %v7053_v56  ;;  %v3755_v8 = vpop.f32.mrb[14].mxu1  ;;  %4302 = vmatpush1.bf16.msra.mxu1 %v7055_v57  ;;  %v6930_v56 = vcombine.high %v236_v50, %v268_v51  ;;  %v6932_v57 = vcombine.high %v237_v52, %v269_v53  ;;  %v46_v52 = vld [vmem:[%s10685_s1 + $0xc0] sm:$0xff] }
 0x15b   :  { %v3715_v11 = vpop.f32.mrb[15].mxu0  ;;  %4262 = vmatprep.subr.bf16.mxu0 %v7118_v58  ;;  %v3756_v16 = vpop.f32.mrb[15].mxu1  ;;  %4303 = vmatprep.subr.bf16.mxu1 %v7120_v60  ;;  %v300_v58 = vld [vmem:[%s10685_s1 + $0x8b0] sm:$0xff]  ;;  %v78_v53 = vld [vmem:[%s10685_s1 + $0x1c0] sm:$0xff] }
 0x15c   :  { %v332_v60 = vld [vmem:[%s10685_s1 + $0x9b0] sm:$0xff] }
 0x15d   :  { %v6994_v6 = vcombine.high %v300_v58, %v332_v60  ;;  %v364_v8 = vld [vmem:[%s10685_s1 + $0xab0] sm:$0xff]  ;;  %v6993_v16 = vcombine.low %v300_v58, %v332_v60  ;;  %v6742_v58 = vcombine.high %v46_v52, %v78_v53 }
 0x15e   :  { %4263 = vmatpush1.bf16.msra.mxu0 %v7117_v7  ;;  %4304 = vmatpush1.bf16.msra.mxu1 %v7119_v13  ;;  %v6996_v7 = vcombine.high %v301_v61, %v333_v62  ;;  %v396_v11 = vld [vmem:[%s10685_s1 + $0xbb0] sm:$0xff]  ;;  %v365_v13 = vld [vmem:[%s10685_s1 + $0xab8] sm:$0xff] }
 0x15f   :  { %4264 = vmatprep.subr.bf16.mxu0 %v7182_v15  ;;  %4305 = vmatprep.subr.bf16.mxu1 %v7184_v17  ;;  %v397_v15 = vld [vmem:[%s10685_s1 + $0xbb8] sm:$0xff]  ;;  %v6995_v17 = vcombine.low %v301_v61, %v333_v62  ;;  %v7058_v18 = vcombine.high %v364_v8, %v396_v11  ;;  %v110_v61 = vld [vmem:[%s10685_s1 + $0x2c0] sm:$0xff] }
 0x160   :  { %v7060_v19 = vcombine.high %v365_v13, %v397_v15  ;;  %v142_v62 = vld [vmem:[%s10685_s1 + $0x3c0] sm:$0xff] }
 0x162   :  { %4265 = vmatpush1.bf16.msra.mxu0 %v7181_v23  ;;  %4306 = vmatpush1.bf16.msra.mxu1 %v7183_v31  ;;  %v429_v23 = vld [vmem:[%s10685_s1 + $0xcb8] sm:$0xff] }
 0x163   :  { %4332 = vmatprep.subr.bf16.mxu0 %v6738_v26  ;;  %4373 = vmatprep.subr.bf16.mxu1 %v6740_v27  ;;  %v461_v31 = vld [vmem:[%s10685_s1 + $0xdb8] sm:$0xff]  ;;  %v7057_v26 = vcombine.low %v364_v8, %v396_v11  ;;  %v7059_v27 = vcombine.low %v365_v13, %v397_v15  ;;  %v6806_v8 = vcombine.high %v110_v61, %v142_v62  ;;  %v174_v13 = vld [vmem:[%s10685_s1 + $0x4c0] sm:$0xff] }
 0x164   :  { %v7124_v32 = vcombine.high %v429_v23, %v461_v31  ;;  %v206_v15 = vld [vmem:[%s10685_s1 + $0x5c0] sm:$0xff] }
 0x165   :  { %4283 = vmatmul.mubr.bf16.vlgmr.msra.gmra.mrb[40].mxu0 %v8471_v40  ;;  %4324 = vmatmul.mubr.bf16.vlgmr.msra.gmra.mrb[40].mxu1 %v8471_v40  ;;  %v6870_v21 = vcombine.high %v174_v13, %v206_v15 }
 0x166   :  { %4333 = vmatpush1.bf16.msra.mxu0 %v6737_v33  ;;  %4374 = vmatpush1.bf16.msra.mxu1 %v6739_v34  ;;  %v524_v33 = vld [vmem:[%s10685_s1 + $0xfb0] sm:$0xff] }
 0x167   :  { %4334 = vmatprep.subr.bf16.mxu0 %v6802_v35  ;;  %4375 = vmatprep.subr.bf16.mxu1 %v6804_v36  ;;  %v493_v36 = vld [vmem:[%s10685_s1 + $0xeb8] sm:$0xff] }
 0x168   :  { %4364 = vmatprep.mubr.bf16.mxu0 %v10691_v3  ;;  %4405 = vmatprep.mubr.bf16.mxu1 %v10691_v3  ;;  %v7188_v51 = vcombine.high %v493_v36, %v525_v37 }
 0x16a   :  { %4335 = vmatpush1.bf16.msra.mxu0 %v6801_v45  ;;  %4376 = vmatpush1.bf16.msra.mxu1 %v6803_v47 }
 0x16b   :  { %4336 = vmatprep.subr.bf16.mxu0 %v6866_v48  ;;  %4377 = vmatprep.subr.bf16.mxu1 %v6868_v49  ;;  %v7123_v48 = vcombine.low %v429_v23, %v461_v31  ;;  %v7186_v49 = vcombine.high %v492_v12, %v524_v33  ;;  %v238_v23 = vld [vmem:[%s10685_s1 + $0x6c0] sm:$0xff] }
 0x16c   :  { %v270_v31 = vld [vmem:[%s10685_s1 + $0x7c0] sm:$0xff] }
 0x16e   :  { %4337 = vmatpush1.bf16.msra.mxu0 %v6865_v54  ;;  %4378 = vmatpush1.bf16.msra.mxu1 %v6867_v55  ;;  %v47_v54 = vld [vmem:[%s10685_s1 + $0xc8] sm:$0xff] }
 0x16f   :  { %4338 = vmatprep.subr.bf16.mxu0 %v6930_v56  ;;  %4379 = vmatprep.subr.bf16.mxu1 %v6932_v57  ;;  %v79_v55 = vld [vmem:[%s10685_s1 + $0x1c8] sm:$0xff]  ;;  %v7185_v56 = vcombine.low %v492_v12, %v524_v33  ;;  %v7187_v57 = vcombine.low %v493_v36, %v525_v37  ;;  %v6934_v12 = vcombine.high %v238_v23, %v270_v31  ;;  %v302_v36 = vld [vmem:[%s10685_s1 + $0x8c0] sm:$0xff] }
 0x170   :  { %v6744_v60 = vcombine.high %v47_v54, %v79_v55  ;;  %v334_v37 = vld [vmem:[%s10685_s1 + $0x9c0] sm:$0xff] }
 0x172   :  { %4339 = vmatpush1.bf16.msra.mxu0 %v6929_v1  ;;  %4380 = vmatpush1.bf16.msra.mxu1 %v6931_v2  ;;  %v111_v1 = vld [vmem:[%s10685_s1 + $0x2c8] sm:$0xff] }
 0x173   :  { %4340 = vmatprep.subr.bf16.mxu0 %v6994_v6  ;;  %4381 = vmatprep.subr.bf16.mxu1 %v6996_v7  ;;  %v143_v2 = vld [vmem:[%s10685_s1 + $0x3c8] sm:$0xff]  ;;  %v6741_v6 = vcombine.low %v46_v52, %v78_v53  ;;  %v6743_v7 = vcombine.low %v47_v54, %v79_v55  ;;  %v6997_v54 = vcombine.low %v302_v36, %v334_v37  ;;  %v550_v55 = vlaneseq }
 0x174   :  { %v6808_v11 = vcombine.high %v111_v1, %v143_v2  ;;  %v367_v52 = vld [vmem:[%s10685_s1 + $0xac8] sm:$0xff] }
 0x175   :  { %v399_v53 = vld [vmem:[%s10685_s1 + $0xbc8] sm:$0xff] }
 0x176   :  { %4341 = vmatpush1.bf16.msra.mxu0 %v6993_v16  ;;  %4382 = vmatpush1.bf16.msra.mxu1 %v6995_v17  ;;  %v175_v16 = vld [vmem:[%s10685_s1 + $0x4c8] sm:$0xff] }
 0x177   :  { %4342 = vmatprep.subr.bf16.mxu0 %v7058_v18  ;;  %4383 = vmatprep.subr.bf16.mxu1 %v7060_v19  ;;  %v207_v17 = vld [vmem:[%s10685_s1 + $0x5c8] sm:$0xff]  ;;  %v6805_v18 = vcombine.low %v110_v61, %v142_v62  ;;  %v6807_v19 = vcombine.low %v111_v1, %v143_v2  ;;  %v462_v61 = vld [vmem:[%s10685_s1 + $0xdc0] sm:$0xff] }
 0x178   :  { %v8531_v30 = vpop.f32.mrb[16].mxu0  ;;  %v8539_v34 = vpop.f32.mrb[16].mxu1  ;;  %v6872_v22 = vcombine.high %v175_v16, %v207_v17  ;;  %v431_v62 = vld [vmem:[%s10685_s1 + $0xcc8] sm:$0xff] }
 0x179   :  { %10770 = vst [vmem:[#allocation5_spill] sm:$0xff] %v8531_v30  ;;  %10771 = vst [vmem:[#allocation6_spill] sm:$0xff] %v8539_v34  ;;  %v8541_v35 = vpop.f32.mrb[17].mxu0  ;;  %v8549_v39 = vpop.f32.mrb[17].mxu1  ;;  %v463_v1 = vld [vmem:[%s10685_s1 + $0xdc8] sm:$0xff] }
 0x17a   :  { %10772 = vst [vmem:[#allocation7_spill] sm:$0xff] %v8541_v35  ;;  %10773 = vst [vmem:[#allocation8_spill] sm:$0xff] %v8549_v39  ;;  %v3796_v41 = vpop.f32.mrb[18].mxu0  ;;  %4343 = vmatpush1.bf16.msra.mxu0 %v7057_v26  ;;  %v3837_v45 = vpop.f32.mrb[18].mxu1  ;;  %4384 = vmatpush1.bf16.msra.mxu1 %v7059_v27  ;;  %v239_v26 = vld [vmem:[%s10685_s1 + $0x6c8] sm:$0xff] }
 0x17b   :  { %v3797_v47 = vpop.f32.mrb[19].mxu0  ;;  %4344 = vmatprep.subr.bf16.mxu0 %v7122_v29  ;;  %v3838_v50 = vpop.f32.mrb[19].mxu1  ;;  %4385 = vmatprep.subr.bf16.mxu1 %v7124_v32  ;;  %v271_v27 = vld [vmem:[%s10685_s1 + $0x7c8] sm:$0xff]  ;;  %v6869_v29 = vcombine.low %v174_v13, %v206_v15  ;;  %v6871_v32 = vcombine.low %v175_v16, %v207_v17  ;;  %v6933_v45 = vcombine.low %v238_v23, %v270_v31  ;;  %v494_v15 = vld [vmem:[%s10685_s1 + $0xec0] sm:$0xff] }
 0x17c   :  { %v6936_v33 = vcombine.high %v239_v26, %v271_v27  ;;  %v303_v41 = vld [vmem:[%s10685_s1 + $0x8c8] sm:$0xff]  ;;  %v6935_v47 = vcombine.low %v239_v26, %v271_v27  ;;  %v366_v50 = vld [vmem:[%s10685_s1 + $0xac0] sm:$0xff]  ;;  %v7128_v13 = vcombine.high %v431_v62, %v463_v1 }
 0x17d   :  { %v526_v16 = vld [vmem:[%s10685_s1 + $0xfc0] sm:$0xff] }
 0x17e   :  { %4345 = vmatpush1.bf16.msra.mxu0 %v7121_v44  ;;  %4386 = vmatpush1.bf16.msra.mxu1 %v7123_v48  ;;  %v335_v44 = vld [vmem:[%s10685_s1 + $0x9c8] sm:$0xff]  ;;  %v6998_v48 = vcombine.high %v302_v36, %v334_v37 }
 0x17f   :  { %4346 = vmatprep.subr.bf16.mxu0 %v7186_v49  ;;  %4387 = vmatprep.subr.bf16.mxu1 %v7188_v51  ;;  %v7000_v49 = vcombine.high %v303_v41, %v335_v44  ;;  %v398_v51 = vld [vmem:[%s10685_s1 + $0xbc0] sm:$0xff] }
 0x180   :  { %v7061_v2 = vcombine.low %v366_v50, %v398_v51 }
 0x182   :  { %4347 = vmatpush1.bf16.msra.mxu0 %v7185_v56  ;;  %4388 = vmatpush1.bf16.msra.mxu1 %v7187_v57  ;;  %v6999_v56 = vcombine.low %v303_v41, %v335_v44  ;;  %v7062_v57 = vcombine.high %v366_v50, %v398_v51  ;;  %v48_v41 = vld [vmem:[%s10685_s1 + $0xd0] sm:$0xff]  ;;  %v7189_v50 = vcombine.low %v494_v15, %v526_v16 }
 0x183   :  { %4414 = vmatprep.subr.bf16.mxu0 %v6742_v58  ;;  %4455 = vmatprep.subr.bf16.mxu1 %v6744_v60  ;;  %v7064_v58 = vcombine.high %v367_v52, %v399_v53  ;;  %v430_v60 = vld [vmem:[%s10685_s1 + $0xcc0] sm:$0xff]  ;;  %v80_v44 = vld [vmem:[%s10685_s1 + $0x1d0] sm:$0xff] }
 0x184   :  { %v7125_v31 = vcombine.low %v430_v60, %v462_v61 }
 0x185   :  { %4365 = vmatmul.mubr.bf16.vlgmr.msra.gmra.mrb[44].mxu0 %v8471_v40  ;;  %4406 = vmatmul.mubr.bf16.vlgmr.msra.gmra.mrb[44].mxu1 %v8471_v40 }
 0x186   :  { %4415 = vmatpush1.bf16.msra.mxu0 %v6741_v6  ;;  %4456 = vmatpush1.bf16.msra.mxu1 %v6743_v7  ;;  %v8639_v6 = vshrl.u32 %v550_v55, 7  ;;  %v7063_v7 = vcombine.low %v367_v52, %v399_v53  ;;  %v6746_v53 = vcombine.high %v48_v41, %v80_v44  ;;  %v112_v55 = vld [vmem:[%s10685_s1 + $0x2d0] sm:$0xff] }
 0x187   :  { %4416 = vmatprep.subr.bf16.mxu0 %v6806_v8  ;;  %4457 = vmatprep.subr.bf16.mxu1 %v6808_v11  ;;  %v7126_v8 = vcombine.high %v430_v60, %v462_v61  ;;  %v145_v60 = vld [vmem:[%s10685_s1 + $0x3d8] sm:$0xff] }
 0x188   :  { %4446 = vmatprep.mubr.bf16.mxu0 %v10691_v3  ;;  %4487 = vmatprep.mubr.bf16.mxu1 %v10691_v3  ;;  %10774 = vst [vmem:[#allocation9_spill] sm:$0xff] %v8639_v6  ;;  %v8662_v26 = vsub.s32 0, %v8639_v6 }
 0x18a   :  { %4417 = vmatpush1.bf16.msra.mxu0 %v6805_v18  ;;  %4458 = vmatpush1.bf16.msra.mxu1 %v6807_v19  ;;  %v495_v19 = vld [vmem:[%s10685_s1 + $0xec8] sm:$0xff]  ;;  %10779 = vst [vmem:[#allocation14_spill] sm:$0xff] %v8662_v26 }
 0x18b   :  { %4418 = vmatprep.subr.bf16.mxu0 %v6870_v21  ;;  %4459 = vmatprep.subr.bf16.mxu1 %v6872_v22  ;;  %v527_v21 = vld [vmem:[%s10685_s1 + $0xfc8] sm:$0xff] }
 0x18c   :  { %v7192_v37 = vcombine.high %v495_v19, %v527_v21  ;;  %v7191_v52 = vcombine.low %v495_v19, %v527_v21  ;;  %v177_v19 = vld [vmem:[%s10685_s1 + $0x4d8] sm:$0xff] }
 0x18d   :  { %v209_v21 = vld [vmem:[%s10685_s1 + $0x5d8] sm:$0xff] }
 0x18e   :  { %4419 = vmatpush1.bf16.msra.mxu0 %v6869_v29  ;;  %4460 = vmatpush1.bf16.msra.mxu1 %v6871_v32  ;;  %v7127_v32 = vcombine.low %v431_v62, %v463_v1  ;;  %v6745_v62 = vcombine.low %v48_v41, %v80_v44  ;;  %v272_v41 = vld [vmem:[%s10685_s1 + $0x7d0] sm:$0xff] }
 0x18f   :  { %4420 = vmatprep.subr.bf16.mxu0 %v6934_v12  ;;  %4461 = vmatprep.subr.bf16.mxu1 %v6936_v33  ;;  %v7190_v12 = vcombine.high %v494_v15, %v526_v16  ;;  %v8667_v33 = vld [vmem:[%s10687_s2] sm:$0xff]  ;;  %v208_v15 = vld [vmem:[%s10685_s1 + $0x5d0] sm:$0xff] }
 0x190   :  { %v553_v51 = vrot.slane %v8667_v33, %v8662_v26 }
 0x192   :  { %4421 = vmatpush1.bf16.msra.mxu0 %v6933_v45  ;;  %4462 = vmatpush1.bf16.msra.mxu1 %v6935_v47  ;;  %v8676_v45 = vsub.s32 2, %v8639_v6  ;;  %v49_v47 = vld [vmem:[%s10685_s1 + $0xd8] sm:$0xff]  ;;  %v8706_v1 = vadd.f32 %v8094_v5, %v553_v51  ;;  %v8718_v5 = vsub.s32 3, %v8639_v6 }
 0x193   :  { %4422 = vmatprep.subr.bf16.mxu0 %v6998_v48  ;;  %4463 = vmatprep.subr.bf16.mxu1 %v7000_v49  ;;  %v81_v48 = vld [vmem:[%s10685_s1 + $0x1d8] sm:$0xff]  ;;  %v8685_v49 = vsub.s32 1, %v8639_v6 }
 0x194   :  { %10780 = vst [vmem:[#allocation15_spill] sm:$0xff] %v8676_v45  ;;  %10782 = vst [vmem:[#allocation17_spill] sm:$0xff] %v8706_v1  ;;  %v241_v51 = vld [vmem:[%s10685_s1 + $0x6d8] sm:$0xff] }
 0x195   :  { %10781 = vst [vmem:[#allocation16_spill] sm:$0xff] %v8685_v49  ;;  %v557_v61 = vrot.slane %v8667_v33, %v8685_v49  ;;  %10784 = vst [vmem:[#allocation19_spill] sm:$0xff] %v8718_v5 }
 0x196   :  { %4423 = vmatpush1.bf16.msra.mxu0 %v6997_v54  ;;  %4464 = vmatpush1.bf16.msra.mxu1 %v6999_v56  ;;  %v6748_v54 = vcombine.high %v49_v47, %v81_v48  ;;  %v144_v56 = vld [vmem:[%s10685_s1 + $0x3d0] sm:$0xff] }
 0x197   :  { %4424 = vmatprep.subr.bf16.mxu0 %v7062_v57  ;;  %4465 = vmatprep.subr.bf16.mxu1 %v7064_v58  ;;  %v561_v57 = vrot.slane %v8667_v33, %v8676_v45  ;;  %v113_v58 = vld [vmem:[%s10685_s1 + $0x2d8] sm:$0xff] }
 0x198   :  { %v8641_v11 = vpop.f32.mrb[20].mxu0  ;;  %v8649_v17 = vpop.f32.mrb[20].mxu1 }
 0x199   :  { %10775 = vst [vmem:[#allocation10_spill] sm:$0xff] %v8641_v11  ;;  %10776 = vst [vmem:[#allocation11_spill] sm:$0xff] %v8649_v17  ;;  %v8651_v18 = vpop.f32.mrb[21].mxu0  ;;  %v8659_v22 = vpop.f32.mrb[21].mxu1  ;;  %v8715_v16 = vadd.f32 %v8102_v9, %v561_v57  ;;  %v6809_v9 = vcombine.low %v112_v55, %v144_v56 }
 0x19a   :  { %10777 = vst [vmem:[#allocation12_spill] sm:$0xff] %v8651_v18  ;;  %10778 = vst [vmem:[#allocation13_spill] sm:$0xff] %v8659_v22  ;;  %v3878_v23 = vpop.f32.mrb[22].mxu0  ;;  %4425 = vmatpush1.bf16.msra.mxu0 %v7061_v2  ;;  %v3919_v27 = vpop.f32.mrb[22].mxu1  ;;  %4466 = vmatpush1.bf16.msra.mxu1 %v7063_v7  ;;  %v6747_v2 = vcombine.low %v49_v47, %v81_v48  ;;  %v6810_v7 = vcombine.high %v112_v55, %v144_v56  ;;  %v8753_v48 = vsub.s32 5, %v8639_v6 }
 0x19b   :  { %v3879_v29 = vpop.f32.mrb[23].mxu0  ;;  %4426 = vmatprep.subr.bf16.mxu0 %v7126_v8  ;;  %v3920_v36 = vpop.f32.mrb[23].mxu1  ;;  %4467 = vmatprep.subr.bf16.mxu1 %v7128_v13  ;;  %v6812_v8 = vcombine.high %v113_v58, %v145_v60  ;;  %v176_v13 = vld [vmem:[%s10685_s1 + $0x4d0] sm:$0xff]  ;;  %10783 = vst [vmem:[#allocation18_spill] sm:$0xff] %v8715_v16  ;;  %v8728_v23 = vadd.f32 %v8104_v10, %v557_v61  ;;  %v8734_v27 = vsub.s32 4, %v8639_v6  ;;  %v8739_v10 = vsub.s32 6, %v8639_v6 }
 0x19c   :  { %v6811_v29 = vcombine.low %v113_v58, %v145_v60  ;;  %v6876_v36 = vcombine.high %v177_v19, %v209_v21  ;;  %v4757_v44 = vsel %vm4742_vm0, %v8715_v16, 0.0  ;;  %v565_v47 = vrot.slane %v8667_v33, %v8718_v5 }
 0x19d   :  { %10785 = vst [vmem:[#allocation20_spill] sm:$0xff] %v8728_v23  ;;  %v4750_v55 = vsel %vm4742_vm0, %v8728_v23, 0.0  ;;  %v6873_v56 = vcombine.low %v176_v13, %v208_v15  ;;  %v6875_v58 = vcombine.low %v177_v19, %v209_v21  ;;  %v4776_v21 = vmul.f32 %v8728_v23, %v8728_v23 }
 0x19e   :  { %4427 = vmatpush1.bf16.msra.mxu0 %v7125_v31  ;;  %4468 = vmatpush1.bf16.msra.mxu1 %v7127_v32  ;;  %v4743_v31 = vsel %vm4742_vm0, %v8706_v1, 0.0  ;;  %v6874_v32 = vcombine.high %v176_v13, %v208_v15  ;;  %v304_v13 = vld [vmem:[%s10685_s1 + $0x8d0] sm:$0xff]  ;;  %v4751_v19 = vrot.slane %v4750_v55, 4 }
 0x19f   :  { %4428 = vmatprep.subr.bf16.mxu0 %v7190_v12  ;;  %4469 = vmatprep.subr.bf16.mxu1 %v7192_v37  ;;  %v4775_v12 = vmul.f32 %v8706_v1, %v8706_v1  ;;  %v240_v37 = vld [vmem:[%s10685_s1 + $0x6d0] sm:$0xff] }
 0x1a0   :  { %v6938_v60 = vcombine.high %v240_v37, %v272_v41  ;;  %v336_v15 = vld [vmem:[%s10685_s1 + $0x9d0] sm:$0xff] }
 0x1a1   :  { %v4779_v61 = vsel %vm4742_vm0, %v4775_v12, 0.0  ;;  %v337_v12 = vld [vmem:[%s10685_s1 + $0x9d8] sm:$0xff]  ;;  %v7002_v23 = vcombine.high %v304_v13, %v336_v15  ;;  %v8835_v1 = vld [vmem:[%s10687_s2 + $0x10] sm:$0xff] }
 0x1a2   :  { %4429 = vmatpush1.bf16.msra.mxu0 %v7189_v50  ;;  %4470 = vmatpush1.bf16.msra.mxu1 %v7191_v52  ;;  %v8756_v50 = vsub.s32 7, %v8639_v6  ;;  %v273_v52 = vld [vmem:[%s10685_s1 + $0x7d8] sm:$0xff] }
 0x1a3   :  { %4496 = vmatprep.subr.bf16.mxu0 %v6746_v53  ;;  %4537 = vmatprep.subr.bf16.mxu1 %v6748_v54  ;;  %v4744_v53 = vrot.slane %v4743_v31, 4  ;;  %v4777_v54 = vmul.f32 %v8715_v16, %v8715_v16  ;;  %v6939_v57 = vcombine.low %v241_v51, %v273_v52 }
 0x1a5   :  { %4447 = vmatmul.mubr.bf16.vlgmr.msra.gmra.mrb[48].mxu0 %v8471_v40  ;;  %4488 = vmatmul.mubr.bf16.vlgmr.msra.gmra.mrb[48].mxu1 %v8471_v40 }
 0x1a6   :  { %4497 = vmatpush1.bf16.msra.mxu0 %v6745_v62  ;;  %4538 = vmatpush1.bf16.msra.mxu1 %v6747_v2  ;;  %v4758_v62 = vrot.slane %v4757_v44, 4 }
 0x1a7   :  { %4498 = vmatprep.subr.bf16.mxu0 %v6810_v7  ;;  %4539 = vmatprep.subr.bf16.mxu1 %v6812_v8  ;;  %v8777_v7 = vld [vmem:[%s10687_s2 + $0x8] sm:$0xff]  ;;  %v6940_v8 = vcombine.high %v241_v51, %v273_v52  ;;  %v4786_v52 = vsel %vm4742_vm0, %v4776_v21, 0.0 }
 0x1a8   :  { %4528 = vmatprep.mubr.bf16.mxu0 %v10691_v3  ;;  %4569 = vmatprep.mubr.bf16.mxu1 %v10691_v3  ;;  %v4793_v3 = vsel %vm4742_vm0, %v4777_v54, 0.0  ;;  %v4759_v16 = vadd.f32 %v4758_v62, %v4757_v44  ;;  %v4752_v44 = vadd.f32 %v4751_v19, %v4750_v55 }
 0x1a9   :  { %v4794_v51 = vrot.slane %v4793_v3, 4 }
 0x1aa   :  { %4499 = vmatpush1.bf16.msra.mxu0 %v6809_v9  ;;  %4540 = vmatpush1.bf16.msra.mxu1 %v6811_v29  ;;  %v8788_v9 = vadd.f32 %v8112_v14, %v565_v47  ;;  %v6937_v14 = vcombine.low %v240_v37, %v272_v41  ;;  %v4780_v47 = vrot.slane %v4779_v61, 4  ;;  %v8810_v37 = vld [vmem:[%s10685_s1 + $0xad0] sm:$0xff]  ;;  %v4760_v6 = vrot.slane %v4759_v16, 2 }
 0x1ab   :  { %4500 = vmatprep.subr.bf16.mxu0 %v6874_v32  ;;  %4541 = vmatprep.subr.bf16.mxu1 %v6876_v36  ;;  %v305_v32 = vld [vmem:[%s10685_s1 + $0x8d8] sm:$0xff]  ;;  %v4745_v36 = vadd.f32 %v4744_v53, %v4743_v31  ;;  %v8815_v41 = vld [vmem:[%s10685_s1 + $0xbd0] sm:$0xff]  ;;  %v4787_v29 = vrot.slane %v4786_v52, 4 }
 0x1ac   :  { %10786 = vst [vmem:[#allocation21_spill] sm:$0xff] %v8788_v9  ;;  %v7004_v53 = vcombine.high %v305_v32, %v337_v12  ;;  %v4764_v54 = vsel %vm4742_vm0, %v8788_v9, 0.0  ;;  %v4781_v19 = vadd.f32 %v4780_v47, %v4779_v61  ;;  %v7003_v21 = vcombine.low %v305_v32, %v337_v12  ;;  %v8840_v61 = vld [vmem:[%s10685_s1 + $0xcd0] sm:$0xff]  ;;  %v8854_v12 = vld [vmem:[%s10685_s1 + $0xcd8] sm:$0xff] }
 0x1ad   :  { %v7066_v31 = vcombine.high %v8810_v37, %v8815_v41  ;;  %v4765_v2 = vrot.slane %v4764_v54, 4 }
 0x1ae   :  { %4501 = vmatpush1.bf16.msra.mxu0 %v6873_v56  ;;  %4542 = vmatpush1.bf16.msra.mxu1 %v6875_v58  ;;  %v369_v56 = vld [vmem:[%s10685_s1 + $0xad8] sm:$0xff]  ;;  %v4782_v32 = vrot.slane %v4781_v19, 2 }
 0x1af   :  { %4502 = vmatprep.subr.bf16.mxu0 %v6938_v60  ;;  %4543 = vmatprep.subr.bf16.mxu1 %v6940_v8  ;;  %v401_v58 = vld [vmem:[%s10685_s1 + $0xbd8] sm:$0xff]  ;;  %v4746_v60 = vrot.slane %v4745_v36, 2  ;;  %v7001_v8 = vcombine.low %v304_v13, %v336_v15  ;;  %v4753_v13 = vrot.slane %v4752_v44, 2  ;;  %v4778_v15 = vmul.f32 %v8788_v9, %v8788_v9 }
 0x1b0   :  { %v7068_v62 = vcombine.high %v369_v56, %v401_v58  ;;  %v7067_v9 = vcombine.low %v369_v56, %v401_v58  ;;  %v8873_v22 = vadd.f32 %v4765_v2, %v4764_v54  ;;  %v497_v58 = vld [vmem:[%s10685_s1 + $0xed8] sm:$0xff] }
 0x1b1   :  { %v4747_v47 = vadd.f32 %v4746_v60, %v4745_v36  ;;  %v8871_v60 = vadd.f32 %v4760_v6, %v4759_v16  ;;  %v8889_v16 = vadd.f32 %v4753_v13, %v4752_v44  ;;  %v4800_v2 = vsel %vm4742_vm0, %v4778_v15, 0.0  ;;  %v529_v44 = vld [vmem:[%s10685_s1 + $0xfd8] sm:$0xff] }
 0x1b2   :  { %4503 = vmatpush1.bf16.msra.mxu0 %v6937_v14  ;;  %4544 = vmatpush1.bf16.msra.mxu1 %v6939_v57  ;;  %v4795_v57 = vadd.f32 %v4794_v51, %v4793_v3  ;;  %v8859_v14 = vld [vmem:[%s10685_s1 + $0xdd8] sm:$0xff]  ;;  %v7065_v51 = vcombine.low %v8810_v37, %v8815_v41  ;;  %v4788_v3 = vadd.f32 %v4787_v29, %v4786_v52  ;;  %v8882_v41 = vld [vmem:[%s10685_s1 + $0xed0] sm:$0xff] }
 0x1b3   :  { %4504 = vmatprep.subr.bf16.mxu0 %v7002_v23  ;;  %4545 = vmatprep.subr.bf16.mxu1 %v7004_v53  ;;  %v8845_v23 = vld [vmem:[%s10685_s1 + $0xdd0] sm:$0xff]  ;;  %v7132_v37 = vcombine.high %v8854_v12, %v8859_v14  ;;  %v10788_v29 = vrot.slane %v8667_v33, %v8734_v27 }
 0x1b4   :  { %v7130_v36 = vcombine.high %v8840_v61, %v8845_v23  ;;  %v4796_v6 = vrot.slane %v4795_v57, 2  ;;  %v7129_v55 = vcombine.low %v8840_v61, %v8845_v23  ;;  %v7196_v61 = vcombine.high %v497_v58, %v529_v44 }
 0x1b5   :  { %v8896_v52 = vadd.f32 %v8202_v20, %v10788_v29  ;;  %v10794_v20 = vrot.slane %v8667_v33, %v8753_v48 }
 0x1b6   :  { %4505 = vmatpush1.bf16.msra.mxu0 %v7001_v8  ;;  %4546 = vmatpush1.bf16.msra.mxu1 %v7003_v21  ;;  %v10792_v8 = vrot.slane %v8667_v33, %v8739_v10  ;;  %v8938_v23 = vadd.f32 %v4796_v6, %v4795_v57 }
 0x1b7   :  { %4506 = vmatprep.subr.bf16.mxu0 %v7066_v31  ;;  %4547 = vmatprep.subr.bf16.mxu1 %v7068_v62  ;;  %v8887_v31 = vld [vmem:[%s10685_s1 + $0xfd0] sm:$0xff]  ;;  %10789 = vst [vmem:[#allocation23_spill] sm:$0xff] %v8896_v52  ;;  %v4748_v62 = vrot.slane %v4747_v47, 1  ;;  %v8918_v13 = vadd.f32 %v8212_v25, %v10794_v20  ;;  %v4789_v20 = vrot.slane %v4788_v3, 2 }
 0x1b8   :  { %v8875_v53 = vpop.f32.mrb[24].mxu0  ;;  %v8898_v54 = vpop.f32.mrb[24].mxu1  ;;  %v8912_v21 = vadd.f32 %v8210_v24, %v10792_v8  ;;  %v7131_v24 = vcombine.low %v8854_v12, %v8859_v14  ;;  %v7194_v25 = vcombine.high %v8882_v41, %v8887_v31  ;;  %v4762_v8 = vrot.slane %v8871_v60, 1 }
 0x1b9   :  { %10787 = vst [vmem:[#allocation22_spill] sm:$0xff] %v8875_v53  ;;  %10790 = vst [vmem:[#allocation24_spill] sm:$0xff] %v8898_v54  ;;  %v8900_v56 = vpop.f32.mrb[25].mxu0  ;;  %v8920_v15 = vpop.f32.mrb[25].mxu1  ;;  %v4811_v12 = vsel %vm4742_vm0, %v8896_v52, 0.0  ;;  %v4843_v14 = vmul.f32 %v8896_v52, %v8896_v52  ;;  %v4818_v6 = vsel %vm4742_vm0, %v8918_v13, 0.0  ;;  %v8962_v18 = vadd.f32 %v4789_v20, %v4788_v3 }
 0x1ba   :  { %10791 = vst [vmem:[#allocation25_spill] sm:$0xff] %v8900_v56  ;;  %10793 = vst [vmem:[#allocation26_spill] sm:$0xff] %v8912_v21  ;;  %v3960_v29 = vpop.f32.mrb[26].mxu0  ;;  %4507 = vmatpush1.bf16.msra.mxu0 %v7065_v51  ;;  %v8924_v56 = vadd.f32 %v4782_v32, %v4781_v19  ;;  %v4001_v54 = vpop.f32.mrb[26].mxu1  ;;  %4548 = vmatpush1.bf16.msra.mxu1 %v7067_v9  ;;  %v4767_v51 = vrot.slane %v8873_v22, 2  ;;  %v50_v9 = vld [vmem:[%s10685_s1 + $0xe0] sm:$0xff]  ;;  %v4845_v52 = vmul.f32 %v8912_v21, %v8912_v21 }
 0x1bb   :  { %10795 = vst [vmem:[#allocation27_spill] sm:$0xff] %v8918_v13  ;;  %10796 = vst [vmem:[#allocation28_spill] sm:$0xff] %v8920_v15  ;;  %v3961_v53 = vpop.f32.mrb[27].mxu0  ;;  %4508 = vmatprep.subr.bf16.mxu0 %v7130_v36  ;;  %v4002_v29 = vpop.f32.mrb[27].mxu1  ;;  %4549 = vmatprep.subr.bf16.mxu1 %v7132_v37  ;;  %v82_v19 = vld [vmem:[%s10685_s1 + $0x1e0] sm:$0xff]  ;;  %v4801_v32 = vrot.slane %v4800_v2, 4  ;;  %v8950_v37 = vadd.f32 %v4748_v62, %v4747_v47  ;;  %v7193_v54 = vcombine.low %v8882_v41, %v8887_v31 }
 0x1bc   :  { %v51_v53 = vld [vmem:[%s10685_s1 + $0xe8] sm:$0xff]  ;;  %v4825_v57 = vsel %vm4742_vm0, %v8912_v21, 0.0  ;;  %v4755_v29 = vrot.slane %v8889_v16, 1  ;;  %v7195_v15 = vcombine.low %v497_v58, %v529_v44  ;;  %v6750_v47 = vcombine.high %v50_v9, %v82_v19  ;;  %v146_v41 = vld [vmem:[%s10685_s1 + $0x3e0] sm:$0xff] }
 0x1bd   :  { %v83_v36 = vld [vmem:[%s10685_s1 + $0x1e8] sm:$0xff]  ;;  %v4784_v62 = vrot.slane %v8924_v56, 1  ;;  %v4812_v17 = vrot.slane %v4811_v12, 4  ;;  %v4847_v31 = vsel %vm4742_vm0, %v4843_v14, 0.0  ;;  %v4826_v58 = vrot.slane %v4825_v57, 4 }
 0x1be   :  { %4509 = vmatpush1.bf16.msra.mxu0 %v7129_v55  ;;  %4550 = vmatpush1.bf16.msra.mxu1 %v7131_v24  ;;  %v6752_v11 = vcombine.high %v51_v53, %v83_v36  ;;  %v8967_v55 = vld [vmem:[%s10685_s1 + $0x2e0] sm:$0xff]  ;;  %v4819_v44 = vrot.slane %v4818_v6, 4  ;;  %v4844_v3 = vmul.f32 %v8918_v13, %v8918_v13  ;;  %v115_v24 = vld [vmem:[%s10685_s1 + $0x2e8] sm:$0xff]  ;;  %v8982_v20 = vadd.f32 %v4767_v51, %v8873_v22 }
 0x1bf   :  { %4510 = vmatprep.subr.bf16.mxu0 %v7194_v25  ;;  %4551 = vmatprep.subr.bf16.mxu1 %v7196_v61  ;;  %v147_v25 = vld [vmem:[%s10685_s1 + $0x3e8] sm:$0xff]  ;;  %v4802_v61 = vadd.f32 %v4801_v32, %v4800_v2  ;;  %v10797_v14 = vrot.slane %v8667_v33, %v8756_v50  ;;  %v6749_v13 = vcombine.low %v50_v9, %v82_v19  ;;  %v4861_v35 = vsel %vm4742_vm0, %v4845_v52, 0.0 }
 0x1c0   :  { %v8991_v39 = vadd.f32 %v4762_v8, %v8871_v60  ;;  %v6751_v34 = vcombine.low %v51_v53, %v83_v36  ;;  %v6814_v22 = vcombine.high %v8967_v55, %v146_v41  ;;  %v4798_v2 = vrot.slane %v8938_v23, 1  ;;  %v210_v60 = vld [vmem:[%s10685_s1 + $0x5e0] sm:$0xff] }
 0x1c1   :  { %v8988_v21 = vadd.f32 %v8220_v28, %v10797_v14  ;;  %v4813_v51 = vadd.f32 %v4812_v17, %v4811_v12  ;;  %v4848_v32 = vrot.slane %v4847_v31, 4  ;;  %v6816_v33 = vcombine.high %v115_v24, %v147_v25  ;;  %v8999_v28 = vld [vmem:[%s10685_s1 + $0x4e0] sm:$0xff]  ;;  %v211_v17 = vld [vmem:[%s10685_s1 + $0x5e8] sm:$0xff] }
 0x1c2   :  { %4511 = vmatpush1.bf16.msra.mxu0 %v7193_v54  ;;  %4552 = vmatpush1.bf16.msra.mxu1 %v7195_v15  ;;  %v9005_v52 = vadd.f32 %v4755_v29, %v8889_v16  ;;  %v4827_v15 = vadd.f32 %v4826_v58, %v4825_v57  ;;  %v4820_v8 = vadd.f32 %v4819_v44, %v4818_v6  ;;  %v4854_v9 = vsel %vm4742_vm0, %v4844_v3, 0.0  ;;  %v275_v3 = vld [vmem:[%s10685_s1 + $0x7e8] sm:$0xff] }
 0x1c3   :  { %10798 = vst [vmem:[#allocation29_spill] sm:$0xff] %v8988_v21  ;;  %4578 = vmatprep.subr.bf16.mxu0 %v6750_v47  ;;  %4619 = vmatprep.subr.bf16.mxu1 %v6752_v11  ;;  %v179_v11 = vld [vmem:[%s10685_s1 + $0x4e8] sm:$0xff]  ;;  %v4803_v19 = vrot.slane %v4802_v61, 2  ;;  %v4862_v12 = vrot.slane %v4861_v35, 4  ;;  %v4832_v16 = vsel %vm4742_vm0, %v8988_v21, 0.0  ;;  %v6813_v53 = vcombine.low %v8967_v55, %v146_v41 }
 0x1c4   :  { %v9020_v36 = vadd.f32 %v4784_v62, %v8924_v56  ;;  %v4791_v57 = vrot.slane %v8962_v18, 1  ;;  %v6815_v6 = vcombine.low %v115_v24, %v147_v25  ;;  %v6878_v54 = vcombine.high %v8999_v28, %v210_v60  ;;  %v274_v56 = vld [vmem:[%s10685_s1 + $0x7e0] sm:$0xff] }
 0x1c5   :  { %4529 = vmatmul.mubr.bf16.vlgmr.msra.gmra.mrb[52].mxu0 %v8471_v40  ;;  %4570 = vmatmul.mubr.bf16.vlgmr.msra.gmra.mrb[52].mxu1 %v8471_v40  ;;  %v4814_v29 = vrot.slane %v4813_v51, 2  ;;  %v4849_v47 = vadd.f32 %v4848_v32, %v4847_v31  ;;  %v4855_v58 = vrot.slane %v4854_v9, 4  ;;  %v6880_v44 = vcombine.high %v179_v11, %v211_v17  ;;  %v242_v40 = vld [vmem:[%s10685_s1 + $0x6e0] sm:$0xff]  ;;  %v243_v31 = vld [vmem:[%s10685_s1 + $0x6e8] sm:$0xff] }
 0x1c6   :  { %4579 = vmatpush1.bf16.msra.mxu0 %v6749_v13  ;;  %4620 = vmatpush1.bf16.msra.mxu1 %v6751_v34  ;;  %v10799_v13 = vmov 0   ;;  %v4828_v34 = vrot.slane %v4827_v15, 2  ;;  %v4821_v62 = vrot.slane %v4820_v8, 2  ;;  %v4833_v55 = vrot.slane %v4832_v16, 4 }
 0x1c7   :  { %4580 = vmatprep.subr.bf16.mxu0 %v6814_v22  ;;  %4621 = vmatprep.subr.bf16.mxu1 %v6816_v33  ;;  %v9041_v24 = vadd.f32 %v4798_v2, %v8938_v23  ;;  %v4804_v25 = vadd.f32 %v4803_v19, %v4802_v61  ;;  %v4863_v14 = vadd.f32 %v4862_v12, %v4861_v35  ;;  %v4769_v32 = vrot.slane %v8982_v20, 1  ;;  %v306_v35 = vld [vmem:[%s10685_s1 + $0x8e0] sm:$0xff] }
 0x1c8   :  { %4610 = vmatprep.mubr.bf16.mxu0 %v10799_v13  ;;  %4651 = vmatprep.mubr.bf16.mxu1 %v10799_v13  ;;  %v6877_v22 = vcombine.low %v8999_v28, %v210_v60  ;;  %v4846_v33 = vmul.f32 %v8988_v21, %v8988_v21  ;;  %v6879_v41 = vcombine.low %v179_v11, %v211_v17  ;;  %v4850_v0 = vrot.slane %v4849_v47, 2  ;;  %v338_v61 = vld [vmem:[%s10685_s1 + $0x9e0] sm:$0xff] }
 0x1c9   :  { %v6942_v30 = vcombine.high %v242_v40, %v274_v56  ;;  %v4815_v4 = vadd.f32 %v4814_v29, %v4813_v51  ;;  %v4856_v63 = vadd.f32 %v4855_v58, %v4854_v9  ;;  %v6944_v23 = vcombine.high %v243_v31, %v275_v3  ;;  %v307_v51 = vld [vmem:[%s10685_s1 + $0x8e8] sm:$0xff] }
 0x1ca   :  { %4581 = vmatpush1.bf16.msra.mxu0 %v6813_v53  ;;  %4622 = vmatpush1.bf16.msra.mxu1 %v6815_v6  ;;  %v4829_v2 = vadd.f32 %v4828_v34, %v4827_v15  ;;  %v4822_v28 = vadd.f32 %v4821_v62, %v4820_v8  ;;  %v4834_v60 = vadd.f32 %v4833_v55, %v4832_v16  ;;  %v339_v9 = vld [vmem:[%s10685_s1 + $0x9e8] sm:$0xff]  ;;  %v4805_v19 = vrot.slane %v4804_v25, 1 }
 0x1cb   :  { %4582 = vmatprep.subr.bf16.mxu0 %v6878_v54  ;;  %4623 = vmatprep.subr.bf16.mxu1 %v6880_v44  ;;  %v9062_v17 = vadd.f32 %v4791_v57, %v8962_v18  ;;  %v6941_v8 = vcombine.low %v242_v40, %v274_v56  ;;  %v4864_v12 = vrot.slane %v4863_v14, 2  ;;  %v4868_v16 = vsel %vm4742_vm0, %v4846_v33, 0.0  ;;  %v9070_v18 = vld [vmem:[%s10685_s1 + $0xae0] sm:$0xff] }
 0x1cc   :  { %v6943_v53 = vcombine.low %v243_v31, %v275_v3  ;;  %v7006_v6 = vcombine.high %v306_v35, %v338_v61  ;;  %v4816_v54 = vrot.slane %v4815_v4, 1  ;;  %v4851_v29 = vadd.f32 %v4850_v0, %v4849_v47  ;;  %v9075_v57 = vld [vmem:[%s10685_s1 + $0xbe0] sm:$0xff]  ;;  %v9083_v0 = vld [vmem:[%s10685_s1 + $0xae8] sm:$0xff] }
 0x1cd   :  { %v4857_v58 = vrot.slane %v4856_v63, 2  ;;  %v7008_v44 = vcombine.high %v307_v51, %v339_v9  ;;  %v9078_v40 = vadd.f32 %v4769_v32, %v8982_v20  ;;  %v4823_v56 = vrot.slane %v4822_v28, 1  ;;  %v403_v47 = vld [vmem:[%s10685_s1 + $0xbe8] sm:$0xff] }
 0x1ce   :  { %4583 = vmatpush1.bf16.msra.mxu0 %v6877_v22  ;;  %4624 = vmatpush1.bf16.msra.mxu1 %v6879_v41  ;;  %v4835_v34 = vrot.slane %v4834_v60, 2  ;;  %v9088_v62 = vadd.f32 %v4805_v19, %v4804_v25  ;;  %v10800_v55 = vrot.slane %v8777_v7, %v8662_v26  ;;  %v7005_v31 = vcombine.low %v306_v35, %v338_v61 }
 0x1cf   :  { %4584 = vmatprep.subr.bf16.mxu0 %v6942_v30  ;;  %4625 = vmatprep.subr.bf16.mxu1 %v6944_v23  ;;  %v4830_v30 = vrot.slane %v4829_v2, 1  ;;  %v4865_v3 = vadd.f32 %v4864_v12, %v4863_v14  ;;  %v4869_v22 = vrot.slane %v4868_v16, 4  ;;  %v7007_v32 = vcombine.low %v307_v51, %v339_v9  ;;  %v9111_v14 = vld [vmem:[%s10685_s1 + $0xde0] sm:$0xff]  ;;  %v9124_v9 = vld [vmem:[%s10685_s1 + $0xce8] sm:$0xff] }
 0x1d0   :  { %v9094_v20 = vadd.f32 %v8310_v38, %v10800_v55  ;;  %v7070_v25 = vcombine.high %v9070_v18, %v9075_v57  ;;  %v4817_v33 = vadd.f32 %v4816_v54, %v4815_v4  ;;  %v4852_v23 = vrot.slane %v4851_v29, 1  ;;  %v9129_v12 = vld [vmem:[%s10685_s1 + $0xde8] sm:$0xff] }
 0x1d1   :  { %v9100_v19 = vadd.f32 %v4857_v58, %v4856_v63  ;;  %v7072_v38 = vcombine.high %v9083_v0, %v403_v47  ;;  %v4831_v35 = vadd.f32 %v4830_v30, %v4829_v2  ;;  %v4824_v61 = vadd.f32 %v4823_v56, %v4822_v28 }
 0x1d2   :  { %10801 = vst [vmem:[#allocation30_spill] sm:$0xff] %v9094_v20  ;;  %4585 = vmatpush1.bf16.msra.mxu0 %v6941_v8  ;;  %4626 = vmatpush1.bf16.msra.mxu1 %v6943_v53  ;;  %v9106_v8 = vld [vmem:[%s10685_s1 + $0xce0] sm:$0xff]  ;;  %v9113_v51 = vadd.f32 %v4835_v34, %v4834_v60  ;;  %v10802_v63 = vrot.slane %v8777_v7, %v8676_v45  ;;  %v4879_v2 = vsel %vm4742_vm0, %v9094_v20, 0.0 }
 0x1d3   :  { %4586 = vmatprep.subr.bf16.mxu0 %v7006_v6  ;;  %4627 = vmatprep.subr.bf16.mxu1 %v7008_v44  ;;  %v4911_v28 = vmul.f32 %v9094_v20, %v9094_v20  ;;  %v7069_v53 = vcombine.low %v9070_v18, %v9075_v57  ;;  %v4866_v6 = vrot.slane %v4865_v3, 1  ;;  %v9143_v54 = vadd.f32 %v4869_v22, %v4868_v16  ;;  %v9159_v18 = vld [vmem:[%s10685_s1 + $0xee0] sm:$0xff]  ;;  %v499_v22 = vld [vmem:[%s10685_s1 + $0xee8] sm:$0xff] }
 0x1d4   :  { %v9119_v4 = vadd.f32 %v8318_v42, %v10802_v63  ;;  %v10804_v42 = vrot.slane %v8777_v7, %v8685_v49  ;;  %v7071_v58 = vcombine.low %v9083_v0, %v403_v47  ;;  %v7134_v44 = vcombine.high %v9106_v8, %v9111_v14  ;;  %v9164_v57 = vld [vmem:[%s10685_s1 + $0xfe0] sm:$0xff] }
 0x1d5   :  { %v9149_v30 = vadd.f32 %v4817_v33, %v8950_v37  ;;  %v4853_v56 = vadd.f32 %v4852_v23, %v4851_v29  ;;  %v7136_v16 = vcombine.high %v9124_v9, %v9129_v12  ;;  %v9167_v37 = vadd.f32 %v4831_v35, %v8991_v39  ;;  %v531_v39 = vld [vmem:[%s10685_s1 + $0xfe8] sm:$0xff] }
 0x1d6   :  { %10803 = vst [vmem:[#allocation31_spill] sm:$0xff] %v9119_v4  ;;  %v9139_v60 = vadd.f32 %v8320_v43, %v10804_v42  ;;  %4587 = vmatpush1.bf16.msra.mxu0 %v7005_v31  ;;  %4628 = vmatpush1.bf16.msra.mxu1 %v7007_v32  ;;  %v4859_v43 = vrot.slane %v9100_v19, 1  ;;  %v4880_v29 = vrot.slane %v4879_v2, 4  ;;  %v4893_v0 = vsel %vm4742_vm0, %v9119_v4, 0.0 }
 0x1d7   :  { %4588 = vmatprep.subr.bf16.mxu0 %v7070_v25  ;;  %4629 = vmatprep.subr.bf16.mxu1 %v7072_v38  ;;  %v4913_v47 = vmul.f32 %v9119_v4, %v9119_v4  ;;  %v4915_v32 = vsel %vm4742_vm0, %v4911_v28, 0.0  ;;  %v7133_v35 = vcombine.low %v9106_v8, %v9111_v14  ;;  %v4837_v63 = vrot.slane %v9113_v51, 1 }
 0x1d8   :  { %10805 = vst [vmem:[#allocation32_spill] sm:$0xff] %v9139_v60  ;;  %v9152_v34 = vpop.f32.mrb[28].mxu0  ;;  %v9173_v55 = vpop.f32.mrb[28].mxu1  ;;  %v4886_v25 = vsel %vm4742_vm0, %v9139_v60, 0.0  ;;  %v4912_v33 = vmul.f32 %v9139_v60, %v9139_v60  ;;  %v10810_v42 = vrot.slane %v8777_v7, %v8718_v5  ;;  %v7135_v11 = vcombine.low %v9124_v9, %v9129_v12 }
 0x1d9   :  { %10806 = vst [vmem:[#allocation33_spill] sm:$0xff] %v9152_v34  ;;  %10807 = vst [vmem:[#allocation34_spill] sm:$0xff] %v9173_v55  ;;  %v9175_v31 = vpop.f32.mrb[29].mxu0  ;;  %v9188_v23 = vpop.f32.mrb[29].mxu1  ;;  %v9204_v8 = vadd.f32 %v4824_v61, %v9005_v52  ;;  %v4894_v14 = vrot.slane %v4893_v0, 4  ;;  %v7200_v60 = vcombine.high %v499_v22, %v531_v39  ;;  %v4916_v9 = vrot.slane %v4915_v32, 4 }
 0x1da   :  { %10808 = vst [vmem:[#allocation35_spill] sm:$0xff] %v9175_v31  ;;  %10809 = vst [vmem:[#allocation36_spill] sm:$0xff] %v9188_v23  ;;  %v4042_v38 = vpop.f32.mrb[30].mxu0  ;;  %4589 = vmatpush1.bf16.msra.mxu0 %v7069_v53  ;;  %v9197_v28 = vadd.f32 %v8328_v46, %v10810_v42  ;;  %v4083_v41 = vpop.f32.mrb[30].mxu1  ;;  %4630 = vmatpush1.bf16.msra.mxu1 %v7071_v58  ;;  %v7198_v53 = vcombine.high %v9159_v18, %v9164_v57  ;;  %v52_v46 = vld [vmem:[%s10685_s1 + $0xf0] sm:$0xff]  ;;  %v4887_v12 = vrot.slane %v4886_v25, 4 }
 0x1db   :  { %v4043_v15 = vpop.f32.mrb[31].mxu0  ;;  %4590 = vmatprep.subr.bf16.mxu0 %v7134_v44  ;;  %v4867_v38 = vadd.f32 %v4866_v6, %v4865_v3  ;;  %v4084_v21 = vpop.f32.mrb[31].mxu1  ;;  %4631 = vmatprep.subr.bf16.mxu1 %v7136_v16  ;;  %v4871_v41 = vrot.slane %v9143_v54, 2  ;;  %v4929_v3 = vsel %vm4742_vm0, %v4913_v47, 0.0  ;;  %v85_v52 = vld [vmem:[%s10685_s1 + $0x1f8] sm:$0xff]  ;;  %v9221_v61 = vadd.f32 %v4853_v56, %v9020_v36 }
 0x1dc   :  { %10811 = vst [vmem:[#allocation37_spill] sm:$0xff] %v9197_v28  ;;  %v84_v15 = vld [vmem:[%s10685_s1 + $0x1f0] sm:$0xff]  ;;  %v53_v21 = vld [vmem:[%s10685_s1 + $0xf8] sm:$0xff]  ;;  %v4881_v6 = vadd.f32 %v4880_v29, %v4879_v2  ;;  %v4922_v58 = vsel %vm4742_vm0, %v4912_v33, 0.0  ;;  %v7197_v44 = vcombine.low %v9159_v18, %v9164_v57  ;;  %v9227_v16 = vadd.f32 %v4859_v43, %v9100_v19 }
 0x1dd   :  { %v4900_v47 = vsel %vm4742_vm0, %v9197_v28, 0.0  ;;  %v7199_v42 = vcombine.low %v499_v22, %v531_v39  ;;  %v6754_v4 = vcombine.high %v52_v46, %v84_v15  ;;  %v9232_v36 = vadd.f32 %v4837_v63, %v9113_v51  ;;  %v116_v18 = vld [vmem:[%s10685_s1 + $0x2f0] sm:$0xff]  ;;  %v117_v51 = vld [vmem:[%s10685_s1 + $0x2f8] sm:$0xff] }
 0x1de   :  { %4591 = vmatpush1.bf16.msra.mxu0 %v7133_v35  ;;  %4632 = vmatpush1.bf16.msra.mxu1 %v7135_v11  ;;  %v4895_v2 = vadd.f32 %v4894_v14, %v4893_v0  ;;  %v4930_v56 = vrot.slane %v4929_v3, 4  ;;  %v6756_v29 = vcombine.high %v53_v21, %v85_v52  ;;  %v148_v19 = vld [vmem:[%s10685_s1 + $0x3f0] sm:$0xff]  ;;  %v4917_v43 = vadd.f32 %v4916_v9, %v4915_v32 }
 0x1df   :  { %4592 = vmatprep.subr.bf16.mxu0 %v7198_v53  ;;  %4633 = vmatprep.subr.bf16.mxu1 %v7200_v60  ;;  %v4888_v11 = vadd.f32 %v4887_v12, %v4886_v25  ;;  %v4923_v57 = vrot.slane %v4922_v58, 4  ;;  %v4914_v22 = vmul.f32 %v9197_v28, %v9197_v28  ;;  %v149_v60 = vld [vmem:[%s10685_s1 + $0x3f8] sm:$0xff]  ;;  %v4872_v0 = vadd.f32 %v4871_v41, %v9143_v54  ;;  %v9257_v54 = vld [vmem:[%s10685_s1 + $0x4f0] sm:$0xff] }
 0x1e0   :  { %v4882_v39 = vrot.slane %v4881_v6, 2  ;;  %v4901_v33 = vrot.slane %v4900_v47, 4  ;;  %v6753_v35 = vcombine.low %v52_v46, %v84_v15  ;;  %v6755_v25 = vcombine.low %v53_v21, %v85_v52  ;;  %v212_v46 = vld [vmem:[%s10685_s1 + $0x5f0] sm:$0xff] }
 0x1e1   :  { %v6818_v63 = vcombine.high %v116_v18, %v148_v19  ;;  %v9252_v53 = vadd.f32 %v4867_v38, %v9041_v24  ;;  %v4896_v14 = vrot.slane %v4895_v2, 2  ;;  %v4931_v9 = vadd.f32 %v4930_v56, %v4929_v3  ;;  %v9266_v24 = vld [vmem:[%s10686_s0] sm:$0x1]  ;;  %v181_v38 = vld [vmem:[%s10685_s1 + $0x4f8] sm:$0xff] }
 0x1e2   :  { %4593 = vmatpush1.bf16.msra.mxu0 %v7197_v44  ;;  %4634 = vmatpush1.bf16.msra.mxu1 %v7199_v42  ;;  %v6820_v12 = vcombine.high %v117_v51, %v149_v60  ;;  %v4918_v15 = vrot.slane %v4917_v43, 2  ;;  %v4924_v41 = vadd.f32 %v4923_v57, %v4922_v58  ;;  %v4936_v21 = vsel %vm4742_vm0, %v4914_v22, 0.0  ;;  %v213_v3 = vld [vmem:[%s10685_s1 + $0x5f8] sm:$0xff] }
 0x1e3   :  { %4660 = vmatprep.subr.bf16.mxu0 %v6754_v4  ;;  %4701 = vmatprep.subr.bf16.mxu1 %v6756_v29  ;;  %v4889_v4 = vrot.slane %v4888_v11, 2  ;;  %v4873_v52 = vrot.slane %v4872_v0, 1  ;;  %v4883_v44 = vadd.f32 %v4882_v39, %v4881_v6  ;;  %v4902_v58 = vadd.f32 %v4901_v33, %v4900_v47  ;;  %v244_v6 = vld [vmem:[%s10685_s1 + $0x6f0] sm:$0xff]  ;;  %v277_v39 = vld [vmem:[%s10685_s1 + $0x7f8] sm:$0xff] }
 0x1e4   :  { %v6817_v42 = vcombine.low %v116_v18, %v148_v19  ;;  %v6819_v29 = vcombine.low %v117_v51, %v149_v60  ;;  %v6882_v57 = vcombine.high %v9257_v54, %v212_v46  ;;  %v4897_v22 = vadd.f32 %v4896_v14, %v4895_v2  ;;  %v276_v47 = vld [vmem:[%s10685_s1 + $0x7f0] sm:$0xff]  ;;  %v245_v60 = vld [vmem:[%s10685_s1 + $0x6f8] sm:$0xff] }
 0x1e5   :  { %4611 = vmatmul.mubr.bf16.vlgmr.msra.gmra.mrb[56].mxu0 %v9266_v24  ;;  %4652 = vmatmul.mubr.bf16.vlgmr.msra.gmra.mrb[56].mxu1 %v9266_v24  ;;  %v4932_v32 = vrot.slane %v4931_v9, 2  ;;  %v4937_v28 = vrot.slane %v4936_v21, 4  ;;  %v6884_v20 = vcombine.high %v181_v38, %v213_v3  ;;  %v9288_v18 = vadd.f32 %v9227_v16, %v9062_v17 }
 0x1e6   :  { %4661 = vmatpush1.bf16.msra.mxu0 %v6753_v35  ;;  %4702 = vmatpush1.bf16.msra.mxu1 %v6755_v25  ;;  %v4919_v19 = vadd.f32 %v4918_v15, %v4917_v43  ;;  %v4890_v2 = vadd.f32 %v4889_v4, %v4888_v11  ;;  %v4925_v51 = vrot.slane %v4924_v41, 2  ;;  %v4874_v33 = vadd.f32 %v4873_v52, %v4872_v0  ;;  %v340_v0 = vld [vmem:[%s10685_s1 + $0x9f0] sm:$0xff] }
 0x1e7   :  { %4662 = vmatprep.subr.bf16.mxu0 %v6818_v63  ;;  %4703 = vmatprep.subr.bf16.mxu1 %v6820_v12  ;;  %v4884_v35 = vrot.slane %v4883_v44, 1  ;;  %v4903_v25 = vrot.slane %v4902_v58, 2  ;;  %v6881_v17 = vcombine.low %v9257_v54, %v212_v46  ;;  %v9300_v16 = vadd.f32 %v9232_v36, %v9078_v40 }
 0x1e8   :  { %4692 = vmatprep.mubr.bf16.mxu0 %v10799_v13  ;;  %4733 = vmatprep.mubr.bf16.mxu1 %v10799_v13  ;;  %v6883_v43 = vcombine.low %v181_v38, %v213_v3  ;;  %v6946_v11 = vcombine.high %v244_v6, %v276_v47  ;;  %v4898_v63 = vrot.slane %v4897_v22, 1  ;;  %v4933_v14 = vadd.f32 %v4932_v32, %v4931_v9  ;;  %v308_v13 = vld [vmem:[%s10685_s1 + $0x8f0] sm:$0xff] }
 0x1e9   :  { %v4938_v12 = vadd.f32 %v4937_v28, %v4936_v21  ;;  %v6948_v15 = vcombine.high %v245_v60, %v277_v39  ;;  %v4920_v54 = vrot.slane %v4919_v19, 1  ;;  %v4891_v40 = vrot.slane %v4890_v2, 1  ;;  %v309_v28 = vld [vmem:[%s10685_s1 + $0x8f8] sm:$0xff] }
 0x1ea   :  { %4663 = vmatpush1.bf16.msra.mxu0 %v6817_v42  ;;  %4704 = vmatpush1.bf16.msra.mxu1 %v6819_v29  ;;  %v4926_v36 = vadd.f32 %v4925_v51, %v4924_v41  ;;  %v9317_v32 = vadd.f32 %v4874_v33, %v9088_v62  ;;  %v4885_v9 = vadd.f32 %v4884_v35, %v4883_v44  ;;  %v9322_v41 = vld [vmem:[%s10687_s2 + $0x18] sm:$0xff]  ;;  %v4934_v44 = vrot.slane %v4933_v14, 1 }
 0x1eb   :  { %4664 = vmatprep.subr.bf16.mxu0 %v6882_v57  ;;  %4705 = vmatprep.subr.bf16.mxu1 %v6884_v20  ;;  %v341_v20 = vld [vmem:[%s10685_s1 + $0x9f8] sm:$0xff]  ;;  %v4904_v4 = vadd.f32 %v4903_v25, %v4902_v58  ;;  %v6945_v21 = vcombine.low %v244_v6, %v276_v47  ;;  %v10812_v38 = vrot.slane %v8777_v7, %v8734_v27  ;;  %v4939_v58 = vrot.slane %v4938_v12, 2  ;;  %v9333_v57 = vld [vmem:[%s10685_s1 + $0xaf0] sm:$0xff] }
 0x1ec   :  { %v6947_v52 = vcombine.low %v245_v60, %v277_v39  ;;  %v7010_v62 = vcombine.high %v308_v13, %v340_v0  ;;  %v4899_v42 = vadd.f32 %v4898_v63, %v4897_v22  ;;  %v7012_v29 = vcombine.high %v309_v28, %v341_v20  ;;  %v9338_v6 = vld [vmem:[%s10685_s1 + $0xbf0] sm:$0xff]  ;;  %v9345_v60 = vld [vmem:[%s10685_s1 + $0xaf8] sm:$0xff] }
 0x1ed   :  { %v9328_v3 = vadd.f32 %v8418_v59, %v10812_v38  ;;  %v4921_v59 = vadd.f32 %v4920_v54, %v4919_v19  ;;  %v4892_v47 = vadd.f32 %v4891_v40, %v4890_v2  ;;  %v4927_v51 = vrot.slane %v4926_v36, 1  ;;  %v405_v39 = vld [vmem:[%s10685_s1 + $0xbf8] sm:$0xff]  ;;  %v10815_v2 = vld [vmem:[#allocation2_spill] sm:$0xff] }
 0x1ee   :  { %4665 = vmatpush1.bf16.msra.mxu0 %v6881_v17  ;;  %4706 = vmatpush1.bf16.msra.mxu1 %v6883_v43  ;;  %v9351_v33 = vadd.f32 %v4885_v9, %v9149_v30  ;;  %v10814_v19 = vrot.slane %v8777_v7, %v8739_v10  ;;  %v10817_v25 = vrot.slane %v8777_v7, %v8753_v48  ;;  %v10818_v17 = vld [vmem:[#allocation3_spill] sm:$0xff]  ;;  %v4905_v63 = vrot.slane %v4904_v4, 1 }
 0x1ef   :  { %10813 = vst [vmem:[#allocation38_spill] sm:$0xff] %v9328_v3  ;;  %4666 = vmatprep.subr.bf16.mxu0 %v6946_v11  ;;  %4707 = vmatprep.subr.bf16.mxu1 %v6948_v15  ;;  %v7009_v11 = vcombine.low %v308_v13, %v340_v0  ;;  %v4979_v15 = vmul.f32 %v9328_v3, %v9328_v3  ;;  %v9376_v13 = vld [vmem:[%s10685_s1 + $0xcf0] sm:$0xff] }
 0x1f0   :  { %v9357_v35 = vadd.f32 %v10815_v2, %v10814_v19  ;;  %v9363_v43 = vadd.f32 %v10818_v17, %v10817_v25  ;;  %v7011_v30 = vcombine.low %v309_v28, %v341_v20  ;;  %v7074_v54 = vcombine.high %v9333_v57, %v9338_v6  ;;  %v468_v0 = vld [vmem:[%s10685_s1 + $0xdf0] sm:$0xff]  ;;  %v437_v20 = vld [vmem:[%s10685_s1 + $0xcf8] sm:$0xff] }
 0x1f1   :  { %v9370_v40 = vadd.f32 %v4899_v42, %v9167_v37  ;;  %v4935_v9 = vadd.f32 %v4934_v44, %v4933_v14  ;;  %v4940_v38 = vadd.f32 %v4939_v58, %v4938_v12  ;;  %v7076_v19 = vcombine.high %v9345_v60, %v405_v39  ;;  %v532_v25 = vld [vmem:[%s10685_s1 + $0xff0] sm:$0xff] }
 0x1f2   :  { %10816 = vst [vmem:[#allocation2_spill] sm:$0xff] %v9357_v35  ;;  %10819 = vst [vmem:[#allocation3_spill] sm:$0xff] %v9363_v43  ;;  %4667 = vmatpush1.bf16.msra.mxu0 %v6945_v21  ;;  %4708 = vmatpush1.bf16.msra.mxu1 %v6947_v52  ;;  %v9382_v28 = vadd.f32 %v4921_v59, %v9221_v61  ;;  %v9385_v37 = vadd.f32 %v4892_v47, %v9204_v8  ;;  %v4947_v12 = vsel %vm4742_vm0, %v9328_v3, 0.0  ;;  %v469_v21 = vld [vmem:[%s10685_s1 + $0xdf8] sm:$0xff] }
 0x1f3   :  { %4668 = vmatprep.subr.bf16.mxu0 %v7010_v62  ;;  %4709 = vmatprep.subr.bf16.mxu1 %v7012_v29  ;;  %v4928_v14 = vadd.f32 %v4927_v51, %v4926_v36  ;;  %v4961_v52 = vsel %vm4742_vm0, %v9357_v35, 0.0  ;;  %v4981_v61 = vmul.f32 %v9357_v35, %v9357_v35  ;;  %v10820_v8 = vrot.slane %v8777_v7, %v8756_v50  ;;  %v10821_v36 = vld [vmem:[#allocation4_spill] sm:$0xff] }
 0x1f4   :  { %v7073_v42 = vcombine.low %v9333_v57, %v9338_v6  ;;  %v4983_v44 = vsel %vm4742_vm0, %v4979_v15, 0.0  ;;  %v4954_v58 = vsel %vm4742_vm0, %v9363_v43, 0.0  ;;  %v7075_v29 = vcombine.low %v9345_v60, %v405_v39  ;;  %v500_v6 = vld [vmem:[%s10685_s1 + $0xef0] sm:$0xff]  ;;  %v501_v15 = vld [vmem:[%s10685_s1 + $0xef8] sm:$0xff] }
 0x1f5   :  { %v9403_v62 = vadd.f32 %v10821_v36, %v10820_v8  ;;  %v7138_v59 = vcombine.high %v9376_v13, %v468_v0  ;;  %v4906_v47 = vadd.f32 %v4905_v63, %v4904_v4  ;;  %v4941_v7 = vrot.slane %v4940_v38, 1 }
 0x1f6   :  { %4669 = vmatpush1.bf16.msra.mxu0 %v7009_v11  ;;  %4710 = vmatpush1.bf16.msra.mxu1 %v7011_v30  ;;  %v7140_v57 = vcombine.high %v437_v20, %v469_v21  ;;  %v9423_v60 = vadd.f32 %v4935_v9, %v9252_v53  ;;  %v4948_v4 = vrot.slane %v4947_v12, 4  ;;  %v4980_v39 = vmul.f32 %v9363_v43, %v9363_v43  ;;  %v533_v53 = vld [vmem:[%s10685_s1 + $0xff8] sm:$0xff] }
 0x1f7   :  { %10822 = vst [vmem:[#allocation4_spill] sm:$0xff] %v9403_v62  ;;  %4670 = vmatprep.subr.bf16.mxu0 %v7074_v54  ;;  %4711 = vmatprep.subr.bf16.mxu1 %v7076_v19  ;;  %v4984_v30 = vrot.slane %v4983_v44, 4  ;;  %v4962_v54 = vrot.slane %v4961_v52, 4  ;;  %v4955_v9 = vrot.slane %v4954_v58, 4  ;;  %v7137_v36 = vcombine.low %v9376_v13, %v468_v0 }
 0x1f8   :  { %v9414_v2 = vpop.f32.mrb[32].mxu0  ;;  %v9429_v11 = vpop.f32.mrb[32].mxu1  ;;  %v4997_v17 = vsel %vm4742_vm0, %v4981_v61, 0.0  ;;  %v4982_v51 = vmul.f32 %v9403_v62, %v9403_v62  ;;  %v7139_v56 = vcombine.low %v437_v20, %v469_v21  ;;  %v7202_v43 = vcombine.high %v500_v6, %v532_v25  ;;  %v10828_v20 = vld [vmem:[#allocation5_spill] sm:$0xff] }
 0x1f9   :  { %10823 = vst [vmem:[#allocation39_spill] sm:$0xff] %v9414_v2  ;;  %10824 = vst [vmem:[#allocation40_spill] sm:$0xff] %v9429_v11  ;;  %v9431_v63 = vpop.f32.mrb[33].mxu0  ;;  %v9439_v19 = vpop.f32.mrb[33].mxu1  ;;  %v9446_v35 = vadd.f32 %v4928_v14, %v9288_v18  ;;  %v9449_v3 = vadd.f32 %v4906_v47, %v9300_v16  ;;  %v7204_v13 = vcombine.high %v501_v15, %v533_v53  ;;  %v4990_v61 = vsel %vm4742_vm0, %v4980_v39, 0.0 }
 0x1fa   :  { %10825 = vst [vmem:[#allocation41_spill] sm:$0xff] %v9431_v63  ;;  %10826 = vst [vmem:[#allocation42_spill] sm:$0xff] %v9439_v19  ;;  %v4124_v8 = vpop.f32.mrb[34].mxu0  ;;  %4671 = vmatpush1.bf16.msra.mxu0 %v7073_v42  ;;  %v4165_v22 = vpop.f32.mrb[34].mxu1  ;;  %4712 = vmatpush1.bf16.msra.mxu1 %v7075_v29  ;;  %v4942_v42 = vadd.f32 %v4941_v7, %v4940_v38  ;;  %v4949_v0 = vadd.f32 %v4948_v4, %v4947_v12  ;;  %v4998_v14 = vrot.slane %v4997_v17, 4  ;;  %v10831_v38 = vld [vmem:[#allocation6_spill] sm:$0xff] }
 0x1fb   :  { %v4125_v46 = vpop.f32.mrb[35].mxu0  ;;  %4672 = vmatprep.subr.bf16.mxu0 %v7138_v59  ;;  %v4166_v8 = vpop.f32.mrb[35].mxu1  ;;  %4713 = vmatprep.subr.bf16.mxu1 %v7140_v57  ;;  %v4968_v22 = vsel %vm4742_vm0, %v9403_v62, 0.0  ;;  %v4963_v18 = vadd.f32 %v4962_v54, %v4961_v52  ;;  %v10830_v16 = vrot.slane %v8835_v1, %v8676_v45  ;;  %v7201_v12 = vcombine.low %v500_v6, %v532_v25  ;;  %v10834_v54 = vld [vmem:[#allocation7_spill] sm:$0xff] }
 0x1fc   :  { %v10827_v46 = vrot.slane %v8835_v1, %v8662_v26  ;;  %v4985_v59 = vadd.f32 %v4984_v30, %v4983_v44  ;;  %v4956_v47 = vadd.f32 %v4955_v9, %v4954_v58  ;;  %v5004_v7 = vsel %vm4742_vm0, %v4982_v51, 0.0 }
 0x1fd   :  { %v9464_v29 = vadd.f32 %v10831_v38, %v10830_v16  ;;  %v7203_v57 = vcombine.low %v501_v15, %v533_v53  ;;  %v4991_v4 = vrot.slane %v4990_v61, 4  ;;  %v4969_v39 = vrot.slane %v4968_v22, 4 }
 0x1fe   :  { %v9458_v21 = vadd.f32 %v10828_v20, %v10827_v46  ;;  %4673 = vmatpush1.bf16.msra.mxu0 %v7137_v36  ;;  %4714 = vmatpush1.bf16.msra.mxu1 %v7139_v56  ;;  %v10833_v52 = vrot.slane %v8835_v1, %v8685_v49  ;;  %v9476_v44 = vadd.f32 %v4942_v42, %v9317_v32  ;;  %v4950_v58 = vrot.slane %v4949_v0, 2  ;;  %v10837_v20 = vld [vmem:[#allocation8_spill] sm:$0xff] }
 0x1ff   :  { %10832 = vst [vmem:[#allocation6_spill] sm:$0xff] %v9464_v29  ;;  %4674 = vmatprep.subr.bf16.mxu0 %v7202_v43  ;;  %4715 = vmatprep.subr.bf16.mxu1 %v7204_v13  ;;  %v4999_v51 = vadd.f32 %v4998_v14, %v4997_v17  ;;  %v5005_v6 = vrot.slane %v5004_v7, 4  ;;  %v5049_v15 = vmul.f32 %v9464_v29, %v9464_v29  ;;  %v4986_v53 = vrot.slane %v4985_v59, 2 }
 0x200   :  { %10829 = vst [vmem:[#allocation5_spill] sm:$0xff] %v9458_v21  ;;  %v9471_v8 = vadd.f32 %v10834_v54, %v10833_v52  ;;  %v5047_v56 = vmul.f32 %v9458_v21, %v9458_v21  ;;  %v5015_v25 = vsel %vm4742_vm0, %v9458_v21, 0.0  ;;  %v4964_v30 = vrot.slane %v4963_v18, 2 }
 0x201   :  { %v4957_v32 = vrot.slane %v4956_v47, 2  ;;  %v5029_v9 = vsel %vm4742_vm0, %v9464_v29, 0.0  ;;  %v4992_v36 = vadd.f32 %v4991_v4, %v4990_v61  ;;  %v4970_v42 = vadd.f32 %v4969_v39, %v4968_v22 }
 0x202   :  { %10835 = vst [vmem:[#allocation7_spill] sm:$0xff] %v9471_v8  ;;  %4675 = vmatpush1.bf16.msra.mxu0 %v7201_v12  ;;  %4716 = vmatpush1.bf16.msra.mxu1 %v7203_v57  ;;  %v5022_v17 = vsel %vm4742_vm0, %v9471_v8, 0.0  ;;  %v10836_v13 = vrot.slane %v8835_v1, %v8718_v5  ;;  %v4951_v16 = vadd.f32 %v4950_v58, %v4949_v0  ;;  %v5016_v38 = vrot.slane %v5015_v25, 4 }
 0x203   :  { %v5051_v12 = vsel %vm4742_vm0, %v5047_v56, 0.0  ;;  %v5048_v52 = vmul.f32 %v9471_v8, %v9471_v8  ;;  %v5000_v61 = vrot.slane %v4999_v51, 2  ;;  %v5006_v22 = vadd.f32 %v5005_v6, %v5004_v7 }
 0x204   :  { %v9494_v14 = vadd.f32 %v10837_v20, %v10836_v13  ;;  %v5030_v57 = vrot.slane %v5029_v9, 4  ;;  %v5065_v4 = vsel %vm4742_vm0, %v5049_v15, 0.0  ;;  %v4987_v39 = vadd.f32 %v4986_v53, %v4985_v59 }
 0x205   :  { %4693 = vmatmul.mubr.bf16.vlgmr.msra.gmra.mrb[60].mxu0 %v9266_v24  ;;  %4734 = vmatmul.mubr.bf16.vlgmr.msra.gmra.mrb[60].mxu1 %v9266_v24  ;;  %v4965_v54 = vadd.f32 %v4964_v30, %v4963_v18  ;;  %v4958_v13 = vadd.f32 %v4957_v32, %v4956_v47  ;;  %v5023_v20 = vrot.slane %v5022_v17, 4  ;;  %v4993_v0 = vrot.slane %v4992_v36, 2 }
 0x206   :  { %10838 = vst [vmem:[#allocation8_spill] sm:$0xff] %v9494_v14  ;;  %v4971_v58 = vrot.slane %v4970_v42, 2  ;;  %v5052_v43 = vrot.slane %v5051_v12, 4  ;;  %v5050_v56 = vmul.f32 %v9494_v14, %v9494_v14  ;;  %v5017_v46 = vadd.f32 %v5016_v38, %v5015_v25 }
 0x207   :  { %v5066_v62 = vrot.slane %v5065_v4, 4  ;;  %v5058_v8 = vsel %vm4742_vm0, %v5048_v52, 0.0  ;;  %v5036_v7 = vsel %vm4742_vm0, %v9494_v14, 0.0  ;;  %v4952_v6 = vrot.slane %v4951_v16, 1 }
 0x208   :  { %v5001_v15 = vadd.f32 %v5000_v61, %v4999_v51  ;;  %v5007_v24 = vrot.slane %v5006_v22, 2  ;;  %v5031_v59 = vadd.f32 %v5030_v57, %v5029_v9  ;;  %v4988_v18 = vrot.slane %v4987_v39, 1 }
 0x209   :  { %v4966_v47 = vrot.slane %v4965_v54, 1  ;;  %v4959_v53 = vrot.slane %v4958_v13, 1  ;;  %v5024_v30 = vadd.f32 %v5023_v20, %v5022_v17  ;;  %v5053_v32 = vadd.f32 %v5052_v43, %v5051_v12 }
 0x20a   :  { %v5059_v29 = vrot.slane %v5058_v8, 4  ;;  %v5037_v21 = vrot.slane %v5036_v7, 4  ;;  %v5072_v19 = vsel %vm4742_vm0, %v5050_v56, 0.0  ;;  %v4994_v25 = vadd.f32 %v4993_v0, %v4992_v36 }
 0x20b   :  { %v4972_v38 = vadd.f32 %v4971_v58, %v4970_v42  ;;  %v5018_v63 = vrot.slane %v5017_v46, 2  ;;  %v5067_v52 = vadd.f32 %v5066_v62, %v5065_v4  ;;  %v4953_v11 = vadd.f32 %v4952_v6, %v4951_v16 }
 0x20c   :  { %v5002_v2 = vrot.slane %v5001_v15, 1  ;;  %v5008_v14 = vadd.f32 %v5007_v24, %v5006_v22  ;;  %v5032_v23 = vrot.slane %v5031_v59, 2  ;;  %v4967_v51 = vadd.f32 %v4966_v47, %v4965_v54 }
 0x20d   :  { %v4960_v61 = vadd.f32 %v4959_v53, %v4958_v13  ;;  %v5025_v9 = vrot.slane %v5024_v30, 2  ;;  %v5073_v57 = vrot.slane %v5072_v19, 4  ;;  %v4989_v31 = vadd.f32 %v4988_v18, %v4987_v39 }
 0x20e   :  { %v5054_v55 = vrot.slane %v5053_v32, 2  ;;  %v5060_v17 = vadd.f32 %v5059_v29, %v5058_v8  ;;  %v5038_v43 = vadd.f32 %v5037_v21, %v5036_v7  ;;  %v4995_v12 = vrot.slane %v4994_v25, 1 }
 0x20f   :  { %v4973_v20 = vrot.slane %v4972_v38, 1  ;;  %v5019_v34 = vadd.f32 %v5018_v63, %v5017_v46  ;;  %v5068_v56 = vrot.slane %v5067_v52, 2  ;;  %v4975_v36 = vadd.f32 %v4953_v11, %v9351_v33 }
 0x210   :  { %v5003_v42 = vadd.f32 %v5002_v2, %v5001_v15  ;;  %v5009_v62 = vrot.slane %v5008_v14, 1  ;;  %v5033_v16 = vadd.f32 %v5032_v23, %v5031_v59  ;;  %v4977_v22 = vadd.f32 %v4967_v51, %v9370_v40 }
 0x211   :  { %v4976_v4 = vadd.f32 %v4960_v61, %v9385_v37  ;;  %v5026_v54 = vadd.f32 %v5025_v9, %v5024_v30  ;;  %v5074_v13 = vadd.f32 %v5073_v57, %v5072_v19  ;;  %v5011_v39 = vadd.f32 %v4989_v31, %v9382_v28  ;;  %v10840_v31 = vld [vmem:[#allocation10_spill] sm:$0xff]  ;;  %v10849_v61 = vld [vmem:[#allocation12_spill] sm:$0xff] }
 0x212   :  { %v5055_v0 = vadd.f32 %v5054_v55, %v5053_v32  ;;  %v5061_v29 = vrot.slane %v5060_v17, 2  ;;  %v5039_v21 = vrot.slane %v5038_v43, 2  ;;  %v4996_v8 = vadd.f32 %v4995_v12, %v4994_v25 }
 0x213   :  { %v4974_v58 = vadd.f32 %v4973_v20, %v4972_v38  ;;  %v5020_v63 = vrot.slane %v5019_v34, 1  ;;  %v5069_v46 = vadd.f32 %v5068_v56, %v5067_v52  ;;  %v5013_v33 = vadd.f32 %v5003_v42, %v9423_v60 }
 0x214   :  { %v5010_v2 = vadd.f32 %v5009_v62, %v5008_v14  ;;  %v5034_v11 = vrot.slane %v5033_v16, 1  ;;  %v5027_v40 = vrot.slane %v5026_v54, 1  ;;  %v5075_v37 = vrot.slane %v5074_v13, 2  ;;  %v10843_v14 = vld [vmem:[#allocation11_spill] sm:$0xff] }
 0x215   :  { %v10839_v19 = vrot.slane %v8835_v1, %v8734_v27  ;;  %v5056_v7 = vrot.slane %v5055_v0, 1  ;;  %v5062_v6 = vadd.f32 %v5061_v29, %v5060_v17  ;;  %v5040_v15 = vadd.f32 %v5039_v21, %v5038_v43 }
 0x216   :  { %v10842_v60 = vrot.slane %v8835_v1, %v8739_v10  ;;  %v5012_v18 = vadd.f32 %v4996_v8, %v9446_v35  ;;  %v4978_v47 = vadd.f32 %v4974_v58, %v9449_v3  ;;  %v5021_v53 = vadd.f32 %v5020_v63, %v5019_v34  ;;  %v9549_v34 = vld [vmem:[%s10687_s2 + $0x20] sm:$0xff] }
 0x217   :  { %v9519_v55 = vadd.f32 %v10840_v31, %v10839_v19  ;;  %v5070_v30 = vrot.slane %v5069_v46, 1  ;;  %v5014_v38 = vadd.f32 %v5010_v2, %v9476_v44  ;;  %v5035_v52 = vadd.f32 %v5034_v11, %v5033_v16 }
 0x218   :  { %v9527_v24 = vadd.f32 %v10843_v14, %v10842_v60  ;;  %v9529_v59 = vpop.f32.mrb[36].mxu0  ;;  %v9533_v32 = vpop.f32.mrb[36].mxu1  ;;  %v10848_v51 = vrot.slane %v8835_v1, %v8753_v48  ;;  %v5028_v17 = vadd.f32 %v5027_v40, %v5026_v54  ;;  %v5076_v44 = vadd.f32 %v5075_v37, %v5074_v13  ;;  %v10853_v40 = vld [vmem:[#allocation13_spill] sm:$0xff] }
 0x219   :  { %10841 = vst [vmem:[#allocation10_spill] sm:$0xff] %v9519_v55  ;;  %10845 = vst [vmem:[#allocation43_spill] sm:$0xff] %v9529_v59  ;;  %v9535_v25 = vpop.f32.mrb[37].mxu0  ;;  %v9551_v3 = vpop.f32.mrb[37].mxu1  ;;  %v5083_v43 = vsel %vm4742_vm0, %v9519_v55, 0.0  ;;  %v5115_v12 = vmul.f32 %v9519_v55, %v9519_v55  ;;  %v5057_v42 = vadd.f32 %v5056_v7, %v5055_v0  ;;  %v5063_v62 = vrot.slane %v5062_v6, 1 }
 0x21a   :  { %10844 = vst [vmem:[#allocation11_spill] sm:$0xff] %v9527_v24  ;;  %10846 = vst [vmem:[#allocation44_spill] sm:$0xff] %v9533_v32  ;;  %v9542_v9 = vadd.f32 %v10849_v61, %v10848_v51  ;;  %v4206_v57 = vpop.f32.mrb[38].mxu0  ;;  %v4247_v20 = vpop.f32.mrb[38].mxu1  ;;  %v5041_v16 = vrot.slane %v5040_v15, 1  ;;  %v5097_v29 = vsel %vm4742_vm0, %v9527_v24, 0.0  ;;  %v9559_v8 = vadd.f32 %v5021_v53, %v4975_v36 }
 0x21b   :  { %10847 = vst [vmem:[#allocation45_spill] sm:$0xff] %v9535_v25  ;;  %10851 = vst [vmem:[#allocation46_spill] sm:$0xff] %v9551_v3  ;;  %v4207_v56 = vpop.f32.mrb[39].mxu0  ;;  %v4248_v21 = vpop.f32.mrb[39].mxu1  ;;  %v5071_v58 = vadd.f32 %v5070_v30, %v5069_v46  ;;  %v5117_v54 = vmul.f32 %v9527_v24, %v9527_v24  ;;  %v9565_v63 = vadd.f32 %v5035_v52, %v4977_v22  ;;  %v5084_v2 = vrot.slane %v5083_v43, 4 }
 0x21c   :  { %10850 = vst [vmem:[#allocation12_spill] sm:$0xff] %v9542_v9  ;;  %v5090_v0 = vsel %vm4742_vm0, %v9542_v9, 0.0  ;;  %v10852_v11 = vrot.slane %v8835_v1, %v8756_v50  ;;  %v5077_v36 = vrot.slane %v5076_v44, 1  ;;  %v5119_v46 = vsel %vm4742_vm0, %v5115_v12, 0.0 }
 0x21d   :  { %v5098_v19 = vrot.slane %v5097_v29, 4  ;;  %v5116_v31 = vmul.f32 %v9542_v9, %v9542_v9  ;;  %v9578_v7 = vadd.f32 %v5057_v42, %v5011_v39  ;;  %v9580_v22 = vadd.f32 %v5028_v17, %v4976_v4 }
 0x21e   :  { %v9573_v37 = vadd.f32 %v10853_v40, %v10852_v11  ;;  %v5064_v60 = vadd.f32 %v5063_v62, %v5062_v6  ;;  %v5042_v14 = vadd.f32 %v5041_v16, %v5040_v15  ;;  %v9582_v53 = vadd.f32 %v5071_v58, %v5013_v33  ;;  %v10856_v15 = vld [vmem:[#allocation22_spill] sm:$0xff]  ;;  %v10859_v62 = vld [vmem:[#allocation24_spill] sm:$0xff]  ;;  %v10862_v58 = vld [vmem:[#allocation25_spill] sm:$0xff] }
 0x21f   :  { %v5133_v1 = vsel %vm4742_vm0, %v5117_v54, 0.0  ;;  %v5091_v30 = vrot.slane %v5090_v0, 4  ;;  %v5085_v51 = vadd.f32 %v5084_v2, %v5083_v43  ;;  %v5120_v61 = vrot.slane %v5119_v46, 4 }
 0x220   :  { %10854 = vst [vmem:[#allocation13_spill] sm:$0xff] %v9573_v37  ;;  %v5118_v57 = vmul.f32 %v9573_v37, %v9573_v37  ;;  %v5078_v4 = vadd.f32 %v5077_v36, %v5076_v44  ;;  %v5099_v17 = vadd.f32 %v5098_v19, %v5097_v29  ;;  %v5126_v6 = vsel %vm4742_vm0, %v5116_v31, 0.0 }
 0x221   :  { %v10855_v33 = vrot.slane %v9322_v41, %v8662_v26  ;;  %v9598_v20 = vadd.f32 %v5064_v60, %v5012_v18  ;;  %v5134_v43 = vrot.slane %v5133_v1, 4  ;;  %v5104_v56 = vsel %vm4742_vm0, %v9573_v37, 0.0 }
 0x222   :  { %v10858_v42 = vrot.slane %v9322_v41, %v8676_v45  ;;  %v9608_v16 = vadd.f32 %v5042_v14, %v4978_v47  ;;  %v5092_v29 = vadd.f32 %v5091_v30, %v5090_v0  ;;  %v10861_v21 = vrot.slane %v9322_v41, %v8685_v49 }
 0x223   :  { %v9596_v12 = vadd.f32 %v10856_v15, %v10855_v33  ;;  %v5086_v2 = vrot.slane %v5085_v51, 2  ;;  %v5121_v11 = vadd.f32 %v5120_v61, %v5119_v46  ;;  %v5127_v40 = vrot.slane %v5126_v6, 4 }
 0x224   :  { %v9606_v44 = vadd.f32 %v10859_v62, %v10858_v42  ;;  %v9614_v54 = vadd.f32 %v10862_v58, %v10861_v21  ;;  %v5140_v36 = vsel %vm4742_vm0, %v5118_v57, 0.0  ;;  %v9619_v19 = vadd.f32 %v5078_v4, %v5014_v38  ;;  %v10865_v4 = vld [vmem:[#allocation28_spill] sm:$0xff] }
 0x225   :  { %10857 = vst [vmem:[#allocation22_spill] sm:$0xff] %v9596_v12  ;;  %v5100_v31 = vrot.slane %v5099_v17, 2  ;;  %v5105_v47 = vrot.slane %v5104_v56, 4  ;;  %v5183_v0 = vmul.f32 %v9596_v12, %v9596_v12  ;;  %v5135_v60 = vadd.f32 %v5134_v43, %v5133_v1 }
 0x226   :  { %10860 = vst [vmem:[#allocation24_spill] sm:$0xff] %v9606_v44  ;;  %10863 = vst [vmem:[#allocation25_spill] sm:$0xff] %v9614_v54  ;;  %v5151_v14 = vsel %vm4742_vm0, %v9596_v12, 0.0  ;;  %v5165_v30 = vsel %vm4742_vm0, %v9606_v44, 0.0  ;;  %v5185_v46 = vmul.f32 %v9606_v44, %v9606_v44  ;;  %v5093_v61 = vrot.slane %v5092_v29, 2 }
 0x227   :  { %v5141_v33 = vrot.slane %v5140_v36, 4  ;;  %v5184_v38 = vmul.f32 %v9614_v54, %v9614_v54  ;;  %v10864_v57 = vrot.slane %v9322_v41, %v8718_v5  ;;  %v5087_v1 = vadd.f32 %v5086_v2, %v5085_v51 }
 0x228   :  { %v5122_v43 = vrot.slane %v5121_v11, 2  ;;  %v5128_v42 = vadd.f32 %v5127_v40, %v5126_v6  ;;  %v5152_v21 = vrot.slane %v5151_v14, 4  ;;  %v5187_v58 = vsel %vm4742_vm0, %v5183_v0, 0.0 }
 0x229   :  { %v9635_v15 = vadd.f32 %v10865_v4, %v10864_v57  ;;  %v5166_v18 = vrot.slane %v5165_v30, 4  ;;  %v5158_v39 = vsel %vm4742_vm0, %v9614_v54, 0.0  ;;  %v5101_v52 = vadd.f32 %v5100_v31, %v5099_v17 }
 0x22a   :  { %v5136_v13 = vrot.slane %v5135_v60, 2  ;;  %v5106_v35 = vadd.f32 %v5105_v47, %v5104_v56  ;;  %v5201_v28 = vsel %vm4742_vm0, %v5185_v46, 0.0  ;;  %v5094_v57 = vadd.f32 %v5093_v61, %v5092_v29 }
 0x22b   :  { %10866 = vst [vmem:[#allocation28_spill] sm:$0xff] %v9635_v15  ;;  %v5142_v4 = vadd.f32 %v5141_v33, %v5140_v36  ;;  %v5194_v51 = vsel %vm4742_vm0, %v5184_v38, 0.0  ;;  %v5186_v6 = vmul.f32 %v9635_v15, %v9635_v15  ;;  %v5123_v2 = vadd.f32 %v5122_v43, %v5121_v11 }
 0x22c   :  { %v5129_v40 = vrot.slane %v5128_v42, 2  ;;  %v5188_v62 = vrot.slane %v5187_v58, 4  ;;  %v5159_v0 = vrot.slane %v5158_v39, 4  ;;  %v5153_v23 = vadd.f32 %v5152_v21, %v5151_v14 }
 0x22d   :  { %v5167_v37 = vadd.f32 %v5166_v18, %v5165_v30  ;;  %v5202_v9 = vrot.slane %v5201_v28, 4  ;;  %v5172_v17 = vsel %vm4742_vm0, %v9635_v15, 0.0  ;;  %v5088_v56 = vrot.slane %v5087_v1, 1 }
 0x22e   :  { %v5102_v31 = vrot.slane %v5101_v52, 1  ;;  %v5107_v47 = vrot.slane %v5106_v35, 2  ;;  %v5195_v29 = vrot.slane %v5194_v51, 4  ;;  %v5137_v36 = vadd.f32 %v5136_v13, %v5135_v60 }
 0x22f   :  { %v5095_v46 = vrot.slane %v5094_v57, 1  ;;  %v5143_v61 = vrot.slane %v5142_v4, 2  ;;  %v5208_v33 = vsel %vm4742_vm0, %v5186_v6, 0.0  ;;  %v5130_v38 = vadd.f32 %v5129_v40, %v5128_v42 }
 0x230   :  { %v5189_v11 = vadd.f32 %v5188_v62, %v5187_v58  ;;  %v5160_v43 = vadd.f32 %v5159_v0, %v5158_v39  ;;  %v5173_v54 = vrot.slane %v5172_v17, 4  ;;  %v5124_v44 = vrot.slane %v5123_v2, 1 }
 0x231   :  { %v5154_v14 = vrot.slane %v5153_v23, 2  ;;  %v5168_v18 = vrot.slane %v5167_v37, 2  ;;  %v5203_v30 = vadd.f32 %v5202_v9, %v5201_v28  ;;  %v5089_v21 = vadd.f32 %v5088_v56, %v5087_v1 }
 0x232   :  { %v5108_v24 = vadd.f32 %v5107_v47, %v5106_v35  ;;  %v5196_v15 = vadd.f32 %v5195_v29, %v5194_v51  ;;  %v5209_v12 = vrot.slane %v5208_v33, 4  ;;  %v5103_v55 = vadd.f32 %v5102_v31, %v5101_v52 }
 0x233   :  { %v5138_v3 = vrot.slane %v5137_v36, 1  ;;  %v5096_v25 = vadd.f32 %v5095_v46, %v5094_v57  ;;  %v5144_v13 = vadd.f32 %v5143_v61, %v5142_v4  ;;  %v5131_v60 = vrot.slane %v5130_v38, 1  ;;  %v10872_v61 = vld [vmem:[#allocation33_spill] sm:$0xff] }
 0x234   :  { %v5190_v32 = vrot.slane %v5189_v11, 2  ;;  %v5161_v59 = vrot.slane %v5160_v43, 2  ;;  %v5174_v6 = vadd.f32 %v5173_v54, %v5172_v17  ;;  %v5125_v42 = vadd.f32 %v5124_v44, %v5123_v2 }
 0x235   :  { %v5155_v62 = vadd.f32 %v5154_v14, %v5153_v23  ;;  %v5169_v39 = vadd.f32 %v5168_v18, %v5167_v37  ;;  %v5204_v58 = vrot.slane %v5203_v30, 2  ;;  %v5111_v40 = vadd.f32 %v5089_v21, %v9559_v8  ;;  %v10875_v21 = vld [vmem:[#allocation34_spill] sm:$0xff] }
 0x236   :  { %v5109_v0 = vrot.slane %v5108_v24, 1  ;;  %v5197_v28 = vrot.slane %v5196_v15, 2  ;;  %v5210_v9 = vadd.f32 %v5209_v12, %v5208_v33  ;;  %v5113_v52 = vadd.f32 %v5103_v55, %v9565_v63 }
 0x237   :  { %v5139_v1 = vadd.f32 %v5138_v3, %v5137_v36  ;;  %v5112_v57 = vadd.f32 %v5096_v25, %v9580_v22  ;;  %v5145_v4 = vrot.slane %v5144_v13, 1  ;;  %v5132_v23 = vadd.f32 %v5131_v60, %v5130_v38 }
 0x238   :  { %v9650_v35 = vpop.f32.mrb[40].mxu0  ;;  %v9654_v51 = vpop.f32.mrb[40].mxu1  ;;  %v5191_v37 = vadd.f32 %v5190_v32, %v5189_v11  ;;  %v5162_v44 = vadd.f32 %v5161_v59, %v5160_v43  ;;  %v5175_v2 = vrot.slane %v5174_v6, 2  ;;  %v5147_v12 = vadd.f32 %v5125_v42, %v9578_v7  ;;  %v9676_v43 = vld [vmem:[%s10687_s2 + $0x28] sm:$0xff] }
 0x239   :  { %10867 = vst [vmem:[#allocation47_spill] sm:$0xff] %v9650_v35  ;;  %10868 = vst [vmem:[#allocation48_spill] sm:$0xff] %v9654_v51  ;;  %v9656_v54 = vpop.f32.mrb[41].mxu0  ;;  %v9658_v8 = vpop.f32.mrb[41].mxu1  ;;  %v5156_v56 = vrot.slane %v5155_v62, 1  ;;  %v5170_v31 = vrot.slane %v5169_v39, 1  ;;  %v5205_v55 = vadd.f32 %v5204_v58, %v5203_v30  ;;  %v5110_v25 = vadd.f32 %v5109_v0, %v5108_v24 }
 0x23a   :  { %10869 = vst [vmem:[#allocation49_spill] sm:$0xff] %v9656_v54  ;;  %10870 = vst [vmem:[#allocation50_spill] sm:$0xff] %v9658_v8  ;;  %v4288_v17 = vpop.f32.mrb[42].mxu0  ;;  %v4329_v3 = vpop.f32.mrb[42].mxu1  ;;  %v5198_v22 = vadd.f32 %v5197_v28, %v5196_v15  ;;  %v5211_v47 = vrot.slane %v5210_v9, 2  ;;  %v5149_v59 = vadd.f32 %v5139_v1, %v9582_v53  ;;  %v5146_v32 = vadd.f32 %v5145_v4, %v5144_v13  ;;  %v10878_v0 = vld [vmem:[#allocation35_spill] sm:$0xff] }
 0x23b   :  { %v4289_v63 = vpop.f32.mrb[43].mxu0  ;;  %v4330_v36 = vpop.f32.mrb[43].mxu1  ;;  %v10871_v46 = vrot.slane %v9322_v41, %v8734_v27  ;;  %v5148_v24 = vadd.f32 %v5132_v23, %v9598_v20  ;;  %v5192_v15 = vrot.slane %v5191_v37, 1  ;;  %v5163_v38 = vrot.slane %v5162_v44, 1 }
 0x23c   :  { %v5176_v11 = vadd.f32 %v5175_v2, %v5174_v6  ;;  %v5157_v53 = vadd.f32 %v5156_v56, %v5155_v62  ;;  %v5171_v14 = vadd.f32 %v5170_v31, %v5169_v39  ;;  %v5206_v18 = vrot.slane %v5205_v55, 1 }
 0x23d   :  { %v9668_v7 = vadd.f32 %v10872_v61, %v10871_v46  ;;  %v10874_v30 = vrot.slane %v9322_v41, %v8739_v10  ;;  %v5114_v60 = vadd.f32 %v5110_v25, %v9608_v16  ;;  %v5199_v20 = vrot.slane %v5198_v22, 1 }
 0x23e   :  { %v5212_v42 = vadd.f32 %v5211_v47, %v5210_v9  ;;  %v5150_v58 = vadd.f32 %v5146_v32, %v9619_v19  ;;  %v10877_v39 = vrot.slane %v9322_v41, %v8753_v48  ;;  %v5193_v16 = vadd.f32 %v5192_v15, %v5191_v37  ;;  %v10884_v15 = vld [vmem:[#allocation39_spill] sm:$0xff] }
 0x23f   :  { %10873 = vst [vmem:[#allocation33_spill] sm:$0xff] %v9668_v7  ;;  %v9682_v13 = vadd.f32 %v10875_v21, %v10874_v30  ;;  %v5251_v62 = vmul.f32 %v9668_v7, %v9668_v7  ;;  %v5164_v4 = vadd.f32 %v5163_v38, %v5162_v44  ;;  %v5177_v9 = vrot.slane %v5176_v11, 1  ;;  %v10881_v44 = vld [vmem:[#allocation36_spill] sm:$0xff] }
 0x240   :  { %v9694_v28 = vadd.f32 %v10878_v0, %v10877_v39  ;;  %v5219_v23 = vsel %vm4742_vm0, %v9668_v7, 0.0  ;;  %v9700_v2 = vadd.f32 %v5157_v53, %v5111_v40  ;;  %v9702_v19 = vadd.f32 %v5171_v14, %v5113_v52 }
 0x241   :  { %10876 = vst [vmem:[#allocation34_spill] sm:$0xff] %v9682_v13  ;;  %v5207_v17 = vadd.f32 %v5206_v18, %v5205_v55  ;;  %v5233_v56 = vsel %vm4742_vm0, %v9682_v13, 0.0  ;;  %v5200_v31 = vadd.f32 %v5199_v20, %v5198_v22  ;;  %v5213_v3 = vrot.slane %v5212_v42, 1 }
 0x242   :  { %10879 = vst [vmem:[#allocation35_spill] sm:$0xff] %v9694_v28  ;;  %v5253_v63 = vmul.f32 %v9682_v13, %v9682_v13  ;;  %v10880_v37 = vrot.slane %v9322_v41, %v8756_v50  ;;  %v5220_v47 = vrot.slane %v5219_v23, 4  ;;  %v5255_v40 = vsel %vm4742_vm0, %v5251_v62, 0.0 }
 0x243   :  { %v5226_v52 = vsel %vm4742_vm0, %v9694_v28, 0.0  ;;  %v5252_v55 = vmul.f32 %v9694_v28, %v9694_v28  ;;  %v9719_v22 = vadd.f32 %v5193_v16, %v5147_v12  ;;  %v9721_v36 = vadd.f32 %v5164_v4, %v5112_v57  ;;  %v10887_v4 = vld [vmem:[#allocation40_spill] sm:$0xff] }
 0x244   :  { %v9712_v25 = vadd.f32 %v10881_v44, %v10880_v37  ;;  %v5178_v32 = vadd.f32 %v5177_v9, %v5176_v11  ;;  %v5234_v46 = vrot.slane %v5233_v56, 4  ;;  %v9723_v61 = vadd.f32 %v5207_v17, %v5149_v59 }
 0x245   :  { %v10883_v41 = vrot.slane %v9549_v34, %v8662_v26  ;;  %v5256_v12 = vrot.slane %v5255_v40, 4  ;;  %v5269_v57 = vsel %vm4742_vm0, %v5253_v63, 0.0  ;;  %v5227_v18 = vrot.slane %v5226_v52, 4 }
 0x246   :  { %10882 = vst [vmem:[#allocation36_spill] sm:$0xff] %v9712_v25  ;;  %v5254_v59 = vmul.f32 %v9712_v25, %v9712_v25  ;;  %v9738_v11 = vadd.f32 %v5200_v31, %v5148_v24  ;;  %v5214_v30 = vadd.f32 %v5213_v3, %v5212_v42  ;;  %v5221_v21 = vadd.f32 %v5220_v47, %v5219_v23  ;;  %v10890_v23 = vld [vmem:[#allocation41_spill] sm:$0xff] }
 0x247   :  { %v9729_v38 = vadd.f32 %v10884_v15, %v10883_v41  ;;  %v5262_v20 = vsel %vm4742_vm0, %v5252_v55, 0.0  ;;  %v9741_v62 = vadd.f32 %v5178_v32, %v5114_v60  ;;  %v5235_v39 = vadd.f32 %v5234_v46, %v5233_v56 }
 0x248   :  { %v5240_v0 = vsel %vm4742_vm0, %v9712_v25, 0.0  ;;  %v10886_v16 = vrot.slane %v9549_v34, %v8676_v45  ;;  %v5270_v17 = vrot.slane %v5269_v57, 4  ;;  %v10889_v42 = vrot.slane %v9549_v34, %v8685_v49 }
 0x249   :  { %10885 = vst [vmem:[#allocation39_spill] sm:$0xff] %v9729_v38  ;;  %v5319_v24 = vmul.f32 %v9729_v38, %v9729_v38  ;;  %v5257_v31 = vadd.f32 %v5256_v12, %v5255_v40  ;;  %v5228_v3 = vadd.f32 %v5227_v18, %v5226_v52  ;;  %v5263_v63 = vrot.slane %v5262_v20, 4  ;;  %v10893_v52 = vld [vmem:[#allocation42_spill] sm:$0xff] }
 0x24a   :  { %v9749_v9 = vadd.f32 %v10887_v4, %v10886_v16  ;;  %v9757_v60 = vadd.f32 %v10890_v23, %v10889_v42  ;;  %v5276_v37 = vsel %vm4742_vm0, %v5254_v59, 0.0  ;;  %v9762_v44 = vadd.f32 %v5214_v30, %v5150_v58 }
 0x24b   :  { %v5222_v47 = vrot.slane %v5221_v21, 2  ;;  %v5241_v55 = vrot.slane %v5240_v0, 4  ;;  %v5287_v32 = vsel %vm4742_vm0, %v9729_v38, 0.0  ;;  %v5236_v46 = vrot.slane %v5235_v39, 2 }
 0x24c   :  { %10888 = vst [vmem:[#allocation40_spill] sm:$0xff] %v9749_v9  ;;  %10891 = vst [vmem:[#allocation41_spill] sm:$0xff] %v9757_v60  ;;  %v5301_v41 = vsel %vm4742_vm0, %v9749_v9, 0.0  ;;  %v5321_v15 = vmul.f32 %v9749_v9, %v9749_v9  ;;  %v10892_v40 = vrot.slane %v9549_v34, %v8718_v5  ;;  %v5271_v58 = vadd.f32 %v5270_v17, %v5269_v57 }
 0x24d   :  { %v5277_v18 = vrot.slane %v5276_v37, 4  ;;  %v5323_v59 = vsel %vm4742_vm0, %v5319_v24, 0.0  ;;  %v5294_v30 = vsel %vm4742_vm0, %v9757_v60, 0.0  ;;  %v5258_v16 = vrot.slane %v5257_v31, 2 }
 0x24e   :  { %v9774_v12 = vadd.f32 %v10893_v52, %v10892_v40  ;;  %v5229_v4 = vrot.slane %v5228_v3, 2  ;;  %v5264_v42 = vadd.f32 %v5263_v63, %v5262_v20  ;;  %v5288_v23 = vrot.slane %v5287_v32, 4 }
 0x24f   :  { %v5242_v56 = vadd.f32 %v5241_v55, %v5240_v0  ;;  %v5302_v14 = vrot.slane %v5301_v41, 4  ;;  %v5320_v53 = vmul.f32 %v9757_v60, %v9757_v60  ;;  %v5324_v52 = vrot.slane %v5323_v59, 4 }
 0x250   :  { %10894 = vst [vmem:[#allocation42_spill] sm:$0xff] %v9774_v12  ;;  %v5337_v57 = vsel %vm4742_vm0, %v5321_v15, 0.0  ;;  %v5295_v17 = vrot.slane %v5294_v30, 4  ;;  %v5322_v24 = vmul.f32 %v9774_v12, %v9774_v12  ;;  %v5223_v1 = vadd.f32 %v5222_v47, %v5221_v21 }
 0x251   :  { %v5237_v6 = vadd.f32 %v5236_v46, %v5235_v39  ;;  %v5272_v33 = vrot.slane %v5271_v58, 2  ;;  %v5278_v20 = vadd.f32 %v5277_v18, %v5276_v37  ;;  %v5259_v63 = vadd.f32 %v5258_v16, %v5257_v31 }
 0x252   :  { %v5230_v0 = vadd.f32 %v5229_v4, %v5228_v3  ;;  %v5265_v55 = vrot.slane %v5264_v42, 2  ;;  %v5289_v29 = vadd.f32 %v5288_v23, %v5287_v32  ;;  %v5303_v25 = vadd.f32 %v5302_v14, %v5301_v41 }
 0x253   :  { %v5338_v60 = vrot.slane %v5337_v57, 4  ;;  %v5330_v28 = vsel %vm4742_vm0, %v5320_v53, 0.0  ;;  %v5308_v40 = vsel %vm4742_vm0, %v9774_v12, 0.0  ;;  %v5243_v15 = vrot.slane %v5242_v56, 2 }
 0x254   :  { %v5325_v9 = vadd.f32 %v5324_v52, %v5323_v59  ;;  %v5296_v13 = vadd.f32 %v5295_v17, %v5294_v30  ;;  %v5344_v38 = vsel %vm4742_vm0, %v5322_v24, 0.0  ;;  %v5224_v21 = vrot.slane %v5223_v1, 1 }
 0x255   :  { %v5238_v39 = vrot.slane %v5237_v6, 1  ;;  %v5273_v47 = vadd.f32 %v5272_v33, %v5271_v58  ;;  %v5279_v37 = vrot.slane %v5278_v20, 2  ;;  %v5231_v31 = vrot.slane %v5230_v0, 1 }
 0x256   :  { %v5266_v3 = vadd.f32 %v5265_v55, %v5264_v42  ;;  %v5331_v46 = vrot.slane %v5330_v28, 4  ;;  %v5309_v32 = vrot.slane %v5308_v40, 4  ;;  %v5290_v41 = vrot.slane %v5289_v29, 2 }
 0x257   :  { %v5304_v53 = vrot.slane %v5303_v25, 2  ;;  %v5339_v18 = vadd.f32 %v5338_v60, %v5337_v57  ;;  %v5345_v16 = vrot.slane %v5344_v38, 4  ;;  %v5260_v30 = vrot.slane %v5259_v63, 1 }
 0x258   :  { %v9790_v14 = vpop.f32.mrb[44].mxu0  ;;  %v9792_v4 = vpop.f32.mrb[44].mxu1  ;;  %v5244_v23 = vadd.f32 %v5243_v15, %v5242_v56  ;;  %v5326_v52 = vrot.slane %v5325_v9, 2  ;;  %v5297_v17 = vrot.slane %v5296_v13, 2  ;;  %v5225_v42 = vadd.f32 %v5224_v21, %v5223_v1 }
 0x259   :  { %10895 = vst [vmem:[#allocation51_spill] sm:$0xff] %v9790_v14  ;;  %10896 = vst [vmem:[#allocation52_spill] sm:$0xff] %v9792_v4  ;;  %v9794_v59 = vpop.f32.mrb[45].mxu0  ;;  %v9796_v33 = vpop.f32.mrb[45].mxu1  ;;  %v5239_v24 = vadd.f32 %v5238_v39, %v5237_v6  ;;  %v5274_v55 = vrot.slane %v5273_v47, 1  ;;  %v5280_v12 = vadd.f32 %v5279_v37, %v5278_v20  ;;  %v5232_v8 = vadd.f32 %v5231_v31, %v5230_v0 }
 0x25a   :  { %10897 = vst [vmem:[#allocation53_spill] sm:$0xff] %v9794_v59  ;;  %10898 = vst [vmem:[#allocation54_spill] sm:$0xff] %v9796_v33  ;;  %v4370_v58 = vpop.f32.mrb[46].mxu0  ;;  %v4411_v7 = vpop.f32.mrb[46].mxu1  ;;  %v5267_v60 = vrot.slane %v5266_v3, 1  ;;  %v5332_v57 = vadd.f32 %v5331_v46, %v5330_v28  ;;  %v5310_v54 = vadd.f32 %v5309_v32, %v5308_v40  ;;  %v5291_v5 = vadd.f32 %v5290_v41, %v5289_v29 }
 0x25b   :  { %v4371_v14 = vpop.f32.mrb[47].mxu0  ;;  %v4412_v4 = vpop.f32.mrb[47].mxu1  ;;  %v5305_v59 = vadd.f32 %v5304_v53, %v5303_v25  ;;  %v5340_v51 = vrot.slane %v5339_v18, 2  ;;  %v5346_v56 = vadd.f32 %v5345_v16, %v5344_v38  ;;  %v5261_v15 = vadd.f32 %v5260_v30, %v5259_v63  ;;  %v10906_v30 = vld [vmem:[#allocation45_spill] sm:$0xff] }
 0x25c   :  { %v5245_v49 = vrot.slane %v5244_v23, 1  ;;  %v5327_v35 = vadd.f32 %v5326_v52, %v5325_v9  ;;  %v5298_v33 = vadd.f32 %v5297_v17, %v5296_v13  ;;  %v5247_v1 = vadd.f32 %v5225_v42, %v9700_v2  ;;  %v9817_v14 = vld [vmem:[%s10687_s2 + $0x30] sm:$0xff] }
 0x25d   :  { %v5249_v6 = vadd.f32 %v5239_v24, %v9702_v19  ;;  %v5275_v20 = vadd.f32 %v5274_v55, %v5273_v47  ;;  %v5281_v7 = vrot.slane %v5280_v12, 1  ;;  %v5248_v0 = vadd.f32 %v5232_v8, %v9721_v36  ;;  %v10900_v47 = vld [vmem:[#allocation43_spill] sm:$0xff] }
 0x25e   :  { %v5268_v21 = vadd.f32 %v5267_v60, %v5266_v3  ;;  %v5333_v28 = vrot.slane %v5332_v57, 2  ;;  %v5311_v40 = vrot.slane %v5310_v54, 2  ;;  %v5292_v39 = vrot.slane %v5291_v5, 1 }
 0x25f   :  { %v5306_v29 = vrot.slane %v5305_v59, 1  ;;  %v5341_v25 = vadd.f32 %v5340_v51, %v5339_v18  ;;  %v5347_v37 = vrot.slane %v5346_v56, 2  ;;  %v5283_v38 = vadd.f32 %v5261_v15, %v9719_v22  ;;  %v10909_v15 = vld [vmem:[#allocation46_spill] sm:$0xff] }
 0x260   :  { %v5246_v63 = vadd.f32 %v5245_v49, %v5244_v23  ;;  %v5328_v9 = vrot.slane %v5327_v35, 1  ;;  %v5299_v13 = vrot.slane %v5298_v33, 1  ;;  %v5285_v2 = vadd.f32 %v5275_v20, %v9723_v61 }
 0x261   :  { %v5282_v31 = vadd.f32 %v5281_v7, %v5280_v12  ;;  %v10899_v19 = vrot.slane %v9549_v34, %v8734_v27  ;;  %v5284_v51 = vadd.f32 %v5268_v21, %v9738_v11  ;;  %v5334_v3 = vadd.f32 %v5333_v28, %v5332_v57 }
 0x262   :  { %v5312_v46 = vadd.f32 %v5311_v40, %v5310_v54  ;;  %v5293_v22 = vadd.f32 %v5292_v39, %v5291_v5  ;;  %v5307_v32 = vadd.f32 %v5306_v29, %v5305_v59  ;;  %v5342_v61 = vrot.slane %v5341_v25, 1  ;;  %v10903_v54 = vld [vmem:[#allocation44_spill] sm:$0xff] }
 0x263   :  { %v9807_v8 = vadd.f32 %v10900_v47, %v10899_v19  ;;  %v5348_v12 = vadd.f32 %v5347_v37, %v5346_v56  ;;  %v5250_v41 = vadd.f32 %v5246_v63, %v9741_v62  ;;  %v5329_v53 = vadd.f32 %v5328_v9, %v5327_v35  ;;  %v10912_v37 = vld [vmem:[#allocation47_spill] sm:$0xff]  ;;  %v10914_v63 = vld [vmem:[#allocation16_spill] sm:$0xff] }
 0x264   :  { %v5300_v18 = vadd.f32 %v5299_v13, %v5298_v33  ;;  %v10902_v11 = vrot.slane %v9549_v34, %v8739_v10  ;;  %v5286_v5 = vadd.f32 %v5282_v31, %v9762_v44  ;;  %v10905_v59 = vrot.slane %v9549_v34, %v8753_v48 }
 0x265   :  { %10901 = vst [vmem:[#allocation43_spill] sm:$0xff] %v9807_v8  ;;  %v5387_v4 = vmul.f32 %v9807_v8, %v9807_v8  ;;  %v5335_v62 = vrot.slane %v5334_v3, 1  ;;  %v5313_v52 = vrot.slane %v5312_v46, 1  ;;  %v5355_v17 = vsel %vm4742_vm0, %v9807_v8, 0.0 }
 0x266   :  { %v9824_v16 = vadd.f32 %v10903_v54, %v10902_v11  ;;  %v9833_v23 = vadd.f32 %v10906_v30, %v10905_v59  ;;  %v9841_v33 = vadd.f32 %v5293_v22, %v5247_v1  ;;  %v9843_v58 = vadd.f32 %v5307_v32, %v5249_v6  ;;  %v10916_v22 = vld [vmem:[#allocation48_spill] sm:$0xff] }
 0x267   :  { %v5343_v42 = vadd.f32 %v5342_v61, %v5341_v25  ;;  %v5349_v24 = vrot.slane %v5348_v12, 1  ;;  %v9845_v55 = vadd.f32 %v5329_v53, %v5283_v38  ;;  %v9847_v60 = vadd.f32 %v5300_v18, %v5248_v0  ;;  %v10918_v61 = vld [vmem:[#allocation19_spill] sm:$0xff] }
 0x268   :  { %10904 = vst [vmem:[#allocation44_spill] sm:$0xff] %v9824_v16  ;;  %10907 = vst [vmem:[#allocation45_spill] sm:$0xff] %v9833_v23  ;;  %v5389_v57 = vmul.f32 %v9824_v16, %v9824_v16  ;;  %v10908_v56 = vrot.slane %v9549_v34, %v8756_v50  ;;  %v5356_v7 = vrot.slane %v5355_v17, 4  ;;  %v5391_v1 = vsel %vm4742_vm0, %v5387_v4, 0.0  ;;  %v10920_v4 = vld [vmem:[#allocation49_spill] sm:$0xff] }
 0x269   :  { %v5369_v6 = vsel %vm4742_vm0, %v9824_v16, 0.0  ;;  %v5362_v21 = vsel %vm4742_vm0, %v9833_v23, 0.0  ;;  %v5336_v0 = vadd.f32 %v5335_v62, %v5334_v3  ;;  %v5314_v28 = vadd.f32 %v5313_v52, %v5312_v46 }
 0x26a   :  { %v9855_v20 = vadd.f32 %v10909_v15, %v10908_v56  ;;  %v5388_v40 = vmul.f32 %v9833_v23, %v9833_v23  ;;  %v9866_v39 = vadd.f32 %v5343_v42, %v5285_v2  ;;  %v5350_v29 = vadd.f32 %v5349_v24, %v5348_v12 }
 0x26b   :  { %v10911_v25 = vrot.slane %v9676_v43, %v8662_v26  ;;  %v5392_v13 = vrot.slane %v5391_v1, 4  ;;  %v5370_v31 = vrot.slane %v5369_v6, 4  ;;  %v5405_v19 = vsel %vm4742_vm0, %v5389_v57, 0.0 }
 0x26c   :  { %10910 = vst [vmem:[#allocation46_spill] sm:$0xff] %v9855_v20  ;;  %v5363_v47 = vrot.slane %v5362_v21, 4  ;;  %v5357_v3 = vadd.f32 %v5356_v7, %v5355_v17  ;;  %v5390_v2 = vmul.f32 %v9855_v20, %v9855_v20  ;;  %v10915_v46 = vrot.slane %v9676_v43, %v8676_v45 }
 0x26d   :  { %v9872_v38 = vadd.f32 %v10912_v37, %v10911_v25  ;;  %v9887_v53 = vadd.f32 %v5336_v0, %v5284_v51  ;;  %v9889_v18 = vadd.f32 %v5314_v28, %v5250_v41  ;;  %v5398_v11 = vsel %vm4742_vm0, %v5388_v40, 0.0 }
 0x26e   :  { %v9883_v32 = vadd.f32 %v10916_v22, %v10915_v46  ;;  %v10919_v54 = vrot.slane %v9676_v43, %v10914_v63  ;;  %v9898_v30 = vadd.f32 %v5350_v29, %v5286_v5  ;;  %v5406_v62 = vrot.slane %v5405_v19, 4 }
 0x26f   :  { %10913 = vst [vmem:[#allocation47_spill] sm:$0xff] %v9872_v38  ;;  %v5455_v52 = vmul.f32 %v9872_v38, %v9872_v38  ;;  %v5393_v17 = vadd.f32 %v5392_v13, %v5391_v1  ;;  %v5371_v41 = vadd.f32 %v5370_v31, %v5369_v6  ;;  %v5364_v42 = vadd.f32 %v5363_v47, %v5362_v21  ;;  %v10923_v21 = vld [vmem:[#allocation50_spill] sm:$0xff] }
 0x270   :  { %10917 = vst [vmem:[#allocation48_spill] sm:$0xff] %v9883_v32  ;;  %v9896_v59 = vadd.f32 %v10920_v4, %v10919_v54  ;;  %v5376_v24 = vsel %vm4742_vm0, %v9855_v20, 0.0  ;;  %v5358_v57 = vrot.slane %v5357_v3, 2  ;;  %v5399_v56 = vrot.slane %v5398_v11, 4 }
 0x271   :  { %v5412_v15 = vsel %vm4742_vm0, %v5390_v2, 0.0  ;;  %v5457_v5 = vmul.f32 %v9883_v32, %v9883_v32  ;;  %v5423_v7 = vsel %vm4742_vm0, %v9872_v38, 0.0  ;;  %v5437_v0 = vsel %vm4742_vm0, %v9883_v32, 0.0 }
 0x272   :  { %10921 = vst [vmem:[#allocation49_spill] sm:$0xff] %v9896_v59  ;;  %v5430_v1 = vsel %vm4742_vm0, %v9896_v59, 0.0  ;;  %v10922_v6 = vrot.slane %v9676_v43, %v10918_v61  ;;  %v5407_v40 = vadd.f32 %v5406_v62, %v5405_v19  ;;  %v5377_v29 = vrot.slane %v5376_v24, 4 }
 0x273   :  { %v5459_v25 = vsel %vm4742_vm0, %v5455_v52, 0.0  ;;  %v5456_v37 = vmul.f32 %v9896_v59, %v9896_v59  ;;  %v5394_v13 = vrot.slane %v5393_v17, 2  ;;  %v5372_v31 = vrot.slane %v5371_v41, 2 }
 0x274   :  { %v9919_v28 = vadd.f32 %v10923_v21, %v10922_v6  ;;  %v5365_v47 = vrot.slane %v5364_v42, 2  ;;  %v5413_v2 = vrot.slane %v5412_v15, 4  ;;  %v5424_v46 = vrot.slane %v5423_v7, 4 }
 0x275   :  { %v5438_v22 = vrot.slane %v5437_v0, 4  ;;  %v5473_v54 = vsel %vm4742_vm0, %v5457_v5, 0.0  ;;  %v5431_v4 = vrot.slane %v5430_v1, 4  ;;  %v5359_v51 = vadd.f32 %v5358_v57, %v5357_v3 }
 0x276   :  { %10924 = vst [vmem:[#allocation50_spill] sm:$0xff] %v9919_v28  ;;  %v5400_v12 = vadd.f32 %v5399_v56, %v5398_v11  ;;  %v5460_v6 = vrot.slane %v5459_v25, 4  ;;  %v5458_v19 = vmul.f32 %v9919_v28, %v9919_v28  ;;  %v5408_v52 = vrot.slane %v5407_v40, 2 }
 0x277   :  { %v5378_v21 = vadd.f32 %v5377_v29, %v5376_v24  ;;  %v5466_v9 = vsel %vm4742_vm0, %v5456_v37, 0.0  ;;  %v5444_v34 = vsel %vm4742_vm0, %v9919_v28, 0.0  ;;  %v5373_v5 = vadd.f32 %v5372_v31, %v5371_v41 }
 0x278   :  { %v9927_v62 = vpop.f32.mrb[48].mxu0  ;;  %v9932_v44 = vpop.f32.mrb[48].mxu1  ;;  %v5366_v3 = vadd.f32 %v5365_v47, %v5364_v42  ;;  %v5414_v11 = vadd.f32 %v5413_v2, %v5412_v15  ;;  %v5474_v57 = vrot.slane %v5473_v54, 4  ;;  %v5395_v36 = vadd.f32 %v5394_v13, %v5393_v17 }
 0x279   :  { %10925 = vst [vmem:[#allocation55_spill] sm:$0xff] %v9927_v62  ;;  %10926 = vst [vmem:[#allocation56_spill] sm:$0xff] %v9932_v44  ;;  %v9934_v35 = vpop.f32.mrb[49].mxu0  ;;  %v9936_v56 = vpop.f32.mrb[49].mxu1  ;;  %v5425_v20 = vadd.f32 %v5424_v46, %v5423_v7  ;;  %v5439_v59 = vadd.f32 %v5438_v22, %v5437_v0  ;;  %v5432_v24 = vadd.f32 %v5431_v4, %v5430_v1  ;;  %v5467_v32 = vrot.slane %v5466_v9, 4 }
 0x27a   :  { %10927 = vst [vmem:[#allocation57_spill] sm:$0xff] %v9934_v35  ;;  %10928 = vst [vmem:[#allocation58_spill] sm:$0xff] %v9936_v56  ;;  %v4452_v49 = vpop.f32.mrb[50].mxu0  ;;  %v4493_v29 = vpop.f32.mrb[50].mxu1  ;;  %v5461_v23 = vadd.f32 %v5460_v6, %v5459_v25  ;;  %v5445_v28 = vrot.slane %v5444_v34, 4  ;;  %v5480_v16 = vsel %vm4742_vm0, %v5458_v19, 0.0  ;;  %v5409_v41 = vadd.f32 %v5408_v52, %v5407_v40 }
 0x27b   :  { %v4453_v37 = vpop.f32.mrb[51].mxu0  ;;  %v4494_v38 = vpop.f32.mrb[51].mxu1  ;;  %v5360_v8 = vrot.slane %v5359_v51, 1  ;;  %v5401_v42 = vrot.slane %v5400_v12, 2  ;;  %v5379_v15 = vrot.slane %v5378_v21, 2  ;;  %v5374_v31 = vrot.slane %v5373_v5, 1 }
 0x27c   :  { %v5367_v47 = vrot.slane %v5366_v3, 1  ;;  %v5415_v2 = vrot.slane %v5414_v11, 2  ;;  %v5475_v49 = vadd.f32 %v5474_v57, %v5473_v54  ;;  %v5396_v17 = vrot.slane %v5395_v36, 1 }
 0x27d   :  { %v5426_v7 = vrot.slane %v5425_v20, 2  ;;  %v5440_v0 = vrot.slane %v5439_v59, 2  ;;  %v5481_v1 = vrot.slane %v5480_v16, 4  ;;  %v5462_v13 = vrot.slane %v5461_v23, 2 }
 0x27e   :  { %v5433_v46 = vrot.slane %v5432_v24, 2  ;;  %v5468_v25 = vadd.f32 %v5467_v32, %v5466_v9  ;;  %v5446_v22 = vadd.f32 %v5445_v28, %v5444_v34  ;;  %v5361_v4 = vadd.f32 %v5360_v8, %v5359_v51 }
 0x27f   :  { %v5410_v6 = vrot.slane %v5409_v41, 1  ;;  %v5402_v19 = vadd.f32 %v5401_v42, %v5400_v12  ;;  %v5380_v38 = vadd.f32 %v5379_v15, %v5378_v21  ;;  %v5375_v29 = vadd.f32 %v5374_v31, %v5373_v5 }
 0x280   :  { %v5368_v40 = vadd.f32 %v5367_v47, %v5366_v3  ;;  %v5416_v52 = vadd.f32 %v5415_v2, %v5414_v11  ;;  %v5476_v37 = vrot.slane %v5475_v49, 2  ;;  %v5397_v56 = vadd.f32 %v5396_v17, %v5395_v36 }
 0x281   :  { %v5427_v35 = vadd.f32 %v5426_v7, %v5425_v20  ;;  %v5441_v61 = vadd.f32 %v5440_v0, %v5439_v59  ;;  %v5482_v54 = vadd.f32 %v5481_v1, %v5480_v16  ;;  %v5463_v57 = vadd.f32 %v5462_v13, %v5461_v23  ;;  %v9959_v7 = vld [vmem:[%s10687_s2 + $0x38] sm:$0xff] }
 0x282   :  { %v5434_v44 = vadd.f32 %v5433_v46, %v5432_v24  ;;  %v5469_v63 = vrot.slane %v5468_v25, 2  ;;  %v5447_v62 = vrot.slane %v5446_v22, 2  ;;  %v5383_v45 = vadd.f32 %v5361_v4, %v9841_v33  ;;  %v10936_v46 = vld [vmem:[#allocation53_spill] sm:$0xff] }
 0x283   :  { %v5411_v9 = vadd.f32 %v5410_v6, %v5409_v41  ;;  %v5403_v34 = vrot.slane %v5402_v19, 1  ;;  %v5381_v8 = vrot.slane %v5380_v38, 1  ;;  %v5385_v32 = vadd.f32 %v5375_v29, %v9843_v58 }
 0x284   :  { %v5384_v12 = vadd.f32 %v5368_v40, %v9847_v60  ;;  %v5417_v51 = vrot.slane %v5416_v52, 1  ;;  %v5477_v28 = vadd.f32 %v5476_v37, %v5475_v49  ;;  %v5419_v36 = vadd.f32 %v5397_v56, %v9845_v55  ;;  %v10930_v55 = vld [vmem:[#allocation51_spill] sm:$0xff] }
 0x285   :  { %v5428_v20 = vrot.slane %v5427_v35, 1  ;;  %v5442_v59 = vrot.slane %v5441_v61, 1  ;;  %v5483_v16 = vrot.slane %v5482_v54, 2  ;;  %v5464_v23 = vrot.slane %v5463_v57, 1 }
 0x286   :  { %v5435_v21 = vrot.slane %v5434_v44, 1  ;;  %v5470_v5 = vadd.f32 %v5469_v63, %v5468_v25  ;;  %v5448_v3 = vadd.f32 %v5447_v62, %v5446_v22  ;;  %v5421_v33 = vadd.f32 %v5411_v9, %v9866_v39 }
 0x287   :  { %v5404_v11 = vadd.f32 %v5403_v34, %v5402_v19  ;;  %v5382_v24 = vadd.f32 %v5381_v8, %v5380_v38  ;;  %v5418_v41 = vadd.f32 %v5417_v51, %v5416_v52  ;;  %v5478_v60 = vrot.slane %v5477_v28, 1 }
 0x288   :  { %v10929_v42 = vrot.slane %v9676_v43, %v8734_v27  ;;  %v5429_v63 = vadd.f32 %v5428_v20, %v5427_v35  ;;  %v5443_v62 = vadd.f32 %v5442_v59, %v5441_v61  ;;  %v5484_v31 = vadd.f32 %v5483_v16, %v5482_v54  ;;  %v10933_v61 = vld [vmem:[#allocation52_spill] sm:$0xff] }
 0x289   :  { %v5465_v47 = vadd.f32 %v5464_v23, %v5463_v57  ;;  %v5436_v2 = vadd.f32 %v5435_v21, %v5434_v44  ;;  %v5471_v49 = vrot.slane %v5470_v5, 1  ;;  %v5449_v17 = vrot.slane %v5448_v3, 1  ;;  %v10943_v23 = vld [vmem:[#allocation55_spill] sm:$0xff] }
 0x28a   :  { %v9950_v56 = vadd.f32 %v10930_v55, %v10929_v42  ;;  %v5420_v0 = vadd.f32 %v5404_v11, %v9887_v53  ;;  %v5386_v1 = vadd.f32 %v5382_v24, %v9889_v18  ;;  %v10932_v35 = vrot.slane %v9676_v43, %v8739_v10  ;;  %v10947_v24 = vld [vmem:[#allocation56_spill] sm:$0xff] }
 0x28b   :  { %v10935_v44 = vrot.slane %v9676_v43, %v8753_v48  ;;  %v5422_v22 = vadd.f32 %v5418_v41, %v9898_v30  ;;  %v5479_v4 = vadd.f32 %v5478_v60, %v5477_v28  ;;  %v9980_v6 = vadd.f32 %v5429_v63, %v5383_v45  ;;  %v10941_v28 = vld [vmem:[#allocation15_spill] sm:$0xff] }
 0x28c   :  { %10931 = vst [vmem:[#allocation51_spill] sm:$0xff] %v9950_v56  ;;  %v9967_v13 = vadd.f32 %v10933_v61, %v10932_v35  ;;  %v5491_v53 = vsel %vm4742_vm0, %v9950_v56, 0.0  ;;  %v5523_v18 = vmul.f32 %v9950_v56, %v9950_v56  ;;  %v9982_v19 = vadd.f32 %v5443_v62, %v5385_v32  ;;  %v10949_v60 = vld [vmem:[#allocation19_spill] sm:$0xff] }
 0x28d   :  { %v9973_v25 = vadd.f32 %v10936_v46, %v10935_v44  ;;  %v5485_v38 = vrot.slane %v5484_v31, 1  ;;  %v9986_v40 = vadd.f32 %v5465_v47, %v5419_v36  ;;  %v9988_v52 = vadd.f32 %v5436_v2, %v5384_v12  ;;  %v10939_v12 = vld [vmem:[#allocation54_spill] sm:$0xff]  ;;  %v10951_v47 = vld [vmem:[#allocation57_spill] sm:$0xff] }
 0x28e   :  { %10934 = vst [vmem:[#allocation52_spill] sm:$0xff] %v9967_v13  ;;  %v5472_v30 = vadd.f32 %v5471_v49, %v5470_v5  ;;  %v5450_v37 = vadd.f32 %v5449_v17, %v5448_v3  ;;  %v5492_v54 = vrot.slane %v5491_v53, 4  ;;  %v5505_v57 = vsel %vm4742_vm0, %v9967_v13, 0.0  ;;  %v10945_v5 = vld [vmem:[#allocation16_spill] sm:$0xff]  ;;  %v10954_v44 = vld [vmem:[#allocation58_spill] sm:$0xff] }
 0x28f   :  { %10937 = vst [vmem:[#allocation53_spill] sm:$0xff] %v9973_v25  ;;  %v5525_v45 = vmul.f32 %v9967_v13, %v9967_v13  ;;  %v5498_v9 = vsel %vm4742_vm0, %v9973_v25, 0.0  ;;  %v9996_v34 = vadd.f32 %v5479_v4, %v5421_v33  ;;  %v5527_v8 = vsel %vm4742_vm0, %v5523_v18, 0.0 }
 0x290   :  { %v10938_v32 = vrot.slane %v9676_v43, %v8756_v50  ;;  %v5486_v20 = vadd.f32 %v5485_v38, %v5484_v31  ;;  %v5524_v59 = vmul.f32 %v9973_v25, %v9973_v25  ;;  %v10942_v16 = vrot.slane %v9817_v14, %v8662_v26 }
 0x291   :  { %v5506_v43 = vrot.slane %v5505_v57, 4  ;;  %v5499_v33 = vrot.slane %v5498_v9, 4  ;;  %v10946_v11 = vrot.slane %v9817_v14, %v10941_v28  ;;  %v5493_v55 = vadd.f32 %v5492_v54, %v5491_v53 }
 0x292   :  { %v10003_v51 = vadd.f32 %v10939_v12, %v10938_v32  ;;  %v10013_v21 = vadd.f32 %v10943_v23, %v10942_v16  ;;  %v5528_v63 = vrot.slane %v5527_v8, 4  ;;  %v5541_v62 = vsel %vm4742_vm0, %v5525_v45, 0.0 }
 0x293   :  { %v10021_v41 = vadd.f32 %v10947_v24, %v10946_v11  ;;  %v10950_v31 = vrot.slane %v9817_v14, %v10945_v5  ;;  %v10032_v49 = vadd.f32 %v5472_v30, %v5420_v0  ;;  %v10034_v17 = vadd.f32 %v5450_v37, %v5386_v1 }
 0x294   :  { %10940 = vst [vmem:[#allocation54_spill] sm:$0xff] %v10003_v51  ;;  %10944 = vst [vmem:[#allocation55_spill] sm:$0xff] %v10013_v21  ;;  %v5526_v35 = vmul.f32 %v10003_v51, %v10003_v51  ;;  %v10953_v61 = vrot.slane %v9817_v14, %v10949_v60  ;;  %v10044_v4 = vadd.f32 %v5486_v20, %v5422_v22  ;;  %v5534_v53 = vsel %vm4742_vm0, %v5524_v59, 0.0 }
 0x295   :  { %10948 = vst [vmem:[#allocation56_spill] sm:$0xff] %v10021_v41  ;;  %v10030_v2 = vadd.f32 %v10951_v47, %v10950_v31  ;;  %v5512_v18 = vsel %vm4742_vm0, %v10003_v51, 0.0  ;;  %v5591_v0 = vmul.f32 %v10013_v21, %v10013_v21  ;;  %v5507_v1 = vadd.f32 %v5506_v43, %v5505_v57 }
 0x296   :  { %v10042_v46 = vadd.f32 %v10954_v44, %v10953_v61  ;;  %10956 = vst [vmem:[#allocation59_spill] sm:$0xff] %v10044_v4  ;;  %v5542_v38 = vrot.slane %v5541_v62, 4  ;;  %v5500_v30 = vadd.f32 %v5499_v33, %v5498_v9  ;;  %v5593_v37 = vmul.f32 %v10021_v41, %v10021_v41 }
 0x297   :  { %10952 = vst [vmem:[#allocation57_spill] sm:$0xff] %v10030_v2  ;;  %v5494_v45 = vrot.slane %v5493_v55, 2  ;;  %v5529_v32 = vadd.f32 %v5528_v63, %v5527_v8  ;;  %v5592_v22 = vmul.f32 %v10030_v2, %v10030_v2  ;;  %v5535_v57 = vrot.slane %v5534_v53, 4 }
 0x298   :  { %10955 = vst [vmem:[#allocation58_spill] sm:$0xff] %v10042_v46  ;;  %v10053_v54 = vpop.f32.mrb[52].mxu0  ;;  %v10057_v12 = vpop.f32.mrb[52].mxu1  ;;  %v5548_v9 = vsel %vm4742_vm0, %v5526_v35, 0.0  ;;  %v5559_v16 = vsel %vm4742_vm0, %v10013_v21, 0.0  ;;  %v5594_v23 = vmul.f32 %v10042_v46, %v10042_v46  ;;  %v5513_v33 = vrot.slane %v5512_v18, 4 }
 0x299   :  { %v10059_v20 = vpop.f32.mrb[53].mxu0  ;;  %v10068_v8 = vpop.f32.mrb[53].mxu1  ;;  %v5595_v11 = vsel %vm4742_vm0, %v5591_v0, 0.0  ;;  %v5573_v24 = vsel %vm4742_vm0, %v10021_v41, 0.0  ;;  %v5566_v63 = vsel %vm4742_vm0, %v10030_v2, 0.0  ;;  %v5508_v35 = vrot.slane %v5507_v1, 2 }
 0x29a   :  { %10957 = vst [vmem:[#allocation60_spill] sm:$0xff] %v10068_v8  ;;  %v4534_v43 = vpop.f32.mrb[54].mxu0  ;;  %v4575_v31 = vpop.f32.mrb[54].mxu1  ;;  %v5543_v61 = vadd.f32 %v5542_v38, %v5541_v62  ;;  %v5501_v44 = vrot.slane %v5500_v30, 2  ;;  %v5609_v59 = vsel %vm4742_vm0, %v5593_v37, 0.0  ;;  %v5549_v3 = vrot.slane %v5548_v9, 4 }
 0x29b   :  { %v4535_v47 = vpop.f32.mrb[55].mxu0  ;;  %v4576_v42 = vpop.f32.mrb[55].mxu1  ;;  %v5560_v36 = vrot.slane %v5559_v16, 4  ;;  %v5602_v43 = vsel %vm4742_vm0, %v5592_v22, 0.0  ;;  %v5580_v0 = vsel %vm4742_vm0, %v10042_v46, 0.0  ;;  %v5596_v29 = vrot.slane %v5595_v11, 4 }
 0x29c   :  { %v5574_v39 = vrot.slane %v5573_v24, 4  ;;  %v5567_v15 = vrot.slane %v5566_v63, 4  ;;  %v5616_v58 = vsel %vm4742_vm0, %v5594_v23, 0.0  ;;  %v5530_v31 = vrot.slane %v5529_v32, 2 }
 0x29d   :  { %v5536_v47 = vadd.f32 %v5535_v57, %v5534_v53  ;;  %v5514_v51 = vadd.f32 %v5513_v33, %v5512_v18  ;;  %v5610_v62 = vrot.slane %v5609_v59, 4  ;;  %v5495_v38 = vadd.f32 %v5494_v45, %v5493_v55 }
 0x29e   :  { %v5544_v2 = vrot.slane %v5543_v61, 2  ;;  %v5603_v37 = vrot.slane %v5602_v43, 4  ;;  %v5581_v42 = vrot.slane %v5580_v0, 4  ;;  %v5509_v25 = vadd.f32 %v5508_v35, %v5507_v1 }
 0x29f   :  { %v5502_v41 = vadd.f32 %v5501_v44, %v5500_v30  ;;  %v5550_v13 = vadd.f32 %v5549_v3, %v5548_v9  ;;  %v5617_v22 = vrot.slane %v5616_v58, 4  ;;  %v5561_v21 = vadd.f32 %v5560_v36, %v5559_v16 }
 0x2a0   :  { %v5597_v56 = vadd.f32 %v5596_v29, %v5595_v11  ;;  %v5575_v46 = vadd.f32 %v5574_v39, %v5573_v24  ;;  %v5568_v60 = vadd.f32 %v5567_v15, %v5566_v63  ;;  %v5531_v5 = vadd.f32 %v5530_v31, %v5529_v32 }
 0x2a1   :  { %v5537_v28 = vrot.slane %v5536_v47, 2  ;;  %v5515_v26 = vrot.slane %v5514_v51, 2  ;;  %v5611_v23 = vadd.f32 %v5610_v62, %v5609_v59  ;;  %v5496_v8 = vrot.slane %v5495_v38, 1 }
 0x2a2   :  { %v5545_v53 = vadd.f32 %v5544_v2, %v5543_v61  ;;  %v5604_v18 = vadd.f32 %v5603_v37, %v5602_v43  ;;  %v5582_v57 = vadd.f32 %v5581_v42, %v5580_v0  ;;  %v5510_v55 = vrot.slane %v5509_v25, 1 }
 0x2a3   :  { %v5503_v45 = vrot.slane %v5502_v41, 1  ;;  %v5551_v33 = vrot.slane %v5550_v13, 2  ;;  %v5618_v4 = vadd.f32 %v5617_v22, %v5616_v58  ;;  %v5562_v1 = vrot.slane %v5561_v21, 2 }
 0x2a4   :  { %v5598_v30 = vrot.slane %v5597_v56, 2  ;;  %v5576_v3 = vrot.slane %v5575_v46, 2  ;;  %v5569_v9 = vrot.slane %v5568_v60, 2  ;;  %v5532_v36 = vrot.slane %v5531_v5, 1 }
 0x2a5   :  { %v5538_v29 = vadd.f32 %v5537_v28, %v5536_v47  ;;  %v5516_v39 = vadd.f32 %v5515_v26, %v5514_v51  ;;  %v5612_v15 = vrot.slane %v5611_v23, 2  ;;  %v5497_v32 = vadd.f32 %v5496_v8, %v5495_v38 }
 0x2a6   :  { %v5546_v16 = vrot.slane %v5545_v53, 1  ;;  %v5605_v11 = vrot.slane %v5604_v18, 2  ;;  %v5583_v59 = vrot.slane %v5582_v57, 2  ;;  %v5511_v24 = vadd.f32 %v5510_v55, %v5509_v25 }
 0x2a7   :  { %v5504_v2 = vadd.f32 %v5503_v45, %v5502_v41  ;;  %v5552_v63 = vadd.f32 %v5551_v33, %v5550_v13  ;;  %v5619_v35 = vrot.slane %v5618_v4, 2  ;;  %v5563_v61 = vadd.f32 %v5562_v1, %v5561_v21 }
 0x2a8   :  { %v5599_v44 = vadd.f32 %v5598_v30, %v5597_v56  ;;  %v5577_v43 = vadd.f32 %v5576_v3, %v5575_v46  ;;  %v5570_v58 = vadd.f32 %v5569_v9, %v5568_v60  ;;  %v5533_v0 = vadd.f32 %v5532_v36, %v5531_v5 }
 0x2a9   :  { %v5539_v31 = vrot.slane %v5538_v29, 1  ;;  %v5517_v62 = vrot.slane %v5516_v39, 1  ;;  %v5613_v37 = vadd.f32 %v5612_v15, %v5611_v23  ;;  %v5519_v28 = vadd.f32 %v5497_v32, %v9980_v6 }
 0x2aa   :  { %v5547_v26 = vadd.f32 %v5546_v16, %v5545_v53  ;;  %v5606_v51 = vadd.f32 %v5605_v11, %v5604_v18  ;;  %v5584_v8 = vadd.f32 %v5583_v59, %v5582_v57  ;;  %v5521_v47 = vadd.f32 %v5511_v24, %v9982_v19  ;;  %v10966_v24 = vld [vmem:[#allocation60_spill] sm:$0xff] }
 0x2ab   :  { %v5520_v25 = vadd.f32 %v5504_v2, %v9988_v52  ;;  %v5553_v41 = vrot.slane %v5552_v63, 1  ;;  %v5620_v13 = vadd.f32 %v5619_v35, %v5618_v4  ;;  %v5564_v38 = vrot.slane %v5563_v61, 1 }
 0x2ac   :  { %v5600_v21 = vrot.slane %v5599_v44, 1  ;;  %v5578_v56 = vrot.slane %v5577_v43, 1  ;;  %v5571_v46 = vrot.slane %v5570_v58, 1  ;;  %v5555_v5 = vadd.f32 %v5533_v0, %v9986_v40 }
 0x2ad   :  { %v5540_v60 = vadd.f32 %v5539_v31, %v5538_v29  ;;  %v5518_v42 = vadd.f32 %v5517_v62, %v5516_v39  ;;  %v5614_v22 = vrot.slane %v5613_v37, 1  ;;  %v5557_v6 = vadd.f32 %v5547_v26, %v9996_v34 }
 0x2ae   :  { %v5607_v23 = vrot.slane %v5606_v51, 1  ;;  %v5585_v53 = vrot.slane %v5584_v8, 1  ;;  %v5554_v18 = vadd.f32 %v5553_v41, %v5552_v63  ;;  %v5621_v52 = vrot.slane %v5620_v13, 1 }
 0x2af   :  { %v10958_v4 = vrot.slane %v9817_v14, %v8734_v27  ;;  %v5565_v55 = vadd.f32 %v5564_v38, %v5563_v61  ;;  %v5601_v45 = vadd.f32 %v5600_v21, %v5599_v44  ;;  %v5579_v33 = vadd.f32 %v5578_v56, %v5577_v43  ;;  %v10971_v56 = vld [vmem:[#allocation15_spill] sm:$0xff] }
 0x2b0   :  { %v5572_v34 = vadd.f32 %v5571_v46, %v5570_v58  ;;  %v5556_v1 = vadd.f32 %v5540_v60, %v10032_v49  ;;  %v5615_v30 = vadd.f32 %v5614_v22, %v5613_v37  ;;  %v10960_v3 = vrot.slane %v9817_v14, %v8739_v10  ;;  %v10964_v49 = vld [vmem:[#allocation59_spill] sm:$0xff]  ;;  %v10974_v60 = vld [vmem:[#allocation16_spill] sm:$0xff] }
 0x2b1   :  { %v10091_v57 = vadd.f32 %v10053_v54, %v10958_v4  ;;  %v5522_v36 = vadd.f32 %v5518_v42, %v10034_v17  ;;  %v5608_v29 = vadd.f32 %v5607_v23, %v5606_v51  ;;  %v5586_v39 = vadd.f32 %v5585_v53, %v5584_v8  ;;  %v10968_v8 = vld [vmem:[#allocation14_spill] sm:$0xff]  ;;  %v10977_v4 = vld [vmem:[#allocation19_spill] sm:$0xff] }
 0x2b2   :  { %v10100_v9 = vadd.f32 %v10057_v12, %v10960_v3  ;;  %v10962_v15 = vrot.slane %v9817_v14, %v8753_v48  ;;  %v5558_v16 = vadd.f32 %v5554_v18, %v10964_v49  ;;  %v5622_v11 = vadd.f32 %v5621_v52, %v5620_v13 }
 0x2b3   :  { %10959 = vst [vmem:[#allocation61_spill] sm:$0xff] %v10091_v57  ;;  %v5659_v12 = vmul.f32 %v10091_v57, %v10091_v57  ;;  %v10965_v59 = vrot.slane %v9817_v14, %v8756_v50  ;;  %v10120_v17 = vadd.f32 %v5565_v55, %v5519_v28  ;;  %v10122_v63 = vadd.f32 %v5601_v45, %v5555_v5 }
 0x2b4   :  { %10961 = vst [vmem:[#allocation62_spill] sm:$0xff] %v10100_v9  ;;  %v10109_v32 = vadd.f32 %v10059_v20, %v10962_v15  ;;  %v10124_v35 = vadd.f32 %v5579_v33, %v5521_v47  ;;  %v10126_v20 = vadd.f32 %v5572_v34, %v5520_v25  ;;  %v10128_v61 = vadd.f32 %v5615_v30, %v5557_v6 }
 0x2b5   :  { %v10118_v2 = vadd.f32 %v10966_v24, %v10965_v59  ;;  %v5627_v44 = vsel %vm4742_vm0, %v10091_v57, 0.0  ;;  %v5641_v43 = vsel %vm4742_vm0, %v10100_v9, 0.0  ;;  %v5661_v14 = vmul.f32 %v10100_v9, %v10100_v9 }
 0x2b6   :  { %10963 = vst [vmem:[#allocation63_spill] sm:$0xff] %v10109_v32  ;;  %v10136_v58 = vadd.f32 %v5608_v29, %v5556_v1  ;;  %v10138_v0 = vadd.f32 %v5586_v39, %v5522_v36  ;;  %v5634_v31 = vsel %vm4742_vm0, %v10109_v32, 0.0  ;;  %v5660_v62 = vmul.f32 %v10109_v32, %v10109_v32 }
 0x2b7   :  { %10967 = vst [vmem:[#allocation59_spill] sm:$0xff] %v10118_v2  ;;  %v10144_v28 = vadd.f32 %v5622_v11, %v5558_v16  ;;  %v5663_v26 = vsel %vm4742_vm0, %v5659_v12, 0.0  ;;  %v5662_v51 = vmul.f32 %v10118_v2, %v10118_v2  ;;  %v10969_v47 = vrot.slane %v9959_v7, %v10968_v8 }
 0x2b8   :  { %v4612_v37 = vpop.f32.mrb[56].mxu0  ;;  %v4653_v41 = vpop.f32.mrb[56].mxu1  ;;  %v5628_v38 = vrot.slane %v5627_v44, 4  ;;  %v5642_v21 = vrot.slane %v5641_v43, 4  ;;  %v10972_v46 = vrot.slane %v9959_v7, %v10971_v56  ;;  %v10975_v42 = vrot.slane %v9959_v7, %v10974_v60 }
 0x2b9   :  { %v10152_v25 = vadd.f32 %v4612_v37, %v10969_v47  ;;  %v4614_v13 = vpop.f32.mrb[57].mxu0  ;;  %v4655_v6 = vpop.f32.mrb[57].mxu1  ;;  %v5677_v53 = vsel %vm4742_vm0, %v5661_v14, 0.0  ;;  %v5635_v18 = vrot.slane %v5634_v31, 4  ;;  %v10978_v55 = vrot.slane %v9959_v7, %v10977_v4 }
 0x2ba   :  { %v10157_v5 = vadd.f32 %v4653_v41, %v10972_v46  ;;  %v10162_v22 = vadd.f32 %v4614_v13, %v10975_v42  ;;  %v4616_v23 = vpop.f32.mrb[58].mxu0  ;;  %v4657_v33 = vpop.f32.mrb[58].mxu1  ;;  %v5664_v1 = vrot.slane %v5663_v26, 4  ;;  %v5670_v30 = vsel %vm4742_vm0, %v5660_v62, 0.0 }
 0x2bb   :  { %10970 = vst [vmem:[#allocation60_spill] sm:$0xff] %v10152_v25  ;;  %v5727_v52 = vmul.f32 %v10152_v25, %v10152_v25  ;;  %v10170_v45 = vadd.f32 %v4655_v6, %v10978_v55  ;;  %v4617_v34 = vpop.f32.mrb[59].mxu0  ;;  %v5648_v3 = vsel %vm4742_vm0, %v10118_v2, 0.0  ;;  %v4658_v29 = vpop.f32.mrb[59].mxu1  ;;  %v5684_v39 = vsel %vm4742_vm0, %v5662_v51, 0.0 }
 0x2bc   :  { %10973 = vst [vmem:[#allocation14_spill] sm:$0xff] %v10157_v5  ;;  %10976 = vst [vmem:[#allocation15_spill] sm:$0xff] %v10162_v22  ;;  %v5729_v36 = vmul.f32 %v10157_v5, %v10157_v5  ;;  %v5695_v15 = vsel %vm4742_vm0, %v10152_v25, 0.0  ;;  %v5709_v49 = vsel %vm4742_vm0, %v10157_v5, 0.0  ;;  %v5728_v16 = vmul.f32 %v10162_v22, %v10162_v22 }
 0x2bd   :  { %10979 = vst [vmem:[#allocation64_spill] sm:$0xff] %v10170_v45  ;;  %v5678_v11 = vrot.slane %v5677_v53, 4  ;;  %v5731_v12 = vsel %vm4742_vm0, %v5727_v52, 0.0  ;;  %v5702_v24 = vsel %vm4742_vm0, %v10162_v22, 0.0  ;;  %v5671_v14 = vrot.slane %v5670_v30, 4 }
 0x2be   :  { %v5745_v59 = vsel %vm4742_vm0, %v5729_v36, 0.0  ;;  %v5649_v62 = vrot.slane %v5648_v3, 4  ;;  %v5738_v37 = vsel %vm4742_vm0, %v5728_v16, 0.0  ;;  %v5716_v51 = vsel %vm4742_vm0, %v10170_v45, 0.0 }
 0x2bf   :  { %v5629_v47 = vadd.f32 %v5628_v38, %v5627_v44  ;;  %v5685_v41 = vrot.slane %v5684_v39, 4  ;;  %v5696_v13 = vrot.slane %v5695_v15, 4  ;;  %v5710_v46 = vrot.slane %v5709_v49, 4 }
 0x2c0   :  { %v5732_v42 = vrot.slane %v5731_v12, 4  ;;  %v5746_v6 = vrot.slane %v5745_v59, 4  ;;  %v5703_v23 = vrot.slane %v5702_v24, 4  ;;  %v5730_v52 = vmul.f32 %v10170_v45, %v10170_v45 }
 0x2c1   :  { %v5643_v55 = vadd.f32 %v5642_v21, %v5641_v43  ;;  %v5636_v33 = vadd.f32 %v5635_v18, %v5634_v31  ;;  %v5739_v34 = vrot.slane %v5738_v37, 4  ;;  %v5717_v36 = vrot.slane %v5716_v51, 4 }
 0x2c2   :  { %v5665_v29 = vadd.f32 %v5664_v1, %v5663_v26  ;;  %v5679_v54 = vadd.f32 %v5678_v11, %v5677_v53  ;;  %v5672_v16 = vadd.f32 %v5671_v14, %v5670_v30  ;;  %v5650_v40 = vadd.f32 %v5649_v62, %v5648_v3 }
 0x2c3   :  { %v5686_v19 = vadd.f32 %v5685_v41, %v5684_v39  ;;  %v5697_v2 = vadd.f32 %v5696_v13, %v5695_v15  ;;  %v5711_v44 = vadd.f32 %v5710_v46, %v5709_v49  ;;  %v5752_v38 = vsel %vm4742_vm0, %v5730_v52, 0.0 }
 0x2c4   :  { %v5630_v22 = vrot.slane %v5629_v47, 2  ;;  %v5733_v32 = vadd.f32 %v5732_v42, %v5731_v12  ;;  %v5747_v5 = vadd.f32 %v5746_v6, %v5745_v59  ;;  %v5704_v9 = vadd.f32 %v5703_v23, %v5702_v24 }
 0x2c5   :  { %v5644_v25 = vrot.slane %v5643_v55, 2  ;;  %v5637_v57 = vrot.slane %v5636_v33, 2  ;;  %v5740_v45 = vadd.f32 %v5739_v34, %v5738_v37  ;;  %v5718_v43 = vadd.f32 %v5717_v36, %v5716_v51 }
 0x2c6   :  { %v5666_v31 = vrot.slane %v5665_v29, 2  ;;  %v5680_v21 = vrot.slane %v5679_v54, 2  ;;  %v5673_v18 = vrot.slane %v5672_v16, 2  ;;  %v5753_v26 = vrot.slane %v5752_v38, 4 }
 0x2c7   :  { %v5651_v53 = vrot.slane %v5650_v40, 2  ;;  %v5687_v1 = vrot.slane %v5686_v19, 2  ;;  %v5698_v30 = vrot.slane %v5697_v2, 2  ;;  %v5712_v3 = vrot.slane %v5711_v44, 2 }
 0x2c8   :  { %v5631_v39 = vadd.f32 %v5630_v22, %v5629_v47  ;;  %v5734_v15 = vrot.slane %v5733_v32, 2  ;;  %v5748_v49 = vrot.slane %v5747_v5, 2  ;;  %v5705_v11 = vrot.slane %v5704_v9, 2 }
 0x2c9   :  { %v5645_v14 = vadd.f32 %v5644_v25, %v5643_v55  ;;  %v5638_v12 = vadd.f32 %v5637_v57, %v5636_v33  ;;  %v5741_v59 = vrot.slane %v5740_v45, 2  ;;  %v5719_v24 = vrot.slane %v5718_v43, 2 }
 0x2ca   :  { %v5667_v62 = vadd.f32 %v5666_v31, %v5665_v29  ;;  %v5681_v41 = vadd.f32 %v5680_v21, %v5679_v54  ;;  %v5674_v37 = vadd.f32 %v5673_v18, %v5672_v16  ;;  %v5754_v51 = vadd.f32 %v5753_v26, %v5752_v38 }
 0x2cb   :  { %v5652_v13 = vadd.f32 %v5651_v53, %v5650_v40  ;;  %v5688_v46 = vadd.f32 %v5687_v1, %v5686_v19  ;;  %v5699_v42 = vadd.f32 %v5698_v30, %v5697_v2  ;;  %v5713_v6 = vadd.f32 %v5712_v3, %v5711_v44 }
 0x2cc   :  { %v5632_v23 = vrot.slane %v5631_v39, 1  ;;  %v5735_v52 = vadd.f32 %v5734_v15, %v5733_v32  ;;  %v5749_v34 = vadd.f32 %v5748_v49, %v5747_v5  ;;  %v5706_v36 = vadd.f32 %v5705_v11, %v5704_v9 }
 0x2cd   :  { %v5646_v22 = vrot.slane %v5645_v14, 1  ;;  %v5639_v47 = vrot.slane %v5638_v12, 1  ;;  %v5742_v4 = vadd.f32 %v5741_v59, %v5740_v45  ;;  %v5720_v60 = vadd.f32 %v5719_v24, %v5718_v43 }
 0x2ce   :  { %v5668_v25 = vrot.slane %v5667_v62, 1  ;;  %v5682_v57 = vrot.slane %v5681_v41, 1  ;;  %v5675_v55 = vrot.slane %v5674_v37, 1  ;;  %v5755_v33 = vrot.slane %v5754_v51, 2 }
 0x2cf   :  { %v5653_v29 = vrot.slane %v5652_v13, 1  ;;  %v5689_v54 = vrot.slane %v5688_v46, 1  ;;  %v5700_v16 = vrot.slane %v5699_v42, 1  ;;  %v5714_v38 = vrot.slane %v5713_v6, 1 }
 0x2d0   :  { %v5633_v40 = vadd.f32 %v5632_v23, %v5631_v39  ;;  %v5736_v19 = vrot.slane %v5735_v52, 1  ;;  %v5750_v2 = vrot.slane %v5749_v34, 1  ;;  %v5707_v44 = vrot.slane %v5706_v36, 1 }
 0x2d1   :  { %v5647_v31 = vadd.f32 %v5646_v22, %v5645_v14  ;;  %v5640_v32 = vadd.f32 %v5639_v47, %v5638_v12  ;;  %v5743_v5 = vrot.slane %v5742_v4, 1  ;;  %v5721_v9 = vrot.slane %v5720_v60, 1 }
 0x2d2   :  { %v5669_v21 = vadd.f32 %v5668_v25, %v5667_v62  ;;  %v5683_v18 = vadd.f32 %v5682_v57, %v5681_v41  ;;  %v5676_v45 = vadd.f32 %v5675_v55, %v5674_v37  ;;  %v5756_v43 = vadd.f32 %v5755_v33, %v5754_v51 }
 0x2d3   :  { %v5654_v26 = vadd.f32 %v5653_v29, %v5652_v13  ;;  %v5690_v53 = vadd.f32 %v5689_v54, %v5688_v46  ;;  %v5701_v1 = vadd.f32 %v5700_v16, %v5699_v42  ;;  %v5715_v30 = vadd.f32 %v5714_v38, %v5713_v6 }
 0x2d4   :  { %v5655_v3 = vadd.f32 %v5633_v40, %v10120_v17  ;;  %v5737_v15 = vadd.f32 %v5736_v19, %v5735_v52  ;;  %v5751_v49 = vadd.f32 %v5750_v2, %v5749_v34  ;;  %v5708_v39 = vadd.f32 %v5707_v44, %v5706_v36 }
 0x2d5   :  { %v5657_v11 = vadd.f32 %v5647_v31, %v10124_v35  ;;  %v5656_v14 = vadd.f32 %v5640_v32, %v10126_v20  ;;  %v5744_v12 = vadd.f32 %v5743_v5, %v5742_v4  ;;  %v5722_v59 = vadd.f32 %v5721_v9, %v5720_v60 }
 0x2d6   :  { %v5691_v24 = vadd.f32 %v5669_v21, %v10122_v63  ;;  %v5693_v62 = vadd.f32 %v5683_v18, %v10128_v61  ;;  %v5692_v41 = vadd.f32 %v5676_v45, %v10136_v58  ;;  %v5757_v37 = vrot.slane %v5756_v43, 1 }
 0x2d7   :  { %v5658_v51 = vadd.f32 %v5654_v26, %v10138_v0  ;;  %v10202_v17 = vadd.f32 %v5690_v53, %v10144_v28  ;;  %v10204_v13 = vadd.f32 %v5701_v1, %v5655_v3  ;;  %v10206_v46 = vadd.f32 %v5715_v30, %v5657_v11 }
 0x2d8   :  { %v4694_v35 = vpop.f32.mrb[60].mxu0  ;;  %v10208_v20 = vadd.f32 %v5737_v15, %v5691_v24  ;;  %v10210_v60 = vadd.f32 %v5751_v49, %v5693_v62  ;;  %v10212_v63 = vadd.f32 %v5708_v39, %v5656_v14  ;;  %v10980_v61 = vrot.slane %v9959_v7, %v8734_v27  ;;  %v4735_v0 = vpop.f32.mrb[60].mxu1 }
 0x2d9   :  { %v4696_v4 = vpop.f32.mrb[61].mxu0  ;;  %v10219_v28 = vadd.f32 %v5744_v12, %v5692_v41  ;;  %v10221_v42 = vadd.f32 %v5722_v59, %v5658_v51  ;;  %v10981_v6 = vrot.slane %v9959_v7, %v8739_v10  ;;  %v10982_v52 = vrot.slane %v9959_v7, %v8753_v48  ;;  %v4737_v36 = vpop.f32.mrb[61].mxu1 }
 0x2da   :  { %v10217_v58 = vadd.f32 %v4694_v35, %v10980_v61  ;;  %v4698_v27 = vpop.f32.mrb[62].mxu0  ;;  %v10233_v22 = vadd.f32 %v5757_v37, %v5756_v43  ;;  %v10983_v10 = vrot.slane %v9959_v7, %v8756_v50  ;;  %v4739_v55 = vpop.f32.mrb[62].mxu1 }
 0x2db   :  { %v10226_v23 = vadd.f32 %v4735_v0, %v10981_v6  ;;  %v10231_v34 = vadd.f32 %v4696_v4, %v10982_v52  ;;  %v4699_v33 = vpop.f32.mrb[63].mxu0  ;;  %v4740_v38 = vpop.f32.mrb[63].mxu1 }
 0x2dc   :  { %v5763_v47 = vsel %vm4742_vm0, %v10217_v58, 0.0  ;;  %v5795_v25 = vmul.f32 %v10217_v58, %v10217_v58  ;;  %v10242_v57 = vadd.f32 %v4737_v36, %v10983_v10 }
 0x2dd   :  { %v5764_v48 = vrot.slane %v5763_v47, 4  ;;  %v5777_v29 = vsel %vm4742_vm0, %v10226_v23, 0.0  ;;  %v5797_v54 = vmul.f32 %v10226_v23, %v10226_v23  ;;  %v5770_v16 = vsel %vm4742_vm0, %v10231_v34, 0.0 }
 0x2de   :  { %v5799_v40 = vsel %vm4742_vm0, %v5795_v25, 0.0  ;;  %v5778_v19 = vrot.slane %v5777_v29, 4  ;;  %v5771_v2 = vrot.slane %v5770_v16, 4  ;;  %v5796_v50 = vmul.f32 %v10231_v34, %v10231_v34 }
 0x2df   :  { %v5765_v7 = vadd.f32 %v5764_v48, %v5763_v47  ;;  %v5800_v44 = vrot.slane %v5799_v40, 4  ;;  %v5813_v31 = vsel %vm4742_vm0, %v5797_v54, 0.0  ;;  %v5784_v32 = vsel %vm4742_vm0, %v10242_v57, 0.0 }
 0x2e0   :  { %v5779_v5 = vadd.f32 %v5778_v19, %v5777_v29  ;;  %v5814_v9 = vrot.slane %v5813_v31, 4  ;;  %v5772_v21 = vadd.f32 %v5771_v2, %v5770_v16  ;;  %v5806_v18 = vsel %vm4742_vm0, %v5796_v50, 0.0 }
 0x2e1   :  { %v5766_v45 = vrot.slane %v5765_v7, 2  ;;  %v5801_v43 = vadd.f32 %v5800_v44, %v5799_v40  ;;  %v5807_v26 = vrot.slane %v5806_v18, 4  ;;  %v5785_v53 = vrot.slane %v5784_v32, 4 }
 0x2e2   :  { %v5780_v1 = vrot.slane %v5779_v5, 2  ;;  %v5815_v30 = vadd.f32 %v5814_v9, %v5813_v31  ;;  %v5773_v3 = vrot.slane %v5772_v21, 2  ;;  %v5798_v15 = vmul.f32 %v10242_v57, %v10242_v57 }
 0x2e3   :  { %v5767_v49 = vadd.f32 %v5766_v45, %v5765_v7  ;;  %v5802_v39 = vrot.slane %v5801_v43, 2  ;;  %v5808_v11 = vadd.f32 %v5807_v26, %v5806_v18  ;;  %v5786_v14 = vadd.f32 %v5785_v53, %v5784_v32 }
 0x2e4   :  { %v5781_v12 = vadd.f32 %v5780_v1, %v5779_v5  ;;  %v5816_v59 = vrot.slane %v5815_v30, 2  ;;  %v5774_v24 = vadd.f32 %v5773_v3, %v5772_v21  ;;  %v5820_v62 = vsel %vm4742_vm0, %v5798_v15, 0.0 }
 0x2e5   :  { %v5768_v41 = vrot.slane %v5767_v49, 1  ;;  %v5803_v37 = vadd.f32 %v5802_v39, %v5801_v43  ;;  %v5809_v51 = vrot.slane %v5808_v11, 2  ;;  %v5787_v35 = vrot.slane %v5786_v14, 2 }
 0x2e6   :  { %v5782_v61 = vrot.slane %v5781_v12, 1  ;;  %v5817_v0 = vadd.f32 %v5816_v59, %v5815_v30  ;;  %v5775_v4 = vrot.slane %v5774_v24, 1  ;;  %v5821_v6 = vrot.slane %v5820_v62, 4  ;;  %v5855_v59 = vld [vmem:[%s10688_s3] sm:$0xf] }
 0x2e7   :  { %v5769_v52 = vadd.f32 %v5768_v41, %v5767_v49  ;;  %v5804_v36 = vrot.slane %v5803_v37, 1  ;;  %v5810_v27 = vadd.f32 %v5809_v51, %v5808_v11  ;;  %v5788_v47 = vadd.f32 %v5787_v35, %v5786_v14 }
 0x2e8   :  { %v5783_v25 = vadd.f32 %v5782_v61, %v5781_v12  ;;  %v5818_v10 = vrot.slane %v5817_v0, 1  ;;  %v5776_v55 = vadd.f32 %v5775_v4, %v5774_v24  ;;  %v5822_v33 = vadd.f32 %v5821_v6, %v5820_v62 }
 0x2e9   :  { %v5791_v48 = vadd.f32 %v5769_v52, %v10204_v13  ;;  %v5805_v29 = vadd.f32 %v5804_v36, %v5803_v37  ;;  %v5811_v54 = vrot.slane %v5810_v27, 1  ;;  %v5789_v16 = vrot.slane %v5788_v47, 1 }
 0x2ea   :  { %v5793_v38 = vadd.f32 %v5783_v25, %v10206_v46  ;;  %v5819_v40 = vadd.f32 %v5818_v10, %v5817_v0  ;;  %v5792_v19 = vadd.f32 %v5776_v55, %v10212_v63  ;;  %v5823_v2 = vrot.slane %v5822_v33, 2  ;;  %v10984_v0 = vld [vmem:[#allocation16_spill] sm:$0xff] }
 0x2eb   :  { %v5827_v50 = vadd.f32 %v5805_v29, %v10208_v20  ;;  %v5831_v7 = vmul.f32 0.03125, %v5791_v48  ;;  %v5812_v44 = vadd.f32 %v5811_v54, %v5810_v27  ;;  %v5790_v31 = vadd.f32 %v5789_v16, %v5788_v47  ;;  %v10988_v16 = vld [vmem:[#allocation17_spill] sm:$0xff] }
 0x2ec   :  { %v5829_v32 = vadd.f32 %v5819_v40, %v10210_v60  ;;  %v5833_v5 = vmul.f32 0.03125, %v5793_v38  ;;  %v5832_v9 = vmul.f32 0.03125, %v5792_v19  ;;  %v5824_v21 = vadd.f32 %v5823_v2, %v5822_v33  ;;  %v10986_v33 = vld [vmem:[#allocation19_spill] sm:$0xff]  ;;  %v10989_v2 = vld [vmem:[#allocation9_spill] sm:$0xff] }
 0x2ed   :  { %v5835_v13 = vmul.f32 0.03125, %v5827_v50  ;;  %v5839_v18 = vmul.f32 %v5831_v7, %v5831_v7  ;;  %v5828_v45 = vadd.f32 %v5812_v44, %v10219_v28  ;;  %v5794_v46 = vadd.f32 %v5790_v31, %v10221_v42  ;;  %v10991_v31 = vld [vmem:[#allocation30_spill] sm:$0xff] }
 0x2ee   :  { %v5837_v43 = vmul.f32 0.03125, %v5829_v32  ;;  %v5841_v26 = vmul.f32 %v5833_v5, %v5833_v5  ;;  %v5840_v63 = vmul.f32 %v5832_v9, %v5832_v9  ;;  %v5825_v53 = vrot.slane %v5824_v21, 1 }
 0x2ef   :  { %v5843_v1 = vsub.f32 %v5835_v13, %v5839_v18  ;;  %v5836_v20 = vmul.f32 0.03125, %v5828_v45  ;;  %v10267_v30 = vmul.f32 0.03125, %v5794_v46  ;;  %v5762_v60 = vadd.f32 %v10233_v22, %v10202_v17  ;;  %v10993_v13 = vld [vmem:[#allocation5_spill] sm:$0xff]  ;;  %v10994_v18 = vld [vmem:[#allocation10_spill] sm:$0xff] }
 0x2f0   :  { %v5845_v3 = vsub.f32 %v5837_v43, %v5841_v26  ;;  %v5826_v15 = vadd.f32 %v5825_v53, %v5824_v21  ;;  %v5860_v17 = vrot.slane %v5855_v59, %v10968_v8  ;;  %v5868_v41 = vrot.slane %v5855_v59, %v10971_v56  ;;  %v10995_v43 = vld [vmem:[#allocation22_spill] sm:$0xff] }
 0x2f1   :  { %v5847_v49 = vadd.f32 1e-05, %v5843_v1  ;;  %v5844_v39 = vsub.f32 %v5836_v20, %v5840_v63  ;;  %v5842_v28 = vmul.f32 %v10267_v30, %v10267_v30  ;;  %v5864_v4 = vrot.slane %v5855_v59, %v10984_v0  ;;  %v10996_v63 = vld [vmem:[#allocation33_spill] sm:$0xff]  ;;  %v10997_v1 = vld [vmem:[#allocation39_spill] sm:$0xff] }
 0x2f2   :  { %v5849_v11 = vadd.f32 1e-05, %v5845_v3  ;;  %v5830_v14 = vadd.f32 %v5826_v15, %v5762_v60  ;;  %v7267_v6 = vmov 1966171168   ;;  %v5872_v48 = vrot.slane %v5855_v59, %v10986_v33  ;;  %v10998_v60 = vld [vmem:[#allocation43_spill] sm:$0xff]  ;;  %v11006_v59 = vld [vmem:[#allocation60_spill] sm:$0xff] }
 0x2f3   :  { %7255 = vrsqrt.f32 %v5847_v49  ;;  %v5848_v12 = vadd.f32 1e-05, %v5844_v39  ;;  %v5893_v52 = vunpack.c.l.s4 %v7267_v6  ;;  %v10999_v15 = vld [vmem:[#allocation47_spill] sm:$0xff]  ;;  %v11012_v6 = vld [vmem:[#allocation6_spill] sm:$0xff] }
 0x2f4   :  { %7257 = vrsqrt.f32 %v5849_v11  ;;  %v5838_v42 = vmul.f32 0.03125, %v5830_v14  ;;  %v11000_v39 = vld [vmem:[#allocation51_spill] sm:$0xff] }
 0x2f5   :  { %7259 = vrsqrt.f32 %v5848_v12  ;;  %v5894_v10 = vunpack.c.0.s8 %v5893_v52  ;;  %v11002_v14 = vld [vmem:[#allocation55_spill] sm:$0xff] }
 0x2f6   :  { %v5846_v24 = vsub.f32 %v5838_v42, %v5842_v28  ;;  %v11004_v42 = vld [vmem:[#allocation61_spill] sm:$0xff] }
 0x2f7   :  { %v10292_v50 = vsub.s32 %v5894_v10, %v10989_v2 }
 0x2f8   :  { %v5850_v22 = vadd.f32 1e-05, %v5846_v24 }
 0x2fa   :  { %7261 = vrsqrt.f32 %v5850_v22 }
 0x2fd   :  { %v7256_v62 = vpop.eup %7255 }
 0x2fe   :  { %v7258_v37 = vpop.eup %7257  ;;  %v5877_v51 = vmul.f32 %v7256_v62, %v5860_v17  ;;  %v11008_v17 = vld [vmem:[#allocation18_spill] sm:$0xff] }
 0x2ff   :  { %v5879_v61 = vmul.f32 %v7258_v37, %v5868_v41  ;;  %v7260_v36 = vpop.eup %7259  ;;  %v11009_v62 = vld [vmem:[#allocation26_spill] sm:$0xff]  ;;  %v11010_v37 = vld [vmem:[#allocation31_spill] sm:$0xff] }
 0x300   :  { %v5919_v35 = vrot.slane %v5877_v51, %v10968_v8  ;;  %v5878_v25 = vmul.f32 %v7260_v36, %v5864_v4  ;;  %v5882_v55 = vmul.f32 %v5877_v51, %v5831_v7  ;;  %v10992_v7 = vld [vmem:[#allocation38_spill] sm:$0xff] }
 0x301   :  { %v5927_v47 = vrot.slane %v5879_v61, %v10968_v8  ;;  %v5884_v40 = vmul.f32 %v5879_v61, %v5833_v5  ;;  %v11011_v61 = vld [vmem:[#allocation2_spill] sm:$0xff] }
 0x302   :  { %v10281_v27 = vmul.f32 %v5919_v35, %v10217_v58  ;;  %v10289_v38 = vmul.f32 %v5919_v35, %v10988_v16  ;;  %v5883_v19 = vmul.f32 %v5878_v25, %v5832_v9  ;;  %v10990_v58 = vld [vmem:[#allocation23_spill] sm:$0xff]  ;;  %v10298_v32 = vmul.f32 %v5919_v35, %v10991_v31 }
 0x303   :  { %v10286_v54 = vmul.f32 %v5927_v47, %v10226_v23  ;;  %v10295_v44 = vmul.f32 %v5919_v35, %v10990_v58  ;;  %v10301_v21 = vmul.f32 %v5919_v35, %v10992_v7  ;;  %v10304_v23 = vmul.f32 %v5919_v35, %v10993_v13  ;;  %v11018_v58 = vld [vmem:[#allocation44_spill] sm:$0xff] }
 0x304   :  { %10985 = vst [vmem:[#allocation16_spill] sm:$0xff] %v10281_v27  ;;  %v7262_v29 = vpop.eup %7261  ;;  %v10307_v45 = vmul.f32 %v5919_v35, %v10994_v18  ;;  %v5890_v5 = vcombine.low %v5882_v55, %v5883_v19  ;;  %v5923_v9 = vrot.slane %v5878_v25, %v10968_v8  ;;  %v10311_v26 = vmul.f32 %v5919_v35, %v10995_v43  ;;  %v11014_v25 = vld [vmem:[#allocation11_spill] sm:$0xff]  ;;  %v11015_v55 = vld [vmem:[#allocation24_spill] sm:$0xff] }
 0x305   :  { %10987 = vst [vmem:[#allocation19_spill] sm:$0xff] %v10286_v54  ;;  %v5880_v46 = vmul.f32 %v7262_v29, %v5872_v48  ;;  %v10314_v53 = vmul.f32 %v5919_v35, %v10996_v63  ;;  %v10317_v20 = vmul.f32 %v5919_v35, %v10997_v1  ;;  %v10320_v3 = vmul.f32 %v5919_v35, %v10998_v60  ;;  %v11016_v29 = vld [vmem:[#allocation34_spill] sm:$0xff]  ;;  %v11017_v19 = vld [vmem:[#allocation40_spill] sm:$0xff]  ;;  %v11049_v54 = vld [vmem:[#allocation29_spill] sm:$0xff] }
 0x306   :  { %v10323_v49 = vmul.f32 %v5919_v35, %v10999_v15  ;;  %v10326_v11 = vmul.f32 %v5919_v35, %v11000_v39  ;;  %v10329_v28 = vmul.f32 %v5919_v35, %v11002_v14  ;;  %v10332_v12 = vmul.f32 %v5919_v35, %v11004_v42  ;;  %v11019_v13 = vld [vmem:[#allocation48_spill] sm:$0xff]  ;;  %v11024_v15 = vld [vmem:[#allocation62_spill] sm:$0xff] }
 0x307   :  { %v10335_v24 = vmul.f32 %v5919_v35, %v11006_v59  ;;  %v10338_v22 = vmul.f32 %v5927_v47, %v11008_v17  ;;  %v10341_v41 = vmul.f32 %v5927_v47, %v11009_v62  ;;  %v10344_v51 = vmul.f32 %v5927_v47, %v11010_v37  ;;  %v11020_v43 = vld [vmem:[#allocation52_spill] sm:$0xff]  ;;  %v11026_v14 = vld [vmem:[#allocation14_spill] sm:$0xff] }
 0x308   :  { %11001 = vst [vmem:[#allocation17_spill] sm:$0xff] %v10326_v11  ;;  %11003 = vst [vmem:[#allocation9_spill] sm:$0xff] %v10329_v28  ;;  %v10347_v4 = vmul.f32 %v5927_v47, %v11011_v61  ;;  %v10350_v52 = vmul.f32 %v5927_v47, %v11012_v6  ;;  %v10353_v36 = vmul.f32 %v5923_v9, %v10231_v34  ;;  %v11022_v1 = vld [vmem:[#allocation56_spill] sm:$0xff]  ;;  %v11031_v61 = vld [vmem:[#allocation3_spill] sm:$0xff] }
 0x309   :  { %11005 = vst [vmem:[#allocation23_spill] sm:$0xff] %v10332_v12  ;;  %11007 = vst [vmem:[#allocation30_spill] sm:$0xff] %v10335_v24  ;;  %v5885_v35 = vmul.f32 %v5880_v46, %v10267_v30  ;;  %v10357_v10 = vmul.f32 %v5927_v47, %v11014_v25  ;;  %v10360_v48 = vmul.f32 %v5927_v47, %v11015_v55  ;;  %v11028_v59 = vld [vmem:[#allocation20_spill] sm:$0xff] }
 0x30a   :  { %11013 = vst [vmem:[#allocation38_spill] sm:$0xff] %v10353_v36  ;;  %v10363_v16 = vmul.f32 %v5927_v47, %v11016_v29  ;;  %v10366_v2 = vmul.f32 %v5927_v47, %v11017_v19  ;;  %v10369_v31 = vmul.f32 %v5927_v47, %v11018_v58  ;;  %v5898_v34 = vrot.slane %v5890_v5, %v10292_v50  ;;  %v11030_v62 = vld [vmem:[#allocation32_spill] sm:$0xff]  ;;  %v11034_v19 = vld [vmem:[#allocation25_spill] sm:$0xff]  ;;  %v11035_v58 = vld [vmem:[#allocation35_spill] sm:$0xff] }
 0x30b   :  { %v5891_v7 = vcombine.low %v5884_v40, %v5885_v35  ;;  %v5931_v30 = vrot.slane %v5880_v46, %v10968_v8  ;;  %v10374_v18 = vmul.f32 %v5927_v47, %v11019_v13  ;;  %v10377_v63 = vmul.f32 %v5927_v47, %v11020_v43  ;;  %v11029_v40 = vld [vmem:[#allocation27_spill] sm:$0xff]  ;;  %v11033_v55 = vld [vmem:[#allocation12_spill] sm:$0xff]  ;;  %v11050_v36 = vld [vmem:[#allocation37_spill] sm:$0xff] }
 0x30c   :  { %v10380_v60 = vmul.f32 %v5927_v47, %v11022_v1  ;;  %v10383_v39 = vmul.f32 %v5927_v47, %v11024_v15  ;;  %v10386_v42 = vmul.f32 %v5927_v47, %v11026_v14  ;;  %v5933_v5 = vmul.f32 %v5923_v9, %v11028_v59  ;;  %v11032_v35 = vld [vmem:[#allocation7_spill] sm:$0xff]  ;;  %v11037_v1 = vld [vmem:[#allocation41_spill] sm:$0xff]  ;;  %v11052_v12 = vld [vmem:[#allocation8_spill] sm:$0xff] }
 0x30d   :  { %11021 = vst [vmem:[#allocation5_spill] sm:$0xff] %v10377_v63  ;;  %v6000_v17 = vmul.f32 %v5923_v9, %v11029_v40  ;;  %v5905_v46 = vrot.slane %v5891_v7, %v10292_v50  ;;  %v6046_v37 = vmul.f32 %v5923_v9, %v11030_v62  ;;  %v10393_v6 = vmul.f32 %v5923_v9, %v11031_v61  ;;  %v11038_v14 = vld [vmem:[#allocation45_spill] sm:$0xff] }
 0x30e   :  { %11023 = vst [vmem:[#allocation10_spill] sm:$0xff] %v10380_v60  ;;  %11025 = vst [vmem:[#allocation22_spill] sm:$0xff] %v10383_v39  ;;  %v10396_v25 = vmul.f32 %v5923_v9, %v11032_v35  ;;  %v10399_v29 = vmul.f32 %v5923_v9, %v11033_v55  ;;  %v10402_v47 = vmul.f32 %v5923_v9, %v11034_v19  ;;  %v11039_v40 = vld [vmem:[#allocation49_spill] sm:$0xff]  ;;  %v5881_v55 = vld [vmem:[%s10689_s4] sm:$0xf] }
 0x30f   :  { %11027 = vst [vmem:[#allocation33_spill] sm:$0xff] %v10386_v42  ;;  %v10405_v13 = vmul.f32 %v5923_v9, %v11035_v58  ;;  %v5906_v43 = vcombine.low %v5898_v34, %v5905_v46  ;;  %v10408_v7 = vmul.f32 %v5931_v30, %v10242_v57  ;;  %v10411_v15 = vmul.f32 %v5923_v9, %v11037_v1  ;;  %v11040_v61 = vld [vmem:[#allocation53_spill] sm:$0xff]  ;;  %v11044_v57 = vld [vmem:[#allocation63_spill] sm:$0xff]  ;;  %v11051_v42 = vld [vmem:[#allocation4_spill] sm:$0xff] }
 0x310   :  { %v10414_v59 = vmul.f32 %v5923_v9, %v11038_v14  ;;  %v10417_v62 = vmul.f32 %v5923_v9, %v11039_v40  ;;  %v10420_v35 = vmul.f32 %v5923_v9, %v11040_v61  ;;  %v11042_v34 = vld [vmem:[#allocation57_spill] sm:$0xff]  ;;  %v10429_v19 = vmul.f32 %v5923_v9, %v11044_v57  ;;  %v11046_v58 = vld [vmem:[#allocation15_spill] sm:$0xff] }
 0x311   :  { %11036 = vst [vmem:[#allocation39_spill] sm:$0xff] %v10408_v7  ;;  %v10426_v46 = vmul.f32 %v5923_v9, %v11042_v34  ;;  %v10432_v1 = vmul.f32 %v5923_v9, %v11046_v58  ;;  %v5913_v14 = vrot.slane %v5906_v43, %v10292_v50  ;;  %v11048_v40 = vld [vmem:[#allocation21_spill] sm:$0xff]  ;;  %v6002_v61 = vmul.f32 %v5931_v30, %v11049_v54  ;;  %v11055_v58 = vld [vmem:[#allocation36_spill] sm:$0xff]  ;;  %v11057_v54 = vld [vmem:[#allocation46_spill] sm:$0xff] }
 0x312   :  { %11041 = vst [vmem:[#allocation43_spill] sm:$0xff] %v10420_v35  ;;  %11045 = vst [vmem:[#allocation51_spill] sm:$0xff] %v10429_v19  ;;  %v5935_v7 = vmul.f32 %v5931_v30, %v11048_v40  ;;  %v6048_v27 = vmul.f32 %v5931_v30, %v11050_v36  ;;  %v6094_v24 = vmul.f32 %v5931_v30, %v11051_v42  ;;  %v11053_v60 = vld [vmem:[#allocation13_spill] sm:$0xff]  ;;  %v11054_v19 = vld [vmem:[#allocation28_spill] sm:$0xff] }
 0x313   :  { %11043 = vst [vmem:[#allocation47_spill] sm:$0xff] %v10426_v46  ;;  %11047 = vst [vmem:[#allocation55_spill] sm:$0xff] %v10432_v1  ;;  %v5915_v39 = vsub.f32 %v5881_v55, %v5913_v14  ;;  %v10440_v34 = vmul.f32 %v5931_v30, %v11052_v12  ;;  %v10443_v57 = vmul.f32 %v5931_v30, %v11053_v60  ;;  %v11056_v40 = vld [vmem:[#allocation42_spill] sm:$0xff] }
 0x314   :  { %v10446_v9 = vmul.f32 %v5931_v30, %v11054_v19  ;;  %v10449_v43 = vmul.f32 %v5931_v30, %v11055_v58  ;;  %v10452_v1 = vmul.f32 %v5931_v30, %v11056_v40  ;;  %v10455_v36 = vmul.f32 %v5931_v30, %v11057_v54  ;;  %v11058_v42 = vld [vmem:[#allocation50_spill] sm:$0xff] }
 0x315   :  { %v10458_v55 = vmul.f32 %v5931_v30, %v11058_v42  ;;  %v10461_v12 = vrot.slane %v5915_v39, %v10968_v8  ;;  %v10464_v60 = vrot.slane %v5915_v39, %v10984_v0  ;;  %v10467_v19 = vrot.slane %v5915_v39, %v10971_v56  ;;  %v11060_v58 = vld [vmem:[#allocation54_spill] sm:$0xff]  ;;  %v11064_v42 = vld [vmem:[#allocation59_spill] sm:$0xff]  ;;  %v11066_v8 = vld [vmem:[#allocation64_spill] sm:$0xff] }
 0x316   :  { %v10470_v14 = vrot.slane %v5915_v39, %v10986_v33  ;;  %v10473_v40 = vmul.f32 %v5931_v30, %v11060_v58  ;;  %v11062_v54 = vld [vmem:[#allocation58_spill] sm:$0xff]  ;;  %v10479_v28 = vmul.f32 %v5931_v30, %v11064_v42  ;;  %v10482_v63 = vmul.f32 %v5931_v30, %v11066_v8 }
 0x317   :  { %11059 = vst [vmem:[#allocation61_spill] sm:$0xff] %v10458_v55  ;;  %v10476_v46 = vmul.f32 %v5931_v30, %v11062_v54  ;;  %v5957_v0 = vadd.f32 %v10461_v12, %v10289_v38  ;;  %v5958_v56 = vadd.f32 %v10464_v60, %v5933_v5  ;;  %v5959_v33 = vadd.f32 %v10467_v19, %v10338_v22 }
 0x318   :  { %11061 = vst [vmem:[#allocation60_spill] sm:$0xff] %v10473_v40  ;;  %11065 = vst [vmem:[#allocation26_spill] sm:$0xff] %v10479_v28  ;;  %v5960_v39 = vadd.f32 %v10470_v14, %v5935_v7  ;;  %v6003_v58 = vadd.f32 %v10295_v44, %v10461_v12  ;;  %v6004_v54 = vadd.f32 %v6000_v17, %v10464_v60 }
 0x319   :  { %11063 = vst [vmem:[#allocation18_spill] sm:$0xff] %v10476_v46  ;;  %11067 = vst [vmem:[#allocation31_spill] sm:$0xff] %v10482_v63  ;;  %v6005_v42 = vadd.f32 %v10341_v41, %v10467_v19  ;;  %v6006_v30 = vadd.f32 %v6002_v61, %v10470_v14  ;;  %v5961_v8 = vmax.f32 %v5957_v0, 0.0  ;;  %v5962_v63 = vmax.f32 %v5958_v56, 0.0 }
 0x31a   :  { %v5963_v38 = vmax.f32 %v5959_v33, 0.0  ;;  %v5964_v28 = vmax.f32 %v5960_v39, 0.0  ;;  %v6007_v5 = vmax.f32 %v6003_v58, 0.0  ;;  %v6008_v46 = vmax.f32 %v6004_v54, 0.0 }
 0x31b   :  { %v6009_v40 = vmax.f32 %v6005_v42, 0.0  ;;  %v6010_v22 = vmax.f32 %v6006_v30, 0.0  ;;  %v7205_v35 = vpack.c.bf16 %v5962_v63, %v5961_v8  ;;  %v6049_v44 = vadd.f32 %v10298_v32, %v10461_v12 }
 0x31c   :  { %v7206_v7 = vpack.c.bf16 %v5964_v28, %v5963_v38  ;;  %v6050_v17 = vadd.f32 %v6046_v37, %v10464_v60  ;;  %v7208_v11 = vpack.c.bf16 %v6008_v46, %v6007_v5  ;;  %v6051_v41 = vadd.f32 %v10344_v51, %v10467_v19 }
 0x31d   :  { %v7209_v55 = vpack.c.bf16 %v6010_v22, %v6009_v40  ;;  %v6052_v61 = vadd.f32 %v6048_v27, %v10470_v14  ;;  %v5981_v0 = vrot.slane %v7205_v35, %v10292_v50  ;;  %v6053_v33 = vmax.f32 %v6049_v44, 0.0 }
 0x31e   :  { %v5988_v56 = vrot.slane %v7206_v7, %v10292_v50  ;;  %v6054_v39 = vmax.f32 %v6050_v17, 0.0  ;;  %v6027_v28 = vrot.slane %v7208_v11, %v10292_v50  ;;  %v6055_v32 = vmax.f32 %v6051_v41, 0.0 }
 0x31f   :  { %v6034_v63 = vrot.slane %v7209_v55, %v10292_v50  ;;  %v6056_v58 = vmax.f32 %v6052_v61, 0.0  ;;  %v6095_v40 = vadd.f32 %v10301_v21, %v10461_v12  ;;  %v6096_v27 = vadd.f32 %v10393_v6, %v10464_v60 }
 0x320   :  { %v5989_v37 = vcombine.low %v5981_v0, %v5988_v56  ;;  %v7211_v46 = vpack.c.bf16 %v6054_v39, %v6053_v33  ;;  %v6097_v54 = vadd.f32 %v10347_v4, %v10467_v19  ;;  %v6098_v42 = vadd.f32 %v6094_v24, %v10470_v14 }
 0x321   :  { %v6035_v51 = vcombine.low %v6027_v28, %v6034_v63  ;;  %v7212_v35 = vpack.c.bf16 %v6056_v58, %v6055_v32  ;;  %v6099_v55 = vmax.f32 %v6095_v40, 0.0  ;;  %v6100_v30 = vmax.f32 %v6096_v27, 0.0 }
 0x322   :  { %7207 = vst.sshfl [vmem:[%s10690_s5] sm:$0x55 pattern:$0x73625140] %v5989_v37  ;;  %v6073_v11 = vrot.slane %v7211_v46, %v10292_v50  ;;  %v6141_v21 = vadd.f32 %v10304_v23, %v10461_v12  ;;  %v6101_v4 = vmax.f32 %v6097_v54, 0.0  ;;  %v6102_v8 = vmax.f32 %v6098_v42, 0.0 }
 0x323   :  { %7210 = vst.sshfl [vmem:[%s10690_s5 + $0x4] sm:$0x55 pattern:$0x73625140] %v6035_v51  ;;  %v6080_v6 = vrot.slane %v7212_v35, %v10292_v50  ;;  %v6142_v24 = vadd.f32 %v10396_v25, %v10464_v60  ;;  %v7214_v38 = vpack.c.bf16 %v6100_v30, %v6099_v55  ;;  %v6143_v5 = vadd.f32 %v10350_v52, %v10467_v19 }
 0x324   :  { %v6144_v22 = vadd.f32 %v10440_v34, %v10470_v14  ;;  %v6145_v7 = vmax.f32 %v6141_v21, 0.0  ;;  %v7215_v44 = vpack.c.bf16 %v6102_v8, %v6101_v4  ;;  %v6187_v41 = vadd.f32 %v10307_v45, %v10461_v12 }
 0x325   :  { %v6081_v23 = vcombine.low %v6073_v11, %v6080_v6  ;;  %v6146_v17 = vmax.f32 %v6142_v24, 0.0  ;;  %v6119_v61 = vrot.slane %v7214_v38, %v10292_v50  ;;  %v6147_v0 = vmax.f32 %v6143_v5, 0.0 }
 0x326   :  { %v6148_v56 = vmax.f32 %v6144_v22, 0.0  ;;  %v6188_v25 = vadd.f32 %v10399_v29, %v10464_v60  ;;  %v6126_v52 = vrot.slane %v7215_v44, %v10292_v50  ;;  %v6189_v33 = vadd.f32 %v10357_v10, %v10467_v19 }
 0x327   :  { %7213 = vst.sshfl [vmem:[%s10690_s5 + $0x8] sm:$0x55 pattern:$0x73625140] %v6081_v23  ;;  %v7217_v34 = vpack.c.bf16 %v6146_v17, %v6145_v7  ;;  %v6190_v45 = vadd.f32 %v10443_v57, %v10470_v14  ;;  %v6191_v28 = vmax.f32 %v6187_v41, 0.0  ;;  %v6233_v32 = vadd.f32 %v10311_v26, %v10461_v12 }
 0x328   :  { %v7218_v39 = vpack.c.bf16 %v6148_v56, %v6147_v0  ;;  %v6192_v63 = vmax.f32 %v6188_v25, 0.0  ;;  %v6127_v29 = vcombine.low %v6119_v61, %v6126_v52  ;;  %v6193_v37 = vmax.f32 %v6189_v33, 0.0 }
 0x329   :  { %v6165_v58 = vrot.slane %v7217_v34, %v10292_v50  ;;  %v6194_v46 = vmax.f32 %v6190_v45, 0.0  ;;  %v6234_v10 = vadd.f32 %v10402_v47, %v10464_v60  ;;  %v6235_v57 = vadd.f32 %v10360_v48, %v10467_v19 }
 0x32a   :  { %v6172_v40 = vrot.slane %v7218_v39, %v10292_v50  ;;  %v7220_v27 = vpack.c.bf16 %v6192_v63, %v6191_v28  ;;  %7216 = vst.sshfl [vmem:[%s10690_s5 + $0xc] sm:$0x55 pattern:$0x73625140] %v6127_v29  ;;  %v6236_v26 = vadd.f32 %v10446_v9, %v10470_v14  ;;  %v6237_v35 = vmax.f32 %v6233_v32, 0.0 }
 0x32b   :  { %v7221_v51 = vpack.c.bf16 %v6194_v46, %v6193_v37  ;;  %v6279_v54 = vadd.f32 %v10314_v53, %v10461_v12  ;;  %v6238_v55 = vmax.f32 %v6234_v10, 0.0  ;;  %v6239_v47 = vmax.f32 %v6235_v57, 0.0  ;;  %v11069_v57 = vld [vmem:[#allocation17_spill] sm:$0xff] }
 0x32c   :  { %v6173_v42 = vcombine.low %v6165_v58, %v6172_v40  ;;  %v6211_v11 = vrot.slane %v7220_v27, %v10292_v50  ;;  %v6240_v48 = vmax.f32 %v6236_v26, 0.0  ;;  %v6280_v21 = vadd.f32 %v10405_v13, %v10464_v60 }
 0x32d   :  { %v6218_v30 = vrot.slane %v7221_v51, %v10292_v50  ;;  %v6281_v6 = vadd.f32 %v10363_v16, %v10467_v19  ;;  %v7223_v9 = vpack.c.bf16 %v6238_v55, %v6237_v35  ;;  %v6282_v53 = vadd.f32 %v10449_v43, %v10470_v14 }
 0x32e   :  { %7219 = vst.sshfl [vmem:[%s10690_s5 + $0x10] sm:$0x55 pattern:$0x73625140] %v6173_v42  ;;  %v6283_v4 = vmax.f32 %v6279_v54, 0.0  ;;  %v6325_v8 = vadd.f32 %v10317_v20, %v10461_v12  ;;  %v7224_v38 = vpack.c.bf16 %v6240_v48, %v6239_v47  ;;  %v6284_v5 = vmax.f32 %v6280_v21, 0.0 }
 0x32f   :  { %v6219_v24 = vcombine.low %v6211_v11, %v6218_v30  ;;  %v6285_v22 = vmax.f32 %v6281_v6, 0.0  ;;  %v6257_v13 = vrot.slane %v7223_v9, %v10292_v50  ;;  %v6286_v7 = vmax.f32 %v6282_v53, 0.0  ;;  %v11070_v11 = vld [vmem:[#allocation43_spill] sm:$0xff]  ;;  %v11071_v47 = vld [vmem:[#allocation5_spill] sm:$0xff]  ;;  %v11072_v21 = vld [vmem:[#allocation60_spill] sm:$0xff] }
 0x330   :  { %v6326_v16 = vadd.f32 %v10411_v15, %v10464_v60  ;;  %v6327_v23 = vadd.f32 %v10366_v2, %v10467_v19  ;;  %v6264_v43 = vrot.slane %v7224_v38, %v10292_v50  ;;  %v7226_v20 = vpack.c.bf16 %v6284_v5, %v6283_v4  ;;  %v11073_v53 = vld [vmem:[#allocation9_spill] sm:$0xff] }
 0x331   :  { %7222 = vst.sshfl [vmem:[%s10690_s5 + $0x14] sm:$0x55 pattern:$0x73625140] %v6219_v24  ;;  %v6328_v44 = vadd.f32 %v10452_v1, %v10470_v14  ;;  %v6329_v17 = vmax.f32 %v6325_v8, 0.0  ;;  %v7227_v41 = vpack.c.bf16 %v6286_v7, %v6285_v22  ;;  %v6371_v15 = vadd.f32 %v10320_v3, %v10461_v12  ;;  %v11074_v7 = vld [vmem:[#allocation47_spill] sm:$0xff] }
 0x332   :  { %v6330_v61 = vmax.f32 %v6326_v16, 0.0  ;;  %v6331_v0 = vmax.f32 %v6327_v23, 0.0  ;;  %v6265_v56 = vcombine.low %v6257_v13, %v6264_v43  ;;  %v6303_v2 = vrot.slane %v7226_v20, %v10292_v50  ;;  %v11075_v23 = vld [vmem:[#allocation10_spill] sm:$0xff] }
 0x333   :  { %v6332_v25 = vmax.f32 %v6328_v44, 0.0  ;;  %v6372_v52 = vadd.f32 %v10414_v59, %v10464_v60  ;;  %v6310_v34 = vrot.slane %v7227_v41, %v10292_v50  ;;  %v6373_v1 = vadd.f32 %v10369_v31, %v10467_v19 }
 0x334   :  { %v7229_v33 = vpack.c.bf16 %v6330_v61, %v6329_v17  ;;  %v6374_v45 = vadd.f32 %v10455_v36, %v10470_v14  ;;  %7225 = vst.sshfl [vmem:[%s10690_s5 + $0x18] sm:$0x55 pattern:$0x73625140] %v6265_v56  ;;  %v6375_v39 = vmax.f32 %v6371_v15, 0.0  ;;  %v6417_v63 = vadd.f32 %v10323_v49, %v10461_v12  ;;  %v11068_v49 = vld [vmem:[#allocation61_spill] sm:$0xff] }
 0x335   :  { %v7230_v3 = vpack.c.bf16 %v6332_v25, %v6331_v0  ;;  %v6376_v28 = vmax.f32 %v6372_v52, 0.0  ;;  %v6311_v59 = vcombine.low %v6303_v2, %v6310_v34  ;;  %v6377_v29 = vmax.f32 %v6373_v1, 0.0  ;;  %v11076_v17 = vld [vmem:[#allocation18_spill] sm:$0xff]  ;;  %v11077_v2 = vld [vmem:[#allocation23_spill] sm:$0xff] }
 0x336   :  { %v6349_v32 = vrot.slane %v7229_v33, %v10292_v50  ;;  %v6378_v58 = vmax.f32 %v6374_v45, 0.0  ;;  %v6418_v36 = vadd.f32 %v10417_v62, %v10464_v60  ;;  %v6419_v46 = vadd.f32 %v10374_v18, %v10467_v19  ;;  %v11078_v1 = vld [vmem:[#allocation51_spill] sm:$0xff] }
 0x337   :  { %v6356_v31 = vrot.slane %v7230_v3, %v10292_v50  ;;  %v7232_v37 = vpack.c.bf16 %v6376_v28, %v6375_v39  ;;  %7228 = vst.sshfl [vmem:[%s10690_s5 + $0x1c] sm:$0x55 pattern:$0x73625140] %v6311_v59  ;;  %v6420_v27 = vadd.f32 %v11068_v49, %v10470_v14  ;;  %v6421_v10 = vmax.f32 %v6417_v63, 0.0  ;;  %v11079_v28 = vld [vmem:[#allocation22_spill] sm:$0xff] }
 0x338   :  { %v7233_v40 = vpack.c.bf16 %v6378_v58, %v6377_v29  ;;  %v6463_v51 = vadd.f32 %v11069_v57, %v10461_v12  ;;  %v6422_v54 = vmax.f32 %v6418_v36, 0.0  ;;  %v6423_v62 = vmax.f32 %v6419_v46, 0.0  ;;  %v11080_v59 = vld [vmem:[#allocation26_spill] sm:$0xff] }
 0x339   :  { %v6357_v26 = vcombine.low %v6349_v32, %v6356_v31  ;;  %v6395_v35 = vrot.slane %v7232_v37, %v10292_v50  ;;  %v6424_v18 = vmax.f32 %v6420_v27, 0.0  ;;  %v6464_v55 = vadd.f32 %v11070_v11, %v10464_v60  ;;  %v11081_v37 = vld [vmem:[#allocation30_spill] sm:$0xff] }
 0x33a   :  { %v6402_v42 = vrot.slane %v7233_v40, %v10292_v50  ;;  %v6465_v30 = vadd.f32 %v11071_v47, %v10467_v19  ;;  %v7235_v48 = vpack.c.bf16 %v6422_v54, %v6421_v10  ;;  %v6466_v6 = vadd.f32 %v11072_v21, %v10470_v14 }
 0x33b   :  { %7231 = vst.sshfl [vmem:[%s10690_s5 + $0x20] sm:$0x55 pattern:$0x73625140] %v6357_v26  ;;  %v6467_v9 = vmax.f32 %v6463_v51, 0.0  ;;  %v6509_v4 = vadd.f32 %v11073_v53, %v10461_v12  ;;  %v7236_v24 = vpack.c.bf16 %v6424_v18, %v6423_v62  ;;  %v6468_v38 = vmax.f32 %v6464_v55, 0.0 }
 0x33c   :  { %v6403_v8 = vcombine.low %v6395_v35, %v6402_v42  ;;  %v6469_v5 = vmax.f32 %v6465_v30, 0.0  ;;  %v6441_v22 = vrot.slane %v7235_v48, %v10292_v50  ;;  %v6470_v13 = vmax.f32 %v6466_v6, 0.0  ;;  %v11082_v51 = vld [vmem:[#allocation55_spill] sm:$0xff]  ;;  %v11083_v35 = vld [vmem:[#allocation33_spill] sm:$0xff]  ;;  %v11085_v55 = vld [vmem:[#allocation16_spill] sm:$0xff] }
 0x33d   :  { %v6510_v16 = vadd.f32 %v11074_v7, %v10464_v60  ;;  %v6511_v43 = vadd.f32 %v11075_v23, %v10467_v19  ;;  %v6448_v20 = vrot.slane %v7236_v24, %v10292_v50  ;;  %v7238_v44 = vpack.c.bf16 %v6468_v38, %v6467_v9  ;;  %v11084_v42 = vld [vmem:[#allocation31_spill] sm:$0xff] }
 0x33e   :  { %7234 = vst.sshfl [vmem:[%s10690_s5 + $0x24] sm:$0x55 pattern:$0x73625140] %v6403_v8  ;;  %v6512_v41 = vadd.f32 %v11076_v17, %v10470_v14  ;;  %v6513_v61 = vmax.f32 %v6509_v4, 0.0  ;;  %v7239_v0 = vpack.c.bf16 %v6470_v13, %v6469_v5  ;;  %v6555_v25 = vadd.f32 %v11077_v2, %v10461_v12  ;;  %v11086_v4 = vld [vmem:[#allocation38_spill] sm:$0xff] }
 0x33f   :  { %v6514_v15 = vmax.f32 %v6510_v16, 0.0  ;;  %v6515_v56 = vmax.f32 %v6511_v43, 0.0  ;;  %v6449_v52 = vcombine.low %v6441_v22, %v6448_v20  ;;  %v6487_v34 = vrot.slane %v7238_v44, %v10292_v50  ;;  %v11087_v24 = vld [vmem:[#allocation19_spill] sm:$0xff] }
 0x340   :  { %v6516_v33 = vmax.f32 %v6512_v41, 0.0  ;;  %v6556_v45 = vadd.f32 %v11078_v1, %v10464_v60  ;;  %v6494_v3 = vrot.slane %v7239_v0, %v10292_v50  ;;  %v6557_v63 = vadd.f32 %v11079_v28, %v10467_v19 }
 0x341   :  { %v7241_v39 = vpack.c.bf16 %v6514_v15, %v6513_v61  ;;  %v6558_v32 = vadd.f32 %v11080_v59, %v10470_v14  ;;  %7237 = vst.sshfl [vmem:[%s10690_s5 + $0x28] sm:$0x55 pattern:$0x73625140] %v6449_v52  ;;  %v6559_v58 = vmax.f32 %v6555_v25, 0.0  ;;  %v6601_v36 = vadd.f32 %v11081_v37, %v10461_v12 }
 0x342   :  { %v7242_v29 = vpack.c.bf16 %v6516_v33, %v6515_v56  ;;  %v6560_v31 = vmax.f32 %v6556_v45, 0.0  ;;  %v6495_v46 = vcombine.low %v6487_v34, %v6494_v3  ;;  %v6561_v49 = vmax.f32 %v6557_v63, 0.0 }
 0x343   :  { %v6533_v40 = vrot.slane %v7241_v39, %v10292_v50  ;;  %v6562_v27 = vmax.f32 %v6558_v32, 0.0  ;;  %v6602_v26 = vadd.f32 %v11082_v51, %v10464_v60  ;;  %v6603_v54 = vadd.f32 %v11083_v35, %v10467_v19 }
 0x344   :  { %v6540_v10 = vrot.slane %v7242_v29, %v10292_v50  ;;  %v7244_v57 = vpack.c.bf16 %v6560_v31, %v6559_v58  ;;  %7240 = vst.sshfl [vmem:[%s10690_s5 + $0x2c] sm:$0x55 pattern:$0x73625140] %v6495_v46  ;;  %v6604_v18 = vadd.f32 %v11084_v42, %v10470_v14  ;;  %v6605_v11 = vmax.f32 %v6601_v36, 0.0 }
 0x345   :  { %v7245_v62 = vpack.c.bf16 %v6562_v27, %v6561_v49  ;;  %v6647_v47 = vadd.f32 %v11085_v55, %v10461_v12  ;;  %v6606_v21 = vmax.f32 %v6602_v26, 0.0  ;;  %v6607_v6 = vmax.f32 %v6603_v54, 0.0  ;;  %v11088_v12 = vld [vmem:[#allocation39_spill] sm:$0xff] }
 0x346   :  { %v6541_v30 = vcombine.low %v6533_v40, %v6540_v10  ;;  %v6579_v48 = vrot.slane %v7244_v57, %v10292_v50  ;;  %v6608_v53 = vmax.f32 %v6604_v18, 0.0  ;;  %v6648_v8 = vadd.f32 %v11086_v4, %v10464_v60 }
 0x347   :  { %v6586_v9 = vrot.slane %v7245_v62, %v10292_v50  ;;  %v6649_v38 = vadd.f32 %v11087_v24, %v10467_v19  ;;  %v7247_v5 = vpack.c.bf16 %v6606_v21, %v6605_v11  ;;  %v6650_v22 = vadd.f32 %v11088_v12, %v10470_v14 }
 0x348   :  { %7243 = vst.sshfl [vmem:[%s10690_s5 + $0x30] sm:$0x55 pattern:$0x73625140] %v6541_v30  ;;  %v6651_v13 = vmax.f32 %v6647_v47, 0.0  ;;  %v7248_v16 = vpack.c.bf16 %v6608_v53, %v6607_v6  ;;  %v6652_v23 = vmax.f32 %v6648_v8, 0.0 }
 0x349   :  { %v6587_v7 = vcombine.low %v6579_v48, %v6586_v9  ;;  %v6653_v43 = vmax.f32 %v6649_v38, 0.0  ;;  %v6625_v20 = vrot.slane %v7247_v5, %v10292_v50  ;;  %v6654_v44 = vmax.f32 %v6650_v22, 0.0 }
 0x34a   :  { %v6632_v60 = vrot.slane %v7248_v16, %v10292_v50  ;;  %v7250_v19 = vpack.c.bf16 %v6652_v23, %v6651_v13 }
 0x34b   :  { %7246 = vst.sshfl [vmem:[%s10690_s5 + $0x34] sm:$0x55 pattern:$0x73625140] %v6587_v7  ;;  %v7251_v17 = vpack.c.bf16 %v6654_v44, %v6653_v43 }
 0x34c   :  { %v6633_v41 = vcombine.low %v6625_v20, %v6632_v60  ;;  %v6671_v61 = vrot.slane %v7250_v19, %v10292_v50 }
 0x34d   :  { %v6678_v14 = vrot.slane %v7251_v17, %v10292_v50 }
 0x34e   :  { %7249 = vst.sshfl [vmem:[%s10690_s5 + $0x38] sm:$0x55 pattern:$0x73625140] %v6633_v41 }
 0x34f   :  { %v6679_v0 = vcombine.low %v6671_v61, %v6678_v14 }
 0x351   :  { %7252 = vst.sshfl [vmem:[%s10690_s5 + $0x3c] sm:$0x55 pattern:$0x73625140] %v6679_v0 }

// kernel: generator_forward.5
= control target key start
LH: loop header
LB: loop body
LE: loop exit
PB: predicated region body
PF: predicated region fallthrough
CT: control target
= control target key end

     0   :  { %s3682_s15 = smov 0   ;;  %s4322_s0 = inlined_call_operand.vmem [shape: bf16[4,32,2048], index: 0, kind: input, shape index: {}]   ;;  %s4323_s1 = inlined_call_operand.vmem [shape: bf16[4,2048,256], index: 1, kind: input, shape index: {}]   ;;  %s4324_s2 = inlined_call_operand.vmem [shape: f32[1,256], index: 2, kind: input, shape index: {}]   ;;  %s4325_s3 = inlined_call_operand.vmem [shape: f32[1,256], index: 3, kind: input, shape index: {}]   ;;  %s4326_s4 = inlined_call_operand.vmem [shape: bf16[4,32,256], index: 4, kind: output, shape index: {}]  }
   0x1 LB: > { %s3688_s16 = sadd.s32 4294967295, %s3653_s15   ;;  %p2829_p0 = scmp.ge.s32.totalorder %s3653_s15, 1  ;;  %s3653_s15 = sphi %s3682_s15, %s14_s15  }
   0x2   : > { %p167_p1 = scmp.lt.s32.totalorder %s3653_s15, 5 }
   0x4   : > { %p168_p2 = pnand %p2829_p0, %p167_p1 }
   0x5   : > { %p193_p3 = scmp.lt.s32.totalorder (!%p168_p2), %s3688_s16, 3  ;;  %p3122_p4 = scmp.ne.s32.totalorder (!%p168_p2), %s3688_s16, 0 }
   0x6   : > { %171 = sbr.rel (%p168_p2) target bundleno = 591 (0x24f), region = 36 }
   0xd   : > { %s3694_s17 = scalar_select %p193_p3, %s3688_s16, 3 }
   0xf   : > { %s3173_s18 = sshll.u32 %s3694_s17, 11  ;;  %s3172_s22 = sshll.u32 %s3694_s17, 8 }
  0x10   : > { %s3700_s21 = scalar_lea.vmem %s4323_s1, %s3173_s18  ;;  %s3750_s25 = scalar_lea.vmem %s4322_s0, %s3172_s22 }
  0x11   : > { %v3261_v0 = vld [vmem:[%s3700_s21 + $0x4] ss:$8 sps:$4 sm:$0xff]   ;;  %v3265_v2 = vld [vmem:[%s3700_s21] ss:$8 sps:$4 sm:$0xff]   ;;  %v3267_v4 = vld [vmem:[%s3700_s21 + $0x14] ss:$8 sps:$4 sm:$0xff]  }
  0x12   : > { %v3263_v1 = vld [vmem:[%s3700_s21 + $0x404] ss:$8 sps:$4 sm:$0xff]   ;;  %1931 = vmatprep.subr.bf16.mxu1 %v3261_v0  ;;  %v3266_v3 = vld [vmem:[%s3700_s21 + $0x400] ss:$8 sps:$4 sm:$0xff]   ;;  %v3269_v5 = vld [vmem:[%s3700_s21 + $0x414] ss:$8 sps:$4 sm:$0xff]  }
  0x13   : > { %2143 = vmatprep.subr.bf16.mxu0 %v3263_v1  ;;  %1932 = vmatpush1.bf16.msra.mxu1 %v3265_v2  ;;  %v3271_v6 = vld [vmem:[%s3700_s21 + $0x10] ss:$8 sps:$4 sm:$0xff]   ;;  %v3273_v8 = vld [vmem:[%s3700_s21 + $0x24] ss:$8 sps:$4 sm:$0xff]   ;;  %v3277_v10 = vld [vmem:[%s3700_s21 + $0x20] ss:$8 sps:$4 sm:$0xff]  }
  0x14   : > { %2144 = vmatpush1.bf16.msra.mxu0 %v3266_v3  ;;  %1933 = vmatprep.subr.bf16.mxu1 %v3267_v4  ;;  %v3272_v7 = vld [vmem:[%s3700_s21 + $0x410] ss:$8 sps:$4 sm:$0xff]   ;;  %v3275_v9 = vld [vmem:[%s3700_s21 + $0x424] ss:$8 sps:$4 sm:$0xff]   ;;  %v3278_v11 = vld [vmem:[%s3700_s21 + $0x420] ss:$8 sps:$4 sm:$0xff]  }
  0x15   : > { %2145 = vmatprep.subr.bf16.mxu0 %v3269_v5  ;;  %v3279_v12 = vld [vmem:[%s3700_s21 + $0x34] ss:$8 sps:$4 sm:$0xff]   ;;  %v3283_v14 = vld [vmem:[%s3700_s21 + $0x30] ss:$8 sps:$4 sm:$0xff]   ;;  %v3285_v16 = vld [vmem:[%s3700_s21 + $0x44] ss:$8 sps:$4 sm:$0xff]  }
  0x16   : > { %v3281_v13 = vld [vmem:[%s3700_s21 + $0x434] ss:$8 sps:$4 sm:$0xff]   ;;  %v3284_v15 = vld [vmem:[%s3700_s21 + $0x430] ss:$8 sps:$4 sm:$0xff]   ;;  %v3287_v17 = vld [vmem:[%s3700_s21 + $0x444] ss:$8 sps:$4 sm:$0xff]  }
  0x17   : > { %1934 = vmatpush1.bf16.msra.mxu1 %v3271_v6  ;;  %v3289_v18 = vld [vmem:[%s3700_s21 + $0x40] ss:$8 sps:$4 sm:$0xff]   ;;  %v3291_v20 = vld [vmem:[%s3700_s21 + $0x54] ss:$8 sps:$4 sm:$0xff]   ;;  %v3295_v22 = vld [vmem:[%s3700_s21 + $0x50] ss:$8 sps:$4 sm:$0xff]  }
  0x18   : > { %2146 = vmatpush1.bf16.msra.mxu0 %v3272_v7  ;;  %1935 = vmatprep.subr.bf16.mxu1 %v3273_v8  ;;  %v3290_v19 = vld [vmem:[%s3700_s21 + $0x440] ss:$8 sps:$4 sm:$0xff]   ;;  %v3293_v21 = vld [vmem:[%s3700_s21 + $0x454] ss:$8 sps:$4 sm:$0xff]   ;;  %v3296_v23 = vld [vmem:[%s3700_s21 + $0x450] ss:$8 sps:$4 sm:$0xff]  }
  0x19   : > { %2147 = vmatprep.subr.bf16.mxu0 %v3275_v9  ;;  %v3297_v24 = vld [vmem:[%s3700_s21 + $0x64] ss:$8 sps:$4 sm:$0xff]   ;;  %v3301_v26 = vld [vmem:[%s3700_s21 + $0x60] ss:$8 sps:$4 sm:$0xff]   ;;  %v3303_v28 = vld [vmem:[%s3700_s21 + $0x74] ss:$8 sps:$4 sm:$0xff]  }
  0x1a   : > { %v3299_v25 = vld [vmem:[%s3700_s21 + $0x464] ss:$8 sps:$4 sm:$0xff]   ;;  %v3302_v27 = vld [vmem:[%s3700_s21 + $0x460] ss:$8 sps:$4 sm:$0xff]   ;;  %v3305_v29 = vld [vmem:[%s3700_s21 + $0x474] ss:$8 sps:$4 sm:$0xff]  }
  0x1b   : > { %1936 = vmatpush1.bf16.msra.mxu1 %v3277_v10  ;;  %v3307_v30 = vld [vmem:[%s3700_s21 + $0x70] ss:$8 sps:$4 sm:$0xff]   ;;  %v3309_v32 = vld [vmem:[%s3700_s21 + $0x84] ss:$8 sps:$4 sm:$0xff]   ;;  %v3313_v34 = vld [vmem:[%s3700_s21 + $0x80] ss:$8 sps:$4 sm:$0xff]  }
  0x1c   : > { %2148 = vmatpush1.bf16.msra.mxu0 %v3278_v11  ;;  %1937 = vmatprep.subr.bf16.mxu1 %v3279_v12  ;;  %v3308_v31 = vld [vmem:[%s3700_s21 + $0x470] ss:$8 sps:$4 sm:$0xff]   ;;  %v3311_v33 = vld [vmem:[%s3700_s21 + $0x484] ss:$8 sps:$4 sm:$0xff]   ;;  %v3314_v35 = vld [vmem:[%s3700_s21 + $0x480] ss:$8 sps:$4 sm:$0xff]  }
  0x1d   : > { %2149 = vmatprep.subr.bf16.mxu0 %v3281_v13  ;;  %v3315_v36 = vld [vmem:[%s3700_s21 + $0x94] ss:$8 sps:$4 sm:$0xff]   ;;  %v3319_v38 = vld [vmem:[%s3700_s21 + $0x90] ss:$8 sps:$4 sm:$0xff]   ;;  %v3321_v40 = vld [vmem:[%s3700_s21 + $0xa4] ss:$8 sps:$4 sm:$0xff]  }
  0x1e   : > { %v3317_v37 = vld [vmem:[%s3700_s21 + $0x494] ss:$8 sps:$4 sm:$0xff]   ;;  %v3320_v39 = vld [vmem:[%s3700_s21 + $0x490] ss:$8 sps:$4 sm:$0xff]   ;;  %v3323_v41 = vld [vmem:[%s3700_s21 + $0x4a4] ss:$8 sps:$4 sm:$0xff]  }
  0x1f   : > { %1938 = vmatpush1.bf16.msra.mxu1 %v3283_v14  ;;  %v3325_v42 = vld [vmem:[%s3700_s21 + $0xa0] ss:$8 sps:$4 sm:$0xff]   ;;  %v3327_v44 = vld [vmem:[%s3700_s21 + $0xb4] ss:$8 sps:$4 sm:$0xff]   ;;  %v3331_v46 = vld [vmem:[%s3700_s21 + $0xb0] ss:$8 sps:$4 sm:$0xff]  }
  0x20   : > { %2150 = vmatpush1.bf16.msra.mxu0 %v3284_v15  ;;  %1939 = vmatprep.subr.bf16.mxu1 %v3285_v16  ;;  %v3326_v43 = vld [vmem:[%s3700_s21 + $0x4a0] ss:$8 sps:$4 sm:$0xff]   ;;  %v3329_v45 = vld [vmem:[%s3700_s21 + $0x4b4] ss:$8 sps:$4 sm:$0xff]   ;;  %v3332_v47 = vld [vmem:[%s3700_s21 + $0x4b0] ss:$8 sps:$4 sm:$0xff]  }
  0x21   : > { %2151 = vmatprep.subr.bf16.mxu0 %v3287_v17  ;;  %v203_v48 = vld [vmem:[%s3750_s25] sm:$0xff]  ;;  %v3339_v58 = vld [vmem:[%s3700_s21 + $0xd4] ss:$8 sps:$4 sm:$0xff]   ;;  %v3343_v60 = vld [vmem:[%s3700_s21 + $0xd0] ss:$8 sps:$4 sm:$0xff]  }
  0x22   : > { %v211_v49 = vld [vmem:[%s3750_s25 + $0x40] sm:$0xff]  ;;  %v3341_v59 = vld [vmem:[%s3700_s21 + $0x4d4] ss:$8 sps:$4 sm:$0xff]   ;;  %v3344_v61 = vld [vmem:[%s3700_s21 + $0x4d0] ss:$8 sps:$4 sm:$0xff]  }
  0x23   : > { %1940 = vmatpush1.bf16.msra.mxu1 %v3289_v18  ;;  %v3333_v50 = vld [vmem:[%s3700_s21 + $0xc4] ss:$8 sps:$4 sm:$0xff]   ;;  %v2835_v52 = vcombine.high %v203_v48, %v211_v49  ;;  %v3337_v56 = vld [vmem:[%s3700_s21 + $0xc0] ss:$8 sps:$4 sm:$0xff]   ;;  %v3351_v2 = vld [vmem:[%s3700_s21 + $0xf4] ss:$8 sps:$4 sm:$0xff]   ;;  %v2834_v8 = vcombine.low %v203_v48, %v211_v49 }
  0x24   : > { %2152 = vmatpush1.bf16.msra.mxu0 %v3290_v19  ;;  %1941 = vmatprep.subr.bf16.mxu1 %v3291_v20  ;;  %v3335_v51 = vld [vmem:[%s3700_s21 + $0x4c4] ss:$8 sps:$4 sm:$0xff]   ;;  %v3338_v57 = vld [vmem:[%s3700_s21 + $0x4c0] ss:$8 sps:$4 sm:$0xff]   ;;  %v3353_v3 = vld [vmem:[%s3700_s21 + $0x4f4] ss:$8 sps:$4 sm:$0xff]  }
  0x25   : > { %2153 = vmatprep.subr.bf16.mxu0 %v3293_v21  ;;  %v207_v53 = vld [vmem:[%s3750_s25 + $0x20] sm:$0xff]  ;;  %1963 = vmatprep.mubr.bf16.mxu1 %v2835_v52  ;;  %v3355_v4 = vld [vmem:[%s3700_s21 + $0xf0] ss:$8 sps:$4 sm:$0xff]   ;;  %v3365_v12 = vld [vmem:[%s3700_s21 + $0x114] ss:$8 sps:$4 sm:$0xff]  }
  0x26   : > { %v215_v54 = vld [vmem:[%s3750_s25 + $0x60] sm:$0xff]  ;;  %v3356_v5 = vld [vmem:[%s3700_s21 + $0x4f0] ss:$8 sps:$4 sm:$0xff]   ;;  %v3368_v13 = vld [vmem:[%s3700_s21 + $0x514] ss:$8 sps:$4 sm:$0xff]  }
  0x27   : > { %1942 = vmatpush1.bf16.msra.mxu1 %v3295_v22  ;;  %v2843_v55 = vcombine.high %v207_v53, %v215_v54  ;;  %v3345_v62 = vld [vmem:[%s3700_s21 + $0xe4] ss:$8 sps:$4 sm:$0xff]   ;;  %v3349_v0 = vld [vmem:[%s3700_s21 + $0xe0] ss:$8 sps:$4 sm:$0xff]   ;;  %v2842_v10 = vcombine.low %v207_v53, %v215_v54  ;;  %v3363_v14 = vld [vmem:[%s3700_s21 + $0x110] ss:$8 sps:$4 sm:$0xff]  }
  0x28   : > { %2154 = vmatpush1.bf16.msra.mxu0 %v3296_v23  ;;  %1943 = vmatprep.subr.bf16.mxu1 %v3297_v24  ;;  %v3347_v63 = vld [vmem:[%s3700_s21 + $0x4e4] ss:$8 sps:$4 sm:$0xff]   ;;  %v3350_v1 = vld [vmem:[%s3700_s21 + $0x4e0] ss:$8 sps:$4 sm:$0xff]   ;;  %v3366_v15 = vld [vmem:[%s3700_s21 + $0x510] ss:$8 sps:$4 sm:$0xff]  }
  0x29   : > { %2155 = vmatprep.subr.bf16.mxu0 %v3299_v25  ;;  %2175 = vmatprep.mubr.bf16.mxu0 %v2843_v55  ;;  %v3359_v6 = vld [vmem:[%s3700_s21 + $0x104] ss:$8 sps:$4 sm:$0xff]   ;;  %v3357_v9 = vld [vmem:[%s3700_s21 + $0x100] ss:$8 sps:$4 sm:$0xff]   ;;  %v3377_v20 = vld [vmem:[%s3700_s21 + $0x134] ss:$8 sps:$4 sm:$0xff]  }
  0x2a   : > { %v3362_v7 = vld [vmem:[%s3700_s21 + $0x504] ss:$8 sps:$4 sm:$0xff]   ;;  %v3360_v11 = vld [vmem:[%s3700_s21 + $0x500] ss:$8 sps:$4 sm:$0xff]   ;;  %v3380_v21 = vld [vmem:[%s3700_s21 + $0x534] ss:$8 sps:$4 sm:$0xff]  }
  0x2b   : > { %1944 = vmatpush1.bf16.msra.mxu1 %v3301_v26  ;;  %v3371_v16 = vld [vmem:[%s3700_s21 + $0x124] ss:$8 sps:$4 sm:$0xff]   ;;  %v3369_v18 = vld [vmem:[%s3700_s21 + $0x120] ss:$8 sps:$4 sm:$0xff]   ;;  %v3375_v22 = vld [vmem:[%s3700_s21 + $0x130] ss:$8 sps:$4 sm:$0xff]  }
  0x2c   : > { %2156 = vmatpush1.bf16.msra.mxu0 %v3302_v27  ;;  %1945 = vmatprep.subr.bf16.mxu1 %v3303_v28  ;;  %v3374_v17 = vld [vmem:[%s3700_s21 + $0x524] ss:$8 sps:$4 sm:$0xff]   ;;  %v3372_v19 = vld [vmem:[%s3700_s21 + $0x520] ss:$8 sps:$4 sm:$0xff]   ;;  %v3378_v23 = vld [vmem:[%s3700_s21 + $0x530] ss:$8 sps:$4 sm:$0xff]  }
  0x2d   : > { %2157 = vmatprep.subr.bf16.mxu0 %v3305_v29  ;;  %v3383_v24 = vld [vmem:[%s3700_s21 + $0x144] ss:$8 sps:$4 sm:$0xff]   ;;  %v3381_v26 = vld [vmem:[%s3700_s21 + $0x140] ss:$8 sps:$4 sm:$0xff]   ;;  %v3389_v28 = vld [vmem:[%s3700_s21 + $0x154] ss:$8 sps:$4 sm:$0xff]  }
  0x2e   : > { %v3386_v25 = vld [vmem:[%s3700_s21 + $0x544] ss:$8 sps:$4 sm:$0xff]   ;;  %v3384_v27 = vld [vmem:[%s3700_s21 + $0x540] ss:$8 sps:$4 sm:$0xff]   ;;  %v3392_v29 = vld [vmem:[%s3700_s21 + $0x554] ss:$8 sps:$4 sm:$0xff]  }
  0x2f   : > { %1946 = vmatpush1.bf16.msra.mxu1 %v3307_v30  ;;  %v219_v30 = vld [vmem:[%s3750_s25 + $0x80] sm:$0xff]  ;;  %v3819_v49 = vld [vmem:[%s3750_s25 + $0x28] sm:$0xff]  ;;  %v3402_v52 = vld [vmem:[%s3700_s21 + $0x570] ss:$8 sps:$4 sm:$0xff]  }
  0x30   : > { %2158 = vmatpush1.bf16.msra.mxu0 %v3308_v31  ;;  %1947 = vmatprep.subr.bf16.mxu1 %v3309_v32  ;;  %v227_v31 = vld [vmem:[%s3750_s25 + $0xc0] sm:$0xff]  ;;  %v3387_v32 = vld [vmem:[%s3700_s21 + $0x150] ss:$8 sps:$4 sm:$0xff]  }
  0x31   : > { %2159 = vmatprep.subr.bf16.mxu0 %v3311_v33  ;;  %v2851_v33 = vcombine.high %v219_v30, %v227_v31  ;;  %v3407_v54 = vld [vmem:[%s3700_s21 + $0x184] ss:$8 sps:$4 sm:$0xff]  }
  0x32   : > { %v3410_v55 = vld [vmem:[%s3700_s21 + $0x584] ss:$8 sps:$4 sm:$0xff]  }
  0x33   : > { %1948 = vmatpush1.bf16.msra.mxu1 %v3313_v34  ;;  %v3390_v34 = vld [vmem:[%s3700_s21 + $0x550] ss:$8 sps:$4 sm:$0xff]  }
  0x34   : > { %2160 = vmatpush1.bf16.msra.mxu0 %v3314_v35  ;;  %1949 = vmatprep.subr.bf16.mxu1 %v3315_v36  ;;  %v223_v35 = vld [vmem:[%s3750_s25 + $0xa0] sm:$0xff] }
  0x35   : > { %2161 = vmatprep.subr.bf16.mxu0 %v3317_v37  ;;  %v231_v36 = vld [vmem:[%s3750_s25 + $0xe0] sm:$0xff]  ;;  %v2850_v37 = vcombine.low %v219_v30, %v227_v31  ;;  %v3461_v30 = vld [vmem:[%s3700_s21 + $0x214] ss:$8 sps:$4 sm:$0xff]  }
  0x36   : > { %v3464_v31 = vld [vmem:[%s3700_s21 + $0x614] ss:$8 sps:$4 sm:$0xff]  }
  0x37   : > { %1950 = vmatpush1.bf16.msra.mxu1 %v3319_v38  ;;  %v3395_v38 = vld [vmem:[%s3700_s21 + $0x164] ss:$8 sps:$4 sm:$0xff]  }
  0x38   : > { %2162 = vmatpush1.bf16.msra.mxu0 %v3320_v39  ;;  %1951 = vmatprep.subr.bf16.mxu1 %v3321_v40  ;;  %v2859_v39 = vcombine.high %v223_v35, %v231_v36  ;;  %v2858_v40 = vcombine.low %v223_v35, %v231_v36  ;;  %v3459_v36 = vld [vmem:[%s3700_s21 + $0x210] ss:$8 sps:$4 sm:$0xff]  }
  0x39   : > { %2163 = vmatprep.subr.bf16.mxu0 %v3323_v41  ;;  %v3398_v41 = vld [vmem:[%s3700_s21 + $0x564] ss:$8 sps:$4 sm:$0xff]  }
  0x3b   : > { %1952 = vmatpush1.bf16.msra.mxu1 %v3325_v42  ;;  %v3393_v42 = vld [vmem:[%s3700_s21 + $0x160] ss:$8 sps:$4 sm:$0xff]  }
  0x3c   : > { %2164 = vmatpush1.bf16.msra.mxu0 %v3326_v43  ;;  %1953 = vmatprep.subr.bf16.mxu1 %v3327_v44  ;;  %v3396_v43 = vld [vmem:[%s3700_s21 + $0x560] ss:$8 sps:$4 sm:$0xff]  }
  0x3d   : > { %2165 = vmatprep.subr.bf16.mxu0 %v3329_v45  ;;  %v3809_v44 = vld [vmem:[%s3750_s25 + $0x8] sm:$0xff] }
  0x3e   : > { %v3812_v45 = vld [vmem:[%s3750_s25 + $0x48] sm:$0xff] }
  0x3f   : > { %1954 = vmatpush1.bf16.msra.mxu1 %v3331_v46  ;;  %v3401_v46 = vld [vmem:[%s3700_s21 + $0x174] ss:$8 sps:$4 sm:$0xff]   ;;  %v2837_v48 = vcombine.high %v3809_v44, %v3812_v45 }
  0x40   : > { %2166 = vmatpush1.bf16.msra.mxu0 %v3332_v47  ;;  %1955 = vmatprep.subr.bf16.mxu1 %v3333_v50  ;;  %v3404_v47 = vld [vmem:[%s3700_s21 + $0x574] ss:$8 sps:$4 sm:$0xff]   ;;  %v3822_v50 = vld [vmem:[%s3750_s25 + $0x68] sm:$0xff] }
  0x41   : > { %2167 = vmatprep.subr.bf16.mxu0 %v3335_v51  ;;  %v3399_v51 = vld [vmem:[%s3700_s21 + $0x170] ss:$8 sps:$4 sm:$0xff]   ;;  %v2845_v53 = vcombine.high %v3819_v49, %v3822_v50 }
  0x43   : > { %1956 = vmatpush1.bf16.msra.mxu1 %v3337_v56  ;;  %v3405_v56 = vld [vmem:[%s3700_s21 + $0x180] ss:$8 sps:$4 sm:$0xff]  }
  0x44   : > { %2168 = vmatpush1.bf16.msra.mxu0 %v3338_v57  ;;  %1957 = vmatprep.subr.bf16.mxu1 %v3339_v58  ;;  %v3408_v57 = vld [vmem:[%s3700_s21 + $0x580] ss:$8 sps:$4 sm:$0xff]   ;;  %v3413_v58 = vld [vmem:[%s3700_s21 + $0x194] ss:$8 sps:$4 sm:$0xff]  }
  0x45   : > { %2169 = vmatprep.subr.bf16.mxu0 %v3341_v59  ;;  %v3416_v59 = vld [vmem:[%s3700_s21 + $0x594] ss:$8 sps:$4 sm:$0xff]  }
  0x47   : > { %1958 = vmatpush1.bf16.msra.mxu1 %v3343_v60  ;;  %v3411_v60 = vld [vmem:[%s3700_s21 + $0x190] ss:$8 sps:$4 sm:$0xff]  }
  0x48   : > { %2170 = vmatpush1.bf16.msra.mxu0 %v3344_v61  ;;  %1959 = vmatprep.subr.bf16.mxu1 %v3345_v62  ;;  %v3414_v61 = vld [vmem:[%s3700_s21 + $0x590] ss:$8 sps:$4 sm:$0xff]   ;;  %v3419_v62 = vld [vmem:[%s3700_s21 + $0x1a4] ss:$8 sps:$4 sm:$0xff]  }
  0x49   : > { %2171 = vmatprep.subr.bf16.mxu0 %v3347_v63  ;;  %v3422_v63 = vld [vmem:[%s3700_s21 + $0x5a4] ss:$8 sps:$4 sm:$0xff]  }
  0x4b   : > { %1960 = vmatpush1.bf16.msra.mxu1 %v3349_v0  ;;  %v3417_v0 = vld [vmem:[%s3700_s21 + $0x1a0] ss:$8 sps:$4 sm:$0xff]  }
  0x4c   : > { %2172 = vmatpush1.bf16.msra.mxu0 %v3350_v1  ;;  %1961 = vmatprep.subr.bf16.mxu1 %v3351_v2  ;;  %v3420_v1 = vld [vmem:[%s3700_s21 + $0x5a0] ss:$8 sps:$4 sm:$0xff]   ;;  %v3425_v2 = vld [vmem:[%s3700_s21 + $0x1b4] ss:$8 sps:$4 sm:$0xff]  }
  0x4d   : > { %2173 = vmatprep.subr.bf16.mxu0 %v3353_v3  ;;  %v3428_v3 = vld [vmem:[%s3700_s21 + $0x5b4] ss:$8 sps:$4 sm:$0xff]  }
  0x4f   : > { %1962 = vmatpush1.bf16.msra.mxu1 %v3355_v4  ;;  %v3423_v4 = vld [vmem:[%s3700_s21 + $0x1b0] ss:$8 sps:$4 sm:$0xff]  }
  0x50   : > { %2174 = vmatpush1.bf16.msra.mxu0 %v3356_v5  ;;  %1984 = vmatprep.subr.bf16.mxu1 %v3359_v6  ;;  %v3426_v5 = vld [vmem:[%s3700_s21 + $0x5b0] ss:$8 sps:$4 sm:$0xff]   ;;  %v3431_v6 = vld [vmem:[%s3700_s21 + $0x1c4] ss:$8 sps:$4 sm:$0xff]  }
  0x51   : > { %2196 = vmatprep.subr.bf16.mxu0 %v3362_v7  ;;  %v3434_v7 = vld [vmem:[%s3700_s21 + $0x5c4] ss:$8 sps:$4 sm:$0xff]  }
  0x52   : > { %1964 = vmatmul.mubr.bf16.vlgmr.msra.gmra.mrb[0].mxu1 %v2834_v8  ;;  %v3429_v8 = vld [vmem:[%s3700_s21 + $0x1c0] ss:$8 sps:$4 sm:$0xff]  }
  0x53   : > { %2176 = vmatmul.mubr.bf16.vlgmr.msra.gmra.mrb[0].mxu0 %v2842_v10  ;;  %1985 = vmatpush1.bf16.msra.mxu1 %v3357_v9  ;;  %v3432_v9 = vld [vmem:[%s3700_s21 + $0x5c0] ss:$8 sps:$4 sm:$0xff]   ;;  %v3437_v10 = vld [vmem:[%s3700_s21 + $0x1d4] ss:$8 sps:$4 sm:$0xff]  }
  0x54   : > { %2197 = vmatpush1.bf16.msra.mxu0 %v3360_v11  ;;  %1986 = vmatprep.subr.bf16.mxu1 %v3365_v12  ;;  %v3440_v11 = vld [vmem:[%s3700_s21 + $0x5d4] ss:$8 sps:$4 sm:$0xff]   ;;  %v3435_v12 = vld [vmem:[%s3700_s21 + $0x1d0] ss:$8 sps:$4 sm:$0xff]  }
  0x55   : > { %2198 = vmatprep.subr.bf16.mxu0 %v3368_v13  ;;  %1973 = vmatprep.mubr.bf16.mxu1 %v2851_v33  ;;  %v3438_v13 = vld [vmem:[%s3700_s21 + $0x5d0] ss:$8 sps:$4 sm:$0xff]   ;;  %v232_v33 = vld [vmem:[%s3750_s25 + $0xe8] sm:$0xff] }
  0x56   : > { %2185 = vmatprep.mubr.bf16.mxu0 %v2859_v39  ;;  %v3470_v39 = vld [vmem:[%s3700_s21 + $0x624] ss:$8 sps:$4 sm:$0xff]  }
  0x57   : > { %1987 = vmatpush1.bf16.msra.mxu1 %v3363_v14  ;;  %v3443_v14 = vld [vmem:[%s3700_s21 + $0x1e4] ss:$8 sps:$4 sm:$0xff]  }
  0x58   : > { %2199 = vmatpush1.bf16.msra.mxu0 %v3366_v15  ;;  %1988 = vmatprep.subr.bf16.mxu1 %v3371_v16  ;;  %v3446_v15 = vld [vmem:[%s3700_s21 + $0x5e4] ss:$8 sps:$4 sm:$0xff]   ;;  %v3441_v16 = vld [vmem:[%s3700_s21 + $0x1e0] ss:$8 sps:$4 sm:$0xff]  }
  0x59   : > { %2200 = vmatprep.subr.bf16.mxu0 %v3374_v17  ;;  %v3444_v17 = vld [vmem:[%s3700_s21 + $0x5e0] ss:$8 sps:$4 sm:$0xff]  }
  0x5a   : > { %1974 = vmatmul.mubr.bf16.gmra.mrb[4].mxu1 %v2850_v37  ;;  %v3462_v37 = vld [vmem:[%s3700_s21 + $0x610] ss:$8 sps:$4 sm:$0xff]  }
  0x5b   : > { %1989 = vmatpush1.bf16.msra.mxu1 %v3369_v18  ;;  %2186 = vmatmul.mubr.bf16.gmra.mrb[4].mxu0 %v2858_v40  ;;  %v3449_v18 = vld [vmem:[%s3700_s21 + $0x1f4] ss:$8 sps:$4 sm:$0xff]   ;;  %v3465_v40 = vld [vmem:[%s3700_s21 + $0x220] ss:$8 sps:$4 sm:$0xff]  }
  0x5c   : > { %2201 = vmatpush1.bf16.msra.mxu0 %v3372_v19  ;;  %1990 = vmatprep.subr.bf16.mxu1 %v3377_v20  ;;  %v3452_v19 = vld [vmem:[%s3700_s21 + $0x5f4] ss:$8 sps:$4 sm:$0xff]   ;;  %v3447_v20 = vld [vmem:[%s3700_s21 + $0x1f0] ss:$8 sps:$4 sm:$0xff]  }
  0x5d   : > { %2202 = vmatprep.subr.bf16.mxu0 %v3380_v21  ;;  %2016 = vmatprep.mubr.bf16.mxu1 %v2837_v48  ;;  %v3450_v21 = vld [vmem:[%s3700_s21 + $0x5f0] ss:$8 sps:$4 sm:$0xff]   ;;  %v3473_v48 = vld [vmem:[%s3700_s21 + $0x234] ss:$8 sps:$4 sm:$0xff]  }
  0x5e   : > { %2228 = vmatprep.mubr.bf16.mxu0 %v2845_v53  ;;  %v3474_v53 = vld [vmem:[%s3700_s21 + $0x630] ss:$8 sps:$4 sm:$0xff]  }
  0x5f   : > { %1991 = vmatpush1.bf16.msra.mxu1 %v3375_v22  ;;  %v3455_v22 = vld [vmem:[%s3700_s21 + $0x204] ss:$8 sps:$4 sm:$0xff]  }
  0x60   : > { %2203 = vmatpush1.bf16.msra.mxu0 %v3378_v23  ;;  %1992 = vmatprep.subr.bf16.mxu1 %v3383_v24  ;;  %v3458_v23 = vld [vmem:[%s3700_s21 + $0x604] ss:$8 sps:$4 sm:$0xff]   ;;  %v3453_v24 = vld [vmem:[%s3700_s21 + $0x200] ss:$8 sps:$4 sm:$0xff]  }
  0x61   : > { %2204 = vmatprep.subr.bf16.mxu0 %v3386_v25  ;;  %v3456_v25 = vld [vmem:[%s3700_s21 + $0x600] ss:$8 sps:$4 sm:$0xff]  }
  0x63   : > { %1993 = vmatpush1.bf16.msra.mxu1 %v3381_v26  ;;  %v220_v26 = vld [vmem:[%s3750_s25 + $0x88] sm:$0xff] }
  0x64   : > { %2205 = vmatpush1.bf16.msra.mxu0 %v3384_v27  ;;  %1994 = vmatprep.subr.bf16.mxu1 %v3389_v28  ;;  %v2836_v27 = vcombine.low %v3809_v44, %v3812_v45  ;;  %v2844_v28 = vcombine.low %v3819_v49, %v3822_v50  ;;  %v3884_v45 = vld [vmem:[%s3750_s25 + $0x50] sm:$0xff] }
  0x65   : > { %2206 = vmatprep.subr.bf16.mxu0 %v3392_v29  ;;  %v228_v29 = vld [vmem:[%s3750_s25 + $0xc8] sm:$0xff]  ;;  %v3476_v49 = vld [vmem:[%s3700_s21 + $0x634] ss:$8 sps:$4 sm:$0xff]  }
  0x67   : > { %1995 = vmatpush1.bf16.msra.mxu1 %v3387_v32  ;;  %v224_v32 = vld [vmem:[%s3750_s25 + $0xa8] sm:$0xff] }
  0x68   : > { %2207 = vmatpush1.bf16.msra.mxu0 %v3390_v34  ;;  %1996 = vmatprep.subr.bf16.mxu1 %v3395_v38  ;;  %v2853_v34 = vcombine.high %v220_v26, %v228_v29  ;;  %v2861_v35 = vcombine.high %v224_v32, %v232_v33  ;;  %v3467_v38 = vld [vmem:[%s3700_s21 + $0x224] ss:$8 sps:$4 sm:$0xff]   ;;  %v2860_v44 = vcombine.low %v224_v32, %v232_v33  ;;  %v3537_v32 = vld [vmem:[%s3700_s21 + $0x2e0] ss:$8 sps:$4 sm:$0xff]  }
  0x69   : > { %2208 = vmatprep.subr.bf16.mxu0 %v3398_v41  ;;  %v3468_v41 = vld [vmem:[%s3700_s21 + $0x620] ss:$8 sps:$4 sm:$0xff]  }
  0x6a   : > { %v3540_v33 = vld [vmem:[%s3700_s21 + $0x6e0] ss:$8 sps:$4 sm:$0xff]  }
  0x6b   : > { %1997 = vmatpush1.bf16.msra.mxu1 %v3393_v42  ;;  %v3881_v42 = vld [vmem:[%s3750_s25 + $0x10] sm:$0xff] }
  0x6c   : > { %2209 = vmatpush1.bf16.msra.mxu0 %v3396_v43  ;;  %1998 = vmatprep.subr.bf16.mxu1 %v3401_v46  ;;  %v2852_v43 = vcombine.low %v220_v26, %v228_v29  ;;  %v3887_v46 = vld [vmem:[%s3750_s25 + $0x30] sm:$0xff]  ;;  %v2839_v50 = vcombine.high %v3881_v42, %v3884_v45 }
  0x6d   : > { %2210 = vmatprep.subr.bf16.mxu0 %v3404_v47  ;;  %v3890_v47 = vld [vmem:[%s3750_s25 + $0x70] sm:$0xff] }
  0x6e   : > { %v3533_v26 = vld [vmem:[%s3700_s21 + $0x2d4] ss:$8 sps:$4 sm:$0xff]   ;;  %v3534_v29 = vld [vmem:[%s3700_s21 + $0x6d0] ss:$8 sps:$4 sm:$0xff]  }
  0x6f   : > { %1999 = vmatpush1.bf16.msra.mxu1 %v3399_v51  ;;  %v2847_v51 = vcombine.high %v3887_v46, %v3890_v47 }
  0x70   : > { %2211 = vmatpush1.bf16.msra.mxu0 %v3402_v52  ;;  %2000 = vmatprep.subr.bf16.mxu1 %v3407_v54  ;;  %v3471_v52 = vld [vmem:[%s3700_s21 + $0x230] ss:$8 sps:$4 sm:$0xff]   ;;  %v3479_v54 = vld [vmem:[%s3700_s21 + $0x244] ss:$8 sps:$4 sm:$0xff]  }
  0x71   : > { %2212 = vmatprep.subr.bf16.mxu0 %v3410_v55  ;;  %v3482_v55 = vld [vmem:[%s3700_s21 + $0x644] ss:$8 sps:$4 sm:$0xff]  }
  0x73   : > { %2001 = vmatpush1.bf16.msra.mxu1 %v3405_v56  ;;  %v3477_v56 = vld [vmem:[%s3700_s21 + $0x240] ss:$8 sps:$4 sm:$0xff]  }
  0x74   : > { %2213 = vmatpush1.bf16.msra.mxu0 %v3408_v57  ;;  %2002 = vmatprep.subr.bf16.mxu1 %v3413_v58  ;;  %v3480_v57 = vld [vmem:[%s3700_s21 + $0x640] ss:$8 sps:$4 sm:$0xff]   ;;  %v3485_v58 = vld [vmem:[%s3700_s21 + $0x254] ss:$8 sps:$4 sm:$0xff]  }
  0x75   : > { %2214 = vmatprep.subr.bf16.mxu0 %v3416_v59  ;;  %v3488_v59 = vld [vmem:[%s3700_s21 + $0x654] ss:$8 sps:$4 sm:$0xff]  }
  0x77   : > { %2003 = vmatpush1.bf16.msra.mxu1 %v3411_v60  ;;  %v3483_v60 = vld [vmem:[%s3700_s21 + $0x250] ss:$8 sps:$4 sm:$0xff]  }
  0x78   : > { %2215 = vmatpush1.bf16.msra.mxu0 %v3414_v61  ;;  %2004 = vmatprep.subr.bf16.mxu1 %v3419_v62  ;;  %v3486_v61 = vld [vmem:[%s3700_s21 + $0x650] ss:$8 sps:$4 sm:$0xff]   ;;  %v3491_v62 = vld [vmem:[%s3700_s21 + $0x264] ss:$8 sps:$4 sm:$0xff]  }
  0x79   : > { %2216 = vmatprep.subr.bf16.mxu0 %v3422_v63  ;;  %v3494_v63 = vld [vmem:[%s3700_s21 + $0x664] ss:$8 sps:$4 sm:$0xff]  }
  0x7b   : > { %2005 = vmatpush1.bf16.msra.mxu1 %v3417_v0  ;;  %v3489_v0 = vld [vmem:[%s3700_s21 + $0x260] ss:$8 sps:$4 sm:$0xff]  }
  0x7c   : > { %2217 = vmatpush1.bf16.msra.mxu0 %v3420_v1  ;;  %2006 = vmatprep.subr.bf16.mxu1 %v3425_v2  ;;  %v3492_v1 = vld [vmem:[%s3700_s21 + $0x660] ss:$8 sps:$4 sm:$0xff]   ;;  %v3497_v2 = vld [vmem:[%s3700_s21 + $0x274] ss:$8 sps:$4 sm:$0xff]  }
  0x7d   : > { %2218 = vmatprep.subr.bf16.mxu0 %v3428_v3  ;;  %v3500_v3 = vld [vmem:[%s3700_s21 + $0x674] ss:$8 sps:$4 sm:$0xff]  }
  0x7f   : > { %2007 = vmatpush1.bf16.msra.mxu1 %v3423_v4  ;;  %v3495_v4 = vld [vmem:[%s3700_s21 + $0x270] ss:$8 sps:$4 sm:$0xff]  }
  0x80   : > { %2219 = vmatpush1.bf16.msra.mxu0 %v3426_v5  ;;  %2008 = vmatprep.subr.bf16.mxu1 %v3431_v6  ;;  %v3498_v5 = vld [vmem:[%s3700_s21 + $0x670] ss:$8 sps:$4 sm:$0xff]   ;;  %v3503_v6 = vld [vmem:[%s3700_s21 + $0x284] ss:$8 sps:$4 sm:$0xff]  }
  0x81   : > { %2220 = vmatprep.subr.bf16.mxu0 %v3434_v7  ;;  %v3506_v7 = vld [vmem:[%s3700_s21 + $0x684] ss:$8 sps:$4 sm:$0xff]  }
  0x83   : > { %2009 = vmatpush1.bf16.msra.mxu1 %v3429_v8  ;;  %v3501_v8 = vld [vmem:[%s3700_s21 + $0x280] ss:$8 sps:$4 sm:$0xff]  }
  0x84   : > { %2221 = vmatpush1.bf16.msra.mxu0 %v3432_v9  ;;  %2010 = vmatprep.subr.bf16.mxu1 %v3437_v10  ;;  %v3504_v9 = vld [vmem:[%s3700_s21 + $0x680] ss:$8 sps:$4 sm:$0xff]   ;;  %v3509_v10 = vld [vmem:[%s3700_s21 + $0x294] ss:$8 sps:$4 sm:$0xff]  }
  0x85   : > { %2222 = vmatprep.subr.bf16.mxu0 %v3440_v11  ;;  %v3512_v11 = vld [vmem:[%s3700_s21 + $0x694] ss:$8 sps:$4 sm:$0xff]  }
  0x87   : > { %2011 = vmatpush1.bf16.msra.mxu1 %v3435_v12  ;;  %v3507_v12 = vld [vmem:[%s3700_s21 + $0x290] ss:$8 sps:$4 sm:$0xff]  }
  0x88   : > { %2223 = vmatpush1.bf16.msra.mxu0 %v3438_v13  ;;  %2012 = vmatprep.subr.bf16.mxu1 %v3443_v14  ;;  %v3510_v13 = vld [vmem:[%s3700_s21 + $0x690] ss:$8 sps:$4 sm:$0xff]   ;;  %v3515_v14 = vld [vmem:[%s3700_s21 + $0x2a4] ss:$8 sps:$4 sm:$0xff]  }
  0x89   : > { %2224 = vmatprep.subr.bf16.mxu0 %v3446_v15  ;;  %v3518_v15 = vld [vmem:[%s3700_s21 + $0x6a4] ss:$8 sps:$4 sm:$0xff]  }
  0x8b   : > { %2013 = vmatpush1.bf16.msra.mxu1 %v3441_v16  ;;  %v3513_v16 = vld [vmem:[%s3700_s21 + $0x2a0] ss:$8 sps:$4 sm:$0xff]  }
  0x8c   : > { %2225 = vmatpush1.bf16.msra.mxu0 %v3444_v17  ;;  %2014 = vmatprep.subr.bf16.mxu1 %v3449_v18  ;;  %v3516_v17 = vld [vmem:[%s3700_s21 + $0x6a0] ss:$8 sps:$4 sm:$0xff]   ;;  %v3521_v18 = vld [vmem:[%s3700_s21 + $0x2b4] ss:$8 sps:$4 sm:$0xff]  }
  0x8d   : > { %2226 = vmatprep.subr.bf16.mxu0 %v3452_v19  ;;  %v3524_v19 = vld [vmem:[%s3700_s21 + $0x6b4] ss:$8 sps:$4 sm:$0xff]  }
  0x8f   : > { %2015 = vmatpush1.bf16.msra.mxu1 %v3447_v20  ;;  %v3519_v20 = vld [vmem:[%s3700_s21 + $0x2b0] ss:$8 sps:$4 sm:$0xff]  }
  0x90   : > { %2227 = vmatpush1.bf16.msra.mxu0 %v3450_v21  ;;  %2037 = vmatprep.subr.bf16.mxu1 %v3455_v22  ;;  %v3522_v21 = vld [vmem:[%s3700_s21 + $0x6b0] ss:$8 sps:$4 sm:$0xff]   ;;  %v3527_v22 = vld [vmem:[%s3700_s21 + $0x2c4] ss:$8 sps:$4 sm:$0xff]  }
  0x91   : > { %2249 = vmatprep.subr.bf16.mxu0 %v3458_v23  ;;  %v3530_v23 = vld [vmem:[%s3700_s21 + $0x6c4] ss:$8 sps:$4 sm:$0xff]  }
  0x92   : > { %2017 = vmatmul.mubr.bf16.vlgmr.msra.gmra.mrb[0].mxu1 %v2836_v27  ;;  %v3536_v27 = vld [vmem:[%s3700_s21 + $0x6d4] ss:$8 sps:$4 sm:$0xff]  }
  0x93   : > { %2229 = vmatmul.mubr.bf16.vlgmr.msra.gmra.mrb[0].mxu0 %v2844_v28  ;;  %2038 = vmatpush1.bf16.msra.mxu1 %v3453_v24  ;;  %v3525_v24 = vld [vmem:[%s3700_s21 + $0x2c0] ss:$8 sps:$4 sm:$0xff]   ;;  %v3531_v28 = vld [vmem:[%s3700_s21 + $0x2d0] ss:$8 sps:$4 sm:$0xff]  }
  0x94   : > { %2250 = vmatpush1.bf16.msra.mxu0 %v3456_v25  ;;  %2039 = vmatprep.subr.bf16.mxu1 %v3461_v30  ;;  %v3528_v25 = vld [vmem:[%s3700_s21 + $0x6c0] ss:$8 sps:$4 sm:$0xff]   ;;  %v3539_v30 = vld [vmem:[%s3700_s21 + $0x2e4] ss:$8 sps:$4 sm:$0xff]  }
  0x95   : > { %2251 = vmatprep.subr.bf16.mxu0 %v3464_v31  ;;  %2026 = vmatprep.mubr.bf16.mxu1 %v2853_v34  ;;  %v3542_v31 = vld [vmem:[%s3700_s21 + $0x6e4] ss:$8 sps:$4 sm:$0xff]   ;;  %v3545_v34 = vld [vmem:[%s3700_s21 + $0x2f4] ss:$8 sps:$4 sm:$0xff]  }
  0x96   : > { %2238 = vmatprep.mubr.bf16.mxu0 %v2861_v35  ;;  %v3548_v35 = vld [vmem:[%s3700_s21 + $0x6f4] ss:$8 sps:$4 sm:$0xff]  }
  0x97   : > { %2040 = vmatpush1.bf16.msra.mxu1 %v3459_v36  ;;  %v3543_v36 = vld [vmem:[%s3700_s21 + $0x2f0] ss:$8 sps:$4 sm:$0xff]  }
  0x98   : > { %2252 = vmatpush1.bf16.msra.mxu0 %v3462_v37  ;;  %2041 = vmatprep.subr.bf16.mxu1 %v3467_v38  ;;  %v3546_v37 = vld [vmem:[%s3700_s21 + $0x6f0] ss:$8 sps:$4 sm:$0xff]   ;;  %v3551_v38 = vld [vmem:[%s3700_s21 + $0x304] ss:$8 sps:$4 sm:$0xff]  }
  0x99   : > { %2253 = vmatprep.subr.bf16.mxu0 %v3470_v39  ;;  %v3554_v39 = vld [vmem:[%s3700_s21 + $0x704] ss:$8 sps:$4 sm:$0xff]  }
  0x9a   : > { %2027 = vmatmul.mubr.bf16.gmra.mrb[4].mxu1 %v2852_v43  ;;  %v2846_v43 = vcombine.low %v3887_v46, %v3890_v47  ;;  %v3555_v46 = vld [vmem:[%s3700_s21 + $0x310] ss:$8 sps:$4 sm:$0xff]  }
  0x9b   : > { %2239 = vmatmul.mubr.bf16.gmra.mrb[4].mxu0 %v2860_v44  ;;  %2042 = vmatpush1.bf16.msra.mxu1 %v3465_v40  ;;  %v221_v40 = vld [vmem:[%s3750_s25 + $0x90] sm:$0xff] }
  0x9c   : > { %2254 = vmatpush1.bf16.msra.mxu0 %v3468_v41  ;;  %2043 = vmatprep.subr.bf16.mxu1 %v3473_v48  ;;  %v2838_v41 = vcombine.low %v3881_v42, %v3884_v45  ;;  %v229_v44 = vld [vmem:[%s3750_s25 + $0xd0] sm:$0xff] }
  0x9d   : > { %2255 = vmatprep.subr.bf16.mxu0 %v3476_v49  ;;  %2069 = vmatprep.mubr.bf16.mxu1 %v2839_v50  ;;  %v225_v48 = vld [vmem:[%s3750_s25 + $0xb0] sm:$0xff]  ;;  %v3549_v50 = vld [vmem:[%s3700_s21 + $0x300] ss:$8 sps:$4 sm:$0xff]   ;;  %v2855_v42 = vcombine.high %v221_v40, %v229_v44 }
  0x9e   : > { %2281 = vmatprep.mubr.bf16.mxu0 %v2847_v51  ;;  %v233_v49 = vld [vmem:[%s3750_s25 + $0xf0] sm:$0xff]  ;;  %v3552_v51 = vld [vmem:[%s3700_s21 + $0x700] ss:$8 sps:$4 sm:$0xff]  }
  0x9f   : > { %2044 = vmatpush1.bf16.msra.mxu1 %v3471_v52  ;;  %v3557_v52 = vld [vmem:[%s3700_s21 + $0x314] ss:$8 sps:$4 sm:$0xff]   ;;  %v2863_v45 = vcombine.high %v225_v48, %v233_v49  ;;  %v3558_v47 = vld [vmem:[%s3700_s21 + $0x710] ss:$8 sps:$4 sm:$0xff]  }
  0xa0   : > { %2256 = vmatpush1.bf16.msra.mxu0 %v3474_v53  ;;  %2045 = vmatprep.subr.bf16.mxu1 %v3479_v54  ;;  %v3560_v53 = vld [vmem:[%s3700_s21 + $0x714] ss:$8 sps:$4 sm:$0xff]   ;;  %v3563_v54 = vld [vmem:[%s3700_s21 + $0x324] ss:$8 sps:$4 sm:$0xff]  }
  0xa1   : > { %2257 = vmatprep.subr.bf16.mxu0 %v3482_v55  ;;  %v3566_v55 = vld [vmem:[%s3700_s21 + $0x724] ss:$8 sps:$4 sm:$0xff]  }
  0xa3   : > { %2046 = vmatpush1.bf16.msra.mxu1 %v3477_v56  ;;  %v3967_v56 = vld [vmem:[%s3750_s25 + $0x18] sm:$0xff] }
  0xa4   : > { %2258 = vmatpush1.bf16.msra.mxu0 %v3480_v57  ;;  %2047 = vmatprep.subr.bf16.mxu1 %v3485_v58  ;;  %v2854_v57 = vcombine.low %v221_v40, %v229_v44  ;;  %v2862_v58 = vcombine.low %v225_v48, %v233_v49  ;;  %v3621_v40 = vld [vmem:[%s3700_s21 + $0x3c0] ss:$8 sps:$4 sm:$0xff]   ;;  %v3632_v44 = vld [vmem:[%s3700_s21 + $0x7d4] ss:$8 sps:$4 sm:$0xff]   ;;  %v3627_v48 = vld [vmem:[%s3700_s21 + $0x3d0] ss:$8 sps:$4 sm:$0xff]  }
  0xa5   : > { %2259 = vmatprep.subr.bf16.mxu0 %v3488_v59  ;;  %v3970_v59 = vld [vmem:[%s3750_s25 + $0x58] sm:$0xff] }
  0xa6   : > { %v3630_v49 = vld [vmem:[%s3700_s21 + $0x7d0] ss:$8 sps:$4 sm:$0xff]  }
  0xa7   : > { %2048 = vmatpush1.bf16.msra.mxu1 %v3483_v60  ;;  %v3973_v60 = vld [vmem:[%s3750_s25 + $0x38] sm:$0xff] }
  0xa8   : > { %2260 = vmatpush1.bf16.msra.mxu0 %v3486_v61  ;;  %2049 = vmatprep.subr.bf16.mxu1 %v3491_v62  ;;  %v3976_v61 = vld [vmem:[%s3750_s25 + $0x78] sm:$0xff]  ;;  %v3561_v62 = vld [vmem:[%s3700_s21 + $0x320] ss:$8 sps:$4 sm:$0xff]  }
  0xa9   : > { %2261 = vmatprep.subr.bf16.mxu0 %v3494_v63  ;;  %v3564_v63 = vld [vmem:[%s3700_s21 + $0x720] ss:$8 sps:$4 sm:$0xff]  }
  0xab   : > { %2050 = vmatpush1.bf16.msra.mxu1 %v3489_v0  ;;  %v3569_v0 = vld [vmem:[%s3700_s21 + $0x334] ss:$8 sps:$4 sm:$0xff]  }
  0xac   : > { %2262 = vmatpush1.bf16.msra.mxu0 %v3492_v1  ;;  %2051 = vmatprep.subr.bf16.mxu1 %v3497_v2  ;;  %v3572_v1 = vld [vmem:[%s3700_s21 + $0x734] ss:$8 sps:$4 sm:$0xff]   ;;  %v2841_v2 = vcombine.high %v3967_v56, %v3970_v59 }
  0xad   : > { %2263 = vmatprep.subr.bf16.mxu0 %v3500_v3  ;;  %v2849_v3 = vcombine.high %v3973_v60, %v3976_v61 }
  0xaf   : > { %2052 = vmatpush1.bf16.msra.mxu1 %v3495_v4  ;;  %v3567_v4 = vld [vmem:[%s3700_s21 + $0x330] ss:$8 sps:$4 sm:$0xff]  }
  0xb0   : > { %2264 = vmatpush1.bf16.msra.mxu0 %v3498_v5  ;;  %2053 = vmatprep.subr.bf16.mxu1 %v3503_v6  ;;  %v3570_v5 = vld [vmem:[%s3700_s21 + $0x730] ss:$8 sps:$4 sm:$0xff]   ;;  %v3575_v6 = vld [vmem:[%s3700_s21 + $0x344] ss:$8 sps:$4 sm:$0xff]  }
  0xb1   : > { %2265 = vmatprep.subr.bf16.mxu0 %v3506_v7  ;;  %v3578_v7 = vld [vmem:[%s3700_s21 + $0x744] ss:$8 sps:$4 sm:$0xff]  }
  0xb3   : > { %2054 = vmatpush1.bf16.msra.mxu1 %v3501_v8  ;;  %v3573_v8 = vld [vmem:[%s3700_s21 + $0x340] ss:$8 sps:$4 sm:$0xff]  }
  0xb4   : > { %2266 = vmatpush1.bf16.msra.mxu0 %v3504_v9  ;;  %2055 = vmatprep.subr.bf16.mxu1 %v3509_v10  ;;  %v3576_v9 = vld [vmem:[%s3700_s21 + $0x740] ss:$8 sps:$4 sm:$0xff]   ;;  %v3581_v10 = vld [vmem:[%s3700_s21 + $0x354] ss:$8 sps:$4 sm:$0xff]  }
  0xb5   : > { %2267 = vmatprep.subr.bf16.mxu0 %v3512_v11  ;;  %v3584_v11 = vld [vmem:[%s3700_s21 + $0x754] ss:$8 sps:$4 sm:$0xff]  }
  0xb7   : > { %2056 = vmatpush1.bf16.msra.mxu1 %v3507_v12  ;;  %v3579_v12 = vld [vmem:[%s3700_s21 + $0x350] ss:$8 sps:$4 sm:$0xff]  }
  0xb8   : > { %2268 = vmatpush1.bf16.msra.mxu0 %v3510_v13  ;;  %2057 = vmatprep.subr.bf16.mxu1 %v3515_v14  ;;  %v3582_v13 = vld [vmem:[%s3700_s21 + $0x750] ss:$8 sps:$4 sm:$0xff]   ;;  %v3587_v14 = vld [vmem:[%s3700_s21 + $0x364] ss:$8 sps:$4 sm:$0xff]  }
  0xb9   : > { %2269 = vmatprep.subr.bf16.mxu0 %v3518_v15  ;;  %v3590_v15 = vld [vmem:[%s3700_s21 + $0x764] ss:$8 sps:$4 sm:$0xff]  }
  0xbb   : > { %2058 = vmatpush1.bf16.msra.mxu1 %v3513_v16  ;;  %v3585_v16 = vld [vmem:[%s3700_s21 + $0x360] ss:$8 sps:$4 sm:$0xff]  }
  0xbc   : > { %2270 = vmatpush1.bf16.msra.mxu0 %v3516_v17  ;;  %2059 = vmatprep.subr.bf16.mxu1 %v3521_v18  ;;  %v3588_v17 = vld [vmem:[%s3700_s21 + $0x760] ss:$8 sps:$4 sm:$0xff]   ;;  %v3593_v18 = vld [vmem:[%s3700_s21 + $0x374] ss:$8 sps:$4 sm:$0xff]  }
  0xbd   : > { %2271 = vmatprep.subr.bf16.mxu0 %v3524_v19  ;;  %v3596_v19 = vld [vmem:[%s3700_s21 + $0x774] ss:$8 sps:$4 sm:$0xff]  }
  0xbf   : > { %2060 = vmatpush1.bf16.msra.mxu1 %v3519_v20  ;;  %v3591_v20 = vld [vmem:[%s3700_s21 + $0x370] ss:$8 sps:$4 sm:$0xff]  }
  0xc0   : > { %2272 = vmatpush1.bf16.msra.mxu0 %v3522_v21  ;;  %2061 = vmatprep.subr.bf16.mxu1 %v3527_v22  ;;  %v3594_v21 = vld [vmem:[%s3700_s21 + $0x770] ss:$8 sps:$4 sm:$0xff]   ;;  %v3599_v22 = vld [vmem:[%s3700_s21 + $0x384] ss:$8 sps:$4 sm:$0xff]  }
  0xc1   : > { %2273 = vmatprep.subr.bf16.mxu0 %v3530_v23  ;;  %v3602_v23 = vld [vmem:[%s3700_s21 + $0x784] ss:$8 sps:$4 sm:$0xff]  }
  0xc3   : > { %2062 = vmatpush1.bf16.msra.mxu1 %v3525_v24  ;;  %v3597_v24 = vld [vmem:[%s3700_s21 + $0x380] ss:$8 sps:$4 sm:$0xff]  }
  0xc4   : > { %2274 = vmatpush1.bf16.msra.mxu0 %v3528_v25  ;;  %2063 = vmatprep.subr.bf16.mxu1 %v3533_v26  ;;  %v3600_v25 = vld [vmem:[%s3700_s21 + $0x780] ss:$8 sps:$4 sm:$0xff]   ;;  %v3605_v26 = vld [vmem:[%s3700_s21 + $0x394] ss:$8 sps:$4 sm:$0xff]  }
  0xc5   : > { %2275 = vmatprep.subr.bf16.mxu0 %v3536_v27  ;;  %v3608_v27 = vld [vmem:[%s3700_s21 + $0x794] ss:$8 sps:$4 sm:$0xff]  }
  0xc7   : > { %2064 = vmatpush1.bf16.msra.mxu1 %v3531_v28  ;;  %v3603_v28 = vld [vmem:[%s3700_s21 + $0x390] ss:$8 sps:$4 sm:$0xff]  }
  0xc8   : > { %2276 = vmatpush1.bf16.msra.mxu0 %v3534_v29  ;;  %2065 = vmatprep.subr.bf16.mxu1 %v3539_v30  ;;  %v3606_v29 = vld [vmem:[%s3700_s21 + $0x790] ss:$8 sps:$4 sm:$0xff]   ;;  %v3611_v30 = vld [vmem:[%s3700_s21 + $0x3a4] ss:$8 sps:$4 sm:$0xff]  }
  0xc9   : > { %2277 = vmatprep.subr.bf16.mxu0 %v3542_v31  ;;  %v3614_v31 = vld [vmem:[%s3700_s21 + $0x7a4] ss:$8 sps:$4 sm:$0xff]  }
  0xcb   : > { %2066 = vmatpush1.bf16.msra.mxu1 %v3537_v32  ;;  %v3609_v32 = vld [vmem:[%s3700_s21 + $0x3a0] ss:$8 sps:$4 sm:$0xff]  }
  0xcc   : > { %2278 = vmatpush1.bf16.msra.mxu0 %v3540_v33  ;;  %2067 = vmatprep.subr.bf16.mxu1 %v3545_v34  ;;  %v3612_v33 = vld [vmem:[%s3700_s21 + $0x7a0] ss:$8 sps:$4 sm:$0xff]   ;;  %v3617_v34 = vld [vmem:[%s3700_s21 + $0x3b4] ss:$8 sps:$4 sm:$0xff]  }
  0xcd   : > { %2279 = vmatprep.subr.bf16.mxu0 %v3548_v35  ;;  %v3620_v35 = vld [vmem:[%s3700_s21 + $0x7b4] ss:$8 sps:$4 sm:$0xff]  }
  0xcf   : > { %2068 = vmatpush1.bf16.msra.mxu1 %v3543_v36  ;;  %v3615_v36 = vld [vmem:[%s3700_s21 + $0x3b0] ss:$8 sps:$4 sm:$0xff]  }
  0xd0   : > { %2280 = vmatpush1.bf16.msra.mxu0 %v3546_v37  ;;  %2090 = vmatprep.subr.bf16.mxu1 %v3551_v38  ;;  %v3618_v37 = vld [vmem:[%s3700_s21 + $0x7b0] ss:$8 sps:$4 sm:$0xff]   ;;  %v3623_v38 = vld [vmem:[%s3700_s21 + $0x3c4] ss:$8 sps:$4 sm:$0xff]  }
  0xd1   : > { %2302 = vmatprep.subr.bf16.mxu0 %v3554_v39  ;;  %v3626_v39 = vld [vmem:[%s3700_s21 + $0x7c4] ss:$8 sps:$4 sm:$0xff]  }
  0xd2   : > { %2070 = vmatmul.mubr.bf16.vlgmr.msra.gmra.mrb[0].mxu1 %v2838_v41  ;;  %v3624_v41 = vld [vmem:[%s3700_s21 + $0x7c0] ss:$8 sps:$4 sm:$0xff]  }
  0xd3   : > { %2282 = vmatmul.mubr.bf16.vlgmr.msra.gmra.mrb[0].mxu0 %v2846_v43  ;;  %2091 = vmatpush1.bf16.msra.mxu1 %v3549_v50  ;;  %v3629_v43 = vld [vmem:[%s3700_s21 + $0x3d4] ss:$8 sps:$4 sm:$0xff]   ;;  %v3635_v50 = vld [vmem:[%s3700_s21 + $0x3e4] ss:$8 sps:$4 sm:$0xff]  }
  0xd4   : > { %2303 = vmatpush1.bf16.msra.mxu0 %v3552_v51  ;;  %2092 = vmatprep.subr.bf16.mxu1 %v3557_v52  ;;  %v3638_v51 = vld [vmem:[%s3700_s21 + $0x7e4] ss:$8 sps:$4 sm:$0xff]   ;;  %v3633_v52 = vld [vmem:[%s3700_s21 + $0x3e0] ss:$8 sps:$4 sm:$0xff]  }
  0xd5   : > { %2304 = vmatprep.subr.bf16.mxu0 %v3560_v53  ;;  %2079 = vmatprep.mubr.bf16.mxu1 %v2855_v42  ;;  %v3636_v53 = vld [vmem:[%s3700_s21 + $0x7e0] ss:$8 sps:$4 sm:$0xff]   ;;  %v3641_v42 = vld [vmem:[%s3700_s21 + $0x3f4] ss:$8 sps:$4 sm:$0xff]  }
  0xd6   : > { %2291 = vmatprep.mubr.bf16.mxu0 %v2863_v45  ;;  %v3644_v45 = vld [vmem:[%s3700_s21 + $0x7f4] ss:$8 sps:$4 sm:$0xff]  }
  0xd7   : > { %2093 = vmatpush1.bf16.msra.mxu1 %v3555_v46  ;;  %v3639_v46 = vld [vmem:[%s3700_s21 + $0x3f0] ss:$8 sps:$4 sm:$0xff]  }
  0xd8   : > { %2305 = vmatpush1.bf16.msra.mxu0 %v3558_v47  ;;  %2094 = vmatprep.subr.bf16.mxu1 %v3563_v54  ;;  %v3642_v47 = vld [vmem:[%s3700_s21 + $0x7f0] ss:$8 sps:$4 sm:$0xff]  }
  0xd9   : > { %2306 = vmatprep.subr.bf16.mxu0 %v3566_v55  ;;  %v222_v54 = vld [vmem:[%s3750_s25 + $0x98] sm:$0xff] }
  0xda   : > { %2080 = vmatmul.mubr.bf16.gmra.mrb[4].mxu1 %v2854_v57  ;;  %v230_v55 = vld [vmem:[%s3750_s25 + $0xd8] sm:$0xff] }
  0xdb   : > { %2292 = vmatmul.mubr.bf16.gmra.mrb[4].mxu0 %v2862_v58  ;;  %2095 = vmatpush1.bf16.msra.mxu1 %v3561_v62  ;;  %v226_v57 = vld [vmem:[%s3750_s25 + $0xb8] sm:$0xff]  ;;  %v2840_v62 = vcombine.low %v3967_v56, %v3970_v59 }
  0xdc   : > { %2307 = vmatpush1.bf16.msra.mxu0 %v3564_v63  ;;  %2096 = vmatprep.subr.bf16.mxu1 %v3569_v0  ;;  %v234_v58 = vld [vmem:[%s3750_s25 + $0xf8] sm:$0xff]  ;;  %v2848_v63 = vcombine.low %v3973_v60, %v3976_v61  ;;  %v2857_v0 = vcombine.high %v222_v54, %v230_v55 }
  0xdd   : > { %2308 = vmatprep.subr.bf16.mxu0 %v3572_v1  ;;  %2122 = vmatprep.mubr.bf16.mxu1 %v2841_v2  ;;  %v2865_v1 = vcombine.high %v226_v57, %v234_v58  ;;  %v2856_v2 = vcombine.low %v222_v54, %v230_v55 }
  0xde   : > { %2334 = vmatprep.mubr.bf16.mxu0 %v2849_v3  ;;  %v2864_v3 = vcombine.low %v226_v57, %v234_v58 }
  0xdf   : > { %2097 = vmatpush1.bf16.msra.mxu1 %v3567_v4 }
  0xe0   : > { %2309 = vmatpush1.bf16.msra.mxu0 %v3570_v5  ;;  %2098 = vmatprep.subr.bf16.mxu1 %v3575_v6 }
  0xe1   : > { %2310 = vmatprep.subr.bf16.mxu0 %v3578_v7 }
  0xe3   : > { %2099 = vmatpush1.bf16.msra.mxu1 %v3573_v8 }
  0xe4   : > { %2311 = vmatpush1.bf16.msra.mxu0 %v3576_v9  ;;  %2100 = vmatprep.subr.bf16.mxu1 %v3581_v10 }
  0xe5   : > { %2312 = vmatprep.subr.bf16.mxu0 %v3584_v11 }
  0xe7   : > { %2101 = vmatpush1.bf16.msra.mxu1 %v3579_v12 }
  0xe8   : > { %2313 = vmatpush1.bf16.msra.mxu0 %v3582_v13  ;;  %2102 = vmatprep.subr.bf16.mxu1 %v3587_v14 }
  0xe9   : > { %2314 = vmatprep.subr.bf16.mxu0 %v3590_v15 }
  0xeb   : > { %2103 = vmatpush1.bf16.msra.mxu1 %v3585_v16 }
  0xec   : > { %2315 = vmatpush1.bf16.msra.mxu0 %v3588_v17  ;;  %2104 = vmatprep.subr.bf16.mxu1 %v3593_v18 }
  0xed   : > { %2316 = vmatprep.subr.bf16.mxu0 %v3596_v19 }
  0xef   : > { %2105 = vmatpush1.bf16.msra.mxu1 %v3591_v20 }
  0xf0   : > { %2317 = vmatpush1.bf16.msra.mxu0 %v3594_v21  ;;  %2106 = vmatprep.subr.bf16.mxu1 %v3599_v22 }
  0xf1   : > { %2318 = vmatprep.subr.bf16.mxu0 %v3602_v23 }
  0xf3   : > { %2107 = vmatpush1.bf16.msra.mxu1 %v3597_v24  ;;  %v2359_v24 = vlaneseq (!%p3122_p4) }
  0xf4   : > { %2319 = vmatpush1.bf16.msra.mxu0 %v3600_v25  ;;  %2108 = vmatprep.subr.bf16.mxu1 %v3605_v26  ;;  %v3655_v25 = vmov (!%p3122_p4), 0.0  }
  0xf5   : > { %2320 = vmatprep.subr.bf16.mxu0 %v3608_v27  ;;  %vm2361_vm0 = vcmp.lt.s32.totalorder (!%p3122_p4), %v2359_v24, 256 }
  0xf6   : > { %2363 = vst.msk [vmem:[#allocation2] sm:$0x3] (!%p3122_p4), %vm2361_vm0, %v3655_v25  ;;  %2364 = vst.msk [vmem:[#allocation3] sm:$0x3] (!%p3122_p4), %vm2361_vm0, %v3655_v25 }
  0xf7   : > { %2109 = vmatpush1.bf16.msra.mxu1 %v3603_v28 }
  0xf8   : > { %2321 = vmatpush1.bf16.msra.mxu0 %v3606_v29  ;;  %2110 = vmatprep.subr.bf16.mxu1 %v3611_v30 }
  0xf9   : > { %2322 = vmatprep.subr.bf16.mxu0 %v3614_v31 }
  0xfb   : > { %2111 = vmatpush1.bf16.msra.mxu1 %v3609_v32 }
  0xfc   : > { %2323 = vmatpush1.bf16.msra.mxu0 %v3612_v33  ;;  %2112 = vmatprep.subr.bf16.mxu1 %v3617_v34 }
  0xfd   : > { %2324 = vmatprep.subr.bf16.mxu0 %v3620_v35 }
  0xff   : > { %2113 = vmatpush1.bf16.msra.mxu1 %v3615_v36 }
 0x100   : > { %2325 = vmatpush1.bf16.msra.mxu0 %v3618_v37  ;;  %2114 = vmatprep.subr.bf16.mxu1 %v3623_v38 }
 0x101   : > { %2326 = vmatprep.subr.bf16.mxu0 %v3626_v39 }
 0x103   : > { %2115 = vmatpush1.bf16.msra.mxu1 %v3621_v40 }
 0x104   : > { %2327 = vmatpush1.bf16.msra.mxu0 %v3624_v41  ;;  %2116 = vmatprep.subr.bf16.mxu1 %v3629_v43 }
 0x105   : > { %2328 = vmatprep.subr.bf16.mxu0 %v3632_v44 }
 0x107   : > { %2117 = vmatpush1.bf16.msra.mxu1 %v3627_v48 }
 0x108   : > { %2329 = vmatpush1.bf16.msra.mxu0 %v3630_v49  ;;  %2118 = vmatprep.subr.bf16.mxu1 %v3635_v50 }
 0x109   : > { %2330 = vmatprep.subr.bf16.mxu0 %v3638_v51 }
 0x10b   : > { %2119 = vmatpush1.bf16.msra.mxu1 %v3633_v52 }
 0x10c   : > { %2331 = vmatpush1.bf16.msra.mxu0 %v3636_v53  ;;  %2120 = vmatprep.subr.bf16.mxu1 %v3641_v42 }
 0x10d   : > { %2332 = vmatprep.subr.bf16.mxu0 %v3644_v45 }
 0x10f   : > { %2121 = vmatpush1.bf16.msra.mxu1 %v3639_v46 }
 0x110   : > { %2333 = vmatpush1.bf16.msra.mxu0 %v3642_v47 }
 0x112   : > { %2123 = vmatmul.mubr.bf16.vlgmr.msra.gmra.mrb[0].mxu1 %v2840_v62 }
 0x113   : > { %2335 = vmatmul.mubr.bf16.vlgmr.msra.gmra.mrb[0].mxu0 %v2848_v63  ;;  %2132 = vmatprep.mubr.bf16.mxu1 %v2857_v0 }
 0x114   : > { %2344 = vmatprep.mubr.bf16.mxu0 %v2865_v1 }
 0x11a   : > { %2133 = vmatmul.mubr.bf16.gmra.mrb[4].mxu1 %v2856_v2 }
 0x11b   : > { %2345 = vmatmul.mubr.bf16.gmra.mrb[4].mxu0 %v2864_v3 }
 0x1e5   : > { %v2124_v4 = vpop.f32.mrb[0].mxu1 }
 0x1e6   : > { %v2336_v5 = vpop.f32.mrb[0].mxu0  ;;  %v2126_v7 = vpop.f32.mrb[1].mxu1 }
 0x1e7   : > { %v3195_v6 = vadd.f32 %v2336_v5, %v2124_v4  ;;  %v2338_v56 = vpop.f32.mrb[1].mxu0  ;;  %v2128_v8 = vpop.f32.mrb[2].mxu1 }
 0x1e8   : > { %v3196_v59 = vadd.f32 %v2338_v56, %v2126_v7  ;;  %v2340_v60 = vpop.f32.mrb[2].mxu0  ;;  %v2130_v9 = vpop.f32.mrb[3].mxu1 }
 0x1e9   : > { %v3197_v61 = vadd.f32 %v2340_v60, %v2128_v8  ;;  %v2342_v10 = vpop.f32.mrb[3].mxu0 }
 0x1ea   : > { %v3198_v11 = vadd.f32 %v2342_v10, %v2130_v9 }
 0x1ec   : > { %2358 = sbr.rel (%p3122_p4) target bundleno = 499 (0x1f3), region = 40 }
 0x1ed   : > { %v2134_v12 = vpop.f32.mrb[4].mxu1 }
 0x1ee   : > { %v2346_v13 = vpop.f32.mrb[4].mxu0  ;;  %v2136_v15 = vpop.f32.mrb[5].mxu1 }
 0x1ef   : > { %v3199_v14 = vadd.f32 %v2346_v13, %v2134_v12  ;;  %v2348_v16 = vpop.f32.mrb[5].mxu0  ;;  %v2138_v18 = vpop.f32.mrb[6].mxu1 }
 0x1f0   : > { %v3200_v17 = vadd.f32 %v2348_v16, %v2136_v15  ;;  %v2350_v19 = vpop.f32.mrb[6].mxu0  ;;  %v2140_v21 = vpop.f32.mrb[7].mxu1 }
 0x1f1   : > { %v3201_v20 = vadd.f32 %v2350_v19, %v2138_v18  ;;  %v2352_v22 = vpop.f32.mrb[7].mxu0 }
 0x1f2   : > { %v3202_v23 = vadd.f32 %v2352_v22, %v2140_v21 }
 0x1f3 PF: > { %v2366_v26 = vadd.f32 %v3197_v61, %v3195_v6  ;;  %v2375_v27 = vadd.f32 %v3198_v11, %v3196_v59  ;;  %v2409_v28 = vmul.f32 %v3195_v6, %v3195_v6  ;;  %v2410_v29 = vmul.f32 %v3196_v59, %v3196_v59  ;;  %s3178_s26 = sshll.u32 %s3688_s16, 5  ;;  %v2365_v16 = vld [vmem:[#allocation2] sm:$0x3]  ;;  %p3129_p5 = scmp.ne.s32.totalorder %s3688_s16, 3 }
 0x1f4   : > { %v2411_v30 = vmul.f32 %v3197_v61, %v3197_v61  ;;  %v2412_v33 = vmul.f32 %v3198_v11, %v3198_v11  ;;  %v2413_v34 = vmul.f32 %v3199_v14, %v3199_v14  ;;  %v2414_v35 = vmul.f32 %v3200_v17, %v3200_v17  ;;  %s2481_s29 = scalar_lea.vmem %s4326_s4, %s3178_s26 }
 0x1f5   : > { %v2367_v31 = vadd.f32 %v3199_v14, %v2366_v26  ;;  %v2376_v32 = vadd.f32 %v3200_v17, %v2375_v27  ;;  %v2415_v38 = vmul.f32 %v3201_v20, %v3201_v20  ;;  %v2416_v39 = vmul.f32 %v3202_v23, %v3202_v23 }
 0x1f6   : > { %v2417_v40 = vadd.f32 %v2411_v30, %v2409_v28  ;;  %v2426_v41 = vadd.f32 %v2412_v33, %v2410_v29  ;;  %v3174_v43 = vpack.c.bf16 %v3196_v59, %v3195_v6  ;;  %v3175_v49 = vpack.c.bf16 %v3198_v11, %v3197_v61 }
 0x1f7   : > { %v2368_v36 = vadd.f32 %v3201_v20, %v2367_v31  ;;  %v2377_v37 = vadd.f32 %v3202_v23, %v2376_v32  ;;  %v3176_v50 = vpack.c.bf16 %v3200_v17, %v3199_v14  ;;  %v3177_v53 = vpack.c.bf16 %v3202_v23, %v3201_v20  ;;  %v2408_v23 = vld [vmem:[#allocation3] sm:$0x3] }
 0x1f8   : > { %v2418_v51 = vadd.f32 %v2417_v40, %v2413_v34  ;;  %v2427_v52 = vadd.f32 %v2426_v41, %v2414_v35  ;;  %2482 = vst [vmem:[%s2481_s29] sm:$0xff] %v3174_v43  ;;  %v3656_v46 = vmov 1966171168   ;;  %v2390_v54 = vlaneseq  ;;  %2483 = vst [vmem:[%s2481_s29 + $0x8] sm:$0xff] %v3175_v49 }
 0x1f9   : > { %v2369_v44 = vrot.slane %v2368_v36, 4  ;;  %v2378_v48 = vrot.slane %v2377_v37, 4  ;;  %v2388_v47 = vunpack.c.l.s4 %v3656_v46  ;;  %2484 = vst [vmem:[%s2481_s29 + $0x10] sm:$0xff] %v3176_v50  ;;  %2485 = vst [vmem:[%s2481_s29 + $0x18] sm:$0xff] %v3177_v53 }
 0x1fa   : > { %v2419_v55 = vadd.f32 %v2418_v51, %v2415_v38  ;;  %v2428_v57 = vadd.f32 %v2427_v52, %v2416_v39  ;;  %v4049_v4 = vshrl.u32 %v2390_v54, 7  ;;  %vm2405_vm1 = vcmp.lt.s32.totalorder %v2390_v54, 256 }
 0x1fb   : > { %v2370_v42 = vadd.f32 %v2369_v44, %v2368_v36  ;;  %v2379_v45 = vadd.f32 %v2378_v48, %v2377_v37  ;;  %v2389_v3 = vunpack.c.0.s8 %v2388_v47  ;;  %v2498_v47 = vld [vmem:[%s4324_s2] sm:$0x3] (!%p3129_p5) }
 0x1fc   : > { %v2420_v63 = vrot.slane %v2419_v55, 4  ;;  %v2429_v0 = vrot.slane %v2428_v57, 4  ;;  %v2518_v38 = vsub.s32 (!%p3129_p5), 0, %v4049_v4  ;;  %v2522_v43 = vsub.s32 (!%p3129_p5), 1, %v4049_v4 }
 0x1fd   : > { %v2371_v58 = vrot.slane %v2370_v42, 2  ;;  %v2380_v62 = vrot.slane %v2379_v45, 2  ;;  %v2392_v9 = vsub.s32 %v2389_v3, %v4049_v4 }
 0x1fe   : > { %v2421_v5 = vadd.f32 %v2420_v63, %v2419_v55  ;;  %v2430_v6 = vadd.f32 %v2429_v0, %v2428_v57 }
 0x1ff   : > { %v2372_v1 = vadd.f32 %v2371_v58, %v2370_v42  ;;  %v2381_v2 = vadd.f32 %v2380_v62, %v2379_v45 }
 0x200   : > { %v2422_v59 = vrot.slane %v2421_v5, 2  ;;  %v2431_v8 = vrot.slane %v2430_v6, 2  ;;  %v2503_v33 = vld [vmem:[%s4326_s4] sm:$0xff] (!%p3129_p5)  ;;  %v2504_v34 = vld [vmem:[%s4326_s4 + $0x8] sm:$0xff] (!%p3129_p5)  ;;  %v2505_v35 = vld [vmem:[%s4326_s4 + $0x10] sm:$0xff] (!%p3129_p5) }
 0x201   : > { %v2373_v7 = vrot.slane %v2372_v1, 1  ;;  %v2382_v56 = vrot.slane %v2381_v2, 1  ;;  %v4065_v36 = vld [vmem:[%s4326_s4 + $0x18] sm:$0xff] (!%p3129_p5)  ;;  %v2507_v37 = vunpack.c.l.bf16 (!%p3129_p5), %v2503_v33  ;;  %v4071_v39 = vld [vmem:[%s4326_s4 + $0x20] sm:$0xff] (!%p3129_p5)  ;;  %v4076_v40 = vld [vmem:[%s4326_s4 + $0x28] sm:$0xff] (!%p3129_p5)  ;;  %v2508_v41 = vunpack.c.h.bf16 (!%p3129_p5), %v2503_v33 }
 0x202   : > { %v2423_v10 = vadd.f32 %v2422_v59, %v2421_v5  ;;  %v2432_v11 = vadd.f32 %v2431_v8, %v2430_v6  ;;  %v2509_v44 = vunpack.c.l.bf16 (!%p3129_p5), %v2504_v34  ;;  %v2510_v48 = vunpack.c.h.bf16 (!%p3129_p5), %v2504_v34  ;;  %v4082_v49 = vld [vmem:[%s4326_s4 + $0x30] sm:$0xff] (!%p3129_p5)  ;;  %v4087_v50 = vld [vmem:[%s4326_s4 + $0x38] sm:$0xff] (!%p3129_p5)  ;;  %v4094_v45 = vld [vmem:[%s4326_s4 + $0x40] sm:$0xff] (!%p3129_p5) }
 0x203   : > { %v2374_v60 = vadd.f32 %v2373_v7, %v2372_v1  ;;  %v2383_v61 = vadd.f32 %v2382_v56, %v2381_v2  ;;  %v2511_v51 = vunpack.c.l.bf16 (!%p3129_p5), %v2505_v35  ;;  %v2512_v52 = vunpack.c.h.bf16 (!%p3129_p5), %v2505_v35  ;;  %v4099_v46 = vld [vmem:[%s4326_s4 + $0x48] sm:$0xff] (!%p3129_p5)  ;;  %v4111_v62 = vld [vmem:[%s4326_s4 + $0x50] sm:$0xff] (!%p3129_p5)  ;;  %v4116_v63 = vld [vmem:[%s4326_s4 + $0x58] sm:$0xff] (!%p3129_p5) }
 0x204   : > { %v2424_v13 = vrot.slane %v2423_v10, 1  ;;  %v2433_v14 = vrot.slane %v2432_v11, 1  ;;  %v2513_v53 = vunpack.c.l.bf16 (!%p3129_p5), %v4065_v36  ;;  %v2514_v42 = vunpack.c.h.bf16 (!%p3129_p5), %v4065_v36  ;;  %v4125_v4 = vld [vmem:[%s4326_s4 + $0x60] sm:$0xff] (!%p3129_p5)  ;;  %v4130_v5 = vld [vmem:[%s4326_s4 + $0x68] sm:$0xff] (!%p3129_p5) }
 0x205   : > { %v2386_v12 = vcombine.low %v2374_v60, %v2383_v61  ;;  %v2594_v54 = vunpack.c.l.bf16 (!%p3129_p5), %v4071_v39  ;;  %v2595_v55 = vunpack.c.h.bf16 (!%p3129_p5), %v4071_v39  ;;  %v2596_v57 = vunpack.c.l.bf16 (!%p3129_p5), %v4076_v40 }
 0x206   : > { %v2425_v17 = vadd.f32 %v2424_v13, %v2423_v10  ;;  %v2434_v18 = vadd.f32 %v2433_v14, %v2432_v11  ;;  %v2597_v58 = vunpack.c.h.bf16 (!%p3129_p5), %v4076_v40  ;;  %v2598_v0 = vunpack.c.l.bf16 (!%p3129_p5), %v4082_v49  ;;  %v4142_v11 = vld [vmem:[%s4326_s4 + $0x70] sm:$0xff] (!%p3129_p5)  ;;  %v2500_v13 = vld [vmem:[%s4325_s3] sm:$0x3] (!%p3129_p5) }
 0x207   : > { %v2393_v15 = vrot.slane %v2386_v12, %v2392_v9  ;;  %v2599_v1 = vunpack.c.h.bf16 (!%p3129_p5), %v4082_v49  ;;  %v2600_v2 = vunpack.c.l.bf16 (!%p3129_p5), %v4087_v50  ;;  %v2601_v3 = vunpack.c.h.bf16 (!%p3129_p5), %v4087_v50  ;;  %v4147_v12 = vld [vmem:[%s4326_s4 + $0x78] sm:$0xff] (!%p3129_p5) }
 0x208   : > { %v2437_v20 = vcombine.low %v2425_v17, %v2434_v18  ;;  %v2659_v7 = vunpack.c.l.bf16 (!%p3129_p5), %v4094_v45  ;;  %v2660_v56 = vunpack.c.h.bf16 (!%p3129_p5), %v4094_v45  ;;  %v2661_v59 = vunpack.c.l.bf16 (!%p3129_p5), %v4099_v46 }
 0x209   : > { %v2400_v19 = vrot.slane %v2393_v15, %v2392_v9  ;;  %v2662_v8 = vunpack.c.h.bf16 (!%p3129_p5), %v4099_v46  ;;  %v2663_v61 = vunpack.c.l.bf16 (!%p3129_p5), %v4111_v62  ;;  %v2665_v10 = vunpack.c.l.bf16 (!%p3129_p5), %v4116_v63 }
 0x20a   : > { %v2444_v22 = vrot.slane %v2437_v20, %v2392_v9  ;;  %2489 = sbr.rel (%p3129_p5) target bundleno = 591 (0x24f), region = 44  ;;  %v2666_v14 = vunpack.c.h.bf16 (!%p3129_p5), %v4116_v63  ;;  %v2724_v15 = vunpack.c.l.bf16 (!%p3129_p5), %v4125_v4  ;;  %v2726_v17 = vunpack.c.l.bf16 (!%p3129_p5), %v4130_v5 }
 0x20b   : > { %v2402_v21 = vadd.f32 %v2400_v19, %v2365_v16  ;;  %v2725_v16 = vunpack.c.h.bf16 (!%p3129_p5), %v4125_v4 }
 0x20c   : > { %v2451_v24 = vrot.slane %v2444_v22, %v2392_v9  ;;  %v2664_v9 = vunpack.c.h.bf16 (!%p3129_p5), %v4111_v62  ;;  %v2728_v22 = vunpack.c.l.bf16 (!%p3129_p5), %v4142_v11 }
 0x20d   : > { %2407 = vst.msk [vmem:[#allocation2] sm:$0x3] %vm2405_vm1, %v2402_v21  ;;  %v2727_v21 = vunpack.c.h.bf16 (!%p3129_p5), %v4130_v5 }
 0x20e   : > { %v2453_v25 = vadd.f32 %v2451_v24, %v2408_v23  ;;  %v2729_v23 = vunpack.c.h.bf16 (!%p3129_p5), %v4142_v11  ;;  %v2730_v24 = vunpack.c.l.bf16 (!%p3129_p5), %v4147_v12 }
 0x210   : > { %2454 = vst.msk [vmem:[#allocation3] sm:$0x3] %vm2405_vm1, %v2453_v25  ;;  %v2731_v25 = vunpack.c.h.bf16 (!%p3129_p5), %v4147_v12 }
 0x214   : > { %v2490_v26 = vld [vmem:[#allocation2] sm:$0x3] }
 0x215   : > { %v2491_v28 = vmul.f32 0.0078125, %v2490_v26 }
 0x217   : > { %v2492_v27 = vld [vmem:[#allocation3] sm:$0x3]  ;;  %v2494_v30 = vmul.f32 %v2491_v28, %v2491_v28 }
 0x218   : > { %v2493_v29 = vmul.f32 0.0078125, %v2492_v27 }
 0x21a   : > { %v2495_v31 = vsub.f32 %v2493_v29, %v2494_v30 }
 0x21c   : > { %v2496_v32 = vadd.f32 1e-05, %v2495_v31 }
 0x21e   : > { %3645 = vrsqrt.f32 %v2496_v32 }
 0x228   : > { %v3646_v6 = vpop.eup %3645 }
 0x229   : > { %v2499_v60 = vmul.f32 %v3646_v6, %v2498_v47 }
 0x22b   : > { %v2501_v18 = vmul.f32 %v2499_v60, %v2491_v28  ;;  %v4156_v19 = vrot.slane %v2499_v60, %v2518_v38  ;;  %v4158_v20 = vrot.slane %v2499_v60, %v2522_v43 }
 0x22d   : > { %v2502_v26 = vsub.f32 %v2500_v13, %v2501_v18  ;;  %v2526_v27 = vmul.f32 %v4156_v19, %v2507_v37  ;;  %v2527_v29 = vmul.f32 %v4158_v20, %v2508_v41  ;;  %v2528_v28 = vmul.f32 %v4156_v19, %v2509_v44 }
 0x22e   : > { %v2529_v30 = vmul.f32 %v4158_v20, %v2510_v48  ;;  %v2530_v31 = vmul.f32 %v4156_v19, %v2511_v51  ;;  %v2531_v32 = vmul.f32 %v4158_v20, %v2512_v52  ;;  %v2532_v33 = vmul.f32 %v4156_v19, %v2513_v53 }
 0x22f   : > { %v4172_v34 = vrot.slane %v2502_v26, %v2518_v38  ;;  %v4174_v35 = vrot.slane %v2502_v26, %v2522_v43  ;;  %v2533_v36 = vmul.f32 %v4158_v20, %v2514_v42  ;;  %v2602_v37 = vmul.f32 %v2594_v54, %v4156_v19 }
 0x230   : > { %v2603_v39 = vmul.f32 %v2595_v55, %v4158_v20  ;;  %v2604_v40 = vmul.f32 %v2596_v57, %v4156_v19  ;;  %v2605_v41 = vmul.f32 %v2597_v58, %v4158_v20  ;;  %v2606_v44 = vmul.f32 %v2598_v0, %v4156_v19 }
 0x231   : > { %v2545_v48 = vadd.f32 %v4172_v34, %v2526_v27  ;;  %v2546_v51 = vadd.f32 %v4174_v35, %v2527_v29  ;;  %v2547_v38 = vadd.f32 %v4172_v34, %v2528_v28  ;;  %v2548_v43 = vadd.f32 %v4174_v35, %v2529_v30 }
 0x232   : > { %v2549_v52 = vadd.f32 %v4172_v34, %v2530_v31  ;;  %v2550_v53 = vadd.f32 %v4174_v35, %v2531_v32  ;;  %v2551_v42 = vadd.f32 %v4172_v34, %v2532_v33  ;;  %v2552_v47 = vadd.f32 %v4174_v35, %v2533_v36 }
 0x233   : > { %v2553_v54 = vmax.f32 %v2545_v48, 0.0  ;;  %v2554_v55 = vmax.f32 %v2546_v51, 0.0  ;;  %v2555_v57 = vmax.f32 %v2547_v38, 0.0  ;;  %v2556_v58 = vmax.f32 %v2548_v43, 0.0 }
 0x234   : > { %v2557_v0 = vmax.f32 %v2549_v52, 0.0  ;;  %v2558_v6 = vmax.f32 %v2550_v53, 0.0  ;;  %v2559_v60 = vmax.f32 %v2551_v42, 0.0  ;;  %v2560_v13 = vmax.f32 %v2552_v47, 0.0 }
 0x235   : > { %v3179_v18 = vpack.c.bf16 %v2554_v55, %v2553_v54  ;;  %v3180_v26 = vpack.c.bf16 %v2556_v58, %v2555_v57  ;;  %v2610_v27 = vadd.f32 %v2602_v37, %v4172_v34  ;;  %v2611_v29 = vadd.f32 %v2603_v39, %v4174_v35 }
 0x236   : > { %v3181_v28 = vpack.c.bf16 %v2558_v6, %v2557_v0  ;;  %v3182_v30 = vpack.c.bf16 %v2560_v13, %v2559_v60  ;;  %v2612_v31 = vadd.f32 %v2604_v40, %v4172_v34  ;;  %v2613_v32 = vadd.f32 %v2605_v41, %v4174_v35 }
 0x237   : > { %2585 = vst [vmem:[%s4326_s4] sm:$0xff] %v3179_v18  ;;  %2586 = vst [vmem:[%s4326_s4 + $0x8] sm:$0xff] %v3180_v26  ;;  %v2618_v33 = vmax.f32 %v2610_v27, 0.0  ;;  %v2619_v36 = vmax.f32 %v2611_v29, 0.0  ;;  %v2607_v37 = vmul.f32 %v2599_v1, %v4158_v20  ;;  %v2614_v39 = vadd.f32 %v2606_v44, %v4172_v34 }
 0x238   : > { %2587 = vst [vmem:[%s4326_s4 + $0x10] sm:$0xff] %v3181_v28  ;;  %2588 = vst [vmem:[%s4326_s4 + $0x18] sm:$0xff] %v3182_v30  ;;  %v2620_v40 = vmax.f32 %v2612_v31, 0.0  ;;  %v2621_v41 = vmax.f32 %v2613_v32, 0.0  ;;  %v2608_v48 = vmul.f32 %v2600_v2, %v4156_v19  ;;  %v2609_v49 = vmul.f32 %v2601_v3, %v4158_v20 }
 0x239   : > { %v3183_v1 = vpack.c.bf16 %v2619_v36, %v2618_v33  ;;  %v2615_v44 = vadd.f32 %v2607_v37, %v4174_v35  ;;  %v2622_v51 = vmax.f32 %v2614_v39, 0.0  ;;  %v2667_v38 = vmul.f32 %v2659_v7, %v4156_v19 }
 0x23a   : > { %v3184_v43 = vpack.c.bf16 %v2621_v41, %v2620_v40  ;;  %v2616_v52 = vadd.f32 %v2608_v48, %v4172_v34  ;;  %v2617_v53 = vadd.f32 %v2609_v49, %v4174_v35  ;;  %v2668_v2 = vmul.f32 %v2660_v56, %v4158_v20 }
 0x23b   : > { %3142 = vst [vmem:[%s4326_s4 + $0x20] sm:$0xff] %v3183_v1  ;;  %v2623_v50 = vmax.f32 %v2615_v44, 0.0  ;;  %v2675_v3 = vadd.f32 %v2667_v38, %v4172_v34  ;;  %v2669_v7 = vmul.f32 %v2661_v59, %v4156_v19  ;;  %v2670_v42 = vmul.f32 %v2662_v8, %v4158_v20 }
 0x23c   : > { %3143 = vst [vmem:[%s4326_s4 + $0x28] sm:$0xff] %v3184_v43  ;;  %v2624_v45 = vmax.f32 %v2616_v52, 0.0  ;;  %v2625_v56 = vmax.f32 %v2617_v53, 0.0  ;;  %v2676_v47 = vadd.f32 %v2668_v2, %v4174_v35  ;;  %v2671_v54 = vmul.f32 %v2663_v61, %v4156_v19 }
 0x23d   : > { %v3185_v55 = vpack.c.bf16 %v2623_v50, %v2622_v51  ;;  %v2683_v57 = vmax.f32 %v2675_v3, 0.0  ;;  %v2677_v59 = vadd.f32 %v2669_v7, %v4172_v34  ;;  %v2678_v58 = vadd.f32 %v2670_v42, %v4174_v35 }
 0x23e   : > { %v3186_v46 = vpack.c.bf16 %v2625_v56, %v2624_v45  ;;  %v2684_v8 = vmax.f32 %v2676_v47, 0.0  ;;  %v2672_v0 = vmul.f32 %v2664_v9, %v4158_v20  ;;  %v2679_v6 = vadd.f32 %v2671_v54, %v4172_v34 }
 0x23f   : > { %3144 = vst [vmem:[%s4326_s4 + $0x30] sm:$0xff] %v3185_v55  ;;  %v2685_v60 = vmax.f32 %v2677_v59, 0.0  ;;  %v2686_v61 = vmax.f32 %v2678_v58, 0.0  ;;  %v2673_v13 = vmul.f32 %v2665_v10, %v4156_v19  ;;  %v2674_v18 = vmul.f32 %v2666_v14, %v4158_v20 }
 0x240   : > { %3145 = vst [vmem:[%s4326_s4 + $0x38] sm:$0xff] %v3186_v46  ;;  %v3187_v62 = vpack.c.bf16 %v2684_v8, %v2683_v57  ;;  %v2680_v9 = vadd.f32 %v2672_v0, %v4174_v35  ;;  %v2687_v26 = vmax.f32 %v2679_v6, 0.0  ;;  %v2732_v27 = vmul.f32 %v2724_v15, %v4156_v19 }
 0x241   : > { %v3188_v29 = vpack.c.bf16 %v2686_v61, %v2685_v60  ;;  %v2681_v28 = vadd.f32 %v2673_v13, %v4172_v34  ;;  %v2682_v10 = vadd.f32 %v2674_v18, %v4174_v35  ;;  %v2733_v63 = vmul.f32 %v2725_v16, %v4158_v20 }
 0x242   : > { %3154 = vst [vmem:[%s4326_s4 + $0x40] sm:$0xff] %v3187_v62  ;;  %v2688_v14 = vmax.f32 %v2680_v9, 0.0  ;;  %v2740_v30 = vadd.f32 %v2732_v27, %v4172_v34  ;;  %v2734_v15 = vmul.f32 %v2726_v17, %v4156_v19  ;;  %v2735_v31 = vmul.f32 %v2727_v21, %v4158_v20 }
 0x243   : > { %3155 = vst [vmem:[%s4326_s4 + $0x48] sm:$0xff] %v3188_v29  ;;  %v2689_v4 = vmax.f32 %v2681_v28, 0.0  ;;  %v2690_v16 = vmax.f32 %v2682_v10, 0.0  ;;  %v2741_v32 = vadd.f32 %v2733_v63, %v4174_v35  ;;  %v2736_v33 = vmul.f32 %v2728_v22, %v4156_v19 }
 0x244   : > { %v3189_v36 = vpack.c.bf16 %v2688_v14, %v2687_v26  ;;  %v2748_v37 = vmax.f32 %v2740_v30, 0.0  ;;  %v2742_v17 = vadd.f32 %v2734_v15, %v4172_v34  ;;  %v2743_v39 = vadd.f32 %v2735_v31, %v4174_v35 }
 0x245   : > { %v3190_v5 = vpack.c.bf16 %v2690_v16, %v2689_v4  ;;  %v2749_v21 = vmax.f32 %v2741_v32, 0.0  ;;  %v2737_v40 = vmul.f32 %v2729_v23, %v4158_v20  ;;  %v2744_v41 = vadd.f32 %v2736_v33, %v4172_v34 }
 0x246   : > { %3156 = vst [vmem:[%s4326_s4 + $0x50] sm:$0xff] %v3189_v36  ;;  %v2750_v48 = vmax.f32 %v2742_v17, 0.0  ;;  %v2751_v22 = vmax.f32 %v2743_v39, 0.0  ;;  %v2738_v49 = vmul.f32 %v2730_v24, %v4156_v19  ;;  %v2739_v1 = vmul.f32 %v2731_v25, %v4158_v20 }
 0x247   : > { %3157 = vst [vmem:[%s4326_s4 + $0x58] sm:$0xff] %v3190_v5  ;;  %v3191_v11 = vpack.c.bf16 %v2749_v21, %v2748_v37  ;;  %v2745_v23 = vadd.f32 %v2737_v40, %v4174_v35  ;;  %v2752_v44 = vmax.f32 %v2744_v41, 0.0 }
 0x248   : > { %v3192_v51 = vpack.c.bf16 %v2751_v22, %v2750_v48  ;;  %v2746_v38 = vadd.f32 %v2738_v49, %v4172_v34  ;;  %v2747_v43 = vadd.f32 %v2739_v1, %v4174_v35 }
 0x249   : > { %3166 = vst [vmem:[%s4326_s4 + $0x60] sm:$0xff] %v3191_v11  ;;  %v2753_v19 = vmax.f32 %v2745_v23, 0.0 }
 0x24a   : > { %3167 = vst [vmem:[%s4326_s4 + $0x68] sm:$0xff] %v3192_v51  ;;  %v2754_v12 = vmax.f32 %v2746_v38, 0.0  ;;  %v2755_v20 = vmax.f32 %v2747_v43, 0.0 }
 0x24b   : > { %v3193_v24 = vpack.c.bf16 %v2753_v19, %v2752_v44 }
 0x24c   : > { %v3194_v25 = vpack.c.bf16 %v2755_v20, %v2754_v12 }
 0x24d   : > { %3168 = vst [vmem:[%s4326_s4 + $0x70] sm:$0xff] %v3193_v24 }
 0x24e   : > { %3169 = vst [vmem:[%s4326_s4 + $0x78] sm:$0xff] %v3194_v25 }
 0x24f PF: > { %s14_s15 = sadd.s32 1, %s3653_s15  }
 0x250   : > { %p11_p6 = scmp.ge.s32.totalorder %s14_s15, 6  }
 0x252   :  { %13 = sbr.rel (!%p11_p6) target bundleno = 1 (0x1), region = 77 }

// kernel: generator_forward.6
= control target key start
LH: loop header
LB: loop body
LE: loop exit
PB: predicated region body
PF: predicated region fallthrough
CT: control target
= control target key end

     0   :  { %s3518_s15 = smov 0   ;;  %s4426_s0 = inlined_call_operand.vmem [shape: bf16[4,128,1024], index: 0, kind: input, shape index: {}]   ;;  %s4427_s1 = inlined_call_operand.vmem [shape: bf16[4,1024,128], index: 1, kind: input, shape index: {}]   ;;  %s4428_s2 = inlined_call_operand.vmem [shape: f32[1,128], index: 2, kind: input, shape index: {}]   ;;  %s4429_s3 = inlined_call_operand.vmem [shape: f32[1,128], index: 3, kind: input, shape index: {}]   ;;  %s4430_s4 = inlined_call_operand.vmem [shape: bf16[4,128,128], index: 4, kind: output, shape index: {}]  }
   0x1 LB: > { %s3524_s16 = sadd.s32 4294967295, %s3490_s15   ;;  %p2358_p0 = scmp.ge.s32.totalorder %s3490_s15, 1  ;;  %s3490_s15 = sphi %s3518_s15, %s14_s15  }
   0x2   : > { %p167_p1 = scmp.lt.s32.totalorder %s3490_s15, 5 }
   0x4   : > { %p168_p2 = pnand %p2358_p0, %p167_p1 }
   0x5   : > { %p193_p3 = scmp.lt.s32.totalorder (!%p168_p2), %s3524_s16, 3  ;;  %p2491_p4 = scmp.ne.s32.totalorder (!%p168_p2), %s3524_s16, 0 }
   0x6   : > { %171 = sbr.rel (%p168_p2) target bundleno = 540 (0x21c), region = 36 }
   0xd   : > { %s3530_s17 = scalar_select %p193_p3, %s3524_s16, 3 }
   0xf   : > { %s2673_s18 = sshll.u32 %s3530_s17, 9 }
  0x10   : > { %s3538_s21 = scalar_lea.vmem %s4427_s1, %s2673_s18  ;;  %s3575_s24 = scalar_lea.vmem %s4426_s0, %s2673_s18 }
  0x11   : > { %v3418_v0 = vld [vmem:[%s3538_s21 + $0x40] sm:$0xff]   ;;  %v3422_v4 = vld [vmem:[%s3538_s21 + $0x48] sm:$0xff]   ;;  %v3426_v8 = vld [vmem:[%s3538_s21 + $0x50] sm:$0xff]  }
  0x12   : > { %v3419_v1 = vld [vmem:[%s3538_s21 + $0xc0] sm:$0xff]   ;;  %3153 = vmatprep.subr.bf16.mxu0 %v3418_v0  ;;  %v3423_v5 = vld [vmem:[%s3538_s21 + $0xc8] sm:$0xff]   ;;  %v3427_v9 = vld [vmem:[%s3538_s21 + $0xd0] sm:$0xff]  }
  0x13   : > { %v3420_v2 = vld [vmem:[%s3538_s21] sm:$0xff]   ;;  %3217 = vmatprep.subr.bf16.mxu1 %v3419_v1  ;;  %v3424_v6 = vld [vmem:[%s3538_s21 + $0x8] sm:$0xff]   ;;  %v3428_v10 = vld [vmem:[%s3538_s21 + $0x10] sm:$0xff]  }
  0x14   : > { %v3421_v3 = vld [vmem:[%s3538_s21 + $0x80] sm:$0xff]   ;;  %3154 = vmatpush3.bf16.msra.mxu0 %v3420_v2  ;;  %v3425_v7 = vld [vmem:[%s3538_s21 + $0x88] sm:$0xff]   ;;  %v3429_v11 = vld [vmem:[%s3538_s21 + $0x90] sm:$0xff]  }
  0x15   : > { %3218 = vmatpush3.bf16.msra.mxu1 %v3421_v3  ;;  %3155 = vmatprep.subr.bf16.mxu0 %v3422_v4  ;;  %v3430_v12 = vld [vmem:[%s3538_s21 + $0x58] sm:$0xff]   ;;  %v3434_v16 = vld [vmem:[%s3538_s21 + $0x60] sm:$0xff]   ;;  %v3438_v20 = vld [vmem:[%s3538_s21 + $0x68] sm:$0xff]  }
  0x16   : > { %3219 = vmatprep.subr.bf16.mxu1 %v3423_v5  ;;  %v3431_v13 = vld [vmem:[%s3538_s21 + $0xd8] sm:$0xff]   ;;  %v3435_v17 = vld [vmem:[%s3538_s21 + $0xe0] sm:$0xff]   ;;  %v3439_v21 = vld [vmem:[%s3538_s21 + $0xe8] sm:$0xff]  }
  0x17   : > { %v3432_v14 = vld [vmem:[%s3538_s21 + $0x18] sm:$0xff]   ;;  %v3436_v18 = vld [vmem:[%s3538_s21 + $0x20] sm:$0xff]   ;;  %v3440_v22 = vld [vmem:[%s3538_s21 + $0x28] sm:$0xff]  }
  0x18   : > { %3156 = vmatpush3.bf16.msra.mxu0 %v3424_v6  ;;  %v3433_v15 = vld [vmem:[%s3538_s21 + $0x98] sm:$0xff]   ;;  %v3437_v19 = vld [vmem:[%s3538_s21 + $0xa0] sm:$0xff]   ;;  %v3441_v23 = vld [vmem:[%s3538_s21 + $0xa8] sm:$0xff]  }
  0x19   : > { %3220 = vmatpush3.bf16.msra.mxu1 %v3425_v7  ;;  %3157 = vmatprep.subr.bf16.mxu0 %v3426_v8  ;;  %v3442_v24 = vld [vmem:[%s3538_s21 + $0x70] sm:$0xff]   ;;  %v3446_v28 = vld [vmem:[%s3538_s21 + $0x78] sm:$0xff]   ;;  %v204_v32 = vld [vmem:[%s3575_s24] sm:$0xff] }
  0x1a   : > { %3221 = vmatprep.subr.bf16.mxu1 %v3427_v9  ;;  %v3443_v25 = vld [vmem:[%s3538_s21 + $0xf0] sm:$0xff]   ;;  %v3447_v29 = vld [vmem:[%s3538_s21 + $0xf8] sm:$0xff]   ;;  %v208_v33 = vld [vmem:[%s3575_s24 + $0x20] sm:$0xff] }
  0x1b   : > { %v3444_v26 = vld [vmem:[%s3538_s21 + $0x30] sm:$0xff]   ;;  %v3448_v30 = vld [vmem:[%s3538_s21 + $0x38] sm:$0xff]   ;;  %v205_v34 = vld [vmem:[%s3575_s24 + $0x8] sm:$0xff]  ;;  %v2363_v35 = vcombine.low %v204_v32, %v208_v33  ;;  %v2364_v36 = vcombine.high %v204_v32, %v208_v33 }
  0x1c   : > { %3158 = vmatpush3.bf16.msra.mxu0 %v3428_v10  ;;  %v3445_v27 = vld [vmem:[%s3538_s21 + $0xb0] sm:$0xff]   ;;  %v3449_v31 = vld [vmem:[%s3538_s21 + $0xb8] sm:$0xff]   ;;  %v209_v37 = vld [vmem:[%s3575_s24 + $0x28] sm:$0xff] }
  0x1d   : > { %3222 = vmatpush3.bf16.msra.mxu1 %v3429_v11  ;;  %3159 = vmatprep.subr.bf16.mxu0 %v3430_v12  ;;  %v2365_v38 = vcombine.low %v205_v34, %v209_v37  ;;  %v2366_v39 = vcombine.high %v205_v34, %v209_v37  ;;  %v3450_v40 = vld [vmem:[%s3538_s21 + $0x140] sm:$0xff]   ;;  %v213_v47 = vld [vmem:[%s3575_s24 + $0x48] sm:$0xff]  ;;  %v3458_v62 = vld [vmem:[%s3538_s21 + $0x150] sm:$0xff]  }
  0x1e   : > { %3223 = vmatprep.subr.bf16.mxu1 %v3431_v13  ;;  %1132 = vmatprep.mubr.bf16.mxu0 %v2364_v36  ;;  %v3451_v41 = vld [vmem:[%s3538_s21 + $0x100] sm:$0xff]   ;;  %v217_v48 = vld [vmem:[%s3575_s24 + $0x68] sm:$0xff]  ;;  %v3459_v63 = vld [vmem:[%s3538_s21 + $0x110] sm:$0xff]  }
  0x1f   : > { %1229 = vmatprep.mubr.bf16.mxu1 %v2366_v39  ;;  %v3452_v42 = vld [vmem:[%s3538_s21 + $0x1c0] sm:$0xff]   ;;  %v2374_v49 = vcombine.high %v213_v47, %v217_v48  ;;  %v3454_v50 = vld [vmem:[%s3538_s21 + $0x148] sm:$0xff]   ;;  %v2373_v53 = vcombine.low %v213_v47, %v217_v48  ;;  %v3460_v0 = vld [vmem:[%s3538_s21 + $0x1d0] sm:$0xff]  }
  0x20   : > { %3160 = vmatpush3.bf16.msra.mxu0 %v3432_v14  ;;  %v3453_v43 = vld [vmem:[%s3538_s21 + $0x180] sm:$0xff]   ;;  %v3455_v52 = vld [vmem:[%s3538_s21 + $0x108] sm:$0xff]   ;;  %v3461_v1 = vld [vmem:[%s3538_s21 + $0x190] sm:$0xff]  }
  0x21   : > { %3224 = vmatpush3.bf16.msra.mxu1 %v3433_v15  ;;  %3161 = vmatprep.subr.bf16.mxu0 %v3434_v16  ;;  %v212_v44 = vld [vmem:[%s3575_s24 + $0x40] sm:$0xff]  ;;  %v3456_v54 = vld [vmem:[%s3538_s21 + $0x1c8] sm:$0xff]   ;;  %v3462_v10 = vld [vmem:[%s3538_s21 + $0x158] sm:$0xff]  }
  0x22   : > { %3225 = vmatprep.subr.bf16.mxu1 %v3435_v17  ;;  %v216_v45 = vld [vmem:[%s3575_s24 + $0x60] sm:$0xff]  ;;  %v3457_v55 = vld [vmem:[%s3538_s21 + $0x188] sm:$0xff]   ;;  %v3463_v11 = vld [vmem:[%s3538_s21 + $0x118] sm:$0xff]  }
  0x23   : > { %v2372_v46 = vcombine.high %v212_v44, %v216_v45  ;;  %v2371_v51 = vcombine.low %v212_v44, %v216_v45  ;;  %v220_v56 = vld [vmem:[%s3575_s24 + $0x80] sm:$0xff]  ;;  %v221_v58 = vld [vmem:[%s3575_s24 + $0x88] sm:$0xff]  ;;  %v3464_v12 = vld [vmem:[%s3538_s21 + $0x1d8] sm:$0xff]  }
  0x24   : > { %3162 = vmatpush3.bf16.msra.mxu0 %v3436_v18  ;;  %v224_v57 = vld [vmem:[%s3575_s24 + $0xa0] sm:$0xff]  ;;  %v225_v59 = vld [vmem:[%s3575_s24 + $0xa8] sm:$0xff]  ;;  %v3465_v13 = vld [vmem:[%s3538_s21 + $0x198] sm:$0xff]  }
  0x25   : > { %3226 = vmatpush3.bf16.msra.mxu1 %v3437_v19  ;;  %3163 = vmatprep.subr.bf16.mxu0 %v3438_v20  ;;  %v2380_v60 = vcombine.high %v220_v56, %v224_v57  ;;  %v2382_v61 = vcombine.high %v221_v58, %v225_v59  ;;  %v2379_v2 = vcombine.low %v220_v56, %v224_v57  ;;  %v228_v3 = vld [vmem:[%s3575_s24 + $0xc0] sm:$0xff]  ;;  %v229_v5 = vld [vmem:[%s3575_s24 + $0xc8] sm:$0xff]  ;;  %v3475_v39 = vld [vmem:[%s3538_s21 + $0x130] sm:$0xff]  }
  0x26   : > { %3227 = vmatprep.subr.bf16.mxu1 %v3439_v21  ;;  %v232_v4 = vld [vmem:[%s3575_s24 + $0xe0] sm:$0xff]  ;;  %v2381_v6 = vcombine.low %v221_v58, %v225_v59  ;;  %v233_v8 = vld [vmem:[%s3575_s24 + $0xe8] sm:$0xff]  ;;  %v3479_v48 = vld [vmem:[%s3538_s21 + $0x138] sm:$0xff]  }
  0x27   : > { %v2388_v7 = vcombine.high %v228_v3, %v232_v4  ;;  %v2390_v9 = vcombine.high %v229_v5, %v233_v8  ;;  %v236_v14 = vld [vmem:[%s3575_s24 + $0x100] sm:$0xff]  ;;  %v237_v16 = vld [vmem:[%s3575_s24 + $0x108] sm:$0xff]  ;;  %v2387_v19 = vcombine.low %v228_v3, %v232_v4  ;;  %v2389_v21 = vcombine.low %v229_v5, %v233_v8  ;;  %v215_v8 = vld [vmem:[%s3575_s24 + $0x58] sm:$0xff] }
  0x28   : > { %3164 = vmatpush3.bf16.msra.mxu0 %v3440_v22  ;;  %v240_v15 = vld [vmem:[%s3575_s24 + $0x120] sm:$0xff]  ;;  %v241_v17 = vld [vmem:[%s3575_s24 + $0x128] sm:$0xff] }
  0x29   : > { %3228 = vmatpush3.bf16.msra.mxu1 %v3441_v23  ;;  %3165 = vmatprep.subr.bf16.mxu0 %v3442_v24  ;;  %v3466_v18 = vld [vmem:[%s3538_s21 + $0x160] sm:$0xff]   ;;  %v2396_v22 = vcombine.high %v236_v14, %v240_v15  ;;  %v2398_v24 = vcombine.high %v237_v16, %v241_v17  ;;  %v3472_v32 = vld [vmem:[%s3538_s21 + $0x1e8] sm:$0xff]   ;;  %v2395_v34 = vcombine.low %v236_v14, %v240_v15  ;;  %v222_v14 = vld [vmem:[%s3575_s24 + $0x90] sm:$0xff] }
  0x2a   : > { %3229 = vmatprep.subr.bf16.mxu1 %v3443_v25  ;;  %v3467_v20 = vld [vmem:[%s3538_s21 + $0x120] sm:$0xff]   ;;  %v3473_v33 = vld [vmem:[%s3538_s21 + $0x1a8] sm:$0xff]   ;;  %v226_v15 = vld [vmem:[%s3575_s24 + $0xb0] sm:$0xff] }
  0x2b   : > { %v3468_v23 = vld [vmem:[%s3538_s21 + $0x1e0] sm:$0xff]   ;;  %v253_v44 = vld [vmem:[%s3575_s24 + $0x188] sm:$0xff] }
  0x2c   : > { %3166 = vmatpush3.bf16.msra.mxu0 %v3444_v26  ;;  %v3469_v25 = vld [vmem:[%s3538_s21 + $0x1a0] sm:$0xff]   ;;  %v257_v45 = vld [vmem:[%s3575_s24 + $0x1a8] sm:$0xff] }
  0x2d   : > { %3230 = vmatpush3.bf16.msra.mxu1 %v3445_v27  ;;  %3167 = vmatprep.subr.bf16.mxu0 %v3446_v28  ;;  %v244_v26 = vld [vmem:[%s3575_s24 + $0x140] sm:$0xff]  ;;  %v3470_v28 = vld [vmem:[%s3538_s21 + $0x168] sm:$0xff]   ;;  %v2413_v59 = vcombine.low %v253_v44, %v257_v45 }
  0x2e   : > { %3231 = vmatprep.subr.bf16.mxu1 %v3447_v29  ;;  %v248_v27 = vld [vmem:[%s3575_s24 + $0x160] sm:$0xff]  ;;  %v245_v29 = vld [vmem:[%s3575_s24 + $0x148] sm:$0xff] }
  0x2f   : > { %v2404_v36 = vcombine.high %v244_v26, %v248_v27  ;;  %v2403_v47 = vcombine.low %v244_v26, %v248_v27  ;;  %v261_v56 = vld [vmem:[%s3575_s24 + $0x1c8] sm:$0xff]  ;;  %v2383_v26 = vcombine.low %v222_v14, %v226_v15 }
  0x30   : > { %3168 = vmatpush3.bf16.msra.mxu0 %v3448_v30  ;;  %v249_v30 = vld [vmem:[%s3575_s24 + $0x168] sm:$0xff] }
  0x31   : > { %3232 = vmatpush3.bf16.msra.mxu1 %v3449_v31  ;;  %3281 = vmatprep.subr.bf16.mxu0 %v3450_v40  ;;  %v3471_v31 = vld [vmem:[%s3538_s21 + $0x128] sm:$0xff]   ;;  %v2406_v37 = vcombine.high %v245_v29, %v249_v30  ;;  %v3476_v40 = vld [vmem:[%s3538_s21 + $0x1f0] sm:$0xff]  }
  0x32   : > { %3345 = vmatprep.subr.bf16.mxu1 %v3452_v42  ;;  %v256_v42 = vld [vmem:[%s3575_s24 + $0x1a0] sm:$0xff]  ;;  %v265_v57 = vld [vmem:[%s3575_s24 + $0x1e8] sm:$0xff] }
  0x33   : > { %1133 = vmatmul.mubr.bf16.vlgmr.msra.gmra.mrb[0].mxu0 %v2363_v35  ;;  %v2397_v35 = vcombine.low %v237_v16, %v241_v17  ;;  %v2421_v3 = vcombine.low %v261_v56, %v265_v57  ;;  %v223_v16 = vld [vmem:[%s3575_s24 + $0x98] sm:$0xff] }
  0x34   : > { %1230 = vmatmul.mubr.bf16.vlgmr.msra.gmra.mrb[0].mxu1 %v2365_v38  ;;  %3282 = vmatpush3.bf16.msra.mxu0 %v3451_v41  ;;  %v3474_v38 = vld [vmem:[%s3538_s21 + $0x170] sm:$0xff]   ;;  %v252_v41 = vld [vmem:[%s3575_s24 + $0x180] sm:$0xff]  ;;  %v227_v17 = vld [vmem:[%s3575_s24 + $0xb8] sm:$0xff] }
  0x35   : > { %3346 = vmatpush3.bf16.msra.mxu1 %v3453_v43  ;;  %1140 = vmatprep.mubr.bf16.mxu0 %v2372_v46  ;;  %v3477_v43 = vld [vmem:[%s3538_s21 + $0x1b0] sm:$0xff]   ;;  %v3478_v46 = vld [vmem:[%s3538_s21 + $0x178] sm:$0xff]   ;;  %v2411_v58 = vcombine.low %v252_v41, %v256_v42  ;;  %v2385_v27 = vcombine.low %v223_v16, %v227_v17 }
  0x36   : > { %1237 = vmatprep.mubr.bf16.mxu1 %v2374_v49  ;;  %3283 = vmatprep.subr.bf16.mxu0 %v3454_v50  ;;  %v2405_v49 = vcombine.low %v245_v29, %v249_v30  ;;  %v2412_v50 = vcombine.high %v252_v41, %v256_v42  ;;  %v238_v30 = vld [vmem:[%s3575_s24 + $0x110] sm:$0xff]  ;;  %v251_v41 = vld [vmem:[%s3575_s24 + $0x178] sm:$0xff] }
  0x37   : > { %3347 = vmatprep.subr.bf16.mxu1 %v3456_v54  ;;  %v260_v54 = vld [vmem:[%s3575_s24 + $0x1c0] sm:$0xff] }
  0x38   : > { %3284 = vmatpush3.bf16.msra.mxu0 %v3455_v52  ;;  %v2414_v52 = vcombine.high %v253_v44, %v257_v45 }
  0x39   : > { %3348 = vmatpush3.bf16.msra.mxu1 %v3457_v55  ;;  %3285 = vmatprep.subr.bf16.mxu0 %v3458_v62  ;;  %v264_v55 = vld [vmem:[%s3575_s24 + $0x1e0] sm:$0xff]  ;;  %v206_v62 = vld [vmem:[%s3575_s24 + $0x10] sm:$0xff] }
  0x3a   : > { %3349 = vmatprep.subr.bf16.mxu1 %v3460_v0  ;;  %v207_v0 = vld [vmem:[%s3575_s24 + $0x18] sm:$0xff] }
  0x3b   : > { %1141 = vmatmul.mubr.bf16.gmra.mrb[4].mxu0 %v2371_v51  ;;  %v3480_v51 = vld [vmem:[%s3538_s21 + $0x1f8] sm:$0xff]  }
  0x3c   : > { %1238 = vmatmul.mubr.bf16.gmra.mrb[4].mxu1 %v2373_v53  ;;  %1148 = vmatprep.mubr.bf16.mxu0 %v2380_v60  ;;  %v3481_v53 = vld [vmem:[%s3538_s21 + $0x1b8] sm:$0xff]   ;;  %v2420_v60 = vcombine.high %v260_v54, %v264_v55 }
  0x3d   : > { %1245 = vmatprep.mubr.bf16.mxu1 %v2382_v61  ;;  %3286 = vmatpush3.bf16.msra.mxu0 %v3459_v63  ;;  %v2422_v61 = vcombine.high %v261_v56, %v265_v57  ;;  %v210_v63 = vld [vmem:[%s3575_s24 + $0x30] sm:$0xff]  ;;  %v263_v56 = vld [vmem:[%s3575_s24 + $0x1d8] sm:$0xff] }
  0x3e   : > { %3350 = vmatpush3.bf16.msra.mxu1 %v3461_v1  ;;  %3287 = vmatprep.subr.bf16.mxu0 %v3462_v10  ;;  %v211_v1 = vld [vmem:[%s3575_s24 + $0x38] sm:$0xff]  ;;  %v2368_v4 = vcombine.high %v206_v62, %v210_v63  ;;  %v2367_v10 = vcombine.low %v206_v62, %v210_v63 }
  0x3f   : > { %3351 = vmatprep.subr.bf16.mxu1 %v3464_v12  ;;  %v2370_v5 = vcombine.high %v207_v0, %v211_v1  ;;  %v267_v57 = vld [vmem:[%s3575_s24 + $0x1f8] sm:$0xff] }
  0x40   : > { %v2425_v63 = vcombine.low %v263_v56, %v267_v57 }
  0x41   : > { %3288 = vmatpush3.bf16.msra.mxu0 %v3463_v11  ;;  %v2369_v11 = vcombine.low %v207_v0, %v211_v1 }
  0x42   : > { %3352 = vmatpush3.bf16.msra.mxu1 %v3465_v13  ;;  %3289 = vmatprep.subr.bf16.mxu0 %v3466_v18 }
  0x43   : > { %1149 = vmatmul.mubr.bf16.gmra.mrb[8].mxu0 %v2379_v2  ;;  %3353 = vmatprep.subr.bf16.mxu1 %v3468_v23  ;;  %v2419_v2 = vcombine.low %v260_v54, %v264_v55  ;;  %v234_v23 = vld [vmem:[%s3575_s24 + $0xf0] sm:$0xff] }
  0x44   : > { %1246 = vmatmul.mubr.bf16.gmra.mrb[8].mxu1 %v2381_v6  ;;  %1156 = vmatprep.mubr.bf16.mxu0 %v2388_v7  ;;  %v214_v6 = vld [vmem:[%s3575_s24 + $0x50] sm:$0xff] }
  0x45   : > { %1253 = vmatprep.mubr.bf16.mxu1 %v2390_v9  ;;  %3290 = vmatpush3.bf16.msra.mxu0 %v3467_v20  ;;  %v218_v7 = vld [vmem:[%s3575_s24 + $0x70] sm:$0xff]  ;;  %v219_v9 = vld [vmem:[%s3575_s24 + $0x78] sm:$0xff]  ;;  %v2384_v20 = vcombine.high %v222_v14, %v226_v15 }
  0x46   : > { %3354 = vmatpush3.bf16.msra.mxu1 %v3469_v25  ;;  %3291 = vmatprep.subr.bf16.mxu0 %v3470_v28  ;;  %v2376_v12 = vcombine.high %v214_v6, %v218_v7  ;;  %v2378_v13 = vcombine.high %v215_v8, %v219_v9  ;;  %v2375_v18 = vcombine.low %v214_v6, %v218_v7  ;;  %v235_v25 = vld [vmem:[%s3575_s24 + $0xf8] sm:$0xff]  ;;  %v262_v54 = vld [vmem:[%s3575_s24 + $0x1d0] sm:$0xff] }
  0x47   : > { %3355 = vmatprep.subr.bf16.mxu1 %v3472_v32  ;;  %v239_v32 = vld [vmem:[%s3575_s24 + $0x118] sm:$0xff]  ;;  %v266_v55 = vld [vmem:[%s3575_s24 + $0x1f0] sm:$0xff] }
  0x48   : > { %v2423_v62 = vcombine.low %v262_v54, %v266_v55 }
  0x49   : > { %3292 = vmatpush3.bf16.msra.mxu0 %v3471_v31  ;;  %v242_v31 = vld [vmem:[%s3575_s24 + $0x130] sm:$0xff] }
  0x4a   : > { %3356 = vmatpush3.bf16.msra.mxu1 %v3473_v33  ;;  %3293 = vmatprep.subr.bf16.mxu0 %v3474_v38  ;;  %v243_v33 = vld [vmem:[%s3575_s24 + $0x138] sm:$0xff]  ;;  %v246_v38 = vld [vmem:[%s3575_s24 + $0x150] sm:$0xff]  ;;  %v2399_v42 = vcombine.low %v238_v30, %v242_v31 }
  0x4b   : > { %1157 = vmatmul.mubr.bf16.gmra.mrb[12].mxu0 %v2387_v19  ;;  %3357 = vmatprep.subr.bf16.mxu1 %v3476_v40  ;;  %v2377_v19 = vcombine.low %v215_v8, %v219_v9  ;;  %v247_v40 = vld [vmem:[%s3575_s24 + $0x158] sm:$0xff] }
  0x4c   : > { %1254 = vmatmul.mubr.bf16.gmra.mrb[12].mxu1 %v2389_v21  ;;  %1164 = vmatprep.mubr.bf16.mxu0 %v2396_v22  ;;  %v2386_v21 = vcombine.high %v223_v16, %v227_v17  ;;  %v230_v22 = vld [vmem:[%s3575_s24 + $0xd0] sm:$0xff]  ;;  %v2410_v45 = vcombine.high %v247_v40, %v251_v41 }
  0x4d   : > { %1261 = vmatprep.mubr.bf16.mxu1 %v2398_v24  ;;  %3294 = vmatpush3.bf16.msra.mxu0 %v3475_v39  ;;  %v231_v24 = vld [vmem:[%s3575_s24 + $0xd8] sm:$0xff]  ;;  %v2392_v28 = vcombine.high %v230_v22, %v234_v23  ;;  %v250_v39 = vld [vmem:[%s3575_s24 + $0x170] sm:$0xff] }
  0x4e   : > { %3358 = vmatpush3.bf16.msra.mxu1 %v3477_v43  ;;  %3295 = vmatprep.subr.bf16.mxu0 %v3478_v46  ;;  %v2394_v29 = vcombine.high %v231_v24, %v235_v25  ;;  %v2401_v43 = vcombine.low %v239_v32, %v243_v33  ;;  %v2408_v44 = vcombine.high %v246_v38, %v250_v39  ;;  %v254_v46 = vld [vmem:[%s3575_s24 + $0x190] sm:$0xff] }
  0x4f   : > { %3359 = vmatprep.subr.bf16.mxu1 %v3480_v51  ;;  %v2409_v51 = vcombine.low %v247_v40, %v251_v41 }
  0x51   : > { %3296 = vmatpush3.bf16.msra.mxu0 %v3479_v48  ;;  %v255_v48 = vld [vmem:[%s3575_s24 + $0x198] sm:$0xff] }
  0x52   : > { %3360 = vmatpush3.bf16.msra.mxu1 %v3481_v53 }
  0x53   : > { %1165 = vmatmul.mubr.bf16.gmra.mrb[16].mxu0 %v2395_v34  ;;  %v2391_v34 = vcombine.low %v230_v22, %v234_v23 }
  0x54   : > { %1262 = vmatmul.mubr.bf16.gmra.mrb[16].mxu1 %v2397_v35  ;;  %1172 = vmatprep.mubr.bf16.mxu0 %v2404_v36  ;;  %v2393_v35 = vcombine.low %v231_v24, %v235_v25  ;;  %v2400_v36 = vcombine.high %v238_v30, %v242_v31 }
  0x55   : > { %1269 = vmatprep.mubr.bf16.mxu1 %v2406_v37  ;;  %v2402_v37 = vcombine.high %v239_v32, %v243_v33 }
  0x5b   : > { %1173 = vmatmul.mubr.bf16.gmra.mrb[20].mxu0 %v2403_v47  ;;  %v258_v47 = vld [vmem:[%s3575_s24 + $0x1b0] sm:$0xff] }
  0x5c   : > { %1270 = vmatmul.mubr.bf16.gmra.mrb[20].mxu1 %v2405_v49  ;;  %1180 = vmatprep.mubr.bf16.mxu0 %v2412_v50  ;;  %v259_v49 = vld [vmem:[%s3575_s24 + $0x1b8] sm:$0xff]  ;;  %v2407_v50 = vcombine.low %v246_v38, %v250_v39 }
  0x5d   : > { %1277 = vmatprep.mubr.bf16.mxu1 %v2414_v52  ;;  %v2416_v52 = vcombine.high %v254_v46, %v258_v47  ;;  %v2418_v53 = vcombine.high %v255_v48, %v259_v49 }
  0x63   : > { %1181 = vmatmul.mubr.bf16.gmra.mrb[24].mxu0 %v2411_v58  ;;  %v2415_v58 = vcombine.low %v254_v46, %v258_v47 }
  0x64   : > { %1278 = vmatmul.mubr.bf16.gmra.mrb[24].mxu1 %v2413_v59  ;;  %1188 = vmatprep.mubr.bf16.mxu0 %v2420_v60  ;;  %v2417_v59 = vcombine.low %v255_v48, %v259_v49  ;;  %v2424_v60 = vcombine.high %v262_v54, %v266_v55 }
  0x65   : > { %1285 = vmatprep.mubr.bf16.mxu1 %v2422_v61  ;;  %v2426_v61 = vcombine.high %v263_v56, %v267_v57 }
  0x6b   : > { %1189 = vmatmul.mubr.bf16.gmra.mrb[28].mxu0 %v2419_v2 }
  0x6c   : > { %1286 = vmatmul.mubr.bf16.gmra.mrb[28].mxu1 %v2421_v3  ;;  %1326 = vmatprep.mubr.bf16.mxu0 %v2368_v4 }
  0x6d   : > { %1423 = vmatprep.mubr.bf16.mxu1 %v2370_v5 }
  0x73   : > { %1327 = vmatmul.mubr.bf16.vlgmr.msra.gmra.mrb[32].mxu0 %v2367_v10 }
  0x74   : > { %1424 = vmatmul.mubr.bf16.vlgmr.msra.gmra.mrb[32].mxu1 %v2369_v11  ;;  %1334 = vmatprep.mubr.bf16.mxu0 %v2376_v12 }
  0x75   : > { %1431 = vmatprep.mubr.bf16.mxu1 %v2378_v13 }
  0x7b   : > { %1335 = vmatmul.mubr.bf16.gmra.mrb[36].mxu0 %v2375_v18 }
  0x7c   : > { %1432 = vmatmul.mubr.bf16.gmra.mrb[36].mxu1 %v2377_v19  ;;  %1342 = vmatprep.mubr.bf16.mxu0 %v2384_v20 }
  0x7d   : > { %1439 = vmatprep.mubr.bf16.mxu1 %v2386_v21 }
  0x83   : > { %1343 = vmatmul.mubr.bf16.gmra.mrb[40].mxu0 %v2383_v26 }
  0x84   : > { %1440 = vmatmul.mubr.bf16.gmra.mrb[40].mxu1 %v2385_v27  ;;  %1350 = vmatprep.mubr.bf16.mxu0 %v2392_v28 }
  0x85   : > { %1447 = vmatprep.mubr.bf16.mxu1 %v2394_v29 }
  0x8b   : > { %1351 = vmatmul.mubr.bf16.gmra.mrb[44].mxu0 %v2391_v34 }
  0x8c   : > { %1448 = vmatmul.mubr.bf16.gmra.mrb[44].mxu1 %v2393_v35  ;;  %1358 = vmatprep.mubr.bf16.mxu0 %v2400_v36 }
  0x8d   : > { %1455 = vmatprep.mubr.bf16.mxu1 %v2402_v37 }
  0x93   : > { %1359 = vmatmul.mubr.bf16.gmra.mrb[48].mxu0 %v2399_v42 }
  0x94   : > { %1456 = vmatmul.mubr.bf16.gmra.mrb[48].mxu1 %v2401_v43  ;;  %1366 = vmatprep.mubr.bf16.mxu0 %v2408_v44 }
  0x95   : > { %1463 = vmatprep.mubr.bf16.mxu1 %v2410_v45 }
  0x9b   : > { %1367 = vmatmul.mubr.bf16.gmra.mrb[52].mxu0 %v2407_v50 }
  0x9c   : > { %1464 = vmatmul.mubr.bf16.gmra.mrb[52].mxu1 %v2409_v51  ;;  %1374 = vmatprep.mubr.bf16.mxu0 %v2416_v52 }
  0x9d   : > { %1471 = vmatprep.mubr.bf16.mxu1 %v2418_v53 }
  0xa3   : > { %1375 = vmatmul.mubr.bf16.gmra.mrb[56].mxu0 %v2415_v58 }
  0xa4   : > { %1472 = vmatmul.mubr.bf16.gmra.mrb[56].mxu1 %v2417_v59  ;;  %1382 = vmatprep.mubr.bf16.mxu0 %v2424_v60 }
  0xa5   : > { %1479 = vmatprep.mubr.bf16.mxu1 %v2426_v61 }
  0xab   : > { %1383 = vmatmul.mubr.bf16.gmra.mrb[60].mxu0 %v2423_v62 }
  0xac   : > { %1480 = vmatmul.mubr.bf16.gmra.mrb[60].mxu1 %v2425_v63 }
 0x106   : > { %v3169_v0 = vpop.f32.mrb[0].mxu0 }
 0x107   : > { %v3233_v1 = vpop.f32.mrb[0].mxu1  ;;  %v3170_v2 = vpop.f32.mrb[1].mxu0 }
 0x108   : > { %v3171_v3 = vadd.f32 %v3170_v2, %v3169_v0  ;;  %v3234_v4 = vpop.f32.mrb[1].mxu1  ;;  %v3172_v5 = vpop.f32.mrb[2].mxu0 }
 0x109   : > { %v3235_v6 = vadd.f32 %v3234_v4, %v3233_v1  ;;  %v3236_v7 = vpop.f32.mrb[2].mxu1  ;;  %v3173_v8 = vpop.f32.mrb[3].mxu0 }
 0x10a   : > { %v3174_v9 = vadd.f32 %v3173_v8, %v3172_v5  ;;  %v3237_v10 = vpop.f32.mrb[3].mxu1 }
 0x10b   : > { %v3675_v11 = vadd.f32 %v3235_v6, %v3171_v3  ;;  %v3238_v12 = vadd.f32 %v3237_v10, %v3236_v7 }
 0x10d   : > { %v3677_v13 = vadd.f32 %v3238_v12, %v3174_v9 }
 0x10e   : > { %v3175_v14 = vpop.f32.mrb[4].mxu0 }
 0x10f   : > { %v3239_v15 = vpop.f32.mrb[4].mxu1  ;;  %v3176_v16 = vpop.f32.mrb[5].mxu0 }
 0x110   : > { %v3177_v17 = vadd.f32 %v3176_v16, %v3175_v14  ;;  %v3240_v18 = vpop.f32.mrb[5].mxu1  ;;  %v3178_v19 = vpop.f32.mrb[6].mxu0 }
 0x111   : > { %v3241_v20 = vadd.f32 %v3240_v18, %v3239_v15  ;;  %v3242_v21 = vpop.f32.mrb[6].mxu1  ;;  %v3179_v22 = vpop.f32.mrb[7].mxu0 }
 0x112   : > { %v3180_v23 = vadd.f32 %v3179_v22, %v3178_v19  ;;  %v3243_v24 = vpop.f32.mrb[7].mxu1 }
 0x113   : > { %v3679_v25 = vadd.f32 %v3241_v20, %v3177_v17  ;;  %v3244_v26 = vadd.f32 %v3243_v24, %v3242_v21 }
 0x115   : > { %v3681_v27 = vadd.f32 %v3244_v26, %v3180_v23 }
 0x116   : > { %v3181_v28 = vpop.f32.mrb[8].mxu0 }
 0x117   : > { %v3245_v29 = vpop.f32.mrb[8].mxu1  ;;  %v3182_v30 = vpop.f32.mrb[9].mxu0 }
 0x118   : > { %v3183_v31 = vadd.f32 %v3182_v30, %v3181_v28  ;;  %v3246_v32 = vpop.f32.mrb[9].mxu1  ;;  %v3184_v33 = vpop.f32.mrb[10].mxu0 }
 0x119   : > { %v3247_v34 = vadd.f32 %v3246_v32, %v3245_v29  ;;  %v3248_v35 = vpop.f32.mrb[10].mxu1  ;;  %v3185_v36 = vpop.f32.mrb[11].mxu0 }
 0x11a   : > { %v3186_v37 = vadd.f32 %v3185_v36, %v3184_v33  ;;  %v3249_v38 = vpop.f32.mrb[11].mxu1 }
 0x11b   : > { %v3683_v39 = vadd.f32 %v3247_v34, %v3183_v31  ;;  %v3250_v40 = vadd.f32 %v3249_v38, %v3248_v35 }
 0x11d   : > { %v3685_v41 = vadd.f32 %v3250_v40, %v3186_v37 }
 0x11e   : > { %v3187_v42 = vpop.f32.mrb[12].mxu0 }
 0x11f   : > { %v3251_v43 = vpop.f32.mrb[12].mxu1  ;;  %v3188_v44 = vpop.f32.mrb[13].mxu0 }
 0x120   : > { %v3189_v45 = vadd.f32 %v3188_v44, %v3187_v42  ;;  %v3252_v46 = vpop.f32.mrb[13].mxu1  ;;  %v3190_v47 = vpop.f32.mrb[14].mxu0 }
 0x121   : > { %v3253_v48 = vadd.f32 %v3252_v46, %v3251_v43  ;;  %v3254_v49 = vpop.f32.mrb[14].mxu1  ;;  %v3191_v50 = vpop.f32.mrb[15].mxu0 }
 0x122   : > { %v3192_v51 = vadd.f32 %v3191_v50, %v3190_v47  ;;  %v3255_v52 = vpop.f32.mrb[15].mxu1 }
 0x123   : > { %v3687_v53 = vadd.f32 %v3253_v48, %v3189_v45  ;;  %v3256_v54 = vadd.f32 %v3255_v52, %v3254_v49 }
 0x125   : > { %v3689_v55 = vadd.f32 %v3256_v54, %v3192_v51 }
 0x126   : > { %v3193_v56 = vpop.f32.mrb[16].mxu0 }
 0x127   : > { %v3257_v57 = vpop.f32.mrb[16].mxu1  ;;  %v3194_v58 = vpop.f32.mrb[17].mxu0 }
 0x128   : > { %v3195_v59 = vadd.f32 %v3194_v58, %v3193_v56  ;;  %v3258_v60 = vpop.f32.mrb[17].mxu1  ;;  %v3196_v61 = vpop.f32.mrb[18].mxu0 }
 0x129   : > { %v3259_v62 = vadd.f32 %v3258_v60, %v3257_v57  ;;  %v3260_v63 = vpop.f32.mrb[18].mxu1  ;;  %v3197_v0 = vpop.f32.mrb[19].mxu0 }
 0x12a   : > { %v3198_v1 = vadd.f32 %v3197_v0, %v3196_v61  ;;  %v3261_v2 = vpop.f32.mrb[19].mxu1 }
 0x12b   : > { %v3691_v3 = vadd.f32 %v3259_v62, %v3195_v59  ;;  %v3262_v4 = vadd.f32 %v3261_v2, %v3260_v63 }
 0x12d   : > { %v3693_v5 = vadd.f32 %v3262_v4, %v3198_v1 }
 0x12e   : > { %v3199_v6 = vpop.f32.mrb[20].mxu0 }
 0x12f   : > { %v3263_v7 = vpop.f32.mrb[20].mxu1  ;;  %v3200_v8 = vpop.f32.mrb[21].mxu0 }
 0x130   : > { %v3201_v9 = vadd.f32 %v3200_v8, %v3199_v6  ;;  %v3264_v10 = vpop.f32.mrb[21].mxu1  ;;  %v3202_v12 = vpop.f32.mrb[22].mxu0 }
 0x131   : > { %v3265_v14 = vadd.f32 %v3264_v10, %v3263_v7  ;;  %v3266_v15 = vpop.f32.mrb[22].mxu1  ;;  %v3203_v16 = vpop.f32.mrb[23].mxu0 }
 0x132   : > { %v3204_v17 = vadd.f32 %v3203_v16, %v3202_v12  ;;  %v3267_v18 = vpop.f32.mrb[23].mxu1 }
 0x133   : > { %v3695_v19 = vadd.f32 %v3265_v14, %v3201_v9  ;;  %v3268_v20 = vadd.f32 %v3267_v18, %v3266_v15 }
 0x135   : > { %v3697_v21 = vadd.f32 %v3268_v20, %v3204_v17 }
 0x136   : > { %v3205_v22 = vpop.f32.mrb[24].mxu0 }
 0x137   : > { %v3269_v23 = vpop.f32.mrb[24].mxu1  ;;  %v3206_v24 = vpop.f32.mrb[25].mxu0 }
 0x138   : > { %v3207_v26 = vadd.f32 %v3206_v24, %v3205_v22  ;;  %v3270_v28 = vpop.f32.mrb[25].mxu1  ;;  %v3208_v29 = vpop.f32.mrb[26].mxu0 }
 0x139   : > { %v3271_v30 = vadd.f32 %v3270_v28, %v3269_v23  ;;  %v3272_v31 = vpop.f32.mrb[26].mxu1  ;;  %v3209_v32 = vpop.f32.mrb[27].mxu0 }
 0x13a   : > { %v3210_v33 = vadd.f32 %v3209_v32, %v3208_v29  ;;  %v3273_v34 = vpop.f32.mrb[27].mxu1 }
 0x13b   : > { %v3699_v35 = vadd.f32 %v3271_v30, %v3207_v26  ;;  %v3274_v36 = vadd.f32 %v3273_v34, %v3272_v31 }
 0x13d   : > { %v3701_v37 = vadd.f32 %v3274_v36, %v3210_v33 }
 0x13e   : > { %v3211_v38 = vpop.f32.mrb[28].mxu0 }
 0x13f   : > { %v3275_v40 = vpop.f32.mrb[28].mxu1  ;;  %v3212_v42 = vpop.f32.mrb[29].mxu0 }
 0x140   : > { %v3213_v43 = vadd.f32 %v3212_v42, %v3211_v38  ;;  %v3276_v44 = vpop.f32.mrb[29].mxu1  ;;  %v3214_v45 = vpop.f32.mrb[30].mxu0 }
 0x141   : > { %v3277_v46 = vadd.f32 %v3276_v44, %v3275_v40  ;;  %v3278_v47 = vpop.f32.mrb[30].mxu1  ;;  %v3215_v48 = vpop.f32.mrb[31].mxu0 }
 0x142   : > { %v3216_v49 = vadd.f32 %v3215_v48, %v3214_v45  ;;  %v3279_v50 = vpop.f32.mrb[31].mxu1 }
 0x143   : > { %v3703_v51 = vadd.f32 %v3277_v46, %v3213_v43  ;;  %v3280_v52 = vadd.f32 %v3279_v50, %v3278_v47 }
 0x145   : > { %v3705_v54 = vadd.f32 %v3280_v52, %v3216_v49 }
 0x146   : > { %v3297_v56 = vpop.f32.mrb[32].mxu0 }
 0x147   : > { %v3361_v57 = vpop.f32.mrb[32].mxu1  ;;  %v3298_v58 = vpop.f32.mrb[33].mxu0 }
 0x148   : > { %v3299_v59 = vadd.f32 %v3298_v58, %v3297_v56  ;;  %v3362_v60 = vpop.f32.mrb[33].mxu1  ;;  %v3300_v61 = vpop.f32.mrb[34].mxu0 }
 0x149   : > { %v3363_v62 = vadd.f32 %v3362_v60, %v3361_v57  ;;  %v3364_v63 = vpop.f32.mrb[34].mxu1  ;;  %v3301_v0 = vpop.f32.mrb[35].mxu0 }
 0x14a   : > { %v1329_v1 = vadd.f32 %v3299_v59, %v3675_v11  ;;  %v3302_v2 = vadd.f32 %v3301_v0, %v3300_v61  ;;  %v3365_v4 = vpop.f32.mrb[35].mxu1 }
 0x14b   : > { %v3366_v6 = vadd.f32 %v3365_v4, %v3364_v63 }
 0x14c   : > { %v3708_v7 = vadd.f32 %v3363_v62, %v1329_v1  ;;  %v1332_v8 = vadd.f32 %v3302_v2, %v3677_v13 }
 0x14e   : > { %v3711_v9 = vadd.f32 %v3366_v6, %v1332_v8  ;;  %v3303_v10 = vpop.f32.mrb[36].mxu0 }
 0x14f   : > { %v3367_v12 = vpop.f32.mrb[36].mxu1  ;;  %v3304_v14 = vpop.f32.mrb[37].mxu0 }
 0x150   : > { %v3305_v15 = vadd.f32 %v3304_v14, %v3303_v10  ;;  %v3368_v16 = vpop.f32.mrb[37].mxu1  ;;  %v3306_v17 = vpop.f32.mrb[38].mxu0 }
 0x151   : > { %v3369_v18 = vadd.f32 %v3368_v16, %v3367_v12  ;;  %v3370_v20 = vpop.f32.mrb[38].mxu1  ;;  %v3307_v22 = vpop.f32.mrb[39].mxu0 }
 0x152   : > { %v1337_v11 = vadd.f32 %v3305_v15, %v3679_v25  ;;  %v3308_v23 = vadd.f32 %v3307_v22, %v3306_v17  ;;  %v3371_v24 = vpop.f32.mrb[39].mxu1 }
 0x153   : > { %v3372_v26 = vadd.f32 %v3371_v24, %v3370_v20 }
 0x154   : > { %v3714_v28 = vadd.f32 %v3369_v18, %v1337_v11  ;;  %v1340_v13 = vadd.f32 %v3308_v23, %v3681_v27 }
 0x156   : > { %v3717_v29 = vadd.f32 %v3372_v26, %v1340_v13  ;;  %v3309_v30 = vpop.f32.mrb[40].mxu0 }
 0x157   : > { %v3373_v31 = vpop.f32.mrb[40].mxu1  ;;  %v3310_v32 = vpop.f32.mrb[41].mxu0 }
 0x158   : > { %v3311_v33 = vadd.f32 %v3310_v32, %v3309_v30  ;;  %v3374_v34 = vpop.f32.mrb[41].mxu1  ;;  %v3312_v36 = vpop.f32.mrb[42].mxu0 }
 0x159   : > { %v3375_v38 = vadd.f32 %v3374_v34, %v3373_v31  ;;  %v3376_v40 = vpop.f32.mrb[42].mxu1  ;;  %v3313_v42 = vpop.f32.mrb[43].mxu0 }
 0x15a   : > { %v1345_v25 = vadd.f32 %v3311_v33, %v3683_v39  ;;  %v3314_v43 = vadd.f32 %v3313_v42, %v3312_v36  ;;  %v3377_v44 = vpop.f32.mrb[43].mxu1 }
 0x15b   : > { %v3378_v45 = vadd.f32 %v3377_v44, %v3376_v40 }
 0x15c   : > { %v3720_v46 = vadd.f32 %v3375_v38, %v1345_v25  ;;  %v1348_v27 = vadd.f32 %v3314_v43, %v3685_v41 }
 0x15e   : > { %v3723_v47 = vadd.f32 %v3378_v45, %v1348_v27  ;;  %v3315_v48 = vpop.f32.mrb[44].mxu0 }
 0x15f   : > { %v3379_v49 = vpop.f32.mrb[44].mxu1  ;;  %v3316_v50 = vpop.f32.mrb[45].mxu0 }
 0x160   : > { %v3317_v52 = vadd.f32 %v3316_v50, %v3315_v48  ;;  %v3380_v56 = vpop.f32.mrb[45].mxu1  ;;  %v3318_v57 = vpop.f32.mrb[46].mxu0 }
 0x161   : > { %v3381_v58 = vadd.f32 %v3380_v56, %v3379_v49  ;;  %v3382_v59 = vpop.f32.mrb[46].mxu1  ;;  %v3319_v60 = vpop.f32.mrb[47].mxu0 }
 0x162   : > { %v1353_v39 = vadd.f32 %v3317_v52, %v3687_v53  ;;  %v3320_v61 = vadd.f32 %v3319_v60, %v3318_v57  ;;  %v3383_v62 = vpop.f32.mrb[47].mxu1 }
 0x163   : > { %v3384_v63 = vadd.f32 %v3383_v62, %v3382_v59 }
 0x164   : > { %v3726_v0 = vadd.f32 %v3381_v58, %v1353_v39  ;;  %v1356_v41 = vadd.f32 %v3320_v61, %v3689_v55 }
 0x166   : > { %v3729_v1 = vadd.f32 %v3384_v63, %v1356_v41  ;;  %v3321_v2 = vpop.f32.mrb[48].mxu0 }
 0x167   : > { %v3385_v4 = vpop.f32.mrb[48].mxu1  ;;  %v3322_v6 = vpop.f32.mrb[49].mxu0 }
 0x168   : > { %v3323_v8 = vadd.f32 %v3322_v6, %v3321_v2  ;;  %v3386_v10 = vpop.f32.mrb[49].mxu1  ;;  %v3324_v12 = vpop.f32.mrb[50].mxu0 }
 0x169   : > { %v3387_v14 = vadd.f32 %v3386_v10, %v3385_v4  ;;  %v3388_v15 = vpop.f32.mrb[50].mxu1  ;;  %v3325_v16 = vpop.f32.mrb[51].mxu0 }
 0x16a   : > { %v1361_v53 = vadd.f32 %v3323_v8, %v3691_v3  ;;  %v3326_v17 = vadd.f32 %v3325_v16, %v3324_v12  ;;  %v3389_v18 = vpop.f32.mrb[51].mxu1 }
 0x16b   : > { %v3390_v20 = vadd.f32 %v3389_v18, %v3388_v15 }
 0x16c   : > { %v3732_v22 = vadd.f32 %v3387_v14, %v1361_v53  ;;  %v1364_v55 = vadd.f32 %v3326_v17, %v3693_v5  ;;  %v3492_v17 = vmov (!%p2491_p4), 0.0  }
 0x16d   : > { %1492 = vst [vmem:[#allocation2] sm:$0x1] (!%p2491_p4), %v3492_v17  ;;  %1493 = vst [vmem:[#allocation3] sm:$0x1] (!%p2491_p4), %v3492_v17 }
 0x16e   : > { %v3735_v11 = vadd.f32 %v3390_v20, %v1364_v55  ;;  %v3327_v23 = vpop.f32.mrb[52].mxu0 }
 0x16f   : > { %v3391_v24 = vpop.f32.mrb[52].mxu1  ;;  %v3328_v26 = vpop.f32.mrb[53].mxu0 }
 0x170   : > { %v3329_v13 = vadd.f32 %v3328_v26, %v3327_v23  ;;  %v3392_v30 = vpop.f32.mrb[53].mxu1  ;;  %v3330_v31 = vpop.f32.mrb[54].mxu0 }
 0x171   : > { %v3393_v32 = vadd.f32 %v3392_v30, %v3391_v24  ;;  %v3394_v33 = vpop.f32.mrb[54].mxu1  ;;  %v3331_v34 = vpop.f32.mrb[55].mxu0 }
 0x172   : > { %v1369_v3 = vadd.f32 %v3329_v13, %v3695_v19  ;;  %v3332_v36 = vadd.f32 %v3331_v34, %v3330_v31  ;;  %v3395_v38 = vpop.f32.mrb[55].mxu1 }
 0x173   : > { %v3396_v40 = vadd.f32 %v3395_v38, %v3394_v33 }
 0x174   : > { %v3738_v42 = vadd.f32 %v3393_v32, %v1369_v3  ;;  %v1372_v5 = vadd.f32 %v3332_v36, %v3697_v21 }
 0x176   : > { %v3741_v25 = vadd.f32 %v3396_v40, %v1372_v5  ;;  %v3333_v43 = vpop.f32.mrb[56].mxu0 }
 0x177   : > { %v3397_v44 = vpop.f32.mrb[56].mxu1  ;;  %v3334_v45 = vpop.f32.mrb[57].mxu0 }
 0x178   : > { %v3335_v27 = vadd.f32 %v3334_v45, %v3333_v43  ;;  %v3398_v48 = vpop.f32.mrb[57].mxu1  ;;  %v3336_v49 = vpop.f32.mrb[58].mxu0 }
 0x179   : > { %v3399_v50 = vadd.f32 %v3398_v48, %v3397_v44  ;;  %v3400_v52 = vpop.f32.mrb[58].mxu1  ;;  %v3337_v56 = vpop.f32.mrb[59].mxu0 }
 0x17a   : > { %v1377_v19 = vadd.f32 %v3335_v27, %v3699_v35  ;;  %v3338_v57 = vadd.f32 %v3337_v56, %v3336_v49  ;;  %v3401_v58 = vpop.f32.mrb[59].mxu1 }
 0x17b   : > { %v3402_v59 = vadd.f32 %v3401_v58, %v3400_v52 }
 0x17c   : > { %v3744_v60 = vadd.f32 %v3399_v50, %v1377_v19  ;;  %v1380_v21 = vadd.f32 %v3338_v57, %v3701_v37 }
 0x17e   : > { %v3747_v39 = vadd.f32 %v3402_v59, %v1380_v21  ;;  %v3339_v61 = vpop.f32.mrb[60].mxu0 }
 0x17f   : > { %v3403_v62 = vpop.f32.mrb[60].mxu1  ;;  %v3340_v63 = vpop.f32.mrb[61].mxu0 }
 0x180   : > { %v3341_v41 = vadd.f32 %v3340_v63, %v3339_v61  ;;  %v3404_v2 = vpop.f32.mrb[61].mxu1  ;;  %v3342_v4 = vpop.f32.mrb[62].mxu0  ;;  %1491 = sbr.rel (%p2491_p4) target bundleno = 391 (0x187), region = 40 }
 0x181   : > { %v3405_v6 = vadd.f32 %v3404_v2, %v3403_v62  ;;  %v3406_v8 = vpop.f32.mrb[62].mxu1  ;;  %v3343_v10 = vpop.f32.mrb[63].mxu0 }
 0x182   : > { %v1385_v35 = vadd.f32 %v3341_v41, %v3703_v51  ;;  %v3344_v12 = vadd.f32 %v3343_v10, %v3342_v4  ;;  %v3407_v14 = vpop.f32.mrb[63].mxu1 }
 0x183   : > { %v3408_v15 = vadd.f32 %v3407_v14, %v3406_v8 }
 0x184   : > { %v3750_v16 = vadd.f32 %v3405_v6, %v1385_v35  ;;  %v1388_v37 = vadd.f32 %v3344_v12, %v3705_v54 }
 0x186   : > { %v3753_v53 = vadd.f32 %v3408_v15, %v1388_v37 }
 0x187 PF: > { %v1495_v51 = vadd.f32 %v3711_v9, %v3708_v7  ;;  %v1519_v18 = vmul.f32 %v3708_v7, %v3708_v7  ;;  %v1520_v20 = vmul.f32 %v3711_v9, %v3711_v9  ;;  %s2691_s25 = sshll.u32 %s3524_s16, 6  ;;  %v1521_v55 = vmul.f32 %v3714_v28, %v3714_v28  ;;  %p2510_p5 = scmp.ne.s32.totalorder %s3524_s16, 3 }
 0x188   : > { %v1522_v24 = vmul.f32 %v3717_v29, %v3717_v29  ;;  %v1523_v26 = vmul.f32 %v3720_v46, %v3720_v46  ;;  %s1624_s28 = scalar_lea.vmem %s4430_s4, %s2691_s25  ;;  %v2759_v30 = vpack.c.bf16 %v3711_v9, %v3708_v7  ;;  %v2764_v31 = vpack.c.bf16 %v3717_v29, %v3714_v28 }
 0x189   : > { %v1496_v54 = vadd.f32 %v1495_v51, %v3714_v28  ;;  %v1535_v13 = vadd.f32 %v1520_v20, %v1519_v18  ;;  %v2769_v32 = vpack.c.bf16 %v3723_v47, %v3720_v46  ;;  %v2774_v33 = vpack.c.bf16 %v3729_v1, %v3726_v0  ;;  %v1494_v51 = vld [vmem:[#allocation2] sm:$0x1] }
 0x18a   : > { %v2779_v36 = vpack.c.bf16 %v3735_v11, %v3732_v22  ;;  %v2784_v38 = vpack.c.bf16 %v3741_v25, %v3738_v42  ;;  %2760 = vst [vmem:[%s1624_s28] sm:$0xff] %v2759_v30   ;;  %3084 = vst [vmem:[%s1624_s28 + $0x8] sm:$0xff] %v2764_v31   ;;  %v2789_v7 = vpack.c.bf16 %v3747_v39, %v3744_v60 }
 0x18b   : > { %v1497_v23 = vadd.f32 %v1496_v54, %v3717_v29  ;;  %v1536_v3 = vadd.f32 %v1535_v13, %v1521_v55  ;;  %3085 = vst [vmem:[%s1624_s28 + $0x10] sm:$0xff] %v2769_v32   ;;  %3086 = vst [vmem:[%s1624_s28 + $0x18] sm:$0xff] %v2774_v33   ;;  %v2794_v9 = vpack.c.bf16 %v3753_v53, %v3750_v16  ;;  %v1518_v55 = vld [vmem:[#allocation3] sm:$0x1]  ;;  %v1691_v13 = vlaneseq (!%p2510_p5) }
 0x18c   : > { %v1524_v29 = vmul.f32 %v3723_v47, %v3723_v47  ;;  %3087 = vst [vmem:[%s1624_s28 + $0x20] sm:$0xff] %v2779_v36   ;;  %3088 = vst [vmem:[%s1624_s28 + $0x28] sm:$0xff] %v2784_v38   ;;  %v1525_v5 = vmul.f32 %v3726_v0, %v3726_v0  ;;  %v1526_v45 = vmul.f32 %v3729_v1, %v3729_v1 }
 0x18d   : > { %v1498_v34 = vadd.f32 %v1497_v23, %v3720_v46  ;;  %v1537_v46 = vadd.f32 %v1536_v3, %v1522_v24  ;;  %3089 = vst [vmem:[%s1624_s28 + $0x30] sm:$0xff] %v2789_v7   ;;  %3090 = vst [vmem:[%s1624_s28 + $0x38] sm:$0xff] %v2794_v9   ;;  %v1528_v52 = vmul.f32 %v3735_v11, %v3735_v11 }
 0x18e   : > { %v1529_v19 = vmul.f32 %v3738_v42, %v3738_v42  ;;  %v1530_v58 = vmul.f32 %v3741_v25, %v3741_v25  ;;  %v1531_v21 = vmul.f32 %v3744_v60, %v3744_v60  ;;  %v1532_v62 = vmul.f32 %v3747_v39, %v3747_v39 }
 0x18f   : > { %v1499_v28 = vadd.f32 %v1498_v34, %v3723_v47  ;;  %v1538_v43 = vadd.f32 %v1537_v46, %v1523_v26  ;;  %v1527_v47 = vmul.f32 %v3732_v22, %v3732_v22  ;;  %v1533_v41 = vmul.f32 %v3750_v16, %v3750_v16 }
 0x190   : > { %v1534_v4 = vmul.f32 %v3753_v53, %v3753_v53  ;;  %v3834_v34 = vshrl.u32 (!%p2510_p5), %v1691_v13, 7 }
 0x191   : > { %v1500_v40 = vadd.f32 %v1499_v28, %v3726_v0  ;;  %v1539_v27 = vadd.f32 %v1538_v43, %v1524_v29 }
 0x193   : > { %v1501_v44 = vadd.f32 %v1500_v40, %v3729_v1  ;;  %v1540_v49 = vadd.f32 %v1539_v27, %v1525_v5 }
 0x194   : > { %v3832_v33 = vld [vmem:[%s4430_s4] sm:$0xff] (!%p2510_p5)   ;;  %v3839_v3 = vld [vmem:[%s4430_s4 + $0x8] sm:$0xff] (!%p2510_p5)   ;;  %v3844_v36 = vld [vmem:[%s4430_s4 + $0x10] sm:$0xff] (!%p2510_p5)  }
 0x195   : > { %v1502_v48 = vadd.f32 %v1501_v44, %v3732_v22  ;;  %v1541_v56 = vadd.f32 %v1540_v49, %v1526_v45  ;;  %v3849_v7 = vld [vmem:[%s4430_s4 + $0x18] sm:$0xff] (!%p2510_p5)   ;;  %v2798_v9 = vunpack.c.l.bf16 (!%p2510_p5), %v3832_v33  ;;  %v2799_v28 = vunpack.c.h.bf16 (!%p2510_p5), %v3832_v33  ;;  %v3856_v29 = vld [vmem:[%s4430_s4 + $0x20] sm:$0xff] (!%p2510_p5)   ;;  %v3861_v46 = vld [vmem:[%s4430_s4 + $0x28] sm:$0xff] (!%p2510_p5)  }
 0x196   : > { %v2802_v5 = vunpack.c.l.bf16 (!%p2510_p5), %v3839_v3  ;;  %v2803_v43 = vunpack.c.h.bf16 (!%p2510_p5), %v3839_v3  ;;  %v2806_v44 = vunpack.c.l.bf16 (!%p2510_p5), %v3844_v36  ;;  %v3869_v45 = vld [vmem:[%s4430_s4 + $0x30] sm:$0xff] (!%p2510_p5)   ;;  %v3874_v27 = vld [vmem:[%s4430_s4 + $0x38] sm:$0xff] (!%p2510_p5)   ;;  %v2810_v49 = vunpack.c.l.bf16 (!%p2510_p5), %v3849_v7  ;;  %v3994_v13 = vld [vmem:[%s4430_s4 + $0xc0] sm:$0xff] (!%p2510_p5)  }
 0x197   : > { %v1503_v50 = vadd.f32 %v1502_v48, %v3735_v11  ;;  %v1542_v57 = vadd.f32 %v1541_v56, %v1527_v47  ;;  %v1693_v48 = vsub.s32 (!%p2510_p5), 0, %v3834_v34  ;;  %v2807_v47 = vunpack.c.h.bf16 (!%p2510_p5), %v3844_v36  ;;  %v3888_v56 = vld [vmem:[%s4430_s4 + $0x48] sm:$0xff] (!%p2510_p5)  }
 0x199   : > { %v1504_v0 = vadd.f32 %v1503_v50, %v3738_v42  ;;  %v1543_v59 = vadd.f32 %v1542_v57, %v1528_v52  ;;  %v2811_v50 = vunpack.c.h.bf16 (!%p2510_p5), %v3849_v7  ;;  %v3883_v52 = vld [vmem:[%s4430_s4 + $0x40] sm:$0xff] (!%p2510_p5)   ;;  %v2818_v57 = vunpack.c.l.bf16 (!%p2510_p5), %v3861_v46 }
 0x19b   : > { %v1505_v1 = vadd.f32 %v1504_v0, %v3741_v25  ;;  %v1544_v61 = vadd.f32 %v1543_v59, %v1529_v19  ;;  %v2814_v0 = vunpack.c.l.bf16 (!%p2510_p5), %v3856_v29  ;;  %v2815_v19 = vunpack.c.h.bf16 (!%p2510_p5), %v3856_v29 }
 0x19c   : > { %v2819_v59 = vunpack.c.h.bf16 (!%p2510_p5), %v3861_v46 }
 0x19d   : > { %v1506_v22 = vadd.f32 %v1505_v1, %v3744_v60  ;;  %v1545_v63 = vadd.f32 %v1544_v61, %v1530_v58  ;;  %v3896_v1 = vld [vmem:[%s4430_s4 + $0x50] sm:$0xff] (!%p2510_p5)   ;;  %v3901_v58 = vld [vmem:[%s4430_s4 + $0x58] sm:$0xff] (!%p2510_p5)   ;;  %v2826_v61 = vunpack.c.l.bf16 (!%p2510_p5), %v3874_v27 }
 0x19f   : > { %v1507_v11 = vadd.f32 %v1506_v22, %v3747_v39  ;;  %v1546_v2 = vadd.f32 %v1545_v63, %v1531_v21  ;;  %v2822_v22 = vunpack.c.l.bf16 (!%p2510_p5), %v3869_v45  ;;  %v2823_v21 = vunpack.c.h.bf16 (!%p2510_p5), %v3869_v45 }
 0x1a0   : > { %v2827_v63 = vunpack.c.h.bf16 (!%p2510_p5), %v3874_v27 }
 0x1a1   : > { %v1508_v42 = vadd.f32 %v1507_v11, %v3750_v16  ;;  %v1547_v6 = vadd.f32 %v1546_v2, %v1532_v62  ;;  %v3910_v11 = vld [vmem:[%s4430_s4 + $0x60] sm:$0xff] (!%p2510_p5)   ;;  %v3915_v62 = vld [vmem:[%s4430_s4 + $0x68] sm:$0xff] (!%p2510_p5)  }
 0x1a3   : > { %v1509_v25 = vadd.f32 %v1508_v42, %v3753_v53  ;;  %v1548_v8 = vadd.f32 %v1547_v6, %v1533_v41  ;;  %v2870_v42 = vunpack.c.l.bf16 (!%p2510_p5), %v3883_v52 }
 0x1a5   : > { %v1510_v60 = vrot.slane %v1509_v25, 4  ;;  %v1549_v35 = vadd.f32 %v1548_v8, %v1534_v4  ;;  %v3929_v4 = vld [vmem:[%s4430_s4 + $0x78] sm:$0xff] (!%p2510_p5)  }
 0x1a7   : > { %v1511_v10 = vadd.f32 %v1510_v60, %v1509_v25  ;;  %v1550_v14 = vrot.slane %v1549_v35, 4  ;;  %v3924_v25 = vld [vmem:[%s4430_s4 + $0x70] sm:$0xff] (!%p2510_p5)  }
 0x1a9   : > { %v1512_v12 = vrot.slane %v1511_v10, 2  ;;  %v1551_v15 = vadd.f32 %v1550_v14, %v1549_v35  ;;  %v3938_v35 = vld [vmem:[%s4430_s4 + $0x80] sm:$0xff] (!%p2510_p5)  }
 0x1ab   : > { %v1513_v39 = vadd.f32 %v1512_v12, %v1511_v10  ;;  %v1552_v17 = vrot.slane %v1551_v15, 2  ;;  %v3943_v12 = vld [vmem:[%s4430_s4 + $0x88] sm:$0xff] (!%p2510_p5)  }
 0x1ad   : > { %v1514_v37 = vrot.slane %v1513_v39, 1  ;;  %v1553_v16 = vadd.f32 %v1552_v17, %v1551_v15  ;;  %v3952_v17 = vld [vmem:[%s4430_s4 + $0x90] sm:$0xff] (!%p2510_p5)   ;;  %v4034_v15 = vld [vmem:[%s4430_s4 + $0xe8] sm:$0xff] (!%p2510_p5)  }
 0x1ae   : > { %v3034_v60 = vunpack.c.l.bf16 (!%p2510_p5), %v4034_v15 }
 0x1af   : > { %v1515_v18 = vadd.f32 %v1514_v37, %v1513_v39  ;;  %v1554_v54 = vrot.slane %v1553_v16, 1  ;;  %1644 = sbr.rel (%p2510_p5) target bundleno = 540 (0x21c), region = 44  ;;  %v4047_v37 = vld [vmem:[%s4430_s4 + $0xf8] sm:$0xff] (!%p2510_p5)  }
 0x1b0   : > { %v3042_v10 = vunpack.c.l.bf16 (!%p2510_p5), %v4047_v37 }
 0x1b1   : > { %v1516_v20 = vadd.f32 %v1515_v18, %v1494_v51  ;;  %v1555_v23 = vadd.f32 %v1554_v54, %v1553_v16  ;;  %v3957_v51 = vld [vmem:[%s4430_s4 + $0x98] sm:$0xff] (!%p2510_p5)   ;;  %v4025_v54 = vld [vmem:[%s4430_s4 + $0xe0] sm:$0xff] (!%p2510_p5)   ;;  %v4042_v16 = vld [vmem:[%s4430_s4 + $0xf0] sm:$0xff] (!%p2510_p5)  }
 0x1b2   : > { %v3031_v14 = vunpack.c.h.bf16 (!%p2510_p5), %v4025_v54  ;;  %v3038_v2 = vunpack.c.l.bf16 (!%p2510_p5), %v4042_v16 }
 0x1b3   : > { %1517 = vst [vmem:[#allocation2] sm:$0x1] %v1516_v20  ;;  %v1556_v53 = vadd.f32 %v1555_v23, %v1518_v55  ;;  %v3966_v55 = vld [vmem:[%s4430_s4 + $0xa0] sm:$0xff] (!%p2510_p5)   ;;  %v3971_v23 = vld [vmem:[%s4430_s4 + $0xa8] sm:$0xff] (!%p2510_p5)   ;;  %v4011_v20 = vld [vmem:[%s4430_s4 + $0xd0] sm:$0xff] (!%p2510_p5)  }
 0x1b5   : > { %1557 = vst [vmem:[#allocation3] sm:$0x1] %v1556_v53  ;;  %v3999_v53 = vld [vmem:[%s4430_s4 + $0xc8] sm:$0xff] (!%p2510_p5)  }
 0x1ba   : > { %v1645_v24 = vld [vmem:[#allocation2] sm:$0x1] }
 0x1bb   : > { %v3825_v30 = vmul.f32 0.001953125, %v1645_v24  ;;  %v4020_v24 = vld [vmem:[%s4430_s4 + $0xd8] sm:$0xff]  }
 0x1bc   : > { %v1647_v26 = vld [vmem:[#allocation3] sm:$0x1] }
 0x1bd   : > { %v1648_v31 = vmul.f32 0.001953125, %v1647_v26  ;;  %v1649_v32 = vmul.f32 %v3825_v30, %v3825_v30 }
 0x1bf   : > { %v1650_v38 = vsub.f32 %v1648_v31, %v1649_v32  ;;  %v3980_v31 = vld [vmem:[%s4430_s4 + $0xb0] sm:$0xff]   ;;  %v3985_v32 = vld [vmem:[%s4430_s4 + $0xb8] sm:$0xff]  }
 0x1c1   : > { %v1651_v40 = vadd.f32 1e-05, %v1650_v38  ;;  %v1653_v38 = vld [vmem:[%s4428_s2] sm:$0x1] }
 0x1c3   : > { %3482 = vrsqrt.f32 %v1651_v40 }
 0x1cd   : > { %v3483_v26 = vpop.eup %3482 }
 0x1ce   : > { %v1654_v39 = vmul.f32 %v3483_v26, %v1653_v38  ;;  %v1655_v26 = vld [vmem:[%s4429_s3] sm:$0x1] }
 0x1d0   : > { %v1656_v18 = vmul.f32 %v1654_v39, %v3825_v30  ;;  %v4059_v40 = vrot.slane %v1654_v39, %v1693_v48 }
 0x1d2   : > { %v1657_v41 = vsub.f32 %v1655_v26, %v1656_v18  ;;  %v1696_v30 = vmul.f32 %v2798_v9, %v4059_v40  ;;  %v1697_v39 = vmul.f32 %v2799_v28, %v4059_v40  ;;  %v1698_v6 = vmul.f32 %v2802_v5, %v4059_v40 }
 0x1d3   : > { %v1699_v38 = vmul.f32 %v2803_v43, %v4059_v40  ;;  %v1700_v18 = vmul.f32 %v2806_v44, %v4059_v40  ;;  %v1701_v9 = vmul.f32 %v2807_v47, %v4059_v40  ;;  %v1702_v33 = vmul.f32 %v2810_v49, %v4059_v40 }
 0x1d4   : > { %v4090_v28 = vrot.slane %v1657_v41, %v1693_v48  ;;  %v1703_v3 = vmul.f32 %v2811_v50, %v4059_v40  ;;  %v1704_v5 = vmul.f32 %v2814_v0, %v4059_v40  ;;  %v1705_v36 = vmul.f32 %v2815_v19, %v4059_v40 }
 0x1d5   : > { %v1706_v43 = vmul.f32 %v2818_v57, %v4059_v40  ;;  %v1707_v34 = vmul.f32 %v2819_v59, %v4059_v40  ;;  %v1708_v7 = vmul.f32 %v2822_v22, %v4059_v40  ;;  %v1709_v44 = vmul.f32 %v2823_v21, %v4059_v40 }
 0x1d6   : > { %v1718_v48 = vadd.f32 %v4090_v28, %v1696_v30  ;;  %v1719_v29 = vadd.f32 %v4090_v28, %v1697_v39  ;;  %v1720_v47 = vadd.f32 %v4090_v28, %v1698_v6  ;;  %v1721_v49 = vadd.f32 %v4090_v28, %v1699_v38 }
 0x1d7   : > { %v1722_v50 = vadd.f32 %v4090_v28, %v1700_v18  ;;  %v1723_v46 = vadd.f32 %v4090_v28, %v1701_v9  ;;  %v1724_v0 = vadd.f32 %v4090_v28, %v1702_v33  ;;  %v1725_v19 = vadd.f32 %v4090_v28, %v1703_v3 }
 0x1d8   : > { %v1734_v57 = vmax.f32 %v1718_v48, 0.0  ;;  %v1735_v59 = vmax.f32 %v1719_v29, 0.0  ;;  %v1736_v45 = vmax.f32 %v1720_v47, 0.0  ;;  %v1737_v22 = vmax.f32 %v1721_v49, 0.0 }
 0x1d9   : > { %v1738_v21 = vmax.f32 %v1722_v50, 0.0  ;;  %v1739_v41 = vmax.f32 %v1723_v46, 0.0  ;;  %v1740_v26 = vmax.f32 %v1724_v0, 0.0  ;;  %v1741_v30 = vmax.f32 %v1725_v19, 0.0 }
 0x1da   : > { %v2831_v39 = vpack.c.bf16 %v1735_v59, %v1734_v57  ;;  %v2836_v6 = vpack.c.bf16 %v1737_v22, %v1736_v45  ;;  %v1726_v38 = vadd.f32 %v4090_v28, %v1704_v5  ;;  %v1727_v18 = vadd.f32 %v4090_v28, %v1705_v36 }
 0x1db   : > { %v2841_v8 = vpack.c.bf16 %v1739_v41, %v1738_v21  ;;  %v2846_v9 = vpack.c.bf16 %v1741_v30, %v1740_v26  ;;  %v1728_v33 = vadd.f32 %v4090_v28, %v1706_v43  ;;  %v1729_v3 = vadd.f32 %v4090_v28, %v1707_v34 }
 0x1dc   : > { %2832 = vst [vmem:[%s4430_s4] sm:$0xff] %v2831_v39   ;;  %3098 = vst [vmem:[%s4430_s4 + $0x8] sm:$0xff] %v2836_v6   ;;  %v1742_v48 = vmax.f32 %v1726_v38, 0.0  ;;  %v1743_v29 = vmax.f32 %v1727_v18, 0.0  ;;  %v1730_v5 = vadd.f32 %v4090_v28, %v1708_v7  ;;  %v1731_v36 = vadd.f32 %v4090_v28, %v1709_v44 }
 0x1dd   : > { %3099 = vst [vmem:[%s4430_s4 + $0x10] sm:$0xff] %v2841_v8   ;;  %3100 = vst [vmem:[%s4430_s4 + $0x18] sm:$0xff] %v2846_v9   ;;  %v1744_v43 = vmax.f32 %v1728_v33, 0.0  ;;  %v1745_v34 = vmax.f32 %v1729_v3, 0.0  ;;  %v1710_v47 = vmul.f32 %v2826_v61, %v4059_v40  ;;  %v1711_v7 = vmul.f32 %v2827_v63, %v4059_v40 }
 0x1de   : > { %v2851_v49 = vpack.c.bf16 %v1743_v29, %v1742_v48  ;;  %v1746_v44 = vmax.f32 %v1730_v5, 0.0  ;;  %v1747_v50 = vmax.f32 %v1731_v36, 0.0  ;;  %v1863_v8 = vmul.f32 %v2870_v42, %v4059_v40 }
 0x1df   : > { %v2856_v46 = vpack.c.bf16 %v1745_v34, %v1744_v43  ;;  %v1732_v0 = vadd.f32 %v4090_v28, %v1710_v47  ;;  %v1733_v19 = vadd.f32 %v4090_v28, %v1711_v7  ;;  %v4431_v57 = vunpack.c.h.bf16 %v3883_v52 }
 0x1e0   : > { %3101 = vst [vmem:[%s4430_s4 + $0x20] sm:$0xff] %v2851_v49   ;;  %v2861_v27 = vpack.c.bf16 %v1747_v50, %v1746_v44  ;;  %v1879_v63 = vadd.f32 %v1863_v8, %v4090_v28  ;;  %v4432_v59 = vunpack.c.l.bf16 %v3888_v56  ;;  %v4433_v45 = vunpack.c.h.bf16 %v3888_v56 }
 0x1e1   : > { %v1864_v61 = vmul.f32 %v4431_v57, %v4059_v40  ;;  %3102 = vst [vmem:[%s4430_s4 + $0x28] sm:$0xff] %v2856_v46   ;;  %v1748_v52 = vmax.f32 %v1732_v0, 0.0  ;;  %v1749_v21 = vmax.f32 %v1733_v19, 0.0  ;;  %v4434_v26 = vunpack.c.l.bf16 %v3896_v1 }
 0x1e2   : > { %v1865_v42 = vmul.f32 %v4432_v59, %v4059_v40  ;;  %v1866_v22 = vmul.f32 %v4433_v45, %v4059_v40  ;;  %3103 = vst [vmem:[%s4430_s4 + $0x30] sm:$0xff] %v2861_v27   ;;  %v1895_v39 = vmax.f32 %v1879_v63, 0.0  ;;  %v4435_v38 = vunpack.c.h.bf16 %v3896_v1 }
 0x1e3   : > { %v1880_v41 = vadd.f32 %v1864_v61, %v4090_v28  ;;  %v1867_v30 = vmul.f32 %v4434_v26, %v4059_v40  ;;  %v2866_v9 = vpack.c.bf16 %v1749_v21, %v1748_v52  ;;  %v4436_v48 = vunpack.c.l.bf16 %v3901_v58 }
 0x1e4   : > { %v1881_v56 = vadd.f32 %v1865_v42, %v4090_v28  ;;  %v1882_v6 = vadd.f32 %v1866_v22, %v4090_v28  ;;  %v1868_v18 = vmul.f32 %v4435_v38, %v4059_v40  ;;  %v4437_v34 = vunpack.c.h.bf16 %v3901_v58 }
 0x1e5   : > { %v1896_v33 = vmax.f32 %v1880_v41, 0.0  ;;  %v1883_v3 = vadd.f32 %v1867_v30, %v4090_v28  ;;  %v1869_v29 = vmul.f32 %v4436_v48, %v4059_v40  ;;  %3104 = vst [vmem:[%s4430_s4 + $0x38] sm:$0xff] %v2866_v9   ;;  %v4438_v44 = vunpack.c.l.bf16 %v3910_v11 }
 0x1e6   : > { %v1897_v5 = vmax.f32 %v1881_v56, 0.0  ;;  %v1898_v36 = vmax.f32 %v1882_v6, 0.0  ;;  %v1884_v43 = vadd.f32 %v1868_v18, %v4090_v28  ;;  %v1870_v47 = vmul.f32 %v4437_v34, %v4059_v40 }
 0x1e7   : > { %v2903_v1 = vpack.c.bf16 %v1896_v33, %v1895_v39  ;;  %v1899_v7 = vmax.f32 %v1883_v3, 0.0  ;;  %v1885_v49 = vadd.f32 %v1869_v29, %v4090_v28  ;;  %v1871_v50 = vmul.f32 %v4438_v44, %v4059_v40 }
 0x1e8   : > { %v2908_v8 = vpack.c.bf16 %v1898_v36, %v1897_v5  ;;  %v1900_v46 = vmax.f32 %v1884_v43, 0.0  ;;  %v1886_v0 = vadd.f32 %v1870_v47, %v4090_v28  ;;  %v4439_v58 = vunpack.c.h.bf16 %v3910_v11 }
 0x1e9   : > { %3113 = vst [vmem:[%s4430_s4 + $0x40] sm:$0xff] %v2903_v1   ;;  %v1901_v57 = vmax.f32 %v1885_v49, 0.0  ;;  %v1887_v61 = vadd.f32 %v1871_v50, %v4090_v28  ;;  %v4440_v27 = vunpack.c.l.bf16 %v3915_v62  ;;  %v4441_v59 = vunpack.c.h.bf16 %v3915_v62 }
 0x1ea   : > { %v1872_v19 = vmul.f32 %v4439_v58, %v4059_v40  ;;  %3114 = vst [vmem:[%s4430_s4 + $0x48] sm:$0xff] %v2908_v8   ;;  %v2913_v11 = vpack.c.bf16 %v1900_v46, %v1899_v7  ;;  %v1902_v45 = vmax.f32 %v1886_v0, 0.0  ;;  %v4442_v52 = vunpack.c.l.bf16 %v3924_v25 }
 0x1eb   : > { %v1873_v63 = vmul.f32 %v4440_v27, %v4059_v40  ;;  %v1874_v42 = vmul.f32 %v4441_v59, %v4059_v40  ;;  %v1903_v41 = vmax.f32 %v1887_v61, 0.0  ;;  %v4443_v62 = vunpack.c.h.bf16 %v3924_v25 }
 0x1ec   : > { %v1888_v22 = vadd.f32 %v1872_v19, %v4090_v28  ;;  %v1875_v21 = vmul.f32 %v4442_v52, %v4059_v40  ;;  %3115 = vst [vmem:[%s4430_s4 + $0x50] sm:$0xff] %v2913_v11   ;;  %v2918_v56 = vpack.c.bf16 %v1902_v45, %v1901_v57  ;;  %v4444_v18 = vunpack.c.l.bf16 %v3929_v4 }
 0x1ed   : > { %v1889_v26 = vadd.f32 %v1873_v63, %v4090_v28  ;;  %v1890_v30 = vadd.f32 %v1874_v42, %v4090_v28  ;;  %v1876_v39 = vmul.f32 %v4443_v62, %v4059_v40  ;;  %v4445_v25 = vunpack.c.h.bf16 %v3929_v4 }
 0x1ee   : > { %v1904_v6 = vmax.f32 %v1888_v22, 0.0  ;;  %v1891_v38 = vadd.f32 %v1875_v21, %v4090_v28  ;;  %v1877_v9 = vmul.f32 %v4444_v18, %v4059_v40  ;;  %3116 = vst [vmem:[%s4430_s4 + $0x58] sm:$0xff] %v2918_v56   ;;  %v4446_v34 = vunpack.c.l.bf16 %v3938_v35 }
 0x1ef   : > { %v1905_v33 = vmax.f32 %v1889_v26, 0.0  ;;  %v1906_v3 = vmax.f32 %v1890_v30, 0.0  ;;  %v1892_v48 = vadd.f32 %v1876_v39, %v4090_v28  ;;  %v1878_v29 = vmul.f32 %v4445_v25, %v4059_v40 }
 0x1f0   : > { %v2923_v5 = vpack.c.bf16 %v1904_v6, %v1903_v41  ;;  %v1907_v36 = vmax.f32 %v1891_v38, 0.0  ;;  %v1893_v43 = vadd.f32 %v1877_v9, %v4090_v28  ;;  %v2024_v47 = vmul.f32 %v4446_v34, %v4059_v40 }
 0x1f1   : > { %v2928_v1 = vpack.c.bf16 %v1906_v3, %v1905_v33  ;;  %v1908_v7 = vmax.f32 %v1892_v48, 0.0  ;;  %v1894_v49 = vadd.f32 %v1878_v29, %v4090_v28  ;;  %v4447_v4 = vunpack.c.h.bf16 %v3938_v35 }
 0x1f2   : > { %3117 = vst [vmem:[%s4430_s4 + $0x60] sm:$0xff] %v2923_v5   ;;  %v1909_v50 = vmax.f32 %v1893_v43, 0.0  ;;  %v2040_v8 = vadd.f32 %v2024_v47, %v4090_v28  ;;  %v4448_v46 = vunpack.c.l.bf16 %v3943_v12  ;;  %v4449_v58 = vunpack.c.h.bf16 %v3943_v12 }
 0x1f3   : > { %v2025_v44 = vmul.f32 %v4447_v4, %v4059_v40  ;;  %3118 = vst [vmem:[%s4430_s4 + $0x68] sm:$0xff] %v2928_v1   ;;  %v2933_v35 = vpack.c.bf16 %v1908_v7, %v1907_v36  ;;  %v1910_v57 = vmax.f32 %v1894_v49, 0.0  ;;  %v4450_v27 = vunpack.c.l.bf16 %v3952_v17 }
 0x1f4   : > { %v2026_v0 = vmul.f32 %v4448_v46, %v4059_v40  ;;  %v2027_v19 = vmul.f32 %v4449_v58, %v4059_v40  ;;  %v2056_v59 = vmax.f32 %v2040_v8, 0.0  ;;  %v4451_v12 = vunpack.c.h.bf16 %v3952_v17 }
 0x1f5   : > { %v2041_v61 = vadd.f32 %v2025_v44, %v4090_v28  ;;  %v2028_v63 = vmul.f32 %v4450_v27, %v4059_v40  ;;  %3119 = vst [vmem:[%s4430_s4 + $0x70] sm:$0xff] %v2933_v35   ;;  %v2938_v22 = vpack.c.bf16 %v1910_v57, %v1909_v50  ;;  %v4452_v41 = vunpack.c.l.bf16 %v3957_v51 }
 0x1f6   : > { %v2042_v42 = vadd.f32 %v2026_v0, %v4090_v28  ;;  %v2043_v11 = vadd.f32 %v2027_v19, %v4090_v28  ;;  %v2029_v45 = vmul.f32 %v4451_v12, %v4059_v40  ;;  %v4453_v17 = vunpack.c.h.bf16 %v3957_v51 }
 0x1f7   : > { %v2057_v52 = vmax.f32 %v2041_v61, 0.0  ;;  %v2044_v21 = vadd.f32 %v2028_v63, %v4090_v28  ;;  %v2030_v26 = vmul.f32 %v4452_v41, %v4059_v40  ;;  %3120 = vst [vmem:[%s4430_s4 + $0x78] sm:$0xff] %v2938_v22   ;;  %v4454_v9 = vunpack.c.l.bf16 %v3966_v55 }
 0x1f8   : > { %v2058_v30 = vmax.f32 %v2042_v42, 0.0  ;;  %v2059_v62 = vmax.f32 %v2043_v11, 0.0  ;;  %v2045_v39 = vadd.f32 %v2029_v45, %v4090_v28  ;;  %v2031_v56 = vmul.f32 %v4453_v17, %v4059_v40 }
 0x1f9   : > { %v2975_v6 = vpack.c.bf16 %v2057_v52, %v2056_v59  ;;  %v2060_v38 = vmax.f32 %v2044_v21, 0.0  ;;  %v2046_v18 = vadd.f32 %v2030_v26, %v4090_v28  ;;  %v2032_v33 = vmul.f32 %v4454_v9, %v4059_v40 }
 0x1fa   : > { %v2980_v3 = vpack.c.bf16 %v2059_v62, %v2058_v30  ;;  %v2061_v48 = vmax.f32 %v2045_v39, 0.0  ;;  %v2047_v25 = vadd.f32 %v2031_v56, %v4090_v28  ;;  %v4455_v51 = vunpack.c.h.bf16 %v3966_v55 }
 0x1fb   : > { %3129 = vst [vmem:[%s4430_s4 + $0x80] sm:$0xff] %v2975_v6   ;;  %v2062_v5 = vmax.f32 %v2046_v18, 0.0  ;;  %v2048_v36 = vadd.f32 %v2032_v33, %v4090_v28  ;;  %v4456_v43 = vunpack.c.l.bf16 %v3971_v23  ;;  %v4457_v47 = vunpack.c.h.bf16 %v3971_v23 }
 0x1fc   : > { %v2033_v29 = vmul.f32 %v4455_v51, %v4059_v40  ;;  %3130 = vst [vmem:[%s4430_s4 + $0x88] sm:$0xff] %v2980_v3   ;;  %v2985_v55 = vpack.c.bf16 %v2061_v48, %v2060_v38  ;;  %v2063_v7 = vmax.f32 %v2047_v25, 0.0  ;;  %v4458_v4 = vunpack.c.l.bf16 %v3980_v31 }
 0x1fd   : > { %v2034_v34 = vmul.f32 %v4456_v43, %v4059_v40  ;;  %v2035_v1 = vmul.f32 %v4457_v47, %v4059_v40  ;;  %v2064_v50 = vmax.f32 %v2048_v36, 0.0  ;;  %v4459_v23 = vunpack.c.h.bf16 %v3980_v31 }
 0x1fe   : > { %v2049_v49 = vadd.f32 %v2033_v29, %v4090_v28  ;;  %v2036_v44 = vmul.f32 %v4458_v4, %v4059_v40  ;;  %3131 = vst [vmem:[%s4430_s4 + $0x90] sm:$0xff] %v2985_v55   ;;  %v2990_v58 = vpack.c.bf16 %v2063_v7, %v2062_v5  ;;  %v4460_v57 = vunpack.c.l.bf16 %v3985_v32 }
 0x1ff   : > { %v2050_v8 = vadd.f32 %v2034_v34, %v4090_v28  ;;  %v2051_v46 = vadd.f32 %v2035_v1, %v4090_v28  ;;  %v2037_v0 = vmul.f32 %v4459_v23, %v4059_v40  ;;  %v4461_v31 = vunpack.c.h.bf16 %v3985_v32 }
 0x200   : > { %v2065_v19 = vmax.f32 %v2049_v49, 0.0  ;;  %v2052_v35 = vadd.f32 %v2036_v44, %v4090_v28  ;;  %v2038_v61 = vmul.f32 %v4460_v57, %v4059_v40  ;;  %3132 = vst [vmem:[%s4430_s4 + $0x98] sm:$0xff] %v2990_v58   ;;  %v4462_v22 = vunpack.c.l.bf16 %v3994_v13 }
 0x201   : > { %v2066_v27 = vmax.f32 %v2050_v8, 0.0  ;;  %v2067_v63 = vmax.f32 %v2051_v46, 0.0  ;;  %v2053_v59 = vadd.f32 %v2037_v0, %v4090_v28  ;;  %v2039_v42 = vmul.f32 %v4461_v31, %v4059_v40 }
 0x202   : > { %v2995_v11 = vpack.c.bf16 %v2065_v19, %v2064_v50  ;;  %v2068_v12 = vmax.f32 %v2052_v35, 0.0  ;;  %v2054_v45 = vadd.f32 %v2038_v61, %v4090_v28  ;;  %v2185_v52 = vmul.f32 %v4462_v22, %v4059_v40 }
 0x203   : > { %v3000_v21 = vpack.c.bf16 %v2067_v63, %v2066_v27  ;;  %v2069_v41 = vmax.f32 %v2053_v59, 0.0  ;;  %v2055_v26 = vadd.f32 %v2039_v42, %v4090_v28  ;;  %v4463_v32 = vunpack.c.h.bf16 %v3994_v13 }
 0x204   : > { %3133 = vst [vmem:[%s4430_s4 + $0xa0] sm:$0xff] %v2995_v11   ;;  %v2070_v62 = vmax.f32 %v2054_v45, 0.0  ;;  %v2201_v39 = vadd.f32 %v2185_v52, %v4090_v28  ;;  %v4464_v17 = vunpack.c.l.bf16 %v3999_v53  ;;  %v4465_v6 = vunpack.c.h.bf16 %v3999_v53 }
 0x205   : > { %v2186_v30 = vmul.f32 %v4463_v32, %v4059_v40  ;;  %3134 = vst [vmem:[%s4430_s4 + $0xa8] sm:$0xff] %v3000_v21   ;;  %v3005_v13 = vpack.c.bf16 %v2069_v41, %v2068_v12  ;;  %v2071_v18 = vmax.f32 %v2055_v26, 0.0  ;;  %v4466_v33 = vunpack.c.l.bf16 %v4011_v20 }
 0x206   : > { %v2187_v56 = vmul.f32 %v4464_v17, %v4059_v40  ;;  %v2188_v38 = vmul.f32 %v4465_v6, %v4059_v40  ;;  %v2217_v48 = vmax.f32 %v2201_v39, 0.0  ;;  %v4467_v53 = vunpack.c.h.bf16 %v4011_v20 }
 0x207   : > { %v2202_v9 = vadd.f32 %v2186_v30, %v4090_v28  ;;  %v2189_v3 = vmul.f32 %v4466_v33, %v4059_v40  ;;  %3135 = vst [vmem:[%s4430_s4 + $0xb0] sm:$0xff] %v3005_v13   ;;  %v3010_v5 = vpack.c.bf16 %v2071_v18, %v2070_v62  ;;  %v4468_v34 = vunpack.c.l.bf16 %v4020_v24 }
 0x208   : > { %v2203_v25 = vadd.f32 %v2187_v56, %v4090_v28  ;;  %v2204_v51 = vadd.f32 %v2188_v38, %v4090_v28  ;;  %v2190_v29 = vmul.f32 %v4467_v53, %v4059_v40  ;;  %v4469_v20 = vunpack.c.h.bf16 %v4020_v24 }
 0x209   : > { %v2218_v36 = vmax.f32 %v2202_v9, 0.0  ;;  %v2205_v43 = vadd.f32 %v2189_v3, %v4090_v28  ;;  %v2191_v47 = vmul.f32 %v4468_v34, %v4059_v40  ;;  %3136 = vst [vmem:[%s4430_s4 + $0xb8] sm:$0xff] %v3010_v5   ;;  %v4470_v8 = vunpack.c.l.bf16 %v4025_v54 }
 0x20a   : > { %v2219_v1 = vmax.f32 %v2203_v25, 0.0  ;;  %v2220_v55 = vmax.f32 %v2204_v51, 0.0  ;;  %v2206_v7 = vadd.f32 %v2190_v29, %v4090_v28  ;;  %v2192_v49 = vmul.f32 %v4469_v20, %v4059_v40 }
 0x20b   : > { %v3047_v4 = vpack.c.bf16 %v2218_v36, %v2217_v48  ;;  %v2221_v44 = vmax.f32 %v2205_v43, 0.0  ;;  %v2207_v50 = vadd.f32 %v2191_v47, %v4090_v28  ;;  %v2193_v46 = vmul.f32 %v4470_v8, %v4059_v40 }
 0x20c   : > { %v3052_v23 = vpack.c.bf16 %v2220_v55, %v2219_v1  ;;  %v2222_v0 = vmax.f32 %v2206_v7, 0.0  ;;  %v2208_v58 = vadd.f32 %v2192_v49, %v4090_v28  ;;  %v2194_v24 = vmul.f32 %v3031_v14, %v4059_v40 }
 0x20d   : > { %3145 = vst [vmem:[%s4430_s4 + $0xc0] sm:$0xff] %v3047_v4   ;;  %v2223_v19 = vmax.f32 %v2207_v50, 0.0  ;;  %v2209_v35 = vadd.f32 %v2193_v46, %v4090_v28  ;;  %v2195_v57 = vmul.f32 %v3034_v60, %v4059_v40  ;;  %v4471_v61 = vunpack.c.h.bf16 %v4034_v15 }
 0x20e   : > { %3146 = vst [vmem:[%s4430_s4 + $0xc8] sm:$0xff] %v3052_v23   ;;  %v3057_v14 = vpack.c.bf16 %v2222_v0, %v2221_v44  ;;  %v2224_v54 = vmax.f32 %v2208_v58, 0.0  ;;  %v2210_v63 = vadd.f32 %v2194_v24, %v4090_v28  ;;  %v2197_v59 = vmul.f32 %v3038_v2, %v4059_v40 }
 0x20f   : > { %v2196_v27 = vmul.f32 %v4471_v61, %v4059_v40  ;;  %v2225_v31 = vmax.f32 %v2209_v35, 0.0  ;;  %v2211_v42 = vadd.f32 %v2195_v57, %v4090_v28  ;;  %v4472_v15 = vunpack.c.h.bf16 %v4042_v16 }
 0x210   : > { %3147 = vst [vmem:[%s4430_s4 + $0xd0] sm:$0xff] %v3057_v14   ;;  %v3062_v12 = vpack.c.bf16 %v2224_v54, %v2223_v19  ;;  %v2226_v45 = vmax.f32 %v2210_v63, 0.0  ;;  %v2213_v22 = vadd.f32 %v2197_v59, %v4090_v28  ;;  %v2199_v2 = vmul.f32 %v3042_v10, %v4059_v40 }
 0x211   : > { %v2212_v60 = vadd.f32 %v2196_v27, %v4090_v28  ;;  %v2198_v11 = vmul.f32 %v4472_v15, %v4059_v40  ;;  %v2227_v52 = vmax.f32 %v2211_v42, 0.0  ;;  %v4473_v16 = vunpack.c.h.bf16 %v4047_v37 }
 0x212   : > { %3148 = vst [vmem:[%s4430_s4 + $0xd8] sm:$0xff] %v3062_v12   ;;  %v3067_v32 = vpack.c.bf16 %v2226_v45, %v2225_v31  ;;  %v2229_v30 = vmax.f32 %v2213_v22, 0.0  ;;  %v2215_v62 = vadd.f32 %v2199_v2, %v4090_v28 }
 0x213   : > { %v2228_v21 = vmax.f32 %v2212_v60, 0.0  ;;  %v2214_v41 = vadd.f32 %v2198_v11, %v4090_v28  ;;  %v2200_v26 = vmul.f32 %v4473_v16, %v4059_v40 }
 0x214   : > { %3149 = vst [vmem:[%s4430_s4 + $0xe0] sm:$0xff] %v3067_v32   ;;  %v2231_v56 = vmax.f32 %v2215_v62, 0.0 }
 0x215   : > { %v3072_v39 = vpack.c.bf16 %v2228_v21, %v2227_v52  ;;  %v2230_v17 = vmax.f32 %v2214_v41, 0.0  ;;  %v2216_v10 = vadd.f32 %v2200_v26, %v4090_v28 }
 0x217   : > { %3150 = vst [vmem:[%s4430_s4 + $0xe8] sm:$0xff] %v3072_v39   ;;  %v3077_v37 = vpack.c.bf16 %v2230_v17, %v2229_v30  ;;  %v2232_v40 = vmax.f32 %v2216_v10, 0.0 }
 0x219   : > { %3151 = vst [vmem:[%s4430_s4 + $0xf0] sm:$0xff] %v3077_v37   ;;  %v3082_v6 = vpack.c.bf16 %v2232_v40, %v2231_v56 }
 0x21b   : > { %3152 = vst [vmem:[%s4430_s4 + $0xf8] sm:$0xff] %v3082_v6  }
 0x21c PF: > { %s14_s15 = sadd.s32 1, %s3490_s15  }
 0x21d   : > { %p11_p6 = scmp.ge.s32.totalorder %s14_s15, 6  }
 0x21f   :  { %13 = sbr.rel (!%p11_p6) target bundleno = 1 (0x1), region = 77 }

// kernel: generator_forward.7
= control target key start
LH: loop header
LB: loop body
LE: loop exit
PB: predicated region body
PF: predicated region fallthrough
CT: control target
= control target key end

     0   :  { %s2692_s12 = smov 0   ;;  %s3053_s0 = inlined_call_operand.vmem [shape: bf16[4,512,512], index: 0, kind: input, shape index: {}]   ;;  %s3054_s1 = inlined_call_operand.vmem [shape: bf16[4,512,128], index: 1, kind: input, shape index: {}]   ;;  %s3055_s2 = inlined_call_operand.vmem [shape: f32[1,128], index: 2, kind: input, shape index: {}]   ;;  %s3056_s3 = inlined_call_operand.vmem [shape: f32[4,512,128], index: 3, kind: output, shape index: {}]  }
   0x1 LB: > { %s1996_s13 = sadd.s32 4294967295, %s2669_s12   ;;  %p2000_p0 = scmp.ge.s32.totalorder %s2669_s12, 1  ;;  %s2669_s12 = sphi %s2692_s12, %s13_s12  }
   0x2   : > { %p147_p1 = scmp.lt.s32.totalorder %s2669_s12, 5 }
   0x4   : > { %p148_p2 = pnand %p2000_p0, %p147_p1 }
   0x5   : > { %p176_p3 = scmp.lt.s32.totalorder (!%p148_p2), %s1996_s13, 3  ;;  %v2671_v0 = vmov (!%p148_p2), 0  }
   0x6   : > { %151 = sbr.rel (%p148_p2) target bundleno = 559 (0x22f), region = 32  ;;  %1223 = vmatprep.subr.bf16.mxu1 (!%p148_p2), %v2671_v0  ;;  %1512 = vmatprep.subr.bf16.mxu0 (!%p148_p2), %v2671_v0 }
   0xd   : > { %s3058_s13 = smov (!%p176_p3, %s1996_s13), 3 }
   0xe   : > { %s2171_s14 = sshll.u32 %s3058_s13, 8  ;;  %s2170_s18 = sshll.u32 %s3058_s13, 10 }
   0xf   : > { %s2708_s17 = scalar_lea.vmem %s3054_s1, %s2171_s14  ;;  %s2745_s21 = scalar_lea.vmem %s3053_s0, %s2170_s18 }
  0x10   : > { %v2310_v1 = vld [vmem:[%s2708_s17] sm:$0xff]   ;;  %v2312_v3 = vld [vmem:[%s2708_s17 + $0x8] sm:$0xff]   ;;  %v2314_v5 = vld [vmem:[%s2708_s17 + $0x10] sm:$0xff]   ;;  %s2172_s24 = sshll.u32 %s3058_s13, 9 }
  0x11   : > { %v2311_v2 = vld [vmem:[%s2708_s17 + $0x80] sm:$0xff]   ;;  %1224 = vmatpush1.bf16.msra.mxu1 %v2310_v1  ;;  %v2313_v4 = vld [vmem:[%s2708_s17 + $0x88] sm:$0xff]   ;;  %v2315_v6 = vld [vmem:[%s2708_s17 + $0x90] sm:$0xff]   ;;  %s2909_s27 = scalar_lea.vmem %s3056_s3, %s2172_s24 }
  0x12   : > { %1513 = vmatpush1.bf16.msra.mxu0 %v2311_v2  ;;  %1225 = vmatprep.subr.bf16.mxu1 %v2671_v0  ;;  %v2316_v7 = vld [vmem:[%s2708_s17 + $0x18] sm:$0xff]   ;;  %v2318_v9 = vld [vmem:[%s2708_s17 + $0x20] sm:$0xff]   ;;  %v2320_v11 = vld [vmem:[%s2708_s17 + $0x28] sm:$0xff]  }
  0x13   : > { %1514 = vmatprep.subr.bf16.mxu0 %v2671_v0  ;;  %v2317_v8 = vld [vmem:[%s2708_s17 + $0x98] sm:$0xff]   ;;  %v2319_v10 = vld [vmem:[%s2708_s17 + $0xa0] sm:$0xff]   ;;  %v2321_v12 = vld [vmem:[%s2708_s17 + $0xa8] sm:$0xff]  }
  0x14   : > { %v2322_v13 = vld [vmem:[%s2708_s17 + $0x30] sm:$0xff]   ;;  %v2324_v15 = vld [vmem:[%s2708_s17 + $0x38] sm:$0xff]   ;;  %v2326_v17 = vld [vmem:[%s2708_s17 + $0x40] sm:$0xff]  }
  0x15   : > { %1226 = vmatpush1.bf16.msra.mxu1 %v2312_v3  ;;  %v2323_v14 = vld [vmem:[%s2708_s17 + $0xb0] sm:$0xff]   ;;  %v2325_v16 = vld [vmem:[%s2708_s17 + $0xb8] sm:$0xff]   ;;  %v2327_v18 = vld [vmem:[%s2708_s17 + $0xc0] sm:$0xff]  }
  0x16   : > { %1515 = vmatpush1.bf16.msra.mxu0 %v2313_v4  ;;  %1227 = vmatprep.subr.bf16.mxu1 %v2671_v0  ;;  %v2344_v19 = vld [vmem:[%s2745_s21 + $0x4] ss:$16 sps:$4 sm:$0xff]   ;;  %v2328_v20 = vld [vmem:[%s2708_s17 + $0x48] sm:$0xff]   ;;  %v2332_v25 = vld [vmem:[%s2708_s17 + $0x58] sm:$0xff]  }
  0x17   : > { %1516 = vmatprep.subr.bf16.mxu0 %v2671_v0  ;;  %v2347_v21 = vld [vmem:[%s2745_s21 + $0xc] ss:$16 sps:$4 sm:$0xff]   ;;  %1255 = vmatprep.mubr.bf16.mxu1 %v2344_v19  ;;  %v2330_v23 = vld [vmem:[%s2708_s17 + $0x50] sm:$0xff]   ;;  %v2334_v27 = vld [vmem:[%s2708_s17 + $0x60] sm:$0xff]  }
  0x18   : > { %v2329_v22 = vld [vmem:[%s2708_s17 + $0xc8] sm:$0xff]   ;;  %1544 = vmatprep.mubr.bf16.mxu0 %v2347_v21  ;;  %v2331_v24 = vld [vmem:[%s2708_s17 + $0xd0] sm:$0xff]   ;;  %v2333_v26 = vld [vmem:[%s2708_s17 + $0xd8] sm:$0xff]  }
  0x19   : > { %1228 = vmatpush1.bf16.msra.mxu1 %v2314_v5  ;;  %v2335_v28 = vld [vmem:[%s2708_s17 + $0xe0] sm:$0xff]   ;;  %v2336_v29 = vld [vmem:[%s2708_s17 + $0x68] sm:$0xff]   ;;  %v2338_v31 = vld [vmem:[%s2708_s17 + $0x70] sm:$0xff]  }
  0x1a   : > { %1517 = vmatpush1.bf16.msra.mxu0 %v2315_v6  ;;  %1229 = vmatprep.subr.bf16.mxu1 %v2671_v0  ;;  %v2337_v30 = vld [vmem:[%s2708_s17 + $0xe8] sm:$0xff]   ;;  %v2339_v32 = vld [vmem:[%s2708_s17 + $0xf0] sm:$0xff]   ;;  %v2340_v33 = vld [vmem:[%s2708_s17 + $0x78] sm:$0xff]  }
  0x1b   : > { %1518 = vmatprep.subr.bf16.mxu0 %v2671_v0  ;;  %v2341_v34 = vld [vmem:[%s2708_s17 + $0xf8] sm:$0xff]   ;;  %v2342_v35 = vld [vmem:[%s2745_s21] ss:$16 sps:$4 sm:$0xff]   ;;  %v2348_v37 = vld [vmem:[%s2745_s21 + $0x24] ss:$16 sps:$4 sm:$0xff]  }
  0x1c   : > { %v2345_v36 = vld [vmem:[%s2745_s21 + $0x8] ss:$16 sps:$4 sm:$0xff]   ;;  %v2350_v38 = vld [vmem:[%s2745_s21 + $0x2c] ss:$16 sps:$4 sm:$0xff]   ;;  %v2352_v39 = vld [vmem:[%s2745_s21 + $0x20] ss:$16 sps:$4 sm:$0xff]  }
  0x1d   : > { %1230 = vmatpush1.bf16.msra.mxu1 %v2316_v7  ;;  %v2353_v40 = vld [vmem:[%s2745_s21 + $0x28] ss:$16 sps:$4 sm:$0xff]   ;;  %v2354_v41 = vld [vmem:[%s2745_s21 + $0x44] ss:$16 sps:$4 sm:$0xff]   ;;  %v2356_v42 = vld [vmem:[%s2745_s21 + $0x4c] ss:$16 sps:$4 sm:$0xff]  }
  0x1e   : > { %1519 = vmatpush1.bf16.msra.mxu0 %v2317_v8  ;;  %1231 = vmatprep.subr.bf16.mxu1 %v2671_v0  ;;  %v2358_v43 = vld [vmem:[%s2745_s21 + $0x40] ss:$16 sps:$4 sm:$0xff]   ;;  %v2359_v44 = vld [vmem:[%s2745_s21 + $0x48] ss:$16 sps:$4 sm:$0xff]   ;;  %v2360_v45 = vld [vmem:[%s2745_s21 + $0x64] ss:$16 sps:$4 sm:$0xff]  }
  0x1f   : > { %1520 = vmatprep.subr.bf16.mxu0 %v2671_v0  ;;  %v2362_v46 = vld [vmem:[%s2745_s21 + $0x6c] ss:$16 sps:$4 sm:$0xff]   ;;  %v2364_v47 = vld [vmem:[%s2745_s21 + $0x60] ss:$16 sps:$4 sm:$0xff]   ;;  %v2365_v48 = vld [vmem:[%s2745_s21 + $0x68] ss:$16 sps:$4 sm:$0xff]  }
  0x20   : > { %v2366_v49 = vld [vmem:[%s2745_s21 + $0x84] ss:$16 sps:$4 sm:$0xff]   ;;  %v2368_v50 = vld [vmem:[%s2745_s21 + $0x8c] ss:$16 sps:$4 sm:$0xff]   ;;  %v2370_v51 = vld [vmem:[%s2745_s21 + $0x80] ss:$16 sps:$4 sm:$0xff]  }
  0x21   : > { %1232 = vmatpush1.bf16.msra.mxu1 %v2318_v9  ;;  %v2371_v52 = vld [vmem:[%s2745_s21 + $0x88] ss:$16 sps:$4 sm:$0xff]   ;;  %v2372_v53 = vld [vmem:[%s2745_s21 + $0xa4] ss:$16 sps:$4 sm:$0xff]   ;;  %v2374_v54 = vld [vmem:[%s2745_s21 + $0xac] ss:$16 sps:$4 sm:$0xff]  }
  0x22   : > { %1521 = vmatpush1.bf16.msra.mxu0 %v2319_v10  ;;  %1233 = vmatprep.subr.bf16.mxu1 %v2671_v0  ;;  %v2376_v55 = vld [vmem:[%s2745_s21 + $0xa0] ss:$16 sps:$4 sm:$0xff]   ;;  %v2377_v56 = vld [vmem:[%s2745_s21 + $0xa8] ss:$16 sps:$4 sm:$0xff]   ;;  %v2378_v57 = vld [vmem:[%s2745_s21 + $0xc4] ss:$16 sps:$4 sm:$0xff]  }
  0x23   : > { %1522 = vmatprep.subr.bf16.mxu0 %v2671_v0  ;;  %v2380_v58 = vld [vmem:[%s2745_s21 + $0xcc] ss:$16 sps:$4 sm:$0xff]   ;;  %v2382_v59 = vld [vmem:[%s2745_s21 + $0xc0] ss:$16 sps:$4 sm:$0xff]   ;;  %v2383_v60 = vld [vmem:[%s2745_s21 + $0xc8] ss:$16 sps:$4 sm:$0xff]  }
  0x24   : > { %v2384_v61 = vld [vmem:[%s2745_s21 + $0xe4] ss:$16 sps:$4 sm:$0xff]   ;;  %v2386_v62 = vld [vmem:[%s2745_s21 + $0xec] ss:$16 sps:$4 sm:$0xff]   ;;  %v2388_v63 = vld [vmem:[%s2745_s21 + $0xe0] ss:$16 sps:$4 sm:$0xff]  }
  0x25   : > { %1234 = vmatpush1.bf16.msra.mxu1 %v2320_v11  ;;  %v2390_v1 = vld [vmem:[%s2745_s21 + $0x104] ss:$16 sps:$4 sm:$0xff]   ;;  %v2392_v2 = vld [vmem:[%s2745_s21 + $0x10c] ss:$16 sps:$4 sm:$0xff]   ;;  %v2394_v3 = vld [vmem:[%s2745_s21 + $0x100] ss:$16 sps:$4 sm:$0xff]  }
  0x26   : > { %1523 = vmatpush1.bf16.msra.mxu0 %v2321_v12  ;;  %1235 = vmatprep.subr.bf16.mxu1 %v2671_v0  ;;  %v2395_v4 = vld [vmem:[%s2745_s21 + $0x108] ss:$16 sps:$4 sm:$0xff]   ;;  %v2396_v5 = vld [vmem:[%s2745_s21 + $0x124] ss:$16 sps:$4 sm:$0xff]   ;;  %v2398_v6 = vld [vmem:[%s2745_s21 + $0x12c] ss:$16 sps:$4 sm:$0xff]  }
  0x27   : > { %1524 = vmatprep.subr.bf16.mxu0 %v2671_v0  ;;  %v2400_v7 = vld [vmem:[%s2745_s21 + $0x120] ss:$16 sps:$4 sm:$0xff]   ;;  %v2401_v8 = vld [vmem:[%s2745_s21 + $0x128] ss:$16 sps:$4 sm:$0xff]   ;;  %v2402_v9 = vld [vmem:[%s2745_s21 + $0x144] ss:$16 sps:$4 sm:$0xff]  }
  0x28   : > { %v2404_v10 = vld [vmem:[%s2745_s21 + $0x14c] ss:$16 sps:$4 sm:$0xff]   ;;  %v2406_v11 = vld [vmem:[%s2745_s21 + $0x140] ss:$16 sps:$4 sm:$0xff]   ;;  %v2407_v12 = vld [vmem:[%s2745_s21 + $0x148] ss:$16 sps:$4 sm:$0xff]  }
  0x29   : > { %1236 = vmatpush1.bf16.msra.mxu1 %v2322_v13  ;;  %v2408_v13 = vld [vmem:[%s2745_s21 + $0x164] ss:$16 sps:$4 sm:$0xff]   ;;  %v2418_v19 = vld [vmem:[%s2745_s21 + $0x180] ss:$16 sps:$4 sm:$0xff]  }
  0x2a   : > { %1525 = vmatpush1.bf16.msra.mxu0 %v2323_v14  ;;  %1237 = vmatprep.subr.bf16.mxu1 %v2671_v0  ;;  %v2410_v14 = vld [vmem:[%s2745_s21 + $0x16c] ss:$16 sps:$4 sm:$0xff]   ;;  %v2420_v21 = vld [vmem:[%s2745_s21 + $0x1a4] ss:$16 sps:$4 sm:$0xff]  }
  0x2b   : > { %1526 = vmatprep.subr.bf16.mxu0 %v2671_v0 }
  0x2d   : > { %1238 = vmatpush1.bf16.msra.mxu1 %v2324_v15  ;;  %v2412_v15 = vld [vmem:[%s2745_s21 + $0x160] ss:$16 sps:$4 sm:$0xff]  }
  0x2e   : > { %1527 = vmatpush1.bf16.msra.mxu0 %v2325_v16  ;;  %1239 = vmatprep.subr.bf16.mxu1 %v2671_v0  ;;  %v2413_v16 = vld [vmem:[%s2745_s21 + $0x168] ss:$16 sps:$4 sm:$0xff]  }
  0x2f   : > { %1528 = vmatprep.subr.bf16.mxu0 %v2671_v0 }
  0x31   : > { %1240 = vmatpush1.bf16.msra.mxu1 %v2326_v17  ;;  %v2414_v17 = vld [vmem:[%s2745_s21 + $0x184] ss:$16 sps:$4 sm:$0xff]  }
  0x32   : > { %1529 = vmatpush1.bf16.msra.mxu0 %v2327_v18  ;;  %1241 = vmatprep.subr.bf16.mxu1 %v2671_v0  ;;  %v2416_v18 = vld [vmem:[%s2745_s21 + $0x18c] ss:$16 sps:$4 sm:$0xff]  }
  0x33   : > { %1530 = vmatprep.subr.bf16.mxu0 %v2671_v0 }
  0x35   : > { %1242 = vmatpush1.bf16.msra.mxu1 %v2328_v20  ;;  %v2419_v20 = vld [vmem:[%s2745_s21 + $0x188] ss:$16 sps:$4 sm:$0xff]  }
  0x36   : > { %1531 = vmatpush1.bf16.msra.mxu0 %v2329_v22  ;;  %1243 = vmatprep.subr.bf16.mxu1 %v2671_v0  ;;  %v2422_v22 = vld [vmem:[%s2745_s21 + $0x1ac] ss:$16 sps:$4 sm:$0xff]  }
  0x37   : > { %1532 = vmatprep.subr.bf16.mxu0 %v2671_v0 }
  0x39   : > { %1244 = vmatpush1.bf16.msra.mxu1 %v2330_v23  ;;  %v2424_v23 = vld [vmem:[%s2745_s21 + $0x1a0] ss:$16 sps:$4 sm:$0xff]  }
  0x3a   : > { %1533 = vmatpush1.bf16.msra.mxu0 %v2331_v24  ;;  %1245 = vmatprep.subr.bf16.mxu1 %v2671_v0  ;;  %v2425_v24 = vld [vmem:[%s2745_s21 + $0x1a8] ss:$16 sps:$4 sm:$0xff]  }
  0x3b   : > { %1534 = vmatprep.subr.bf16.mxu0 %v2671_v0 }
  0x3d   : > { %1246 = vmatpush1.bf16.msra.mxu1 %v2332_v25  ;;  %v2426_v25 = vld [vmem:[%s2745_s21 + $0x1c4] ss:$16 sps:$4 sm:$0xff]  }
  0x3e   : > { %1535 = vmatpush1.bf16.msra.mxu0 %v2333_v26  ;;  %1247 = vmatprep.subr.bf16.mxu1 %v2671_v0  ;;  %v2428_v26 = vld [vmem:[%s2745_s21 + $0x1cc] ss:$16 sps:$4 sm:$0xff]  }
  0x3f   : > { %1536 = vmatprep.subr.bf16.mxu0 %v2671_v0 }
  0x41   : > { %1248 = vmatpush1.bf16.msra.mxu1 %v2334_v27  ;;  %v2430_v27 = vld [vmem:[%s2745_s21 + $0x1c0] ss:$16 sps:$4 sm:$0xff]  }
  0x42   : > { %1537 = vmatpush1.bf16.msra.mxu0 %v2335_v28  ;;  %1249 = vmatprep.subr.bf16.mxu1 %v2671_v0  ;;  %v2431_v28 = vld [vmem:[%s2745_s21 + $0x1c8] ss:$16 sps:$4 sm:$0xff]  }
  0x43   : > { %1538 = vmatprep.subr.bf16.mxu0 %v2671_v0 }
  0x45   : > { %1250 = vmatpush1.bf16.msra.mxu1 %v2336_v29  ;;  %v2432_v29 = vld [vmem:[%s2745_s21 + $0x1e4] ss:$16 sps:$4 sm:$0xff]  }
  0x46   : > { %1539 = vmatpush1.bf16.msra.mxu0 %v2337_v30  ;;  %1251 = vmatprep.subr.bf16.mxu1 %v2671_v0  ;;  %v2434_v30 = vld [vmem:[%s2745_s21 + $0x1ec] ss:$16 sps:$4 sm:$0xff]  }
  0x47   : > { %1540 = vmatprep.subr.bf16.mxu0 %v2671_v0 }
  0x49   : > { %1252 = vmatpush1.bf16.msra.mxu1 %v2338_v31  ;;  %v2436_v31 = vld [vmem:[%s2745_s21 + $0x1e0] ss:$16 sps:$4 sm:$0xff]  }
  0x4a   : > { %1541 = vmatpush1.bf16.msra.mxu0 %v2339_v32  ;;  %1253 = vmatprep.subr.bf16.mxu1 %v2671_v0  ;;  %v2437_v32 = vld [vmem:[%s2745_s21 + $0x1e8] ss:$16 sps:$4 sm:$0xff]  }
  0x4b   : > { %1542 = vmatprep.subr.bf16.mxu0 %v2671_v0  ;;  %v2389_v0 = vld [vmem:[%s2745_s21 + $0xe8] ss:$16 sps:$4 sm:$0xff]  }
  0x4d   : > { %1254 = vmatpush1.bf16.msra.mxu1 %v2340_v33  ;;  %v2438_v33 = vld [vmem:[%s2745_s21 + $0x204] ss:$16 sps:$4 sm:$0xff]  }
  0x4e   : > { %1543 = vmatpush1.bf16.msra.mxu0 %v2341_v34  ;;  %v2440_v34 = vld [vmem:[%s2745_s21 + $0x20c] ss:$16 sps:$4 sm:$0xff]  }
  0x50   : > { %1256 = vmatmul.mubr.bf16.vlgmr.msra.gmra.mrb[0].mxu1 %v2342_v35  ;;  %v2442_v35 = vld [vmem:[%s2745_s21 + $0x200] ss:$16 sps:$4 sm:$0xff]  }
  0x51   : > { %1545 = vmatmul.mubr.bf16.vlgmr.msra.gmra.mrb[0].mxu0 %v2345_v36  ;;  %1263 = vmatprep.mubr.bf16.mxu1 %v2348_v37  ;;  %v2443_v36 = vld [vmem:[%s2745_s21 + $0x208] ss:$16 sps:$4 sm:$0xff]   ;;  %v2444_v37 = vld [vmem:[%s2745_s21 + $0x224] ss:$16 sps:$4 sm:$0xff]  }
  0x52   : > { %1552 = vmatprep.mubr.bf16.mxu0 %v2350_v38  ;;  %v2446_v38 = vld [vmem:[%s2745_s21 + $0x22c] ss:$16 sps:$4 sm:$0xff]  }
  0x58   : > { %1264 = vmatmul.mubr.bf16.gmra.mrb[4].mxu1 %v2352_v39  ;;  %v2448_v39 = vld [vmem:[%s2745_s21 + $0x220] ss:$16 sps:$4 sm:$0xff]  }
  0x59   : > { %1553 = vmatmul.mubr.bf16.gmra.mrb[4].mxu0 %v2353_v40  ;;  %1271 = vmatprep.mubr.bf16.mxu1 %v2354_v41  ;;  %v2449_v40 = vld [vmem:[%s2745_s21 + $0x228] ss:$16 sps:$4 sm:$0xff]   ;;  %v2450_v41 = vld [vmem:[%s2745_s21 + $0x244] ss:$16 sps:$4 sm:$0xff]  }
  0x5a   : > { %1560 = vmatprep.mubr.bf16.mxu0 %v2356_v42  ;;  %v2452_v42 = vld [vmem:[%s2745_s21 + $0x24c] ss:$16 sps:$4 sm:$0xff]  }
  0x60   : > { %1272 = vmatmul.mubr.bf16.gmra.mrb[8].mxu1 %v2358_v43  ;;  %v2454_v43 = vld [vmem:[%s2745_s21 + $0x240] ss:$16 sps:$4 sm:$0xff]  }
  0x61   : > { %1561 = vmatmul.mubr.bf16.gmra.mrb[8].mxu0 %v2359_v44  ;;  %1279 = vmatprep.mubr.bf16.mxu1 %v2360_v45  ;;  %v2455_v44 = vld [vmem:[%s2745_s21 + $0x248] ss:$16 sps:$4 sm:$0xff]   ;;  %v2456_v45 = vld [vmem:[%s2745_s21 + $0x264] ss:$16 sps:$4 sm:$0xff]  }
  0x62   : > { %1568 = vmatprep.mubr.bf16.mxu0 %v2362_v46  ;;  %v2458_v46 = vld [vmem:[%s2745_s21 + $0x26c] ss:$16 sps:$4 sm:$0xff]  }
  0x68   : > { %1280 = vmatmul.mubr.bf16.gmra.mrb[12].mxu1 %v2364_v47  ;;  %v2460_v47 = vld [vmem:[%s2745_s21 + $0x260] ss:$16 sps:$4 sm:$0xff]  }
  0x69   : > { %1569 = vmatmul.mubr.bf16.gmra.mrb[12].mxu0 %v2365_v48  ;;  %1287 = vmatprep.mubr.bf16.mxu1 %v2366_v49  ;;  %v2461_v48 = vld [vmem:[%s2745_s21 + $0x268] ss:$16 sps:$4 sm:$0xff]   ;;  %v2462_v49 = vld [vmem:[%s2745_s21 + $0x284] ss:$16 sps:$4 sm:$0xff]  }
  0x6a   : > { %1576 = vmatprep.mubr.bf16.mxu0 %v2368_v50  ;;  %v2464_v50 = vld [vmem:[%s2745_s21 + $0x28c] ss:$16 sps:$4 sm:$0xff]  }
  0x70   : > { %1288 = vmatmul.mubr.bf16.gmra.mrb[16].mxu1 %v2370_v51  ;;  %v2466_v51 = vld [vmem:[%s2745_s21 + $0x280] ss:$16 sps:$4 sm:$0xff]  }
  0x71   : > { %1577 = vmatmul.mubr.bf16.gmra.mrb[16].mxu0 %v2371_v52  ;;  %1295 = vmatprep.mubr.bf16.mxu1 %v2372_v53  ;;  %v2467_v52 = vld [vmem:[%s2745_s21 + $0x288] ss:$16 sps:$4 sm:$0xff]   ;;  %v2468_v53 = vld [vmem:[%s2745_s21 + $0x2a4] ss:$16 sps:$4 sm:$0xff]  }
  0x72   : > { %1584 = vmatprep.mubr.bf16.mxu0 %v2374_v54  ;;  %v2470_v54 = vld [vmem:[%s2745_s21 + $0x2ac] ss:$16 sps:$4 sm:$0xff]  }
  0x78   : > { %1296 = vmatmul.mubr.bf16.gmra.mrb[20].mxu1 %v2376_v55  ;;  %v2472_v55 = vld [vmem:[%s2745_s21 + $0x2a0] ss:$16 sps:$4 sm:$0xff]  }
  0x79   : > { %1585 = vmatmul.mubr.bf16.gmra.mrb[20].mxu0 %v2377_v56  ;;  %1303 = vmatprep.mubr.bf16.mxu1 %v2378_v57  ;;  %v2473_v56 = vld [vmem:[%s2745_s21 + $0x2a8] ss:$16 sps:$4 sm:$0xff]   ;;  %v2474_v57 = vld [vmem:[%s2745_s21 + $0x2c4] ss:$16 sps:$4 sm:$0xff]  }
  0x7a   : > { %1592 = vmatprep.mubr.bf16.mxu0 %v2380_v58  ;;  %v2476_v58 = vld [vmem:[%s2745_s21 + $0x2cc] ss:$16 sps:$4 sm:$0xff]  }
  0x80   : > { %1304 = vmatmul.mubr.bf16.gmra.mrb[24].mxu1 %v2382_v59  ;;  %v2478_v59 = vld [vmem:[%s2745_s21 + $0x2c0] ss:$16 sps:$4 sm:$0xff]  }
  0x81   : > { %1593 = vmatmul.mubr.bf16.gmra.mrb[24].mxu0 %v2383_v60  ;;  %1311 = vmatprep.mubr.bf16.mxu1 %v2384_v61  ;;  %v2479_v60 = vld [vmem:[%s2745_s21 + $0x2c8] ss:$16 sps:$4 sm:$0xff]   ;;  %v2480_v61 = vld [vmem:[%s2745_s21 + $0x2e4] ss:$16 sps:$4 sm:$0xff]  }
  0x82   : > { %1600 = vmatprep.mubr.bf16.mxu0 %v2386_v62  ;;  %v2482_v62 = vld [vmem:[%s2745_s21 + $0x2ec] ss:$16 sps:$4 sm:$0xff]  }
  0x88   : > { %1312 = vmatmul.mubr.bf16.gmra.mrb[28].mxu1 %v2388_v63  ;;  %v2484_v63 = vld [vmem:[%s2745_s21 + $0x2e0] ss:$16 sps:$4 sm:$0xff]  }
  0x89   : > { %1601 = vmatmul.mubr.bf16.gmra.mrb[28].mxu0 %v2389_v0  ;;  %1319 = vmatprep.mubr.bf16.mxu1 %v2390_v1  ;;  %v2485_v0 = vld [vmem:[%s2745_s21 + $0x2e8] ss:$16 sps:$4 sm:$0xff]   ;;  %v2486_v1 = vld [vmem:[%s2745_s21 + $0x304] ss:$16 sps:$4 sm:$0xff]  }
  0x8a   : > { %1608 = vmatprep.mubr.bf16.mxu0 %v2392_v2  ;;  %v2488_v2 = vld [vmem:[%s2745_s21 + $0x30c] ss:$16 sps:$4 sm:$0xff]  }
  0x90   : > { %1320 = vmatmul.mubr.bf16.gmra.mrb[32].mxu1 %v2394_v3  ;;  %v2490_v3 = vld [vmem:[%s2745_s21 + $0x300] ss:$16 sps:$4 sm:$0xff]  }
  0x91   : > { %1609 = vmatmul.mubr.bf16.gmra.mrb[32].mxu0 %v2395_v4  ;;  %1327 = vmatprep.mubr.bf16.mxu1 %v2396_v5  ;;  %v2491_v4 = vld [vmem:[%s2745_s21 + $0x308] ss:$16 sps:$4 sm:$0xff]   ;;  %v2492_v5 = vld [vmem:[%s2745_s21 + $0x324] ss:$16 sps:$4 sm:$0xff]  }
  0x92   : > { %1616 = vmatprep.mubr.bf16.mxu0 %v2398_v6  ;;  %v2494_v6 = vld [vmem:[%s2745_s21 + $0x32c] ss:$16 sps:$4 sm:$0xff]  }
  0x98   : > { %1328 = vmatmul.mubr.bf16.gmra.mrb[36].mxu1 %v2400_v7  ;;  %v2496_v7 = vld [vmem:[%s2745_s21 + $0x320] ss:$16 sps:$4 sm:$0xff]  }
  0x99   : > { %1617 = vmatmul.mubr.bf16.gmra.mrb[36].mxu0 %v2401_v8  ;;  %1335 = vmatprep.mubr.bf16.mxu1 %v2402_v9  ;;  %v2497_v8 = vld [vmem:[%s2745_s21 + $0x328] ss:$16 sps:$4 sm:$0xff]   ;;  %v2498_v9 = vld [vmem:[%s2745_s21 + $0x344] ss:$16 sps:$4 sm:$0xff]  }
  0x9a   : > { %1624 = vmatprep.mubr.bf16.mxu0 %v2404_v10  ;;  %v2500_v10 = vld [vmem:[%s2745_s21 + $0x34c] ss:$16 sps:$4 sm:$0xff]  }
  0xa0   : > { %1336 = vmatmul.mubr.bf16.gmra.mrb[40].mxu1 %v2406_v11  ;;  %v2502_v11 = vld [vmem:[%s2745_s21 + $0x340] ss:$16 sps:$4 sm:$0xff]  }
  0xa1   : > { %1625 = vmatmul.mubr.bf16.gmra.mrb[40].mxu0 %v2407_v12  ;;  %1343 = vmatprep.mubr.bf16.mxu1 %v2408_v13  ;;  %v2503_v12 = vld [vmem:[%s2745_s21 + $0x348] ss:$16 sps:$4 sm:$0xff]   ;;  %v2504_v13 = vld [vmem:[%s2745_s21 + $0x364] ss:$16 sps:$4 sm:$0xff]  }
  0xa2   : > { %1632 = vmatprep.mubr.bf16.mxu0 %v2410_v14  ;;  %v2506_v14 = vld [vmem:[%s2745_s21 + $0x36c] ss:$16 sps:$4 sm:$0xff]  }
  0xa8   : > { %1344 = vmatmul.mubr.bf16.gmra.mrb[44].mxu1 %v2412_v15  ;;  %v2891_v15 = vld [vmem:[%s3055_s2] ss:$0 sm:$0xff] }
  0xa9   : > { %1633 = vmatmul.mubr.bf16.gmra.mrb[44].mxu0 %v2413_v16  ;;  %1351 = vmatprep.mubr.bf16.mxu1 %v2414_v17 }
  0xaa   : > { %1640 = vmatprep.mubr.bf16.mxu0 %v2416_v18 }
  0xb0   : > { %1352 = vmatmul.mubr.bf16.gmra.mrb[48].mxu1 %v2418_v19 }
  0xb1   : > { %1641 = vmatmul.mubr.bf16.gmra.mrb[48].mxu0 %v2419_v20  ;;  %1359 = vmatprep.mubr.bf16.mxu1 %v2420_v21  ;;  %v2508_v20 = vld [vmem:[%s2745_s21 + $0x360] ss:$16 sps:$4 sm:$0xff]  }
  0xb2   : > { %1648 = vmatprep.mubr.bf16.mxu0 %v2422_v22 }
  0xb8   : > { %1360 = vmatmul.mubr.bf16.gmra.mrb[52].mxu1 %v2424_v23  ;;  %v2509_v23 = vld [vmem:[%s2745_s21 + $0x368] ss:$16 sps:$4 sm:$0xff]  }
  0xb9   : > { %1649 = vmatmul.mubr.bf16.gmra.mrb[52].mxu0 %v2425_v24  ;;  %1367 = vmatprep.mubr.bf16.mxu1 %v2426_v25  ;;  %v2510_v24 = vld [vmem:[%s2745_s21 + $0x384] ss:$16 sps:$4 sm:$0xff]  }
  0xba   : > { %1656 = vmatprep.mubr.bf16.mxu0 %v2428_v26 }
  0xc0   : > { %1368 = vmatmul.mubr.bf16.gmra.mrb[56].mxu1 %v2430_v27 }
  0xc1   : > { %1657 = vmatmul.mubr.bf16.gmra.mrb[56].mxu0 %v2431_v28  ;;  %1375 = vmatprep.mubr.bf16.mxu1 %v2432_v29  ;;  %v2512_v29 = vld [vmem:[%s2745_s21 + $0x38c] ss:$16 sps:$4 sm:$0xff]  }
  0xc2   : > { %1664 = vmatprep.mubr.bf16.mxu0 %v2434_v30 }
  0xc8   : > { %1376 = vmatmul.mubr.bf16.gmra.mrb[60].mxu1 %v2436_v31 }
  0xc9   : > { %1665 = vmatmul.mubr.bf16.gmra.mrb[60].mxu0 %v2437_v32  ;;  %1383 = vmatprep.mubr.bf16.mxu1 %v2438_v33 }
  0xca   : > { %1672 = vmatprep.mubr.bf16.mxu0 %v2440_v34 }
  0xd0   : > { %1384 = vmatmul.mubr.bf16.gmra.mrb[64].mxu1 %v2442_v35 }
  0xd1   : > { %1673 = vmatmul.mubr.bf16.gmra.mrb[64].mxu0 %v2443_v36  ;;  %1391 = vmatprep.mubr.bf16.mxu1 %v2444_v37  ;;  %v2514_v36 = vld [vmem:[%s2745_s21 + $0x380] ss:$16 sps:$4 sm:$0xff]  }
  0xd2   : > { %1680 = vmatprep.mubr.bf16.mxu0 %v2446_v38 }
  0xd8   : > { %1392 = vmatmul.mubr.bf16.gmra.mrb[68].mxu1 %v2448_v39  ;;  %v2515_v39 = vld [vmem:[%s2745_s21 + $0x388] ss:$16 sps:$4 sm:$0xff]  }
  0xd9   : > { %1681 = vmatmul.mubr.bf16.gmra.mrb[68].mxu0 %v2449_v40  ;;  %1399 = vmatprep.mubr.bf16.mxu1 %v2450_v41  ;;  %v2516_v40 = vld [vmem:[%s2745_s21 + $0x3a4] ss:$16 sps:$4 sm:$0xff]  }
  0xda   : > { %1688 = vmatprep.mubr.bf16.mxu0 %v2452_v42 }
  0xe0   : > { %1400 = vmatmul.mubr.bf16.gmra.mrb[72].mxu1 %v2454_v43 }
  0xe1   : > { %1689 = vmatmul.mubr.bf16.gmra.mrb[72].mxu0 %v2455_v44  ;;  %1407 = vmatprep.mubr.bf16.mxu1 %v2456_v45  ;;  %v2518_v45 = vld [vmem:[%s2745_s21 + $0x3ac] ss:$16 sps:$4 sm:$0xff]  }
  0xe2   : > { %1696 = vmatprep.mubr.bf16.mxu0 %v2458_v46 }
  0xe8   : > { %1408 = vmatmul.mubr.bf16.gmra.mrb[76].mxu1 %v2460_v47 }
  0xe9   : > { %1697 = vmatmul.mubr.bf16.gmra.mrb[76].mxu0 %v2461_v48  ;;  %1415 = vmatprep.mubr.bf16.mxu1 %v2462_v49 }
  0xea   : > { %1704 = vmatprep.mubr.bf16.mxu0 %v2464_v50 }
  0xf0   : > { %1416 = vmatmul.mubr.bf16.gmra.mrb[80].mxu1 %v2466_v51 }
  0xf1   : > { %1705 = vmatmul.mubr.bf16.gmra.mrb[80].mxu0 %v2467_v52  ;;  %1423 = vmatprep.mubr.bf16.mxu1 %v2468_v53 }
  0xf2   : > { %1712 = vmatprep.mubr.bf16.mxu0 %v2470_v54  ;;  %v2520_v54 = vld [vmem:[%s2745_s21 + $0x3a0] ss:$16 sps:$4 sm:$0xff]  }
  0xf8   : > { %1424 = vmatmul.mubr.bf16.gmra.mrb[84].mxu1 %v2472_v55 }
  0xf9   : > { %1713 = vmatmul.mubr.bf16.gmra.mrb[84].mxu0 %v2473_v56  ;;  %1431 = vmatprep.mubr.bf16.mxu1 %v2474_v57  ;;  %v2521_v57 = vld [vmem:[%s2745_s21 + $0x3a8] ss:$16 sps:$4 sm:$0xff]  }
  0xfa   : > { %1720 = vmatprep.mubr.bf16.mxu0 %v2476_v58  ;;  %v2522_v58 = vld [vmem:[%s2745_s21 + $0x3c4] ss:$16 sps:$4 sm:$0xff]  }
 0x100   : > { %1432 = vmatmul.mubr.bf16.gmra.mrb[88].mxu1 %v2478_v59 }
 0x101   : > { %1721 = vmatmul.mubr.bf16.gmra.mrb[88].mxu0 %v2479_v60  ;;  %1439 = vmatprep.mubr.bf16.mxu1 %v2480_v61 }
 0x102   : > { %1728 = vmatprep.mubr.bf16.mxu0 %v2482_v62 }
 0x108   : > { %1440 = vmatmul.mubr.bf16.gmra.mrb[92].mxu1 %v2484_v63  ;;  %v2524_v63 = vld [vmem:[%s2745_s21 + $0x3cc] ss:$16 sps:$4 sm:$0xff]  }
 0x109   : > { %1729 = vmatmul.mubr.bf16.gmra.mrb[92].mxu0 %v2485_v0  ;;  %1447 = vmatprep.mubr.bf16.mxu1 %v2486_v1 }
 0x10a   : > { %1736 = vmatprep.mubr.bf16.mxu0 %v2488_v2 }
 0x110   : > { %1448 = vmatmul.mubr.bf16.gmra.mrb[96].mxu1 %v2490_v3 }
 0x111   : > { %1737 = vmatmul.mubr.bf16.gmra.mrb[96].mxu0 %v2491_v4  ;;  %1455 = vmatprep.mubr.bf16.mxu1 %v2492_v5 }
 0x112   : > { %1744 = vmatprep.mubr.bf16.mxu0 %v2494_v6 }
 0x118   : > { %1456 = vmatmul.mubr.bf16.gmra.mrb[100].mxu1 %v2496_v7 }
 0x119   : > { %1745 = vmatmul.mubr.bf16.gmra.mrb[100].mxu0 %v2497_v8  ;;  %1463 = vmatprep.mubr.bf16.mxu1 %v2498_v9  ;;  %v2526_v8 = vld [vmem:[%s2745_s21 + $0x3c0] ss:$16 sps:$4 sm:$0xff]  }
 0x11a   : > { %1752 = vmatprep.mubr.bf16.mxu0 %v2500_v10 }
 0x120   : > { %1464 = vmatmul.mubr.bf16.gmra.mrb[104].mxu1 %v2502_v11  ;;  %v2527_v11 = vld [vmem:[%s2745_s21 + $0x3c8] ss:$16 sps:$4 sm:$0xff]  }
 0x121   : > { %1753 = vmatmul.mubr.bf16.gmra.mrb[104].mxu0 %v2503_v12  ;;  %1471 = vmatprep.mubr.bf16.mxu1 %v2504_v13  ;;  %v2528_v12 = vld [vmem:[%s2745_s21 + $0x3e4] ss:$16 sps:$4 sm:$0xff]  }
 0x122   : > { %1760 = vmatprep.mubr.bf16.mxu0 %v2506_v14 }
 0x123   : > { %v1257_v16 = vpop.f32.mrb[0].mxu1 }
 0x124   : > { %v1258_v17 = vadd.f32 %v2891_v15, %v1257_v16  ;;  %v1546_v18 = vpop.f32.mrb[0].mxu0  ;;  %v1259_v19 = vpop.f32.mrb[1].mxu1 }
 0x125   : > { %v1548_v21 = vpop.f32.mrb[1].mxu0  ;;  %v1260_v22 = vpop.f32.mrb[2].mxu1 }
 0x126   : > { %v1547_v25 = vadd.f32 %v1546_v18, %v1258_v17  ;;  %v1261_v26 = vadd.f32 %v2891_v15, %v1260_v22  ;;  %v1549_v27 = vpop.f32.mrb[2].mxu0  ;;  %v1262_v28 = vpop.f32.mrb[3].mxu1  ;;  %v2530_v18 = vld [vmem:[%s2745_s21 + $0x3ec] ss:$16 sps:$4 sm:$0xff]  }
 0x127   : > { %v1551_v30 = vpop.f32.mrb[3].mxu0 }
 0x128   : > { %2534 = vtanh.f32 %v1547_v25  ;;  %v1550_v31 = vadd.f32 %v1549_v27, %v1261_v26  ;;  %1472 = vmatmul.mubr.bf16.gmra.mrb[108].mxu1 %v2508_v20  ;;  %v2532_v27 = vld [vmem:[%s2745_s21 + $0x3e0] ss:$16 sps:$4 sm:$0xff]   ;;  %v2533_v30 = vld [vmem:[%s2745_s21 + $0x3e8] ss:$16 sps:$4 sm:$0xff]  }
 0x129   : > { %1761 = vmatmul.mubr.bf16.gmra.mrb[108].mxu0 %v2509_v23  ;;  %1479 = vmatprep.mubr.bf16.mxu1 %v2510_v24 }
 0x12a   : > { %2536 = vtanh.f32 %v1550_v31  ;;  %1768 = vmatprep.mubr.bf16.mxu0 %v2512_v29 }
 0x12b   : > { %v1265_v32 = vpop.f32.mrb[4].mxu1 }
 0x12c   : > { %v1266_v33 = vadd.f32 %v2891_v15, %v1265_v32  ;;  %v1554_v34 = vpop.f32.mrb[4].mxu0  ;;  %v1267_v35 = vpop.f32.mrb[5].mxu1 }
 0x12d   : > { %v1556_v37 = vpop.f32.mrb[5].mxu0  ;;  %v1268_v38 = vpop.f32.mrb[6].mxu1 }
 0x12e   : > { %v1555_v41 = vadd.f32 %v1554_v34, %v1266_v33  ;;  %v1269_v42 = vadd.f32 %v2891_v15, %v1268_v38  ;;  %v1557_v43 = vpop.f32.mrb[6].mxu0  ;;  %v1270_v44 = vpop.f32.mrb[7].mxu1 }
 0x12f   : > { %v1559_v46 = vpop.f32.mrb[7].mxu0 }
 0x130   : > { %2538 = vtanh.f32 %v1555_v41  ;;  %v1558_v47 = vadd.f32 %v1557_v43, %v1269_v42  ;;  %1480 = vmatmul.mubr.bf16.gmra.mrb[112].mxu1 %v2514_v36 }
 0x131   : > { %1769 = vmatmul.mubr.bf16.gmra.mrb[112].mxu0 %v2515_v39  ;;  %1487 = vmatprep.mubr.bf16.mxu1 %v2516_v40 }
 0x132   : > { %v2535_v48 = vpop.eup %2534  ;;  %2540 = vtanh.f32 %v1558_v47  ;;  %1776 = vmatprep.mubr.bf16.mxu0 %v2518_v45 }
 0x133   : > { %1865 = vst [vmem:[%s2909_s27] sm:$0xff] %v2535_v48  ;;  %v1273_v49 = vpop.f32.mrb[8].mxu1 }
 0x134   : > { %v2537_v50 = vpop.eup %2536  ;;  %v1274_v51 = vadd.f32 %v2891_v15, %v1273_v49  ;;  %v1562_v52 = vpop.f32.mrb[8].mxu0 }
 0x135   : > { %v1275_v53 = vpop.f32.mrb[9].mxu1  ;;  %1866 = vst [vmem:[%s2909_s27 + $0x8] sm:$0xff] %v2537_v50  ;;  %v1564_v55 = vpop.f32.mrb[9].mxu0 }
 0x136   : > { %v1276_v56 = vpop.f32.mrb[10].mxu1  ;;  %v1563_v59 = vadd.f32 %v1562_v52, %v1274_v51  ;;  %v1565_v61 = vpop.f32.mrb[10].mxu0 }
 0x137   : > { %v1277_v60 = vadd.f32 %v2891_v15, %v1276_v56  ;;  %v1278_v62 = vpop.f32.mrb[11].mxu1  ;;  %v1567_v0 = vpop.f32.mrb[11].mxu0 }
 0x138   : > { %2542 = vtanh.f32 %v1563_v59  ;;  %1488 = vmatmul.mubr.bf16.gmra.mrb[116].mxu1 %v2520_v54 }
 0x139   : > { %v1566_v1 = vadd.f32 %v1565_v61, %v1277_v60  ;;  %1777 = vmatmul.mubr.bf16.gmra.mrb[116].mxu0 %v2521_v57  ;;  %1495 = vmatprep.mubr.bf16.mxu1 %v2522_v58 }
 0x13a   : > { %v2539_v2 = vpop.eup %2538  ;;  %1784 = vmatprep.mubr.bf16.mxu0 %v2524_v63 }
 0x13b   : > { %2544 = vtanh.f32 %v1566_v1  ;;  %1867 = vst [vmem:[%s2909_s27 + $0x10] sm:$0xff] %v2539_v2  ;;  %v1281_v3 = vpop.f32.mrb[12].mxu1 }
 0x13c   : > { %v2541_v4 = vpop.eup %2540  ;;  %v1282_v5 = vadd.f32 %v2891_v15, %v1281_v3  ;;  %v1570_v6 = vpop.f32.mrb[12].mxu0 }
 0x13d   : > { %v1283_v7 = vpop.f32.mrb[13].mxu1  ;;  %1868 = vst [vmem:[%s2909_s27 + $0x18] sm:$0xff] %v2541_v4  ;;  %v1572_v9 = vpop.f32.mrb[13].mxu0 }
 0x13e   : > { %v1284_v10 = vpop.f32.mrb[14].mxu1  ;;  %v1571_v13 = vadd.f32 %v1570_v6, %v1282_v5  ;;  %v1573_v16 = vpop.f32.mrb[14].mxu0 }
 0x13f   : > { %v1285_v14 = vadd.f32 %v2891_v15, %v1284_v10  ;;  %v1286_v17 = vpop.f32.mrb[15].mxu1  ;;  %v1575_v19 = vpop.f32.mrb[15].mxu0 }
 0x140   : > { %2546 = vtanh.f32 %v1571_v13  ;;  %1496 = vmatmul.mubr.bf16.gmra.mrb[120].mxu1 %v2526_v8 }
 0x141   : > { %v1574_v20 = vadd.f32 %v1573_v16, %v1285_v14  ;;  %1785 = vmatmul.mubr.bf16.gmra.mrb[120].mxu0 %v2527_v11  ;;  %1503 = vmatprep.mubr.bf16.mxu1 %v2528_v12 }
 0x142   : > { %v2543_v21 = vpop.eup %2542  ;;  %1792 = vmatprep.mubr.bf16.mxu0 %v2530_v18 }
 0x143   : > { %2548 = vtanh.f32 %v1574_v20  ;;  %1869 = vst [vmem:[%s2909_s27 + $0x20] sm:$0xff] %v2543_v21  ;;  %v1289_v22 = vpop.f32.mrb[16].mxu1 }
 0x144   : > { %v1290_v24 = vadd.f32 %v2891_v15, %v1289_v22  ;;  %v1578_v25 = vpop.f32.mrb[16].mxu0  ;;  %v1291_v26 = vpop.f32.mrb[17].mxu1 }
 0x145   : > { %v2545_v23 = vpop.eup %2544  ;;  %v1580_v28 = vpop.f32.mrb[17].mxu0 }
 0x146   : > { %1870 = vst [vmem:[%s2909_s27 + $0x28] sm:$0xff] %v2545_v23  ;;  %v1292_v29 = vpop.f32.mrb[18].mxu1  ;;  %v1579_v31 = vadd.f32 %v1578_v25, %v1290_v24  ;;  %v1581_v33 = vpop.f32.mrb[18].mxu0 }
 0x147   : > { %v1293_v32 = vadd.f32 %v2891_v15, %v1292_v29  ;;  %v1294_v34 = vpop.f32.mrb[19].mxu1  ;;  %v1583_v35 = vpop.f32.mrb[19].mxu0 }
 0x148   : > { %2550 = vtanh.f32 %v1579_v31  ;;  %1504 = vmatmul.mubr.bf16.gmra.mrb[124].mxu1 %v2532_v27 }
 0x149   : > { %v1582_v36 = vadd.f32 %v1581_v33, %v1293_v32  ;;  %1793 = vmatmul.mubr.bf16.gmra.mrb[124].mxu0 %v2533_v30 }
 0x14a   : > { %v2547_v37 = vpop.eup %2546 }
 0x14b   : > { %2552 = vtanh.f32 %v1582_v36  ;;  %1871 = vst [vmem:[%s2909_s27 + $0x30] sm:$0xff] %v2547_v37  ;;  %v1297_v38 = vpop.f32.mrb[20].mxu1 }
 0x14c   : > { %v1298_v40 = vadd.f32 %v2891_v15, %v1297_v38  ;;  %v1586_v41 = vpop.f32.mrb[20].mxu0  ;;  %v1299_v42 = vpop.f32.mrb[21].mxu1 }
 0x14d   : > { %v2549_v39 = vpop.eup %2548  ;;  %v1588_v43 = vpop.f32.mrb[21].mxu0 }
 0x14e   : > { %1872 = vst [vmem:[%s2909_s27 + $0x38] sm:$0xff] %v2549_v39  ;;  %v1300_v44 = vpop.f32.mrb[22].mxu1  ;;  %v1587_v45 = vadd.f32 %v1586_v41, %v1298_v40  ;;  %v1589_v47 = vpop.f32.mrb[22].mxu0 }
 0x14f   : > { %v1301_v46 = vadd.f32 %v2891_v15, %v1300_v44  ;;  %v1302_v48 = vpop.f32.mrb[23].mxu1  ;;  %v1591_v49 = vpop.f32.mrb[23].mxu0 }
 0x150   : > { %2554 = vtanh.f32 %v1587_v45 }
 0x151   : > { %v1590_v50 = vadd.f32 %v1589_v47, %v1301_v46 }
 0x152   : > { %v2551_v51 = vpop.eup %2550 }
 0x153   : > { %2556 = vtanh.f32 %v1590_v50  ;;  %1873 = vst [vmem:[%s2909_s27 + $0x40] sm:$0xff] %v2551_v51  ;;  %v1305_v52 = vpop.f32.mrb[24].mxu1 }
 0x154   : > { %v1306_v54 = vadd.f32 %v2891_v15, %v1305_v52  ;;  %v1594_v55 = vpop.f32.mrb[24].mxu0  ;;  %v1307_v56 = vpop.f32.mrb[25].mxu1 }
 0x155   : > { %v2553_v53 = vpop.eup %2552  ;;  %v1596_v57 = vpop.f32.mrb[25].mxu0 }
 0x156   : > { %1874 = vst [vmem:[%s2909_s27 + $0x48] sm:$0xff] %v2553_v53  ;;  %v1308_v58 = vpop.f32.mrb[26].mxu1  ;;  %v1595_v59 = vadd.f32 %v1594_v55, %v1306_v54  ;;  %v1597_v61 = vpop.f32.mrb[26].mxu0 }
 0x157   : > { %v1309_v60 = vadd.f32 %v2891_v15, %v1308_v58  ;;  %v1310_v62 = vpop.f32.mrb[27].mxu1  ;;  %v1599_v63 = vpop.f32.mrb[27].mxu0 }
 0x158   : > { %2558 = vtanh.f32 %v1595_v59 }
 0x159   : > { %v1598_v0 = vadd.f32 %v1597_v61, %v1309_v60 }
 0x15a   : > { %v2555_v1 = vpop.eup %2554 }
 0x15b   : > { %2560 = vtanh.f32 %v1598_v0  ;;  %1875 = vst [vmem:[%s2909_s27 + $0x50] sm:$0xff] %v2555_v1  ;;  %v1313_v2 = vpop.f32.mrb[28].mxu1 }
 0x15c   : > { %v1314_v4 = vadd.f32 %v2891_v15, %v1313_v2  ;;  %v1602_v5 = vpop.f32.mrb[28].mxu0  ;;  %v1315_v6 = vpop.f32.mrb[29].mxu1 }
 0x15d   : > { %v2557_v3 = vpop.eup %2556  ;;  %v1604_v7 = vpop.f32.mrb[29].mxu0 }
 0x15e   : > { %1876 = vst [vmem:[%s2909_s27 + $0x58] sm:$0xff] %v2557_v3  ;;  %v1316_v8 = vpop.f32.mrb[30].mxu1  ;;  %v1603_v9 = vadd.f32 %v1602_v5, %v1314_v4  ;;  %v1605_v11 = vpop.f32.mrb[30].mxu0 }
 0x15f   : > { %v1317_v10 = vadd.f32 %v2891_v15, %v1316_v8  ;;  %v1318_v12 = vpop.f32.mrb[31].mxu1  ;;  %v1607_v13 = vpop.f32.mrb[31].mxu0 }
 0x160   : > { %2562 = vtanh.f32 %v1603_v9 }
 0x161   : > { %v1606_v14 = vadd.f32 %v1605_v11, %v1317_v10 }
 0x162   : > { %v2559_v16 = vpop.eup %2558 }
 0x163   : > { %2564 = vtanh.f32 %v1606_v14  ;;  %1877 = vst [vmem:[%s2909_s27 + $0x60] sm:$0xff] %v2559_v16  ;;  %v1321_v17 = vpop.f32.mrb[32].mxu1 }
 0x164   : > { %v1322_v19 = vadd.f32 %v2891_v15, %v1321_v17  ;;  %v1610_v20 = vpop.f32.mrb[32].mxu0  ;;  %v1323_v21 = vpop.f32.mrb[33].mxu1 }
 0x165   : > { %v2561_v18 = vpop.eup %2560  ;;  %v1612_v22 = vpop.f32.mrb[33].mxu0 }
 0x166   : > { %1878 = vst [vmem:[%s2909_s27 + $0x68] sm:$0xff] %v2561_v18  ;;  %v1324_v23 = vpop.f32.mrb[34].mxu1  ;;  %v1611_v24 = vadd.f32 %v1610_v20, %v1322_v19  ;;  %v1613_v26 = vpop.f32.mrb[34].mxu0 }
 0x167   : > { %v1325_v25 = vadd.f32 %v2891_v15, %v1324_v23  ;;  %v1326_v27 = vpop.f32.mrb[35].mxu1  ;;  %v1615_v28 = vpop.f32.mrb[35].mxu0 }
 0x168   : > { %2566 = vtanh.f32 %v1611_v24 }
 0x169   : > { %v1614_v29 = vadd.f32 %v1613_v26, %v1325_v25 }
 0x16a   : > { %v2563_v30 = vpop.eup %2562 }
 0x16b   : > { %2568 = vtanh.f32 %v1614_v29  ;;  %1879 = vst [vmem:[%s2909_s27 + $0x70] sm:$0xff] %v2563_v30  ;;  %v1329_v31 = vpop.f32.mrb[36].mxu1 }
 0x16c   : > { %v1330_v33 = vadd.f32 %v2891_v15, %v1329_v31  ;;  %v1618_v34 = vpop.f32.mrb[36].mxu0  ;;  %v1331_v35 = vpop.f32.mrb[37].mxu1 }
 0x16d   : > { %v2565_v32 = vpop.eup %2564  ;;  %v1620_v36 = vpop.f32.mrb[37].mxu0 }
 0x16e   : > { %1880 = vst [vmem:[%s2909_s27 + $0x78] sm:$0xff] %v2565_v32  ;;  %v1332_v37 = vpop.f32.mrb[38].mxu1  ;;  %v1619_v38 = vadd.f32 %v1618_v34, %v1330_v33  ;;  %v1621_v40 = vpop.f32.mrb[38].mxu0 }
 0x16f   : > { %v1333_v39 = vadd.f32 %v2891_v15, %v1332_v37  ;;  %v1334_v41 = vpop.f32.mrb[39].mxu1  ;;  %v1623_v42 = vpop.f32.mrb[39].mxu0 }
 0x170   : > { %2570 = vtanh.f32 %v1619_v38 }
 0x171   : > { %v1622_v43 = vadd.f32 %v1621_v40, %v1333_v39 }
 0x172   : > { %v2567_v44 = vpop.eup %2566 }
 0x173   : > { %2572 = vtanh.f32 %v1622_v43  ;;  %1881 = vst [vmem:[%s2909_s27 + $0x80] sm:$0xff] %v2567_v44  ;;  %v1337_v45 = vpop.f32.mrb[40].mxu1 }
 0x174   : > { %v1338_v47 = vadd.f32 %v2891_v15, %v1337_v45  ;;  %v1626_v48 = vpop.f32.mrb[40].mxu0  ;;  %v1339_v49 = vpop.f32.mrb[41].mxu1 }
 0x175   : > { %v2569_v46 = vpop.eup %2568  ;;  %v1628_v50 = vpop.f32.mrb[41].mxu0 }
 0x176   : > { %1882 = vst [vmem:[%s2909_s27 + $0x88] sm:$0xff] %v2569_v46  ;;  %v1340_v51 = vpop.f32.mrb[42].mxu1  ;;  %v1627_v52 = vadd.f32 %v1626_v48, %v1338_v47  ;;  %v1629_v54 = vpop.f32.mrb[42].mxu0 }
 0x177   : > { %v1341_v53 = vadd.f32 %v2891_v15, %v1340_v51  ;;  %v1342_v55 = vpop.f32.mrb[43].mxu1  ;;  %v1631_v56 = vpop.f32.mrb[43].mxu0 }
 0x178   : > { %2574 = vtanh.f32 %v1627_v52 }
 0x179   : > { %v1630_v57 = vadd.f32 %v1629_v54, %v1341_v53 }
 0x17a   : > { %v2571_v58 = vpop.eup %2570 }
 0x17b   : > { %2576 = vtanh.f32 %v1630_v57  ;;  %1883 = vst [vmem:[%s2909_s27 + $0x90] sm:$0xff] %v2571_v58  ;;  %v1345_v59 = vpop.f32.mrb[44].mxu1 }
 0x17c   : > { %v1346_v61 = vadd.f32 %v2891_v15, %v1345_v59  ;;  %v1634_v62 = vpop.f32.mrb[44].mxu0  ;;  %v1347_v63 = vpop.f32.mrb[45].mxu1 }
 0x17d   : > { %v2573_v60 = vpop.eup %2572  ;;  %v1636_v0 = vpop.f32.mrb[45].mxu0 }
 0x17e   : > { %1884 = vst [vmem:[%s2909_s27 + $0x98] sm:$0xff] %v2573_v60  ;;  %v1348_v1 = vpop.f32.mrb[46].mxu1  ;;  %v1635_v2 = vadd.f32 %v1634_v62, %v1346_v61  ;;  %v1637_v4 = vpop.f32.mrb[46].mxu0 }
 0x17f   : > { %v1349_v3 = vadd.f32 %v2891_v15, %v1348_v1  ;;  %v1350_v5 = vpop.f32.mrb[47].mxu1  ;;  %v1639_v6 = vpop.f32.mrb[47].mxu0 }
 0x180   : > { %2578 = vtanh.f32 %v1635_v2 }
 0x181   : > { %v1638_v7 = vadd.f32 %v1637_v4, %v1349_v3 }
 0x182   : > { %v2575_v8 = vpop.eup %2574 }
 0x183   : > { %2580 = vtanh.f32 %v1638_v7  ;;  %1885 = vst [vmem:[%s2909_s27 + $0xa0] sm:$0xff] %v2575_v8  ;;  %v1353_v9 = vpop.f32.mrb[48].mxu1 }
 0x184   : > { %v1354_v11 = vadd.f32 %v2891_v15, %v1353_v9  ;;  %v1642_v12 = vpop.f32.mrb[48].mxu0  ;;  %v1355_v13 = vpop.f32.mrb[49].mxu1 }
 0x185   : > { %v2577_v10 = vpop.eup %2576  ;;  %v1644_v14 = vpop.f32.mrb[49].mxu0 }
 0x186   : > { %1886 = vst [vmem:[%s2909_s27 + $0xa8] sm:$0xff] %v2577_v10  ;;  %v1356_v16 = vpop.f32.mrb[50].mxu1  ;;  %v1643_v17 = vadd.f32 %v1642_v12, %v1354_v11  ;;  %v1645_v19 = vpop.f32.mrb[50].mxu0 }
 0x187   : > { %v1357_v18 = vadd.f32 %v2891_v15, %v1356_v16  ;;  %v1358_v20 = vpop.f32.mrb[51].mxu1  ;;  %v1647_v21 = vpop.f32.mrb[51].mxu0 }
 0x188   : > { %2582 = vtanh.f32 %v1643_v17 }
 0x189   : > { %v1646_v22 = vadd.f32 %v1645_v19, %v1357_v18 }
 0x18a   : > { %v2579_v23 = vpop.eup %2578 }
 0x18b   : > { %2584 = vtanh.f32 %v1646_v22  ;;  %1887 = vst [vmem:[%s2909_s27 + $0xb0] sm:$0xff] %v2579_v23  ;;  %v1361_v24 = vpop.f32.mrb[52].mxu1 }
 0x18c   : > { %v1362_v26 = vadd.f32 %v2891_v15, %v1361_v24  ;;  %v1650_v27 = vpop.f32.mrb[52].mxu0  ;;  %v1363_v28 = vpop.f32.mrb[53].mxu1 }
 0x18d   : > { %v2581_v25 = vpop.eup %2580  ;;  %v1652_v29 = vpop.f32.mrb[53].mxu0 }
 0x18e   : > { %1888 = vst [vmem:[%s2909_s27 + $0xb8] sm:$0xff] %v2581_v25  ;;  %v1364_v30 = vpop.f32.mrb[54].mxu1  ;;  %v1651_v31 = vadd.f32 %v1650_v27, %v1362_v26  ;;  %v1653_v33 = vpop.f32.mrb[54].mxu0 }
 0x18f   : > { %v1365_v32 = vadd.f32 %v2891_v15, %v1364_v30  ;;  %v1366_v34 = vpop.f32.mrb[55].mxu1  ;;  %v1655_v35 = vpop.f32.mrb[55].mxu0 }
 0x190   : > { %2586 = vtanh.f32 %v1651_v31 }
 0x191   : > { %v1654_v36 = vadd.f32 %v1653_v33, %v1365_v32 }
 0x192   : > { %v2583_v37 = vpop.eup %2582 }
 0x193   : > { %2588 = vtanh.f32 %v1654_v36  ;;  %1889 = vst [vmem:[%s2909_s27 + $0xc0] sm:$0xff] %v2583_v37  ;;  %v1369_v38 = vpop.f32.mrb[56].mxu1 }
 0x194   : > { %v1370_v40 = vadd.f32 %v2891_v15, %v1369_v38  ;;  %v1658_v41 = vpop.f32.mrb[56].mxu0  ;;  %v1371_v42 = vpop.f32.mrb[57].mxu1 }
 0x195   : > { %v2585_v39 = vpop.eup %2584  ;;  %v1660_v43 = vpop.f32.mrb[57].mxu0 }
 0x196   : > { %1890 = vst [vmem:[%s2909_s27 + $0xc8] sm:$0xff] %v2585_v39  ;;  %v1372_v44 = vpop.f32.mrb[58].mxu1  ;;  %v1659_v45 = vadd.f32 %v1658_v41, %v1370_v40  ;;  %v1661_v47 = vpop.f32.mrb[58].mxu0 }
 0x197   : > { %v1373_v46 = vadd.f32 %v2891_v15, %v1372_v44  ;;  %v1374_v48 = vpop.f32.mrb[59].mxu1  ;;  %v1663_v49 = vpop.f32.mrb[59].mxu0 }
 0x198   : > { %2590 = vtanh.f32 %v1659_v45 }
 0x199   : > { %v1662_v50 = vadd.f32 %v1661_v47, %v1373_v46 }
 0x19a   : > { %v2587_v51 = vpop.eup %2586 }
 0x19b   : > { %2592 = vtanh.f32 %v1662_v50  ;;  %1891 = vst [vmem:[%s2909_s27 + $0xd0] sm:$0xff] %v2587_v51  ;;  %v1377_v52 = vpop.f32.mrb[60].mxu1 }
 0x19c   : > { %v1378_v54 = vadd.f32 %v2891_v15, %v1377_v52  ;;  %v1666_v55 = vpop.f32.mrb[60].mxu0  ;;  %v1379_v56 = vpop.f32.mrb[61].mxu1 }
 0x19d   : > { %v2589_v53 = vpop.eup %2588  ;;  %v1668_v57 = vpop.f32.mrb[61].mxu0 }
 0x19e   : > { %1892 = vst [vmem:[%s2909_s27 + $0xd8] sm:$0xff] %v2589_v53  ;;  %v1380_v58 = vpop.f32.mrb[62].mxu1  ;;  %v1667_v59 = vadd.f32 %v1666_v55, %v1378_v54  ;;  %v1669_v61 = vpop.f32.mrb[62].mxu0 }
 0x19f   : > { %v1381_v60 = vadd.f32 %v2891_v15, %v1380_v58  ;;  %v1382_v62 = vpop.f32.mrb[63].mxu1  ;;  %v1671_v63 = vpop.f32.mrb[63].mxu0 }
 0x1a0   : > { %2594 = vtanh.f32 %v1667_v59 }
 0x1a1   : > { %v1670_v0 = vadd.f32 %v1669_v61, %v1381_v60 }
 0x1a2   : > { %v2591_v1 = vpop.eup %2590 }
 0x1a3   : > { %2596 = vtanh.f32 %v1670_v0  ;;  %1893 = vst [vmem:[%s2909_s27 + $0xe0] sm:$0xff] %v2591_v1  ;;  %v1385_v2 = vpop.f32.mrb[64].mxu1 }
 0x1a4   : > { %v1386_v4 = vadd.f32 %v2891_v15, %v1385_v2  ;;  %v1674_v5 = vpop.f32.mrb[64].mxu0  ;;  %v1387_v6 = vpop.f32.mrb[65].mxu1 }
 0x1a5   : > { %v2593_v3 = vpop.eup %2592  ;;  %v1676_v7 = vpop.f32.mrb[65].mxu0 }
 0x1a6   : > { %1894 = vst [vmem:[%s2909_s27 + $0xe8] sm:$0xff] %v2593_v3  ;;  %v1388_v8 = vpop.f32.mrb[66].mxu1  ;;  %v1675_v9 = vadd.f32 %v1674_v5, %v1386_v4  ;;  %v1677_v11 = vpop.f32.mrb[66].mxu0 }
 0x1a7   : > { %v1389_v10 = vadd.f32 %v2891_v15, %v1388_v8  ;;  %v1390_v12 = vpop.f32.mrb[67].mxu1  ;;  %v1679_v13 = vpop.f32.mrb[67].mxu0 }
 0x1a8   : > { %2598 = vtanh.f32 %v1675_v9 }
 0x1a9   : > { %v1678_v14 = vadd.f32 %v1677_v11, %v1389_v10 }
 0x1aa   : > { %v2595_v16 = vpop.eup %2594 }
 0x1ab   : > { %2600 = vtanh.f32 %v1678_v14  ;;  %1895 = vst [vmem:[%s2909_s27 + $0xf0] sm:$0xff] %v2595_v16  ;;  %v1393_v17 = vpop.f32.mrb[68].mxu1 }
 0x1ac   : > { %v1394_v19 = vadd.f32 %v2891_v15, %v1393_v17  ;;  %v1682_v20 = vpop.f32.mrb[68].mxu0  ;;  %v1395_v21 = vpop.f32.mrb[69].mxu1 }
 0x1ad   : > { %v2597_v18 = vpop.eup %2596  ;;  %v1684_v22 = vpop.f32.mrb[69].mxu0 }
 0x1ae   : > { %1896 = vst [vmem:[%s2909_s27 + $0xf8] sm:$0xff] %v2597_v18  ;;  %v1396_v23 = vpop.f32.mrb[70].mxu1  ;;  %v1683_v24 = vadd.f32 %v1682_v20, %v1394_v19  ;;  %v1685_v26 = vpop.f32.mrb[70].mxu0 }
 0x1af   : > { %v1397_v25 = vadd.f32 %v2891_v15, %v1396_v23  ;;  %v1398_v27 = vpop.f32.mrb[71].mxu1  ;;  %v1687_v28 = vpop.f32.mrb[71].mxu0 }
 0x1b0   : > { %2602 = vtanh.f32 %v1683_v24 }
 0x1b1   : > { %v1686_v29 = vadd.f32 %v1685_v26, %v1397_v25 }
 0x1b2   : > { %v2599_v30 = vpop.eup %2598 }
 0x1b3   : > { %2604 = vtanh.f32 %v1686_v29  ;;  %1897 = vst [vmem:[%s2909_s27 + $0x100] sm:$0xff] %v2599_v30  ;;  %v1401_v31 = vpop.f32.mrb[72].mxu1 }
 0x1b4   : > { %v1402_v33 = vadd.f32 %v2891_v15, %v1401_v31  ;;  %v1690_v34 = vpop.f32.mrb[72].mxu0  ;;  %v1403_v35 = vpop.f32.mrb[73].mxu1 }
 0x1b5   : > { %v2601_v32 = vpop.eup %2600  ;;  %v1692_v36 = vpop.f32.mrb[73].mxu0 }
 0x1b6   : > { %1898 = vst [vmem:[%s2909_s27 + $0x108] sm:$0xff] %v2601_v32  ;;  %v1404_v37 = vpop.f32.mrb[74].mxu1  ;;  %v1691_v38 = vadd.f32 %v1690_v34, %v1402_v33  ;;  %v1693_v40 = vpop.f32.mrb[74].mxu0 }
 0x1b7   : > { %v1405_v39 = vadd.f32 %v2891_v15, %v1404_v37  ;;  %v1406_v41 = vpop.f32.mrb[75].mxu1  ;;  %v1695_v42 = vpop.f32.mrb[75].mxu0 }
 0x1b8   : > { %2606 = vtanh.f32 %v1691_v38 }
 0x1b9   : > { %v1694_v43 = vadd.f32 %v1693_v40, %v1405_v39 }
 0x1ba   : > { %v2603_v44 = vpop.eup %2602 }
 0x1bb   : > { %2608 = vtanh.f32 %v1694_v43  ;;  %1899 = vst [vmem:[%s2909_s27 + $0x110] sm:$0xff] %v2603_v44  ;;  %v1409_v45 = vpop.f32.mrb[76].mxu1 }
 0x1bc   : > { %v1410_v47 = vadd.f32 %v2891_v15, %v1409_v45  ;;  %v1698_v48 = vpop.f32.mrb[76].mxu0  ;;  %v1411_v49 = vpop.f32.mrb[77].mxu1 }
 0x1bd   : > { %v2605_v46 = vpop.eup %2604  ;;  %v1700_v50 = vpop.f32.mrb[77].mxu0 }
 0x1be   : > { %1900 = vst [vmem:[%s2909_s27 + $0x118] sm:$0xff] %v2605_v46  ;;  %v1412_v51 = vpop.f32.mrb[78].mxu1  ;;  %v1699_v52 = vadd.f32 %v1698_v48, %v1410_v47  ;;  %v1701_v54 = vpop.f32.mrb[78].mxu0 }
 0x1bf   : > { %v1413_v53 = vadd.f32 %v2891_v15, %v1412_v51  ;;  %v1414_v55 = vpop.f32.mrb[79].mxu1  ;;  %v1703_v56 = vpop.f32.mrb[79].mxu0 }
 0x1c0   : > { %2610 = vtanh.f32 %v1699_v52 }
 0x1c1   : > { %v1702_v57 = vadd.f32 %v1701_v54, %v1413_v53 }
 0x1c2   : > { %v2607_v58 = vpop.eup %2606 }
 0x1c3   : > { %2612 = vtanh.f32 %v1702_v57  ;;  %1901 = vst [vmem:[%s2909_s27 + $0x120] sm:$0xff] %v2607_v58  ;;  %v1417_v59 = vpop.f32.mrb[80].mxu1 }
 0x1c4   : > { %v1418_v61 = vadd.f32 %v2891_v15, %v1417_v59  ;;  %v1706_v62 = vpop.f32.mrb[80].mxu0  ;;  %v1419_v63 = vpop.f32.mrb[81].mxu1 }
 0x1c5   : > { %v2609_v60 = vpop.eup %2608  ;;  %v1708_v0 = vpop.f32.mrb[81].mxu0 }
 0x1c6   : > { %1902 = vst [vmem:[%s2909_s27 + $0x128] sm:$0xff] %v2609_v60  ;;  %v1420_v1 = vpop.f32.mrb[82].mxu1  ;;  %v1707_v2 = vadd.f32 %v1706_v62, %v1418_v61  ;;  %v1709_v4 = vpop.f32.mrb[82].mxu0 }
 0x1c7   : > { %v1421_v3 = vadd.f32 %v2891_v15, %v1420_v1  ;;  %v1422_v5 = vpop.f32.mrb[83].mxu1  ;;  %v1711_v6 = vpop.f32.mrb[83].mxu0 }
 0x1c8   : > { %2614 = vtanh.f32 %v1707_v2 }
 0x1c9   : > { %v1710_v7 = vadd.f32 %v1709_v4, %v1421_v3 }
 0x1ca   : > { %v2611_v8 = vpop.eup %2610 }
 0x1cb   : > { %2616 = vtanh.f32 %v1710_v7  ;;  %1903 = vst [vmem:[%s2909_s27 + $0x130] sm:$0xff] %v2611_v8  ;;  %v1425_v9 = vpop.f32.mrb[84].mxu1 }
 0x1cc   : > { %v1426_v11 = vadd.f32 %v2891_v15, %v1425_v9  ;;  %v1714_v12 = vpop.f32.mrb[84].mxu0  ;;  %v1427_v13 = vpop.f32.mrb[85].mxu1 }
 0x1cd   : > { %v2613_v10 = vpop.eup %2612  ;;  %v1716_v14 = vpop.f32.mrb[85].mxu0 }
 0x1ce   : > { %1904 = vst [vmem:[%s2909_s27 + $0x138] sm:$0xff] %v2613_v10  ;;  %v1428_v16 = vpop.f32.mrb[86].mxu1  ;;  %v1715_v17 = vadd.f32 %v1714_v12, %v1426_v11  ;;  %v1717_v19 = vpop.f32.mrb[86].mxu0 }
 0x1cf   : > { %v1429_v18 = vadd.f32 %v2891_v15, %v1428_v16  ;;  %v1430_v20 = vpop.f32.mrb[87].mxu1  ;;  %v1719_v21 = vpop.f32.mrb[87].mxu0 }
 0x1d0   : > { %2618 = vtanh.f32 %v1715_v17 }
 0x1d1   : > { %v1718_v22 = vadd.f32 %v1717_v19, %v1429_v18 }
 0x1d2   : > { %v2615_v23 = vpop.eup %2614 }
 0x1d3   : > { %2620 = vtanh.f32 %v1718_v22  ;;  %1905 = vst [vmem:[%s2909_s27 + $0x140] sm:$0xff] %v2615_v23  ;;  %v1433_v24 = vpop.f32.mrb[88].mxu1 }
 0x1d4   : > { %v1434_v26 = vadd.f32 %v2891_v15, %v1433_v24  ;;  %v1722_v27 = vpop.f32.mrb[88].mxu0  ;;  %v1435_v28 = vpop.f32.mrb[89].mxu1 }
 0x1d5   : > { %v2617_v25 = vpop.eup %2616  ;;  %v1724_v29 = vpop.f32.mrb[89].mxu0 }
 0x1d6   : > { %1906 = vst [vmem:[%s2909_s27 + $0x148] sm:$0xff] %v2617_v25  ;;  %v1436_v30 = vpop.f32.mrb[90].mxu1  ;;  %v1723_v31 = vadd.f32 %v1722_v27, %v1434_v26  ;;  %v1725_v33 = vpop.f32.mrb[90].mxu0  ;;  %v3023_v25 = vld [vmem:[%s3055_s2] ss:$0 sm:$0xff] }
 0x1d7   : > { %v1437_v32 = vadd.f32 %v2891_v15, %v1436_v30  ;;  %v1438_v34 = vpop.f32.mrb[91].mxu1  ;;  %v1727_v35 = vpop.f32.mrb[91].mxu0 }
 0x1d8   : > { %2622 = vtanh.f32 %v1723_v31 }
 0x1d9   : > { %v1726_v36 = vadd.f32 %v1725_v33, %v1437_v32 }
 0x1da   : > { %v2619_v37 = vpop.eup %2618 }
 0x1db   : > { %2624 = vtanh.f32 %v1726_v36  ;;  %1907 = vst [vmem:[%s2909_s27 + $0x150] sm:$0xff] %v2619_v37  ;;  %v1441_v38 = vpop.f32.mrb[92].mxu1 }
 0x1dc   : > { %v1442_v40 = vadd.f32 %v2891_v15, %v1441_v38  ;;  %v1730_v41 = vpop.f32.mrb[92].mxu0  ;;  %v1443_v42 = vpop.f32.mrb[93].mxu1 }
 0x1dd   : > { %v2621_v39 = vpop.eup %2620  ;;  %v1732_v43 = vpop.f32.mrb[93].mxu0 }
 0x1de   : > { %1908 = vst [vmem:[%s2909_s27 + $0x158] sm:$0xff] %v2621_v39  ;;  %v1444_v44 = vpop.f32.mrb[94].mxu1  ;;  %v1731_v45 = vadd.f32 %v1730_v41, %v1442_v40  ;;  %v1733_v47 = vpop.f32.mrb[94].mxu0 }
 0x1df   : > { %v1445_v46 = vadd.f32 %v2891_v15, %v1444_v44  ;;  %v1446_v48 = vpop.f32.mrb[95].mxu1  ;;  %v1735_v49 = vpop.f32.mrb[95].mxu0 }
 0x1e0   : > { %2626 = vtanh.f32 %v1731_v45 }
 0x1e1   : > { %v1734_v50 = vadd.f32 %v1733_v47, %v1445_v46 }
 0x1e2   : > { %v2623_v51 = vpop.eup %2622 }
 0x1e3   : > { %2628 = vtanh.f32 %v1734_v50  ;;  %1909 = vst [vmem:[%s2909_s27 + $0x160] sm:$0xff] %v2623_v51  ;;  %v1449_v52 = vpop.f32.mrb[96].mxu1 }
 0x1e4   : > { %v1450_v54 = vadd.f32 %v2891_v15, %v1449_v52  ;;  %v1738_v55 = vpop.f32.mrb[96].mxu0  ;;  %v1451_v56 = vpop.f32.mrb[97].mxu1 }
 0x1e5   : > { %v2625_v53 = vpop.eup %2624  ;;  %v1740_v57 = vpop.f32.mrb[97].mxu0 }
 0x1e6   : > { %1910 = vst [vmem:[%s2909_s27 + $0x168] sm:$0xff] %v2625_v53  ;;  %v1452_v58 = vpop.f32.mrb[98].mxu1  ;;  %v1739_v59 = vadd.f32 %v1738_v55, %v1450_v54  ;;  %v1741_v61 = vpop.f32.mrb[98].mxu0 }
 0x1e7   : > { %v1453_v60 = vadd.f32 %v2891_v15, %v1452_v58  ;;  %v1454_v62 = vpop.f32.mrb[99].mxu1  ;;  %v1743_v63 = vpop.f32.mrb[99].mxu0 }
 0x1e8   : > { %2630 = vtanh.f32 %v1739_v59 }
 0x1e9   : > { %v1742_v0 = vadd.f32 %v1741_v61, %v1453_v60 }
 0x1ea   : > { %v2627_v1 = vpop.eup %2626 }
 0x1eb   : > { %2632 = vtanh.f32 %v1742_v0  ;;  %1911 = vst [vmem:[%s2909_s27 + $0x170] sm:$0xff] %v2627_v1  ;;  %v1457_v2 = vpop.f32.mrb[100].mxu1 }
 0x1ec   : > { %v1458_v4 = vadd.f32 %v2891_v15, %v1457_v2  ;;  %v1746_v5 = vpop.f32.mrb[100].mxu0  ;;  %v1459_v6 = vpop.f32.mrb[101].mxu1 }
 0x1ed   : > { %v2629_v3 = vpop.eup %2628  ;;  %v1748_v7 = vpop.f32.mrb[101].mxu0 }
 0x1ee   : > { %1912 = vst [vmem:[%s2909_s27 + $0x178] sm:$0xff] %v2629_v3  ;;  %v1460_v8 = vpop.f32.mrb[102].mxu1  ;;  %v1747_v9 = vadd.f32 %v1746_v5, %v1458_v4  ;;  %v1749_v11 = vpop.f32.mrb[102].mxu0 }
 0x1ef   : > { %v1461_v10 = vadd.f32 %v2891_v15, %v1460_v8  ;;  %v1462_v12 = vpop.f32.mrb[103].mxu1  ;;  %v1751_v13 = vpop.f32.mrb[103].mxu0 }
 0x1f0   : > { %2634 = vtanh.f32 %v1747_v9 }
 0x1f1   : > { %v1750_v14 = vadd.f32 %v1749_v11, %v1461_v10 }
 0x1f2   : > { %v2631_v16 = vpop.eup %2630 }
 0x1f3   : > { %2636 = vtanh.f32 %v1750_v14  ;;  %1913 = vst [vmem:[%s2909_s27 + $0x180] sm:$0xff] %v2631_v16  ;;  %v1465_v17 = vpop.f32.mrb[104].mxu1 }
 0x1f4   : > { %v1466_v19 = vadd.f32 %v2891_v15, %v1465_v17  ;;  %v1754_v20 = vpop.f32.mrb[104].mxu0  ;;  %v1467_v21 = vpop.f32.mrb[105].mxu1 }
 0x1f5   : > { %v2633_v18 = vpop.eup %2632  ;;  %v1756_v22 = vpop.f32.mrb[105].mxu0 }
 0x1f6   : > { %1914 = vst [vmem:[%s2909_s27 + $0x188] sm:$0xff] %v2633_v18  ;;  %v1468_v23 = vpop.f32.mrb[106].mxu1  ;;  %v1755_v24 = vadd.f32 %v1754_v20, %v1466_v19  ;;  %v1757_v27 = vpop.f32.mrb[106].mxu0 }
 0x1f7   : > { %v1469_v26 = vadd.f32 %v3023_v25, %v1468_v23  ;;  %v1470_v28 = vpop.f32.mrb[107].mxu1  ;;  %v1759_v29 = vpop.f32.mrb[107].mxu0 }
 0x1f8   : > { %2638 = vtanh.f32 %v1755_v24 }
 0x1f9   : > { %v1758_v15 = vadd.f32 %v1757_v27, %v1469_v26 }
 0x1fa   : > { %v2635_v30 = vpop.eup %2634 }
 0x1fb   : > { %2640 = vtanh.f32 %v1758_v15  ;;  %1915 = vst [vmem:[%s2909_s27 + $0x190] sm:$0xff] %v2635_v30  ;;  %v1473_v31 = vpop.f32.mrb[108].mxu1 }
 0x1fc   : > { %v1474_v33 = vadd.f32 %v3023_v25, %v1473_v31  ;;  %v1762_v34 = vpop.f32.mrb[108].mxu0  ;;  %v1475_v35 = vpop.f32.mrb[109].mxu1 }
 0x1fd   : > { %v2637_v32 = vpop.eup %2636  ;;  %v1764_v36 = vpop.f32.mrb[109].mxu0 }
 0x1fe   : > { %1916 = vst [vmem:[%s2909_s27 + $0x198] sm:$0xff] %v2637_v32  ;;  %v1476_v37 = vpop.f32.mrb[110].mxu1  ;;  %v1763_v38 = vadd.f32 %v1762_v34, %v1474_v33  ;;  %v1765_v40 = vpop.f32.mrb[110].mxu0 }
 0x1ff   : > { %v1477_v39 = vadd.f32 %v3023_v25, %v1476_v37  ;;  %v1478_v41 = vpop.f32.mrb[111].mxu1  ;;  %v1767_v42 = vpop.f32.mrb[111].mxu0 }
 0x200   : > { %2642 = vtanh.f32 %v1763_v38 }
 0x201   : > { %v1766_v43 = vadd.f32 %v1765_v40, %v1477_v39 }
 0x202   : > { %v2639_v44 = vpop.eup %2638 }
 0x203   : > { %2644 = vtanh.f32 %v1766_v43  ;;  %1917 = vst [vmem:[%s2909_s27 + $0x1a0] sm:$0xff] %v2639_v44  ;;  %v1481_v45 = vpop.f32.mrb[112].mxu1 }
 0x204   : > { %v1482_v47 = vadd.f32 %v3023_v25, %v1481_v45  ;;  %v1770_v48 = vpop.f32.mrb[112].mxu0  ;;  %v1483_v49 = vpop.f32.mrb[113].mxu1 }
 0x205   : > { %v2641_v46 = vpop.eup %2640  ;;  %v1772_v50 = vpop.f32.mrb[113].mxu0 }
 0x206   : > { %1918 = vst [vmem:[%s2909_s27 + $0x1a8] sm:$0xff] %v2641_v46  ;;  %v1484_v51 = vpop.f32.mrb[114].mxu1  ;;  %v1771_v52 = vadd.f32 %v1770_v48, %v1482_v47  ;;  %v1773_v54 = vpop.f32.mrb[114].mxu0 }
 0x207   : > { %v1485_v53 = vadd.f32 %v3023_v25, %v1484_v51  ;;  %v1486_v55 = vpop.f32.mrb[115].mxu1  ;;  %v1775_v56 = vpop.f32.mrb[115].mxu0 }
 0x208   : > { %2646 = vtanh.f32 %v1771_v52 }
 0x209   : > { %v1774_v57 = vadd.f32 %v1773_v54, %v1485_v53 }
 0x20a   : > { %v2643_v58 = vpop.eup %2642 }
 0x20b   : > { %2648 = vtanh.f32 %v1774_v57  ;;  %1919 = vst [vmem:[%s2909_s27 + $0x1b0] sm:$0xff] %v2643_v58  ;;  %v1489_v59 = vpop.f32.mrb[116].mxu1 }
 0x20c   : > { %v1490_v61 = vadd.f32 %v3023_v25, %v1489_v59  ;;  %v1778_v62 = vpop.f32.mrb[116].mxu0  ;;  %v1491_v63 = vpop.f32.mrb[117].mxu1 }
 0x20d   : > { %v2645_v60 = vpop.eup %2644  ;;  %v1780_v0 = vpop.f32.mrb[117].mxu0 }
 0x20e   : > { %1920 = vst [vmem:[%s2909_s27 + $0x1b8] sm:$0xff] %v2645_v60  ;;  %v1492_v1 = vpop.f32.mrb[118].mxu1  ;;  %v1779_v2 = vadd.f32 %v1778_v62, %v1490_v61  ;;  %v1781_v4 = vpop.f32.mrb[118].mxu0 }
 0x20f   : > { %v1493_v3 = vadd.f32 %v3023_v25, %v1492_v1  ;;  %v1494_v5 = vpop.f32.mrb[119].mxu1  ;;  %v1783_v6 = vpop.f32.mrb[119].mxu0 }
 0x210   : > { %2650 = vtanh.f32 %v1779_v2 }
 0x211   : > { %v1782_v7 = vadd.f32 %v1781_v4, %v1493_v3 }
 0x212   : > { %v2647_v8 = vpop.eup %2646 }
 0x213   : > { %2652 = vtanh.f32 %v1782_v7  ;;  %1921 = vst [vmem:[%s2909_s27 + $0x1c0] sm:$0xff] %v2647_v8  ;;  %v1497_v9 = vpop.f32.mrb[120].mxu1 }
 0x214   : > { %v1498_v11 = vadd.f32 %v3023_v25, %v1497_v9  ;;  %v1786_v12 = vpop.f32.mrb[120].mxu0  ;;  %v1499_v13 = vpop.f32.mrb[121].mxu1 }
 0x215   : > { %v2649_v10 = vpop.eup %2648  ;;  %v1788_v14 = vpop.f32.mrb[121].mxu0 }
 0x216   : > { %1922 = vst [vmem:[%s2909_s27 + $0x1c8] sm:$0xff] %v2649_v10  ;;  %v1500_v16 = vpop.f32.mrb[122].mxu1  ;;  %v1787_v17 = vadd.f32 %v1786_v12, %v1498_v11  ;;  %v1789_v19 = vpop.f32.mrb[122].mxu0 }
 0x217   : > { %v1501_v18 = vadd.f32 %v3023_v25, %v1500_v16  ;;  %v1502_v20 = vpop.f32.mrb[123].mxu1  ;;  %v1791_v21 = vpop.f32.mrb[123].mxu0 }
 0x218   : > { %2654 = vtanh.f32 %v1787_v17 }
 0x219   : > { %v1790_v22 = vadd.f32 %v1789_v19, %v1501_v18 }
 0x21a   : > { %v2651_v23 = vpop.eup %2650 }
 0x21b   : > { %2656 = vtanh.f32 %v1790_v22  ;;  %1923 = vst [vmem:[%s2909_s27 + $0x1d0] sm:$0xff] %v2651_v23  ;;  %v1505_v24 = vpop.f32.mrb[124].mxu1 }
 0x21c   : > { %v1506_v27 = vadd.f32 %v3023_v25, %v1505_v24  ;;  %v1794_v28 = vpop.f32.mrb[124].mxu0  ;;  %v1507_v29 = vpop.f32.mrb[125].mxu1 }
 0x21d   : > { %v2653_v26 = vpop.eup %2652  ;;  %v1796_v15 = vpop.f32.mrb[125].mxu0 }
 0x21e   : > { %1924 = vst [vmem:[%s2909_s27 + $0x1d8] sm:$0xff] %v2653_v26  ;;  %v1508_v30 = vpop.f32.mrb[126].mxu1  ;;  %v1795_v31 = vadd.f32 %v1794_v28, %v1506_v27  ;;  %v1797_v33 = vpop.f32.mrb[126].mxu0 }
 0x21f   : > { %v1509_v32 = vadd.f32 %v3023_v25, %v1508_v30  ;;  %v1510_v34 = vpop.f32.mrb[127].mxu1  ;;  %v1799_v35 = vpop.f32.mrb[127].mxu0 }
 0x220   : > { %2658 = vtanh.f32 %v1795_v31 }
 0x221   : > { %v1798_v36 = vadd.f32 %v1797_v33, %v1509_v32 }
 0x222   : > { %v2655_v37 = vpop.eup %2654 }
 0x223   : > { %2660 = vtanh.f32 %v1798_v36  ;;  %1925 = vst [vmem:[%s2909_s27 + $0x1e0] sm:$0xff] %v2655_v37 }
 0x225   : > { %v2657_v38 = vpop.eup %2656 }
 0x226   : > { %1926 = vst [vmem:[%s2909_s27 + $0x1e8] sm:$0xff] %v2657_v38 }
 0x22a   : > { %v2659_v39 = vpop.eup %2658 }
 0x22b   : > { %1927 = vst [vmem:[%s2909_s27 + $0x1f0] sm:$0xff] %v2659_v39 }
 0x22d   : > { %v2661_v40 = vpop.eup %2660 }
 0x22e   : > { %1928 = vst [vmem:[%s2909_s27 + $0x1f8] sm:$0xff] %v2661_v40 }
 0x22f PF: > { %s13_s12 = sadd.s32 1, %s2669_s12  }
 0x230   : > { %p10_p4 = scmp.ge.s32.totalorder %s13_s12, 6  }
 0x232   :  { %12 = sbr.rel (!%p10_p4) target bundleno = 1 (0x1), region = 65 }

</bundles_post_ra>
